<compile_context>
chip_gen: v6e
topology: v6e:2x2x1
jax: 0.10.0
libtpu: 0.0.40
codegen_flags: <defaults>
</compile_context>

<pallas_src>
import math

import jax
import jax.numpy as jnp
from jax.experimental import pallas as pl
from jax.experimental.pallas import tpu as pltpu

# -------- deterministic "parameters" (VSI.__init__ defaults) ----------------
VALUE_RANGE = 1.0
C1 = 1.27
C2 = 386.0 / 255.0 ** 2
C3 = 130.0 / 255.0 ** 2
ALPHA = 0.4
BETA = 0.02
SIGMA_C = 0.001
SIGMA_D = 145.0
OMEGA_0 = 0.021
SIGMA_F = 1.34

# sRGB -> XYZ (D65) and XYZ white point; RGB -> LMN (FSIM/VSI convention).
_RGB2XYZ = [[0.412453, 0.357580, 0.180423],
            [0.212671, 0.715160, 0.072169],
            [0.019334, 0.119193, 0.950227]]
_XYZ_WHITE = [0.950456, 1.0, 1.088754]
_RGB2LMN = [[0.06, 0.63, 0.27],
            [0.30, 0.04, -0.35],
            [0.34, -0.60, 0.17]]


# -------- pure-jnp helpers (traced inside the Pallas kernel and in glue) -----
def _rgb_to_lab(r, g, b):
    r = r / VALUE_RANGE
    g = g / VALUE_RANGE
    b = b / VALUE_RANGE
    X = _RGB2XYZ[0][0] * r + _RGB2XYZ[0][1] * g + _RGB2XYZ[0][2] * b
    Y = _RGB2XYZ[1][0] * r + _RGB2XYZ[1][1] * g + _RGB2XYZ[1][2] * b
    Z = _RGB2XYZ[2][0] * r + _RGB2XYZ[2][1] * g + _RGB2XYZ[2][2] * b
    X = X / _XYZ_WHITE[0]
    Y = Y / _XYZ_WHITE[1]
    Z = Z / _XYZ_WHITE[2]
    eps = 216.0 / 24389.0
    kappa = 24389.0 / 27.0

    def f(t):
        t_safe = jnp.maximum(t, 1e-12)
        return jnp.where(t > eps, jnp.exp(jnp.log(t_safe) / 3.0), (kappa * t + 16.0) / 116.0)

    fx, fy, fz = f(X), f(Y), f(Z)
    L = 116.0 * fy - 16.0
    A = 500.0 * (fx - fy)
    B = 200.0 * (fy - fz)
    return L, A, B


def _rgb_to_lmn(r, g, b):
    l_ = _RGB2LMN[0][0] * r + _RGB2LMN[0][1] * g + _RGB2LMN[0][2] * b
    m_ = _RGB2LMN[1][0] * r + _RGB2LMN[1][1] * g + _RGB2LMN[1][2] * b
    n_ = _RGB2LMN[2][0] * r + _RGB2LMN[2][1] * g + _RGB2LMN[2][2] * b
    return l_, m_, n_


def _spectral_chunk(xc, cs, csbd, cs4, filt):
    """Re(ifft2(fft2(plane) * filt)) for PPC lane-packed (W-wide) planes.

    xc:   (H, CW)   PPC planes side by side along lanes
    cs:   (2H, H)   [C; S] stacked row-DFT matrices
    csbd: (CW, 2CW) [kron(I,C) | kron(I,S)] block-diag column-DFT matrices
    cs4:  (2CW, CW) [kron(I,C); -kron(I,S)] for the final stage
    filt: (H, CW)   log-Gabor filter, pre-scaled by 1/(H*W), lane-tiled
    """
    f32 = jnp.float32
    H = cs.shape[1]
    CW = xc.shape[1]
    t = jnp.dot(cs, xc, preferred_element_type=f32)          # [C X; S X]        (2H, CW)
    m2 = jnp.dot(t, csbd, preferred_element_type=f32)        # [CXC CXS; SXC SXS](2H, 2CW)
    z_r = (m2[:H, :CW] - m2[H:, CW:]) * filt                 # Re(fft2) * filt
    z_i = -(m2[H:, :CW] + m2[:H, CW:]) * filt                # Im(fft2) * filt
    a3 = jnp.dot(cs, z_r, preferred_element_type=f32)        # [C Zr; S Zr]
    b3 = jnp.dot(cs, z_i, preferred_element_type=f32)        # [C Zi; S Zi]
    u_r = a3[:H] - b3[H:]
    u_i = b3[:H] + a3[H:]
    uv = jnp.concatenate([u_r, u_i], axis=1)                 # (H, 2CW)
    return jnp.dot(uv, cs4, preferred_element_type=f32)      # U_r Cbd - U_i Sbd


# ------------------------------- wrapper -------------------------------------
def make_vsi_fn(N, H, W):
    """Builds the Pallas VSI forward (reduction='mean') for (N, 3, H, W) inputs."""
    assert H == W, "reference s_d broadcasting / DFT packing requires square spatial dims"

    # ---- batch / lane layout: keep every image block a multiple of 128 lanes ----
    if W % 128 == 0:
        NB = 1                       # already lane-aligned; grid = N keeps both v7x TCs busy
    elif 128 % W == 0:
        NB = 128 // W                # pack images until one block spans full vregs
    else:
        NB = N                       # fallback: whole batch per step (block == full array)
    N_pad = ((N + NB - 1) // NB) * NB
    G = N_pad // NB                  # grid steps
    NBW = NB * W                     # lanes of the x (or y) half of a block
    DW = 2 * NBW                     # lanes of the combined x|y slab
    TNB = 2 * NB                     # images (x and y) per block

    # planes per spectral chunk: block-diagonal DFT tile of width <= max(W, 256)
    cap = max(W, 256)
    PPC = 1
    for d in range(1, TNB + 1):
        if TNB % d == 0 and d * W <= cap:
            PPC = d
    CW = PPC * W
    NCH = DW // CW

    # ---- constants (glue) ----
    # log-Gabor SDSP filter, pre-scaled by 1/(H*W), lane-tiled to one chunk.
    fu = jnp.asarray(jnp.fft.fftfreq(H), jnp.float32)
    fv = jnp.asarray(jnp.fft.fftfreq(W), jnp.float32)
    U, V = jnp.meshgrid(fu, fv, indexing="ij")
    r = jnp.sqrt(U * U + V * V)
    r_safe = jnp.where(r > 0, r, 1.0)
    filtr = jnp.exp(-(jnp.log(r_safe / OMEGA_0)) ** 2 / (2.0 * math.log(SIGMA_F) ** 2))
    filtr = jnp.where(r > 0, filtr, 0.0) * (r <= 0.5).astype(jnp.float32)
    filt_pack = jnp.tile(filtr / float(H * W), (1, PPC))                  # (H, CW)

    # stacked cos/sin DFT matrices (H == W, one pair serves rows and columns)
    ah = jnp.arange(H, dtype=jnp.float32)
    ang = 2.0 * math.pi * jnp.outer(ah, ah) / H
    dc, dsn = jnp.cos(ang), jnp.sin(ang)
    CS = jnp.concatenate([dc, dsn], axis=0)                               # (2H, H)
    eye_p = jnp.eye(PPC, dtype=jnp.float32)
    cbd, sbd = jnp.kron(eye_p, dc), jnp.kron(eye_p, dsn)                  # (CW, CW)
    CSBD = jnp.concatenate([cbd, sbd], axis=1)                            # (CW, 2CW)
    CS4 = jnp.concatenate([cbd, -sbd], axis=0)                            # (2CW, CW)

    # vertical taps of the separable Scharr kernels (/16 folded in)
    e_m1 = jnp.eye(H, k=-1, dtype=jnp.float32)
    e_0 = jnp.eye(H, dtype=jnp.float32)
    e_p1 = jnp.eye(H, k=1, dtype=jnp.float32)
    VMAT = jnp.stack([(3.0 * e_m1 + 10.0 * e_0 + 3.0 * e_p1) / 16.0,
                      (e_p1 - e_m1) / 16.0])                              # (2, H, H)

    # center prior s_d, tiled over the 2*NB images of a block
    a_idx = jnp.arange(H, dtype=jnp.float32) - (H - 1) / 2.0
    b_idx = jnp.arange(W, dtype=jnp.float32) - (W - 1) / 2.0
    s_d = jnp.exp(-(a_idx[:, None] ** 2 + b_idx[None, :] ** 2) / SIGMA_D ** 2)
    sd_pack = jnp.tile(s_d, (1, TNB))                                     # (H, DW)

    # segment selectors: broadcast per-image scalars to lanes / reduce lanes per image
    SEGB = jnp.kron(jnp.eye(TNB, dtype=jnp.float32),
                    jnp.ones((1, W), jnp.float32))                        # (TNB, DW)
    SEG = jnp.kron(jnp.eye(NB, dtype=jnp.float32),
                   jnp.ones((W, 1), jnp.float32))                         # (NBW, NB)

    cos_bpi = math.cos(BETA * math.pi)
    c2 = C2 * VALUE_RANGE ** 2
    c3 = C3 * VALUE_RANGE ** 2

    # ------------------------------- the kernel -------------------------------
    def vsi_kernel(xy_ref, filt_ref, cs_ref, csbd_ref, cs4_ref, vmat_ref,
                   sd_ref, segb_ref, seg_ref, out_ref):
        f32 = jnp.float32
        cs = cs_ref[...]
        csbd = csbd_ref[...]
        cs4 = cs4_ref[...]
        filt = filt_ref[...]
        v_smooth, v_diff = vmat_ref[0], vmat_ref[1]
        sd = sd_ref[...]
        segb = segb_ref[...]
        seg = seg_ref[...]

        r_, g_, b_ = xy_ref[0], xy_ref[1], xy_ref[2]       # (H, DW): x images | y images

        # --- SDSP: Lab conversion once + chunked spectral filtering ---
        L, A, B = _rgb_to_lab(r_, g_, b_)
        sf_chunks = []
        for c in range(NCH):
            sl = slice(c * CW, (c + 1) * CW)
            fl = _spectral_chunk(L[:, sl], cs, csbd, cs4, filt)
            fa = _spectral_chunk(A[:, sl], cs, csbd, cs4, filt)
            fb = _spectral_chunk(B[:, sl], cs, csbd, cs4, filt)
            sf_chunks.append(jnp.sqrt(fl * fl + fa * fa + fb * fb))
        s_f = sf_chunks[0] if NCH == 1 else jnp.concatenate(sf_chunks, axis=1)  # (H, DW)

        # --- chroma saliency: sublane reduce once, tiny per-image lane reduces,
        #     broadcast lo / 1/(up-lo) back with MXU matmuls against SEGB ---
        def per_image(slab, op):
            row = op(slab, axis=0, keepdims=True)                         # (1, DW)
            parts = [op(row[:, j * W:(j + 1) * W], keepdims=True) for j in range(TNB)]
            return jnp.concatenate(parts, axis=1)                         # (1, TNB)

        lo_a, up_a = per_image(A, jnp.min), per_image(A, jnp.max)
        lo_b, up_b = per_image(B, jnp.min), per_image(B, jnp.max)
        inv_a = 1.0 / (up_a - lo_a + 1e-8)
        inv_b = 1.0 / (up_b - lo_b + 1e-8)
        lo_a_m = jnp.dot(lo_a, segb, preferred_element_type=f32)          # (1, DW)
        inv_a_m = jnp.dot(inv_a, segb, preferred_element_type=f32)
        lo_b_m = jnp.dot(lo_b, segb, preferred_element_type=f32)
        inv_b_m = jnp.dot(inv_b, segb, preferred_element_type=f32)
        an = (A - lo_a_m) * inv_a_m
        bn = (B - lo_b_m) * inv_b_m
        sal_c = 1.0 - jnp.exp(-(an * an + bn * bn) / (SIGMA_C ** 2))

        vs = s_f * sal_c * sd                                             # (H, DW)
        vs_x, vs_y = vs[:, :NBW], vs[:, NBW:]

        # --- RGB -> LMN once on the combined slab ---
        lC, mC, nC = _rgb_to_lmn(r_, g_, b_)
        mx, my = mC[:, :NBW], mC[:, NBW:]
        nx, ny = nC[:, :NBW], nC[:, NBW:]

        # --- separable 3x3 Scharr gradient: roll-based lane shifts + banded matmuls ---
        lane = jax.lax.broadcasted_iota(jnp.int32, (1, DW), 1)
        lane_mod = (lane & (W - 1)) if (W & (W - 1)) == 0 else (lane % W)
        not_first = (lane_mod != 0).astype(f32)
        not_last = (lane_mod != (W - 1)).astype(f32)
        x_next = pltpu.roll(lC, DW - 1, axis=1) * not_last                # value at lane q+1
        x_prev = pltpu.roll(lC, 1, axis=1) * not_first                    # value at lane q-1
        d_h = x_next - x_prev                                             # horizontal [-1,0,1]
        sm_h = 3.0 * x_prev + 10.0 * lC + 3.0 * x_next                    # horizontal [3,10,3]
        g0 = jnp.dot(v_smooth, d_h, preferred_element_type=f32)           # vertical [3,10,3]/16
        g1 = jnp.dot(v_diff, sm_h, preferred_element_type=f32)            # vertical [-1,0,1]/16
        gmag = jnp.sqrt(g0 * g0 + g1 * g1)
        g_x, g_y = gmag[:, :NBW], gmag[:, NBW:]

        # --- VSI similarity map ---
        vs_m = jnp.maximum(vs_x, vs_y)
        s_vs = (2.0 * vs_x * vs_y + C1) / (vs_x * vs_x + vs_y * vs_y + C1)
        s_g = (2.0 * g_x * g_y + c2) / (g_x * g_x + g_y * g_y + c2)
        scm = (2.0 * mx * my + c3) / (mx * mx + my * my + c3)
        scn = (2.0 * nx * ny + c3) / (nx * nx + ny * ny + c3)
        s_c = scm * scn
        abs_sc = jnp.abs(s_c)
        # fused fractional powers:  Re((s_c + 0j)^beta) * s_g^alpha with a single exp
        log_pow = BETA * jnp.log(jnp.maximum(abs_sc, 1e-30)) + ALPHA * jnp.log(s_g)
        signed = jnp.exp(log_pow) * jnp.where(s_c >= 0.0, 1.0, cos_bpi)
        s = s_vs * jnp.where(abs_sc > 0.0, signed, 0.0)

        # --- per-image reductions: one stacked (2, NBW) @ SEG matmul ---
        rows = jnp.concatenate([jnp.sum(s * vs_m, axis=0, keepdims=True),
                                jnp.sum(vs_m, axis=0, keepdims=True)], axis=0)   # (2, NBW)
        nd = jnp.dot(rows, seg, preferred_element_type=f32)                      # (2, NB)
        out_ref[...] = (nd[0:1, :] / nd[1:2, :]).reshape(1, 1, NB)

    # ---- VMEM budget (x|y slab double-buffered + constants + live temporaries) ----
    const_elems = (H * CW + 2 * H * H + CW * 2 * CW + 2 * CW * CW + 2 * H * H
                   + H * DW + TNB * DW + NBW * NB)
    io_elems = 3 * H * DW + NB
    tmp_elems = 48 * H * DW + 12 * (2 * H) * (2 * CW)
    est = 4 * (2 * (const_elems + io_elems) + tmp_elems)
    vmem_limit = int(min(56 * 2 ** 20, max(24 * 2 ** 20, 2 * est)))

    grid_spec = pltpu.PrefetchScalarGridSpec(
        num_scalar_prefetch=0,
        grid=(G,),
        in_specs=[
            pl.BlockSpec((3, H, DW), lambda i: (0, 0, i)),     # x|y lane-packed slab
            pl.BlockSpec((H, CW), lambda i: (0, 0)),           # filter (pre-scaled, tiled)
            pl.BlockSpec((2 * H, H), lambda i: (0, 0)),        # [C; S] row DFT
            pl.BlockSpec((CW, 2 * CW), lambda i: (0, 0)),      # [Cbd | Sbd] column DFT
            pl.BlockSpec((2 * CW, CW), lambda i: (0, 0)),      # [Cbd; -Sbd] final stage
            pl.BlockSpec((2, H, H), lambda i: (0, 0, 0)),      # vertical Scharr taps
            pl.BlockSpec((H, DW), lambda i: (0, 0)),           # center prior s_d
            pl.BlockSpec((TNB, DW), lambda i: (0, 0)),         # per-image broadcast selector
            pl.BlockSpec((NBW, NB), lambda i: (0, 0)),         # per-image sum selector
        ],
        out_specs=pl.BlockSpec((1, 1, NB), lambda i: (i, 0, 0)),
    )

    call = pl.pallas_call(
        vsi_kernel,
        grid_spec=grid_spec,
        out_shape=jax.ShapeDtypeStruct((G, 1, NB), jnp.float32),
        compiler_params=pltpu.CompilerParams(
            dimension_semantics=("parallel",),
            vmem_limit_bytes=vmem_limit),
    )

    def fn(x, y):
        x = x.astype(jnp.float32)
        y = y.astype(jnp.float32)
        if N_pad != N:
            pad = jnp.zeros((N_pad - N, 3, H, W), jnp.float32)
            x = jnp.concatenate([x, pad], axis=0)
            y = jnp.concatenate([y, pad], axis=0)
        # NCHW -> lane-packed (3, H, G * 2*NB*W): block i holds its x images then y images
        xg = x.reshape(G, NB, 3, H, W)
        yg = y.reshape(G, NB, 3, H, W)
        xy = jnp.concatenate([xg, yg], axis=1)                    # (G, 2NB, 3, H, W)
        xy = jnp.transpose(xy, (2, 3, 0, 1, 4)).reshape(3, H, G * TNB * W)
        per_image = call(xy, filt_pack, CS, CSBD, CS4, VMAT, sd_pack, SEGB, SEG)
        per_image = per_image.reshape(G * NB)[:N]                 # drop padded images
        return jnp.mean(per_image)                                # reduction='mean'

    consts = dict(filtr=filtr, filt_pack=filt_pack, CS=CS, CSBD=CSBD, CS4=CS4,
                  PPC=PPC, NB=NB, CW=CW)
    return fn, consts


if __name__ == "__main__":
    N, C, H, W = 2, 3, 16, 16
    key = jax.random.PRNGKey(0)
    kx, ky, kt = jax.random.split(key, 3)
    x = jax.random.uniform(kx, (N, C, H, W), dtype=jnp.float32)
    y = jax.random.uniform(ky, (N, C, H, W), dtype=jnp.float32)

    fn, consts = make_vsi_fn(N, H, W)

    # glue-level self-check: chunked stacked-DFT spectral filter vs jnp.fft
    PPC = consts["PPC"]
    planes = jax.random.normal(kt, (PPC, H, W), dtype=jnp.float32)
    xc = jnp.concatenate(list(planes), axis=1)
    got = _spectral_chunk(xc, consts["CS"], consts["CSBD"], consts["CS4"],
                          consts["filt_pack"])
    for j in range(PPC):
        ref = jnp.real(jnp.fft.ifft2(jnp.fft.fft2(planes[j]) * consts["filtr"]))
        err = float(jnp.max(jnp.abs(got[:, j * W:(j + 1) * W] - ref.astype(jnp.float32))))
        assert err < 2e-3, err

    out = jax.jit(fn)(x, y)
    jax.block_until_ready(out)
    print("KERNEL_OK")
</pallas_src>

<mosaic_0001>
module attributes {stable_mosaic.version = 11 : i64} {
  func.func @vsi_kernel(%arg0: i32, %arg1: memref<3x16x256xf32, #tpu.memory_space<vmem>>, %arg2: memref<16x256xf32, #tpu.memory_space<vmem>>, %arg3: memref<32x16xf32, #tpu.memory_space<vmem>>, %arg4: memref<256x512xf32, #tpu.memory_space<vmem>>, %arg5: memref<512x256xf32, #tpu.memory_space<vmem>>, %arg6: memref<2x16x16xf32, #tpu.memory_space<vmem>>, %arg7: memref<16x256xf32, #tpu.memory_space<vmem>>, %arg8: memref<16x256xf32, #tpu.memory_space<vmem>>, %arg9: memref<128x8xf32, #tpu.memory_space<vmem>>, %arg10: memref<1x1x8xf32, #tpu.memory_space<vmem>>) attributes {dimension_semantics = [#tpu.dimension_semantics<parallel>], iteration_bounds = array<i64: 1>, scalar_prefetch = 0 : i64, scratch_operands = 0 : i64, tpu.core_type = #tpu.core_type<tc>, window_params = [{transform_indices = @transform_0, window_bounds = array<i64: 3, 16, 256>}, {pipeline_mode = #tpu.pipeline_mode<synchronous>, transform_indices = @transform_1, window_bounds = array<i64: 16, 256>}, {pipeline_mode = #tpu.pipeline_mode<synchronous>, transform_indices = @transform_2, window_bounds = array<i64: 32, 16>}, {pipeline_mode = #tpu.pipeline_mode<synchronous>, transform_indices = @transform_3, window_bounds = array<i64: 256, 512>}, {pipeline_mode = #tpu.pipeline_mode<synchronous>, transform_indices = @transform_4, window_bounds = array<i64: 512, 256>}, {pipeline_mode = #tpu.pipeline_mode<synchronous>, transform_indices = @transform_5, window_bounds = array<i64: 2, 16, 16>}, {pipeline_mode = #tpu.pipeline_mode<synchronous>, transform_indices = @transform_6, window_bounds = array<i64: 16, 256>}, {pipeline_mode = #tpu.pipeline_mode<synchronous>, transform_indices = @transform_7, window_bounds = array<i64: 16, 256>}, {pipeline_mode = #tpu.pipeline_mode<synchronous>, transform_indices = @transform_8, window_bounds = array<i64: 128, 8>}, {transform_indices = @transform_9, window_bounds = array<i64: 1, 1, 8>}]} {
    %c0 = arith.constant 0 : index
    %c0_0 = arith.constant 0 : index
    %0 = vector.load %arg3[%c0, %c0_0] : memref<32x16xf32, #tpu.memory_space<vmem>>, vector<32x16xf32>
    %c0_1 = arith.constant 0 : index
    %c0_2 = arith.constant 0 : index
    %1 = vector.load %arg4[%c0_1, %c0_2] : memref<256x512xf32, #tpu.memory_space<vmem>>, vector<256x512xf32>
    %c0_3 = arith.constant 0 : index
    %c0_4 = arith.constant 0 : index
    %2 = vector.load %arg5[%c0_3, %c0_4] : memref<512x256xf32, #tpu.memory_space<vmem>>, vector<512x256xf32>
    %c0_5 = arith.constant 0 : index
    %c0_6 = arith.constant 0 : index
    %3 = vector.load %arg2[%c0_5, %c0_6] : memref<16x256xf32, #tpu.memory_space<vmem>>, vector<16x256xf32>
    %c0_7 = arith.constant 0 : index
    %c0_8 = arith.constant 0 : index
    %c0_9 = arith.constant 0 : index
    %4 = vector.load %arg6[%c0_7, %c0_8, %c0_9] : memref<2x16x16xf32, #tpu.memory_space<vmem>>, vector<1x16x16xf32>
    %5 = vector.shape_cast %4 : vector<1x16x16xf32> to vector<16x16xf32>
    %c1 = arith.constant 1 : index
    %c0_10 = arith.constant 0 : index
    %c0_11 = arith.constant 0 : index
    %6 = vector.load %arg6[%c1, %c0_10, %c0_11] : memref<2x16x16xf32, #tpu.memory_space<vmem>>, vector<1x16x16xf32>
    %7 = vector.shape_cast %6 : vector<1x16x16xf32> to vector<16x16xf32>
    %c0_12 = arith.constant 0 : index
    %c0_13 = arith.constant 0 : index
    %8 = vector.load %arg7[%c0_12, %c0_13] : memref<16x256xf32, #tpu.memory_space<vmem>>, vector<16x256xf32>
    %c0_14 = arith.constant 0 : index
    %c0_15 = arith.constant 0 : index
    %9 = vector.load %arg8[%c0_14, %c0_15] : memref<16x256xf32, #tpu.memory_space<vmem>>, vector<16x256xf32>
    %c0_16 = arith.constant 0 : index
    %c0_17 = arith.constant 0 : index
    %10 = vector.load %arg9[%c0_16, %c0_17] : memref<128x8xf32, #tpu.memory_space<vmem>>, vector<128x8xf32>
    %c0_18 = arith.constant 0 : index
    %c0_19 = arith.constant 0 : index
    %c0_20 = arith.constant 0 : index
    %11 = vector.load %arg1[%c0_18, %c0_19, %c0_20] : memref<3x16x256xf32, #tpu.memory_space<vmem>>, vector<1x16x256xf32>
    %12 = vector.shape_cast %11 : vector<1x16x256xf32> to vector<16x256xf32>
    %c1_21 = arith.constant 1 : index
    %c0_22 = arith.constant 0 : index
    %c0_23 = arith.constant 0 : index
    %13 = vector.load %arg1[%c1_21, %c0_22, %c0_23] : memref<3x16x256xf32, #tpu.memory_space<vmem>>, vector<1x16x256xf32>
    %14 = vector.shape_cast %13 : vector<1x16x256xf32> to vector<16x256xf32>
    %c2 = arith.constant 2 : index
    %c0_24 = arith.constant 0 : index
    %c0_25 = arith.constant 0 : index
    %15 = vector.load %arg1[%c2, %c0_24, %c0_25] : memref<3x16x256xf32, #tpu.memory_space<vmem>>, vector<1x16x256xf32>
    %16 = vector.shape_cast %15 : vector<1x16x256xf32> to vector<16x256xf32>
    %cst = arith.constant 1.000000e+00 : f32
    %17 = vector.broadcast %cst : f32 to vector<16x256xf32>
    %18 = arith.divf %12, %17 : vector<16x256xf32>
    %cst_26 = arith.constant 1.000000e+00 : f32
    %19 = vector.broadcast %cst_26 : f32 to vector<16x256xf32>
    %20 = arith.divf %14, %19 : vector<16x256xf32>
    %cst_27 = arith.constant 1.000000e+00 : f32
    %21 = vector.broadcast %cst_27 : f32 to vector<16x256xf32>
    %22 = arith.divf %16, %21 : vector<16x256xf32>
    %cst_28 = arith.constant 4.124530e-01 : f32
    %23 = vector.broadcast %cst_28 : f32 to vector<16x256xf32>
    %24 = arith.mulf %23, %18 : vector<16x256xf32>
    %cst_29 = arith.constant 3.575800e-01 : f32
    %25 = vector.broadcast %cst_29 : f32 to vector<16x256xf32>
    %26 = arith.mulf %25, %20 : vector<16x256xf32>
    %27 = arith.addf %24, %26 : vector<16x256xf32>
    %cst_30 = arith.constant 1.804230e-01 : f32
    %28 = vector.broadcast %cst_30 : f32 to vector<16x256xf32>
    %29 = arith.mulf %28, %22 : vector<16x256xf32>
    %30 = arith.addf %27, %29 : vector<16x256xf32>
    %cst_31 = arith.constant 2.126710e-01 : f32
    %31 = vector.broadcast %cst_31 : f32 to vector<16x256xf32>
    %32 = arith.mulf %31, %18 : vector<16x256xf32>
    %cst_32 = arith.constant 7.151600e-01 : f32
    %33 = vector.broadcast %cst_32 : f32 to vector<16x256xf32>
    %34 = arith.mulf %33, %20 : vector<16x256xf32>
    %35 = arith.addf %32, %34 : vector<16x256xf32>
    %cst_33 = arith.constant 7.216900e-02 : f32
    %36 = vector.broadcast %cst_33 : f32 to vector<16x256xf32>
    %37 = arith.mulf %36, %22 : vector<16x256xf32>
    %38 = arith.addf %35, %37 : vector<16x256xf32>
    %cst_34 = arith.constant 1.933400e-02 : f32
    %39 = vector.broadcast %cst_34 : f32 to vector<16x256xf32>
    %40 = arith.mulf %39, %18 : vector<16x256xf32>
    %cst_35 = arith.constant 1.191930e-01 : f32
    %41 = vector.broadcast %cst_35 : f32 to vector<16x256xf32>
    %42 = arith.mulf %41, %20 : vector<16x256xf32>
    %43 = arith.addf %40, %42 : vector<16x256xf32>
    %cst_36 = arith.constant 9.502270e-01 : f32
    %44 = vector.broadcast %cst_36 : f32 to vector<16x256xf32>
    %45 = arith.mulf %44, %22 : vector<16x256xf32>
    %46 = arith.addf %43, %45 : vector<16x256xf32>
    %cst_37 = arith.constant 9.504560e-01 : f32
    %47 = vector.broadcast %cst_37 : f32 to vector<16x256xf32>
    %48 = arith.divf %30, %47 : vector<16x256xf32>
    %cst_38 = arith.constant 1.000000e+00 : f32
    %49 = vector.broadcast %cst_38 : f32 to vector<16x256xf32>
    %50 = arith.divf %38, %49 : vector<16x256xf32>
    %cst_39 = arith.constant 1.08875406 : f32
    %51 = vector.broadcast %cst_39 : f32 to vector<16x256xf32>
    %52 = arith.divf %46, %51 : vector<16x256xf32>
    %cst_40 = arith.constant 9.99999996E-13 : f32
    %53 = vector.broadcast %cst_40 : f32 to vector<16x256xf32>
    %54 = arith.maximumf %48, %53 : vector<16x256xf32>
    %cst_41 = arith.constant 0.00885645207 : f32
    %55 = vector.broadcast %cst_41 : f32 to vector<16x256xf32>
    %56 = arith.cmpf ogt, %48, %55 : vector<16x256xf32>
    %57 = math.log %54 : vector<16x256xf32>
    %cst_42 = arith.constant 3.000000e+00 : f32
    %58 = vector.broadcast %cst_42 : f32 to vector<16x256xf32>
    %59 = arith.divf %57, %58 : vector<16x256xf32>
    %60 = math.exp %59 : vector<16x256xf32>
    %cst_43 = arith.constant 903.296325 : f32
    %61 = vector.broadcast %cst_43 : f32 to vector<16x256xf32>
    %62 = arith.mulf %61, %48 : vector<16x256xf32>
    %cst_44 = arith.constant 1.600000e+01 : f32
    %63 = vector.broadcast %cst_44 : f32 to vector<16x256xf32>
    %64 = arith.addf %62, %63 : vector<16x256xf32>
    %cst_45 = arith.constant 1.160000e+02 : f32
    %65 = vector.broadcast %cst_45 : f32 to vector<16x256xf32>
    %66 = arith.divf %64, %65 : vector<16x256xf32>
    %67 = arith.select %56, %60, %66 : vector<16x256xi1>, vector<16x256xf32>
    %cst_46 = arith.constant 9.99999996E-13 : f32
    %68 = vector.broadcast %cst_46 : f32 to vector<16x256xf32>
    %69 = arith.maximumf %50, %68 : vector<16x256xf32>
    %cst_47 = arith.constant 0.00885645207 : f32
    %70 = vector.broadcast %cst_47 : f32 to vector<16x256xf32>
    %71 = arith.cmpf ogt, %50, %70 : vector<16x256xf32>
    %72 = math.log %69 : vector<16x256xf32>
    %cst_48 = arith.constant 3.000000e+00 : f32
    %73 = vector.broadcast %cst_48 : f32 to vector<16x256xf32>
    %74 = arith.divf %72, %73 : vector<16x256xf32>
    %75 = math.exp %74 : vector<16x256xf32>
    %cst_49 = arith.constant 903.296325 : f32
    %76 = vector.broadcast %cst_49 : f32 to vector<16x256xf32>
    %77 = arith.mulf %76, %50 : vector<16x256xf32>
    %cst_50 = arith.constant 1.600000e+01 : f32
    %78 = vector.broadcast %cst_50 : f32 to vector<16x256xf32>
    %79 = arith.addf %77, %78 : vector<16x256xf32>
    %cst_51 = arith.constant 1.160000e+02 : f32
    %80 = vector.broadcast %cst_51 : f32 to vector<16x256xf32>
    %81 = arith.divf %79, %80 : vector<16x256xf32>
    %82 = arith.select %71, %75, %81 : vector<16x256xi1>, vector<16x256xf32>
    %cst_52 = arith.constant 9.99999996E-13 : f32
    %83 = vector.broadcast %cst_52 : f32 to vector<16x256xf32>
    %84 = arith.maximumf %52, %83 : vector<16x256xf32>
    %cst_53 = arith.constant 0.00885645207 : f32
    %85 = vector.broadcast %cst_53 : f32 to vector<16x256xf32>
    %86 = arith.cmpf ogt, %52, %85 : vector<16x256xf32>
    %87 = math.log %84 : vector<16x256xf32>
    %cst_54 = arith.constant 3.000000e+00 : f32
    %88 = vector.broadcast %cst_54 : f32 to vector<16x256xf32>
    %89 = arith.divf %87, %88 : vector<16x256xf32>
    %90 = math.exp %89 : vector<16x256xf32>
    %cst_55 = arith.constant 903.296325 : f32
    %91 = vector.broadcast %cst_55 : f32 to vector<16x256xf32>
    %92 = arith.mulf %91, %52 : vector<16x256xf32>
    %cst_56 = arith.constant 1.600000e+01 : f32
    %93 = vector.broadcast %cst_56 : f32 to vector<16x256xf32>
    %94 = arith.addf %92, %93 : vector<16x256xf32>
    %cst_57 = arith.constant 1.160000e+02 : f32
    %95 = vector.broadcast %cst_57 : f32 to vector<16x256xf32>
    %96 = arith.divf %94, %95 : vector<16x256xf32>
    %97 = arith.select %86, %90, %96 : vector<16x256xi1>, vector<16x256xf32>
    %cst_58 = arith.constant 1.160000e+02 : f32
    %98 = vector.broadcast %cst_58 : f32 to vector<16x256xf32>
    %99 = arith.mulf %98, %82 : vector<16x256xf32>
    %cst_59 = arith.constant 1.600000e+01 : f32
    %100 = vector.broadcast %cst_59 : f32 to vector<16x256xf32>
    %101 = arith.subf %99, %100 : vector<16x256xf32>
    %102 = arith.subf %67, %82 : vector<16x256xf32>
    %cst_60 = arith.constant 5.000000e+02 : f32
    %103 = vector.broadcast %cst_60 : f32 to vector<16x256xf32>
    %104 = arith.mulf %103, %102 : vector<16x256xf32>
    %105 = arith.subf %82, %97 : vector<16x256xf32>
    %cst_61 = arith.constant 2.000000e+02 : f32
    %106 = vector.broadcast %cst_61 : f32 to vector<16x256xf32>
    %107 = arith.mulf %106, %105 : vector<16x256xf32>
    %cst_62 = arith.constant dense<0.000000e+00> : vector<32x256xf32>
    %108 = tpu.matmul %0, %101, %cst_62 {dimension_numbers = #tpu.dot_dimension_numbers<[1], [0], [0], [1], [0, 0, 1, 1], [], []>} : vector<32x16xf32>, vector<16x256xf32>, vector<32x256xf32> -> vector<32x256xf32>
    %cst_63 = arith.constant dense<0.000000e+00> : vector<32x512xf32>
    %109 = tpu.matmul %108, %1, %cst_63 {dimension_numbers = #tpu.dot_dimension_numbers<[1], [0], [0], [1], [0, 0, 1, 1], [], []>} : vector<32x256xf32>, vector<256x512xf32>, vector<32x512xf32> -> vector<32x512xf32>
    %110 = vector.extract_strided_slice %109 {offsets = [0, 0], sizes = [16, 256], strides = [1, 1]} : vector<32x512xf32> to vector<16x256xf32>
    %111 = vector.extract_strided_slice %109 {offsets = [16, 256], sizes = [16, 256], strides = [1, 1]} : vector<32x512xf32> to vector<16x256xf32>
    %112 = arith.subf %110, %111 : vector<16x256xf32>
    %113 = arith.mulf %112, %3 : vector<16x256xf32>
    %114 = vector.extract_strided_slice %109 {offsets = [16, 0], sizes = [16, 256], strides = [1, 1]} : vector<32x512xf32> to vector<16x256xf32>
    %115 = vector.extract_strided_slice %109 {offsets = [0, 256], sizes = [16, 256], strides = [1, 1]} : vector<32x512xf32> to vector<16x256xf32>
    %116 = arith.addf %114, %115 : vector<16x256xf32>
    %cst_64 = arith.constant 0.000000e+00 : f32
    %117 = vector.broadcast %cst_64 : f32 to vector<16x256xf32>
    %118 = arith.subf %117, %116 : vector<16x256xf32>
    %119 = arith.mulf %118, %3 : vector<16x256xf32>
    %cst_65 = arith.constant dense<0.000000e+00> : vector<32x256xf32>
    %120 = tpu.matmul %0, %113, %cst_65 {dimension_numbers = #tpu.dot_dimension_numbers<[1], [0], [0], [1], [0, 0, 1, 1], [], []>} : vector<32x16xf32>, vector<16x256xf32>, vector<32x256xf32> -> vector<32x256xf32>
    %cst_66 = arith.constant dense<0.000000e+00> : vector<32x256xf32>
    %121 = tpu.matmul %0, %119, %cst_66 {dimension_numbers = #tpu.dot_dimension_numbers<[1], [0], [0], [1], [0, 0, 1, 1], [], []>} : vector<32x16xf32>, vector<16x256xf32>, vector<32x256xf32> -> vector<32x256xf32>
    %122 = vector.extract_strided_slice %120 {offsets = [0, 0], sizes = [16, 256], strides = [1, 1]} : vector<32x256xf32> to vector<16x256xf32>
    %123 = vector.extract_strided_slice %121 {offsets = [16, 0], sizes = [16, 256], strides = [1, 1]} : vector<32x256xf32> to vector<16x256xf32>
    %124 = arith.subf %122, %123 : vector<16x256xf32>
    %125 = vector.extract_strided_slice %121 {offsets = [0, 0], sizes = [16, 256], strides = [1, 1]} : vector<32x256xf32> to vector<16x256xf32>
    %126 = vector.extract_strided_slice %120 {offsets = [16, 0], sizes = [16, 256], strides = [1, 1]} : vector<32x256xf32> to vector<16x256xf32>
    %127 = arith.addf %125, %126 : vector<16x256xf32>
    %128 = tpu.concatenate %124, %127 in 1 : vector<16x256xf32>, vector<16x256xf32> -> vector<16x512xf32>
    %cst_67 = arith.constant dense<0.000000e+00> : vector<16x256xf32>
    %129 = tpu.matmul %128, %2, %cst_67 {dimension_numbers = #tpu.dot_dimension_numbers<[1], [0], [0], [1], [0, 0, 1, 1], [], []>} : vector<16x512xf32>, vector<512x256xf32>, vector<16x256xf32> -> vector<16x256xf32>
    %cst_68 = arith.constant dense<0.000000e+00> : vector<32x256xf32>
    %130 = tpu.matmul %0, %104, %cst_68 {dimension_numbers = #tpu.dot_dimension_numbers<[1], [0], [0], [1], [0, 0, 1, 1], [], []>} : vector<32x16xf32>, vector<16x256xf32>, vector<32x256xf32> -> vector<32x256xf32>
    %cst_69 = arith.constant dense<0.000000e+00> : vector<32x512xf32>
    %131 = tpu.matmul %130, %1, %cst_69 {dimension_numbers = #tpu.dot_dimension_numbers<[1], [0], [0], [1], [0, 0, 1, 1], [], []>} : vector<32x256xf32>, vector<256x512xf32>, vector<32x512xf32> -> vector<32x512xf32>
    %132 = vector.extract_strided_slice %131 {offsets = [0, 0], sizes = [16, 256], strides = [1, 1]} : vector<32x512xf32> to vector<16x256xf32>
    %133 = vector.extract_strided_slice %131 {offsets = [16, 256], sizes = [16, 256], strides = [1, 1]} : vector<32x512xf32> to vector<16x256xf32>
    %134 = arith.subf %132, %133 : vector<16x256xf32>
    %135 = arith.mulf %134, %3 : vector<16x256xf32>
    %136 = vector.extract_strided_slice %131 {offsets = [16, 0], sizes = [16, 256], strides = [1, 1]} : vector<32x512xf32> to vector<16x256xf32>
    %137 = vector.extract_strided_slice %131 {offsets = [0, 256], sizes = [16, 256], strides = [1, 1]} : vector<32x512xf32> to vector<16x256xf32>
    %138 = arith.addf %136, %137 : vector<16x256xf32>
    %cst_70 = arith.constant 0.000000e+00 : f32
    %139 = vector.broadcast %cst_70 : f32 to vector<16x256xf32>
    %140 = arith.subf %139, %138 : vector<16x256xf32>
    %141 = arith.mulf %140, %3 : vector<16x256xf32>
    %cst_71 = arith.constant dense<0.000000e+00> : vector<32x256xf32>
    %142 = tpu.matmul %0, %135, %cst_71 {dimension_numbers = #tpu.dot_dimension_numbers<[1], [0], [0], [1], [0, 0, 1, 1], [], []>} : vector<32x16xf32>, vector<16x256xf32>, vector<32x256xf32> -> vector<32x256xf32>
    %cst_72 = arith.constant dense<0.000000e+00> : vector<32x256xf32>
    %143 = tpu.matmul %0, %141, %cst_72 {dimension_numbers = #tpu.dot_dimension_numbers<[1], [0], [0], [1], [0, 0, 1, 1], [], []>} : vector<32x16xf32>, vector<16x256xf32>, vector<32x256xf32> -> vector<32x256xf32>
    %144 = vector.extract_strided_slice %142 {offsets = [0, 0], sizes = [16, 256], strides = [1, 1]} : vector<32x256xf32> to vector<16x256xf32>
    %145 = vector.extract_strided_slice %143 {offsets = [16, 0], sizes = [16, 256], strides = [1, 1]} : vector<32x256xf32> to vector<16x256xf32>
    %146 = arith.subf %144, %145 : vector<16x256xf32>
    %147 = vector.extract_strided_slice %143 {offsets = [0, 0], sizes = [16, 256], strides = [1, 1]} : vector<32x256xf32> to vector<16x256xf32>
    %148 = vector.extract_strided_slice %142 {offsets = [16, 0], sizes = [16, 256], strides = [1, 1]} : vector<32x256xf32> to vector<16x256xf32>
    %149 = arith.addf %147, %148 : vector<16x256xf32>
    %150 = tpu.concatenate %146, %149 in 1 : vector<16x256xf32>, vector<16x256xf32> -> vector<16x512xf32>
    %cst_73 = arith.constant dense<0.000000e+00> : vector<16x256xf32>
    %151 = tpu.matmul %150, %2, %cst_73 {dimension_numbers = #tpu.dot_dimension_numbers<[1], [0], [0], [1], [0, 0, 1, 1], [], []>} : vector<16x512xf32>, vector<512x256xf32>, vector<16x256xf32> -> vector<16x256xf32>
    %cst_74 = arith.constant dense<0.000000e+00> : vector<32x256xf32>
    %152 = tpu.matmul %0, %107, %cst_74 {dimension_numbers = #tpu.dot_dimension_numbers<[1], [0], [0], [1], [0, 0, 1, 1], [], []>} : vector<32x16xf32>, vector<16x256xf32>, vector<32x256xf32> -> vector<32x256xf32>
    %cst_75 = arith.constant dense<0.000000e+00> : vector<32x512xf32>
    %153 = tpu.matmul %152, %1, %cst_75 {dimension_numbers = #tpu.dot_dimension_numbers<[1], [0], [0], [1], [0, 0, 1, 1], [], []>} : vector<32x256xf32>, vector<256x512xf32>, vector<32x512xf32> -> vector<32x512xf32>
    %154 = vector.extract_strided_slice %153 {offsets = [0, 0], sizes = [16, 256], strides = [1, 1]} : vector<32x512xf32> to vector<16x256xf32>
    %155 = vector.extract_strided_slice %153 {offsets = [16, 256], sizes = [16, 256], strides = [1, 1]} : vector<32x512xf32> to vector<16x256xf32>
    %156 = arith.subf %154, %155 : vector<16x256xf32>
    %157 = arith.mulf %156, %3 : vector<16x256xf32>
    %158 = vector.extract_strided_slice %153 {offsets = [16, 0], sizes = [16, 256], strides = [1, 1]} : vector<32x512xf32> to vector<16x256xf32>
    %159 = vector.extract_strided_slice %153 {offsets = [0, 256], sizes = [16, 256], strides = [1, 1]} : vector<32x512xf32> to vector<16x256xf32>
    %160 = arith.addf %158, %159 : vector<16x256xf32>
    %cst_76 = arith.constant 0.000000e+00 : f32
    %161 = vector.broadcast %cst_76 : f32 to vector<16x256xf32>
    %162 = arith.subf %161, %160 : vector<16x256xf32>
    %163 = arith.mulf %162, %3 : vector<16x256xf32>
    %cst_77 = arith.constant dense<0.000000e+00> : vector<32x256xf32>
    %164 = tpu.matmul %0, %157, %cst_77 {dimension_numbers = #tpu.dot_dimension_numbers<[1], [0], [0], [1], [0, 0, 1, 1], [], []>} : vector<32x16xf32>, vector<16x256xf32>, vector<32x256xf32> -> vector<32x256xf32>
    %cst_78 = arith.constant dense<0.000000e+00> : vector<32x256xf32>
    %165 = tpu.matmul %0, %163, %cst_78 {dimension_numbers = #tpu.dot_dimension_numbers<[1], [0], [0], [1], [0, 0, 1, 1], [], []>} : vector<32x16xf32>, vector<16x256xf32>, vector<32x256xf32> -> vector<32x256xf32>
    %166 = vector.extract_strided_slice %164 {offsets = [0, 0], sizes = [16, 256], strides = [1, 1]} : vector<32x256xf32> to vector<16x256xf32>
    %167 = vector.extract_strided_slice %165 {offsets = [16, 0], sizes = [16, 256], strides = [1, 1]} : vector<32x256xf32> to vector<16x256xf32>
    %168 = arith.subf %166, %167 : vector<16x256xf32>
    %169 = vector.extract_strided_slice %165 {offsets = [0, 0], sizes = [16, 256], strides = [1, 1]} : vector<32x256xf32> to vector<16x256xf32>
    %170 = vector.extract_strided_slice %164 {offsets = [16, 0], sizes = [16, 256], strides = [1, 1]} : vector<32x256xf32> to vector<16x256xf32>
    %171 = arith.addf %169, %170 : vector<16x256xf32>
    %172 = tpu.concatenate %168, %171 in 1 : vector<16x256xf32>, vector<16x256xf32> -> vector<16x512xf32>
    %cst_79 = arith.constant dense<0.000000e+00> : vector<16x256xf32>
    %173 = tpu.matmul %172, %2, %cst_79 {dimension_numbers = #tpu.dot_dimension_numbers<[1], [0], [0], [1], [0, 0, 1, 1], [], []>} : vector<16x512xf32>, vector<512x256xf32>, vector<16x256xf32> -> vector<16x256xf32>
    %174 = arith.mulf %129, %129 : vector<16x256xf32>
    %175 = arith.mulf %151, %151 : vector<16x256xf32>
    %176 = arith.addf %174, %175 : vector<16x256xf32>
    %177 = arith.mulf %173, %173 : vector<16x256xf32>
    %178 = arith.addf %176, %177 : vector<16x256xf32>
    %179 = math.sqrt %178 : vector<16x256xf32>
    %cst_80 = arith.constant dense<0x7F800000> : vector<256xf32>
    %180 = vector.multi_reduction <minimumf>, %104, %cst_80 [0] : vector<16x256xf32> to vector<256xf32>
    %181 = vector.shape_cast %180 : vector<256xf32> to vector<1x256xf32>
    %182 = vector.extract_strided_slice %181 {offsets = [0, 0], sizes = [1, 16], strides = [1, 1]} : vector<1x256xf32> to vector<1x16xf32>
    %183 = vector.shape_cast %182 : vector<1x16xf32> to vector<1x1x16xf32>
    %cst_81 = arith.constant dense<0x7F800000> : vector<1xf32>
    %184 = vector.multi_reduction <minimumf>, %183, %cst_81 [1, 2] : vector<1x1x16xf32> to vector<1xf32>
    %185 = vector.shape_cast %184 : vector<1xf32> to vector<1x1x1xf32>
    %186 = vector.extract %185[0, 0, 0] : f32 from vector<1x1x1xf32>
    %187 = vector.broadcast %186 : f32 to vector<1x1xf32>
    %188 = vector.extract_strided_slice %181 {offsets = [0, 16], sizes = [1, 16], strides = [1, 1]} : vector<1x256xf32> to vector<1x16xf32>
    %189 = vector.shape_cast %188 : vector<1x16xf32> to vector<1x1x16xf32>
    %cst_82 = arith.constant dense<0x7F800000> : vector<1xf32>
    %190 = vector.multi_reduction <minimumf>, %189, %cst_82 [1, 2] : vector<1x1x16xf32> to vector<1xf32>
    %191 = vector.shape_cast %190 : vector<1xf32> to vector<1x1x1xf32>
    %192 = vector.extract %191[0, 0, 0] : f32 from vector<1x1x1xf32>
    %193 = vector.broadcast %192 : f32 to vector<1x1xf32>
    %194 = vector.extract_strided_slice %181 {offsets = [0, 32], sizes = [1, 16], strides = [1, 1]} : vector<1x256xf32> to vector<1x16xf32>
    %195 = vector.shape_cast %194 : vector<1x16xf32> to vector<1x1x16xf32>
    %cst_83 = arith.constant dense<0x7F800000> : vector<1xf32>
    %196 = vector.multi_reduction <minimumf>, %195, %cst_83 [1, 2] : vector<1x1x16xf32> to vector<1xf32>
    %197 = vector.shape_cast %196 : vector<1xf32> to vector<1x1x1xf32>
    %198 = vector.extract %197[0, 0, 0] : f32 from vector<1x1x1xf32>
    %199 = vector.broadcast %198 : f32 to vector<1x1xf32>
    %200 = vector.extract_strided_slice %181 {offsets = [0, 48], sizes = [1, 16], strides = [1, 1]} : vector<1x256xf32> to vector<1x16xf32>
    %201 = vector.shape_cast %200 : vector<1x16xf32> to vector<1x1x16xf32>
    %cst_84 = arith.constant dense<0x7F800000> : vector<1xf32>
    %202 = vector.multi_reduction <minimumf>, %201, %cst_84 [1, 2] : vector<1x1x16xf32> to vector<1xf32>
    %203 = vector.shape_cast %202 : vector<1xf32> to vector<1x1x1xf32>
    %204 = vector.extract %203[0, 0, 0] : f32 from vector<1x1x1xf32>
    %205 = vector.broadcast %204 : f32 to vector<1x1xf32>
    %206 = vector.extract_strided_slice %181 {offsets = [0, 64], sizes = [1, 16], strides = [1, 1]} : vector<1x256xf32> to vector<1x16xf32>
    %207 = vector.shape_cast %206 : vector<1x16xf32> to vector<1x1x16xf32>
    %cst_85 = arith.constant dense<0x7F800000> : vector<1xf32>
    %208 = vector.multi_reduction <minimumf>, %207, %cst_85 [1, 2] : vector<1x1x16xf32> to vector<1xf32>
    %209 = vector.shape_cast %208 : vector<1xf32> to vector<1x1x1xf32>
    %210 = vector.extract %209[0, 0, 0] : f32 from vector<1x1x1xf32>
    %211 = vector.broadcast %210 : f32 to vector<1x1xf32>
    %212 = vector.extract_strided_slice %181 {offsets = [0, 80], sizes = [1, 16], strides = [1, 1]} : vector<1x256xf32> to vector<1x16xf32>
    %213 = vector.shape_cast %212 : vector<1x16xf32> to vector<1x1x16xf32>
    %cst_86 = arith.constant dense<0x7F800000> : vector<1xf32>
    %214 = vector.multi_reduction <minimumf>, %213, %cst_86 [1, 2] : vector<1x1x16xf32> to vector<1xf32>
    %215 = vector.shape_cast %214 : vector<1xf32> to vector<1x1x1xf32>
    %216 = vector.extract %215[0, 0, 0] : f32 from vector<1x1x1xf32>
    %217 = vector.broadcast %216 : f32 to vector<1x1xf32>
    %218 = vector.extract_strided_slice %181 {offsets = [0, 96], sizes = [1, 16], strides = [1, 1]} : vector<1x256xf32> to vector<1x16xf32>
    %219 = vector.shape_cast %218 : vector<1x16xf32> to vector<1x1x16xf32>
    %cst_87 = arith.constant dense<0x7F800000> : vector<1xf32>
    %220 = vector.multi_reduction <minimumf>, %219, %cst_87 [1, 2] : vector<1x1x16xf32> to vector<1xf32>
    %221 = vector.shape_cast %220 : vector<1xf32> to vector<1x1x1xf32>
    %222 = vector.extract %221[0, 0, 0] : f32 from vector<1x1x1xf32>
    %223 = vector.broadcast %222 : f32 to vector<1x1xf32>
    %224 = vector.extract_strided_slice %181 {offsets = [0, 112], sizes = [1, 16], strides = [1, 1]} : vector<1x256xf32> to vector<1x16xf32>
    %225 = vector.shape_cast %224 : vector<1x16xf32> to vector<1x1x16xf32>
    %cst_88 = arith.constant dense<0x7F800000> : vector<1xf32>
    %226 = vector.multi_reduction <minimumf>, %225, %cst_88 [1, 2] : vector<1x1x16xf32> to vector<1xf32>
    %227 = vector.shape_cast %226 : vector<1xf32> to vector<1x1x1xf32>
    %228 = vector.extract %227[0, 0, 0] : f32 from vector<1x1x1xf32>
    %229 = vector.broadcast %228 : f32 to vector<1x1xf32>
    %230 = vector.extract_strided_slice %181 {offsets = [0, 128], sizes = [1, 16], strides = [1, 1]} : vector<1x256xf32> to vector<1x16xf32>
    %231 = vector.shape_cast %230 : vector<1x16xf32> to vector<1x1x16xf32>
    %cst_89 = arith.constant dense<0x7F800000> : vector<1xf32>
    %232 = vector.multi_reduction <minimumf>, %231, %cst_89 [1, 2] : vector<1x1x16xf32> to vector<1xf32>
    %233 = vector.shape_cast %232 : vector<1xf32> to vector<1x1x1xf32>
    %234 = vector.extract %233[0, 0, 0] : f32 from vector<1x1x1xf32>
    %235 = vector.broadcast %234 : f32 to vector<1x1xf32>
    %236 = vector.extract_strided_slice %181 {offsets = [0, 144], sizes = [1, 16], strides = [1, 1]} : vector<1x256xf32> to vector<1x16xf32>
    %237 = vector.shape_cast %236 : vector<1x16xf32> to vector<1x1x16xf32>
    %cst_90 = arith.constant dense<0x7F800000> : vector<1xf32>
    %238 = vector.multi_reduction <minimumf>, %237, %cst_90 [1, 2] : vector<1x1x16xf32> to vector<1xf32>
    %239 = vector.shape_cast %238 : vector<1xf32> to vector<1x1x1xf32>
    %240 = vector.extract %239[0, 0, 0] : f32 from vector<1x1x1xf32>
    %241 = vector.broadcast %240 : f32 to vector<1x1xf32>
    %242 = vector.extract_strided_slice %181 {offsets = [0, 160], sizes = [1, 16], strides = [1, 1]} : vector<1x256xf32> to vector<1x16xf32>
    %243 = vector.shape_cast %242 : vector<1x16xf32> to vector<1x1x16xf32>
    %cst_91 = arith.constant dense<0x7F800000> : vector<1xf32>
    %244 = vector.multi_reduction <minimumf>, %243, %cst_91 [1, 2] : vector<1x1x16xf32> to vector<1xf32>
    %245 = vector.shape_cast %244 : vector<1xf32> to vector<1x1x1xf32>
    %246 = vector.extract %245[0, 0, 0] : f32 from vector<1x1x1xf32>
    %247 = vector.broadcast %246 : f32 to vector<1x1xf32>
    %248 = vector.extract_strided_slice %181 {offsets = [0, 176], sizes = [1, 16], strides = [1, 1]} : vector<1x256xf32> to vector<1x16xf32>
    %249 = vector.shape_cast %248 : vector<1x16xf32> to vector<1x1x16xf32>
    %cst_92 = arith.constant dense<0x7F800000> : vector<1xf32>
    %250 = vector.multi_reduction <minimumf>, %249, %cst_92 [1, 2] : vector<1x1x16xf32> to vector<1xf32>
    %251 = vector.shape_cast %250 : vector<1xf32> to vector<1x1x1xf32>
    %252 = vector.extract %251[0, 0, 0] : f32 from vector<1x1x1xf32>
    %253 = vector.broadcast %252 : f32 to vector<1x1xf32>
    %254 = vector.extract_strided_slice %181 {offsets = [0, 192], sizes = [1, 16], strides = [1, 1]} : vector<1x256xf32> to vector<1x16xf32>
    %255 = vector.shape_cast %254 : vector<1x16xf32> to vector<1x1x16xf32>
    %cst_93 = arith.constant dense<0x7F800000> : vector<1xf32>
    %256 = vector.multi_reduction <minimumf>, %255, %cst_93 [1, 2] : vector<1x1x16xf32> to vector<1xf32>
    %257 = vector.shape_cast %256 : vector<1xf32> to vector<1x1x1xf32>
    %258 = vector.extract %257[0, 0, 0] : f32 from vector<1x1x1xf32>
    %259 = vector.broadcast %258 : f32 to vector<1x1xf32>
    %260 = vector.extract_strided_slice %181 {offsets = [0, 208], sizes = [1, 16], strides = [1, 1]} : vector<1x256xf32> to vector<1x16xf32>
    %261 = vector.shape_cast %260 : vector<1x16xf32> to vector<1x1x16xf32>
    %cst_94 = arith.constant dense<0x7F800000> : vector<1xf32>
    %262 = vector.multi_reduction <minimumf>, %261, %cst_94 [1, 2] : vector<1x1x16xf32> to vector<1xf32>
    %263 = vector.shape_cast %262 : vector<1xf32> to vector<1x1x1xf32>
    %264 = vector.extract %263[0, 0, 0] : f32 from vector<1x1x1xf32>
    %265 = vector.broadcast %264 : f32 to vector<1x1xf32>
    %266 = vector.extract_strided_slice %181 {offsets = [0, 224], sizes = [1, 16], strides = [1, 1]} : vector<1x256xf32> to vector<1x16xf32>
    %267 = vector.shape_cast %266 : vector<1x16xf32> to vector<1x1x16xf32>
    %cst_95 = arith.constant dense<0x7F800000> : vector<1xf32>
    %268 = vector.multi_reduction <minimumf>, %267, %cst_95 [1, 2] : vector<1x1x16xf32> to vector<1xf32>
    %269 = vector.shape_cast %268 : vector<1xf32> to vector<1x1x1xf32>
    %270 = vector.extract %269[0, 0, 0] : f32 from vector<1x1x1xf32>
    %271 = vector.broadcast %270 : f32 to vector<1x1xf32>
    %272 = vector.extract_strided_slice %181 {offsets = [0, 240], sizes = [1, 16], strides = [1, 1]} : vector<1x256xf32> to vector<1x16xf32>
    %273 = vector.shape_cast %272 : vector<1x16xf32> to vector<1x1x16xf32>
    %cst_96 = arith.constant dense<0x7F800000> : vector<1xf32>
    %274 = vector.multi_reduction <minimumf>, %273, %cst_96 [1, 2] : vector<1x1x16xf32> to vector<1xf32>
    %275 = vector.shape_cast %274 : vector<1xf32> to vector<1x1x1xf32>
    %276 = vector.extract %275[0, 0, 0] : f32 from vector<1x1x1xf32>
    %277 = vector.broadcast %276 : f32 to vector<1x1xf32>
    %278 = tpu.concatenate %187, %193, %199, %205, %211, %217, %223, %229, %235, %241, %247, %253, %259, %265, %271, %277 in 1 : vector<1x1xf32>, vector<1x1xf32>, vector<1x1xf32>, vector<1x1xf32>, vector<1x1xf32>, vector<1x1xf32>, vector<1x1xf32>, vector<1x1xf32>, vector<1x1xf32>, vector<1x1xf32>, vector<1x1xf32>, vector<1x1xf32>, vector<1x1xf32>, vector<1x1xf32>, vector<1x1xf32>, vector<1x1xf32> -> vector<1x16xf32>
    %cst_97 = arith.constant dense<0xFF800000> : vector<256xf32>
    %279 = vector.multi_reduction <maximumf>, %104, %cst_97 [0] : vector<16x256xf32> to vector<256xf32>
    %280 = vector.shape_cast %279 : vector<256xf32> to vector<1x256xf32>
    %281 = vector.extract_strided_slice %280 {offsets = [0, 0], sizes = [1, 16], strides = [1, 1]} : vector<1x256xf32> to vector<1x16xf32>
    %282 = vector.shape_cast %281 : vector<1x16xf32> to vector<1x1x16xf32>
    %cst_98 = arith.constant dense<0xFF800000> : vector<1xf32>
    %283 = vector.multi_reduction <maximumf>, %282, %cst_98 [1, 2] : vector<1x1x16xf32> to vector<1xf32>
    %284 = vector.shape_cast %283 : vector<1xf32> to vector<1x1x1xf32>
    %285 = vector.extract %284[0, 0, 0] : f32 from vector<1x1x1xf32>
    %286 = vector.broadcast %285 : f32 to vector<1x1xf32>
    %287 = vector.extract_strided_slice %280 {offsets = [0, 16], sizes = [1, 16], strides = [1, 1]} : vector<1x256xf32> to vector<1x16xf32>
    %288 = vector.shape_cast %287 : vector<1x16xf32> to vector<1x1x16xf32>
    %cst_99 = arith.constant dense<0xFF800000> : vector<1xf32>
    %289 = vector.multi_reduction <maximumf>, %288, %cst_99 [1, 2] : vector<1x1x16xf32> to vector<1xf32>
    %290 = vector.shape_cast %289 : vector<1xf32> to vector<1x1x1xf32>
    %291 = vector.extract %290[0, 0, 0] : f32 from vector<1x1x1xf32>
    %292 = vector.broadcast %291 : f32 to vector<1x1xf32>
    %293 = vector.extract_strided_slice %280 {offsets = [0, 32], sizes = [1, 16], strides = [1, 1]} : vector<1x256xf32> to vector<1x16xf32>
    %294 = vector.shape_cast %293 : vector<1x16xf32> to vector<1x1x16xf32>
    %cst_100 = arith.constant dense<0xFF800000> : vector<1xf32>
    %295 = vector.multi_reduction <maximumf>, %294, %cst_100 [1, 2] : vector<1x1x16xf32> to vector<1xf32>
    %296 = vector.shape_cast %295 : vector<1xf32> to vector<1x1x1xf32>
    %297 = vector.extract %296[0, 0, 0] : f32 from vector<1x1x1xf32>
    %298 = vector.broadcast %297 : f32 to vector<1x1xf32>
    %299 = vector.extract_strided_slice %280 {offsets = [0, 48], sizes = [1, 16], strides = [1, 1]} : vector<1x256xf32> to vector<1x16xf32>
    %300 = vector.shape_cast %299 : vector<1x16xf32> to vector<1x1x16xf32>
    %cst_101 = arith.constant dense<0xFF800000> : vector<1xf32>
    %301 = vector.multi_reduction <maximumf>, %300, %cst_101 [1, 2] : vector<1x1x16xf32> to vector<1xf32>
    %302 = vector.shape_cast %301 : vector<1xf32> to vector<1x1x1xf32>
    %303 = vector.extract %302[0, 0, 0] : f32 from vector<1x1x1xf32>
    %304 = vector.broadcast %303 : f32 to vector<1x1xf32>
    %305 = vector.extract_strided_slice %280 {offsets = [0, 64], sizes = [1, 16], strides = [1, 1]} : vector<1x256xf32> to vector<1x16xf32>
    %306 = vector.shape_cast %305 : vector<1x16xf32> to vector<1x1x16xf32>
    %cst_102 = arith.constant dense<0xFF800000> : vector<1xf32>
    %307 = vector.multi_reduction <maximumf>, %306, %cst_102 [1, 2] : vector<1x1x16xf32> to vector<1xf32>
    %308 = vector.shape_cast %307 : vector<1xf32> to vector<1x1x1xf32>
    %309 = vector.extract %308[0, 0, 0] : f32 from vector<1x1x1xf32>
    %310 = vector.broadcast %309 : f32 to vector<1x1xf32>
    %311 = vector.extract_strided_slice %280 {offsets = [0, 80], sizes = [1, 16], strides = [1, 1]} : vector<1x256xf32> to vector<1x16xf32>
    %312 = vector.shape_cast %311 : vector<1x16xf32> to vector<1x1x16xf32>
    %cst_103 = arith.constant dense<0xFF800000> : vector<1xf32>
    %313 = vector.multi_reduction <maximumf>, %312, %cst_103 [1, 2] : vector<1x1x16xf32> to vector<1xf32>
    %314 = vector.shape_cast %313 : vector<1xf32> to vector<1x1x1xf32>
    %315 = vector.extract %314[0, 0, 0] : f32 from vector<1x1x1xf32>
    %316 = vector.broadcast %315 : f32 to vector<1x1xf32>
    %317 = vector.extract_strided_slice %280 {offsets = [0, 96], sizes = [1, 16], strides = [1, 1]} : vector<1x256xf32> to vector<1x16xf32>
    %318 = vector.shape_cast %317 : vector<1x16xf32> to vector<1x1x16xf32>
    %cst_104 = arith.constant dense<0xFF800000> : vector<1xf32>
    %319 = vector.multi_reduction <maximumf>, %318, %cst_104 [1, 2] : vector<1x1x16xf32> to vector<1xf32>
    %320 = vector.shape_cast %319 : vector<1xf32> to vector<1x1x1xf32>
    %321 = vector.extract %320[0, 0, 0] : f32 from vector<1x1x1xf32>
    %322 = vector.broadcast %321 : f32 to vector<1x1xf32>
    %323 = vector.extract_strided_slice %280 {offsets = [0, 112], sizes = [1, 16], strides = [1, 1]} : vector<1x256xf32> to vector<1x16xf32>
    %324 = vector.shape_cast %323 : vector<1x16xf32> to vector<1x1x16xf32>
    %cst_105 = arith.constant dense<0xFF800000> : vector<1xf32>
    %325 = vector.multi_reduction <maximumf>, %324, %cst_105 [1, 2] : vector<1x1x16xf32> to vector<1xf32>
    %326 = vector.shape_cast %325 : vector<1xf32> to vector<1x1x1xf32>
    %327 = vector.extract %326[0, 0, 0] : f32 from vector<1x1x1xf32>
    %328 = vector.broadcast %327 : f32 to vector<1x1xf32>
    %329 = vector.extract_strided_slice %280 {offsets = [0, 128], sizes = [1, 16], strides = [1, 1]} : vector<1x256xf32> to vector<1x16xf32>
    %330 = vector.shape_cast %329 : vector<1x16xf32> to vector<1x1x16xf32>
    %cst_106 = arith.constant dense<0xFF800000> : vector<1xf32>
    %331 = vector.multi_reduction <maximumf>, %330, %cst_106 [1, 2] : vector<1x1x16xf32> to vector<1xf32>
    %332 = vector.shape_cast %331 : vector<1xf32> to vector<1x1x1xf32>
    %333 = vector.extract %332[0, 0, 0] : f32 from vector<1x1x1xf32>
    %334 = vector.broadcast %333 : f32 to vector<1x1xf32>
    %335 = vector.extract_strided_slice %280 {offsets = [0, 144], sizes = [1, 16], strides = [1, 1]} : vector<1x256xf32> to vector<1x16xf32>
    %336 = vector.shape_cast %335 : vector<1x16xf32> to vector<1x1x16xf32>
    %cst_107 = arith.constant dense<0xFF800000> : vector<1xf32>
    %337 = vector.multi_reduction <maximumf>, %336, %cst_107 [1, 2] : vector<1x1x16xf32> to vector<1xf32>
    %338 = vector.shape_cast %337 : vector<1xf32> to vector<1x1x1xf32>
    %339 = vector.extract %338[0, 0, 0] : f32 from vector<1x1x1xf32>
    %340 = vector.broadcast %339 : f32 to vector<1x1xf32>
    %341 = vector.extract_strided_slice %280 {offsets = [0, 160], sizes = [1, 16], strides = [1, 1]} : vector<1x256xf32> to vector<1x16xf32>
    %342 = vector.shape_cast %341 : vector<1x16xf32> to vector<1x1x16xf32>
    %cst_108 = arith.constant dense<0xFF800000> : vector<1xf32>
    %343 = vector.multi_reduction <maximumf>, %342, %cst_108 [1, 2] : vector<1x1x16xf32> to vector<1xf32>
    %344 = vector.shape_cast %343 : vector<1xf32> to vector<1x1x1xf32>
    %345 = vector.extract %344[0, 0, 0] : f32 from vector<1x1x1xf32>
    %346 = vector.broadcast %345 : f32 to vector<1x1xf32>
    %347 = vector.extract_strided_slice %280 {offsets = [0, 176], sizes = [1, 16], strides = [1, 1]} : vector<1x256xf32> to vector<1x16xf32>
    %348 = vector.shape_cast %347 : vector<1x16xf32> to vector<1x1x16xf32>
    %cst_109 = arith.constant dense<0xFF800000> : vector<1xf32>
    %349 = vector.multi_reduction <maximumf>, %348, %cst_109 [1, 2] : vector<1x1x16xf32> to vector<1xf32>
    %350 = vector.shape_cast %349 : vector<1xf32> to vector<1x1x1xf32>
    %351 = vector.extract %350[0, 0, 0] : f32 from vector<1x1x1xf32>
    %352 = vector.broadcast %351 : f32 to vector<1x1xf32>
    %353 = vector.extract_strided_slice %280 {offsets = [0, 192], sizes = [1, 16], strides = [1, 1]} : vector<1x256xf32> to vector<1x16xf32>
    %354 = vector.shape_cast %353 : vector<1x16xf32> to vector<1x1x16xf32>
    %cst_110 = arith.constant dense<0xFF800000> : vector<1xf32>
    %355 = vector.multi_reduction <maximumf>, %354, %cst_110 [1, 2] : vector<1x1x16xf32> to vector<1xf32>
    %356 = vector.shape_cast %355 : vector<1xf32> to vector<1x1x1xf32>
    %357 = vector.extract %356[0, 0, 0] : f32 from vector<1x1x1xf32>
    %358 = vector.broadcast %357 : f32 to vector<1x1xf32>
    %359 = vector.extract_strided_slice %280 {offsets = [0, 208], sizes = [1, 16], strides = [1, 1]} : vector<1x256xf32> to vector<1x16xf32>
    %360 = vector.shape_cast %359 : vector<1x16xf32> to vector<1x1x16xf32>
    %cst_111 = arith.constant dense<0xFF800000> : vector<1xf32>
    %361 = vector.multi_reduction <maximumf>, %360, %cst_111 [1, 2] : vector<1x1x16xf32> to vector<1xf32>
    %362 = vector.shape_cast %361 : vector<1xf32> to vector<1x1x1xf32>
    %363 = vector.extract %362[0, 0, 0] : f32 from vector<1x1x1xf32>
    %364 = vector.broadcast %363 : f32 to vector<1x1xf32>
    %365 = vector.extract_strided_slice %280 {offsets = [0, 224], sizes = [1, 16], strides = [1, 1]} : vector<1x256xf32> to vector<1x16xf32>
    %366 = vector.shape_cast %365 : vector<1x16xf32> to vector<1x1x16xf32>
    %cst_112 = arith.constant dense<0xFF800000> : vector<1xf32>
    %367 = vector.multi_reduction <maximumf>, %366, %cst_112 [1, 2] : vector<1x1x16xf32> to vector<1xf32>
    %368 = vector.shape_cast %367 : vector<1xf32> to vector<1x1x1xf32>
    %369 = vector.extract %368[0, 0, 0] : f32 from vector<1x1x1xf32>
    %370 = vector.broadcast %369 : f32 to vector<1x1xf32>
    %371 = vector.extract_strided_slice %280 {offsets = [0, 240], sizes = [1, 16], strides = [1, 1]} : vector<1x256xf32> to vector<1x16xf32>
    %372 = vector.shape_cast %371 : vector<1x16xf32> to vector<1x1x16xf32>
    %cst_113 = arith.constant dense<0xFF800000> : vector<1xf32>
    %373 = vector.multi_reduction <maximumf>, %372, %cst_113 [1, 2] : vector<1x1x16xf32> to vector<1xf32>
    %374 = vector.shape_cast %373 : vector<1xf32> to vector<1x1x1xf32>
    %375 = vector.extract %374[0, 0, 0] : f32 from vector<1x1x1xf32>
    %376 = vector.broadcast %375 : f32 to vector<1x1xf32>
    %377 = tpu.concatenate %286, %292, %298, %304, %310, %316, %322, %328, %334, %340, %346, %352, %358, %364, %370, %376 in 1 : vector<1x1xf32>, vector<1x1xf32>, vector<1x1xf32>, vector<1x1xf32>, vector<1x1xf32>, vector<1x1xf32>, vector<1x1xf32>, vector<1x1xf32>, vector<1x1xf32>, vector<1x1xf32>, vector<1x1xf32>, vector<1x1xf32>, vector<1x1xf32>, vector<1x1xf32>, vector<1x1xf32>, vector<1x1xf32> -> vector<1x16xf32>
    %cst_114 = arith.constant dense<0x7F800000> : vector<256xf32>
    %378 = vector.multi_reduction <minimumf>, %107, %cst_114 [0] : vector<16x256xf32> to vector<256xf32>
    %379 = vector.shape_cast %378 : vector<256xf32> to vector<1x256xf32>
    %380 = vector.extract_strided_slice %379 {offsets = [0, 0], sizes = [1, 16], strides = [1, 1]} : vector<1x256xf32> to vector<1x16xf32>
    %381 = vector.shape_cast %380 : vector<1x16xf32> to vector<1x1x16xf32>
    %cst_115 = arith.constant dense<0x7F800000> : vector<1xf32>
    %382 = vector.multi_reduction <minimumf>, %381, %cst_115 [1, 2] : vector<1x1x16xf32> to vector<1xf32>
    %383 = vector.shape_cast %382 : vector<1xf32> to vector<1x1x1xf32>
    %384 = vector.extract %383[0, 0, 0] : f32 from vector<1x1x1xf32>
    %385 = vector.broadcast %384 : f32 to vector<1x1xf32>
    %386 = vector.extract_strided_slice %379 {offsets = [0, 16], sizes = [1, 16], strides = [1, 1]} : vector<1x256xf32> to vector<1x16xf32>
    %387 = vector.shape_cast %386 : vector<1x16xf32> to vector<1x1x16xf32>
    %cst_116 = arith.constant dense<0x7F800000> : vector<1xf32>
    %388 = vector.multi_reduction <minimumf>, %387, %cst_116 [1, 2] : vector<1x1x16xf32> to vector<1xf32>
    %389 = vector.shape_cast %388 : vector<1xf32> to vector<1x1x1xf32>
    %390 = vector.extract %389[0, 0, 0] : f32 from vector<1x1x1xf32>
    %391 = vector.broadcast %390 : f32 to vector<1x1xf32>
    %392 = vector.extract_strided_slice %379 {offsets = [0, 32], sizes = [1, 16], strides = [1, 1]} : vector<1x256xf32> to vector<1x16xf32>
    %393 = vector.shape_cast %392 : vector<1x16xf32> to vector<1x1x16xf32>
    %cst_117 = arith.constant dense<0x7F800000> : vector<1xf32>
    %394 = vector.multi_reduction <minimumf>, %393, %cst_117 [1, 2] : vector<1x1x16xf32> to vector<1xf32>
    %395 = vector.shape_cast %394 : vector<1xf32> to vector<1x1x1xf32>
    %396 = vector.extract %395[0, 0, 0] : f32 from vector<1x1x1xf32>
    %397 = vector.broadcast %396 : f32 to vector<1x1xf32>
    %398 = vector.extract_strided_slice %379 {offsets = [0, 48], sizes = [1, 16], strides = [1, 1]} : vector<1x256xf32> to vector<1x16xf32>
    %399 = vector.shape_cast %398 : vector<1x16xf32> to vector<1x1x16xf32>
    %cst_118 = arith.constant dense<0x7F800000> : vector<1xf32>
    %400 = vector.multi_reduction <minimumf>, %399, %cst_118 [1, 2] : vector<1x1x16xf32> to vector<1xf32>
    %401 = vector.shape_cast %400 : vector<1xf32> to vector<1x1x1xf32>
    %402 = vector.extract %401[0, 0, 0] : f32 from vector<1x1x1xf32>
    %403 = vector.broadcast %402 : f32 to vector<1x1xf32>
    %404 = vector.extract_strided_slice %379 {offsets = [0, 64], sizes = [1, 16], strides = [1, 1]} : vector<1x256xf32> to vector<1x16xf32>
    %405 = vector.shape_cast %404 : vector<1x16xf32> to vector<1x1x16xf32>
    %cst_119 = arith.constant dense<0x7F800000> : vector<1xf32>
    %406 = vector.multi_reduction <minimumf>, %405, %cst_119 [1, 2] : vector<1x1x16xf32> to vector<1xf32>
    %407 = vector.shape_cast %406 : vector<1xf32> to vector<1x1x1xf32>
    %408 = vector.extract %407[0, 0, 0] : f32 from vector<1x1x1xf32>
    %409 = vector.broadcast %408 : f32 to vector<1x1xf32>
    %410 = vector.extract_strided_slice %379 {offsets = [0, 80], sizes = [1, 16], strides = [1, 1]} : vector<1x256xf32> to vector<1x16xf32>
    %411 = vector.shape_cast %410 : vector<1x16xf32> to vector<1x1x16xf32>
    %cst_120 = arith.constant dense<0x7F800000> : vector<1xf32>
    %412 = vector.multi_reduction <minimumf>, %411, %cst_120 [1, 2] : vector<1x1x16xf32> to vector<1xf32>
    %413 = vector.shape_cast %412 : vector<1xf32> to vector<1x1x1xf32>
    %414 = vector.extract %413[0, 0, 0] : f32 from vector<1x1x1xf32>
    %415 = vector.broadcast %414 : f32 to vector<1x1xf32>
    %416 = vector.extract_strided_slice %379 {offsets = [0, 96], sizes = [1, 16], strides = [1, 1]} : vector<1x256xf32> to vector<1x16xf32>
    %417 = vector.shape_cast %416 : vector<1x16xf32> to vector<1x1x16xf32>
    %cst_121 = arith.constant dense<0x7F800000> : vector<1xf32>
    %418 = vector.multi_reduction <minimumf>, %417, %cst_121 [1, 2] : vector<1x1x16xf32> to vector<1xf32>
    %419 = vector.shape_cast %418 : vector<1xf32> to vector<1x1x1xf32>
    %420 = vector.extract %419[0, 0, 0] : f32 from vector<1x1x1xf32>
    %421 = vector.broadcast %420 : f32 to vector<1x1xf32>
    %422 = vector.extract_strided_slice %379 {offsets = [0, 112], sizes = [1, 16], strides = [1, 1]} : vector<1x256xf32> to vector<1x16xf32>
    %423 = vector.shape_cast %422 : vector<1x16xf32> to vector<1x1x16xf32>
    %cst_122 = arith.constant dense<0x7F800000> : vector<1xf32>
    %424 = vector.multi_reduction <minimumf>, %423, %cst_122 [1, 2] : vector<1x1x16xf32> to vector<1xf32>
    %425 = vector.shape_cast %424 : vector<1xf32> to vector<1x1x1xf32>
    %426 = vector.extract %425[0, 0, 0] : f32 from vector<1x1x1xf32>
    %427 = vector.broadcast %426 : f32 to vector<1x1xf32>
    %428 = vector.extract_strided_slice %379 {offsets = [0, 128], sizes = [1, 16], strides = [1, 1]} : vector<1x256xf32> to vector<1x16xf32>
    %429 = vector.shape_cast %428 : vector<1x16xf32> to vector<1x1x16xf32>
    %cst_123 = arith.constant dense<0x7F800000> : vector<1xf32>
    %430 = vector.multi_reduction <minimumf>, %429, %cst_123 [1, 2] : vector<1x1x16xf32> to vector<1xf32>
    %431 = vector.shape_cast %430 : vector<1xf32> to vector<1x1x1xf32>
    %432 = vector.extract %431[0, 0, 0] : f32 from vector<1x1x1xf32>
    %433 = vector.broadcast %432 : f32 to vector<1x1xf32>
    %434 = vector.extract_strided_slice %379 {offsets = [0, 144], sizes = [1, 16], strides = [1, 1]} : vector<1x256xf32> to vector<1x16xf32>
    %435 = vector.shape_cast %434 : vector<1x16xf32> to vector<1x1x16xf32>
    %cst_124 = arith.constant dense<0x7F800000> : vector<1xf32>
    %436 = vector.multi_reduction <minimumf>, %435, %cst_124 [1, 2] : vector<1x1x16xf32> to vector<1xf32>
    %437 = vector.shape_cast %436 : vector<1xf32> to vector<1x1x1xf32>
    %438 = vector.extract %437[0, 0, 0] : f32 from vector<1x1x1xf32>
    %439 = vector.broadcast %438 : f32 to vector<1x1xf32>
    %440 = vector.extract_strided_slice %379 {offsets = [0, 160], sizes = [1, 16], strides = [1, 1]} : vector<1x256xf32> to vector<1x16xf32>
    %441 = vector.shape_cast %440 : vector<1x16xf32> to vector<1x1x16xf32>
    %cst_125 = arith.constant dense<0x7F800000> : vector<1xf32>
    %442 = vector.multi_reduction <minimumf>, %441, %cst_125 [1, 2] : vector<1x1x16xf32> to vector<1xf32>
    %443 = vector.shape_cast %442 : vector<1xf32> to vector<1x1x1xf32>
    %444 = vector.extract %443[0, 0, 0] : f32 from vector<1x1x1xf32>
    %445 = vector.broadcast %444 : f32 to vector<1x1xf32>
    %446 = vector.extract_strided_slice %379 {offsets = [0, 176], sizes = [1, 16], strides = [1, 1]} : vector<1x256xf32> to vector<1x16xf32>
    %447 = vector.shape_cast %446 : vector<1x16xf32> to vector<1x1x16xf32>
    %cst_126 = arith.constant dense<0x7F800000> : vector<1xf32>
    %448 = vector.multi_reduction <minimumf>, %447, %cst_126 [1, 2] : vector<1x1x16xf32> to vector<1xf32>
    %449 = vector.shape_cast %448 : vector<1xf32> to vector<1x1x1xf32>
    %450 = vector.extract %449[0, 0, 0] : f32 from vector<1x1x1xf32>
    %451 = vector.broadcast %450 : f32 to vector<1x1xf32>
    %452 = vector.extract_strided_slice %379 {offsets = [0, 192], sizes = [1, 16], strides = [1, 1]} : vector<1x256xf32> to vector<1x16xf32>
    %453 = vector.shape_cast %452 : vector<1x16xf32> to vector<1x1x16xf32>
    %cst_127 = arith.constant dense<0x7F800000> : vector<1xf32>
    %454 = vector.multi_reduction <minimumf>, %453, %cst_127 [1, 2] : vector<1x1x16xf32> to vector<1xf32>
    %455 = vector.shape_cast %454 : vector<1xf32> to vector<1x1x1xf32>
    %456 = vector.extract %455[0, 0, 0] : f32 from vector<1x1x1xf32>
    %457 = vector.broadcast %456 : f32 to vector<1x1xf32>
    %458 = vector.extract_strided_slice %379 {offsets = [0, 208], sizes = [1, 16], strides = [1, 1]} : vector<1x256xf32> to vector<1x16xf32>
    %459 = vector.shape_cast %458 : vector<1x16xf32> to vector<1x1x16xf32>
    %cst_128 = arith.constant dense<0x7F800000> : vector<1xf32>
    %460 = vector.multi_reduction <minimumf>, %459, %cst_128 [1, 2] : vector<1x1x16xf32> to vector<1xf32>
    %461 = vector.shape_cast %460 : vector<1xf32> to vector<1x1x1xf32>
    %462 = vector.extract %461[0, 0, 0] : f32 from vector<1x1x1xf32>
    %463 = vector.broadcast %462 : f32 to vector<1x1xf32>
    %464 = vector.extract_strided_slice %379 {offsets = [0, 224], sizes = [1, 16], strides = [1, 1]} : vector<1x256xf32> to vector<1x16xf32>
    %465 = vector.shape_cast %464 : vector<1x16xf32> to vector<1x1x16xf32>
    %cst_129 = arith.constant dense<0x7F800000> : vector<1xf32>
    %466 = vector.multi_reduction <minimumf>, %465, %cst_129 [1, 2] : vector<1x1x16xf32> to vector<1xf32>
    %467 = vector.shape_cast %466 : vector<1xf32> to vector<1x1x1xf32>
    %468 = vector.extract %467[0, 0, 0] : f32 from vector<1x1x1xf32>
    %469 = vector.broadcast %468 : f32 to vector<1x1xf32>
    %470 = vector.extract_strided_slice %379 {offsets = [0, 240], sizes = [1, 16], strides = [1, 1]} : vector<1x256xf32> to vector<1x16xf32>
    %471 = vector.shape_cast %470 : vector<1x16xf32> to vector<1x1x16xf32>
    %cst_130 = arith.constant dense<0x7F800000> : vector<1xf32>
    %472 = vector.multi_reduction <minimumf>, %471, %cst_130 [1, 2] : vector<1x1x16xf32> to vector<1xf32>
    %473 = vector.shape_cast %472 : vector<1xf32> to vector<1x1x1xf32>
    %474 = vector.extract %473[0, 0, 0] : f32 from vector<1x1x1xf32>
    %475 = vector.broadcast %474 : f32 to vector<1x1xf32>
    %476 = tpu.concatenate %385, %391, %397, %403, %409, %415, %421, %427, %433, %439, %445, %451, %457, %463, %469, %475 in 1 : vector<1x1xf32>, vector<1x1xf32>, vector<1x1xf32>, vector<1x1xf32>, vector<1x1xf32>, vector<1x1xf32>, vector<1x1xf32>, vector<1x1xf32>, vector<1x1xf32>, vector<1x1xf32>, vector<1x1xf32>, vector<1x1xf32>, vector<1x1xf32>, vector<1x1xf32>, vector<1x1xf32>, vector<1x1xf32> -> vector<1x16xf32>
    %cst_131 = arith.constant dense<0xFF800000> : vector<256xf32>
    %477 = vector.multi_reduction <maximumf>, %107, %cst_131 [0] : vector<16x256xf32> to vector<256xf32>
    %478 = vector.shape_cast %477 : vector<256xf32> to vector<1x256xf32>
    %479 = vector.extract_strided_slice %478 {offsets = [0, 0], sizes = [1, 16], strides = [1, 1]} : vector<1x256xf32> to vector<1x16xf32>
    %480 = vector.shape_cast %479 : vector<1x16xf32> to vector<1x1x16xf32>
    %cst_132 = arith.constant dense<0xFF800000> : vector<1xf32>
    %481 = vector.multi_reduction <maximumf>, %480, %cst_132 [1, 2] : vector<1x1x16xf32> to vector<1xf32>
    %482 = vector.shape_cast %481 : vector<1xf32> to vector<1x1x1xf32>
    %483 = vector.extract %482[0, 0, 0] : f32 from vector<1x1x1xf32>
    %484 = vector.broadcast %483 : f32 to vector<1x1xf32>
    %485 = vector.extract_strided_slice %478 {offsets = [0, 16], sizes = [1, 16], strides = [1, 1]} : vector<1x256xf32> to vector<1x16xf32>
    %486 = vector.shape_cast %485 : vector<1x16xf32> to vector<1x1x16xf32>
    %cst_133 = arith.constant dense<0xFF800000> : vector<1xf32>
    %487 = vector.multi_reduction <maximumf>, %486, %cst_133 [1, 2] : vector<1x1x16xf32> to vector<1xf32>
    %488 = vector.shape_cast %487 : vector<1xf32> to vector<1x1x1xf32>
    %489 = vector.extract %488[0, 0, 0] : f32 from vector<1x1x1xf32>
    %490 = vector.broadcast %489 : f32 to vector<1x1xf32>
    %491 = vector.extract_strided_slice %478 {offsets = [0, 32], sizes = [1, 16], strides = [1, 1]} : vector<1x256xf32> to vector<1x16xf32>
    %492 = vector.shape_cast %491 : vector<1x16xf32> to vector<1x1x16xf32>
    %cst_134 = arith.constant dense<0xFF800000> : vector<1xf32>
    %493 = vector.multi_reduction <maximumf>, %492, %cst_134 [1, 2] : vector<1x1x16xf32> to vector<1xf32>
    %494 = vector.shape_cast %493 : vector<1xf32> to vector<1x1x1xf32>
    %495 = vector.extract %494[0, 0, 0] : f32 from vector<1x1x1xf32>
    %496 = vector.broadcast %495 : f32 to vector<1x1xf32>
    %497 = vector.extract_strided_slice %478 {offsets = [0, 48], sizes = [1, 16], strides = [1, 1]} : vector<1x256xf32> to vector<1x16xf32>
    %498 = vector.shape_cast %497 : vector<1x16xf32> to vector<1x1x16xf32>
    %cst_135 = arith.constant dense<0xFF800000> : vector<1xf32>
    %499 = vector.multi_reduction <maximumf>, %498, %cst_135 [1, 2] : vector<1x1x16xf32> to vector<1xf32>
    %500 = vector.shape_cast %499 : vector<1xf32> to vector<1x1x1xf32>
    %501 = vector.extract %500[0, 0, 0] : f32 from vector<1x1x1xf32>
    %502 = vector.broadcast %501 : f32 to vector<1x1xf32>
    %503 = vector.extract_strided_slice %478 {offsets = [0, 64], sizes = [1, 16], strides = [1, 1]} : vector<1x256xf32> to vector<1x16xf32>
    %504 = vector.shape_cast %503 : vector<1x16xf32> to vector<1x1x16xf32>
    %cst_136 = arith.constant dense<0xFF800000> : vector<1xf32>
    %505 = vector.multi_reduction <maximumf>, %504, %cst_136 [1, 2] : vector<1x1x16xf32> to vector<1xf32>
    %506 = vector.shape_cast %505 : vector<1xf32> to vector<1x1x1xf32>
    %507 = vector.extract %506[0, 0, 0] : f32 from vector<1x1x1xf32>
    %508 = vector.broadcast %507 : f32 to vector<1x1xf32>
    %509 = vector.extract_strided_slice %478 {offsets = [0, 80], sizes = [1, 16], strides = [1, 1]} : vector<1x256xf32> to vector<1x16xf32>
    %510 = vector.shape_cast %509 : vector<1x16xf32> to vector<1x1x16xf32>
    %cst_137 = arith.constant dense<0xFF800000> : vector<1xf32>
    %511 = vector.multi_reduction <maximumf>, %510, %cst_137 [1, 2] : vector<1x1x16xf32> to vector<1xf32>
    %512 = vector.shape_cast %511 : vector<1xf32> to vector<1x1x1xf32>
    %513 = vector.extract %512[0, 0, 0] : f32 from vector<1x1x1xf32>
    %514 = vector.broadcast %513 : f32 to vector<1x1xf32>
    %515 = vector.extract_strided_slice %478 {offsets = [0, 96], sizes = [1, 16], strides = [1, 1]} : vector<1x256xf32> to vector<1x16xf32>
    %516 = vector.shape_cast %515 : vector<1x16xf32> to vector<1x1x16xf32>
    %cst_138 = arith.constant dense<0xFF800000> : vector<1xf32>
    %517 = vector.multi_reduction <maximumf>, %516, %cst_138 [1, 2] : vector<1x1x16xf32> to vector<1xf32>
    %518 = vector.shape_cast %517 : vector<1xf32> to vector<1x1x1xf32>
    %519 = vector.extract %518[0, 0, 0] : f32 from vector<1x1x1xf32>
    %520 = vector.broadcast %519 : f32 to vector<1x1xf32>
    %521 = vector.extract_strided_slice %478 {offsets = [0, 112], sizes = [1, 16], strides = [1, 1]} : vector<1x256xf32> to vector<1x16xf32>
    %522 = vector.shape_cast %521 : vector<1x16xf32> to vector<1x1x16xf32>
    %cst_139 = arith.constant dense<0xFF800000> : vector<1xf32>
    %523 = vector.multi_reduction <maximumf>, %522, %cst_139 [1, 2] : vector<1x1x16xf32> to vector<1xf32>
    %524 = vector.shape_cast %523 : vector<1xf32> to vector<1x1x1xf32>
    %525 = vector.extract %524[0, 0, 0] : f32 from vector<1x1x1xf32>
    %526 = vector.broadcast %525 : f32 to vector<1x1xf32>
    %527 = vector.extract_strided_slice %478 {offsets = [0, 128], sizes = [1, 16], strides = [1, 1]} : vector<1x256xf32> to vector<1x16xf32>
    %528 = vector.shape_cast %527 : vector<1x16xf32> to vector<1x1x16xf32>
    %cst_140 = arith.constant dense<0xFF800000> : vector<1xf32>
    %529 = vector.multi_reduction <maximumf>, %528, %cst_140 [1, 2] : vector<1x1x16xf32> to vector<1xf32>
    %530 = vector.shape_cast %529 : vector<1xf32> to vector<1x1x1xf32>
    %531 = vector.extract %530[0, 0, 0] : f32 from vector<1x1x1xf32>
    %532 = vector.broadcast %531 : f32 to vector<1x1xf32>
    %533 = vector.extract_strided_slice %478 {offsets = [0, 144], sizes = [1, 16], strides = [1, 1]} : vector<1x256xf32> to vector<1x16xf32>
    %534 = vector.shape_cast %533 : vector<1x16xf32> to vector<1x1x16xf32>
    %cst_141 = arith.constant dense<0xFF800000> : vector<1xf32>
    %535 = vector.multi_reduction <maximumf>, %534, %cst_141 [1, 2] : vector<1x1x16xf32> to vector<1xf32>
    %536 = vector.shape_cast %535 : vector<1xf32> to vector<1x1x1xf32>
    %537 = vector.extract %536[0, 0, 0] : f32 from vector<1x1x1xf32>
    %538 = vector.broadcast %537 : f32 to vector<1x1xf32>
    %539 = vector.extract_strided_slice %478 {offsets = [0, 160], sizes = [1, 16], strides = [1, 1]} : vector<1x256xf32> to vector<1x16xf32>
    %540 = vector.shape_cast %539 : vector<1x16xf32> to vector<1x1x16xf32>
    %cst_142 = arith.constant dense<0xFF800000> : vector<1xf32>
    %541 = vector.multi_reduction <maximumf>, %540, %cst_142 [1, 2] : vector<1x1x16xf32> to vector<1xf32>
    %542 = vector.shape_cast %541 : vector<1xf32> to vector<1x1x1xf32>
    %543 = vector.extract %542[0, 0, 0] : f32 from vector<1x1x1xf32>
    %544 = vector.broadcast %543 : f32 to vector<1x1xf32>
    %545 = vector.extract_strided_slice %478 {offsets = [0, 176], sizes = [1, 16], strides = [1, 1]} : vector<1x256xf32> to vector<1x16xf32>
    %546 = vector.shape_cast %545 : vector<1x16xf32> to vector<1x1x16xf32>
    %cst_143 = arith.constant dense<0xFF800000> : vector<1xf32>
    %547 = vector.multi_reduction <maximumf>, %546, %cst_143 [1, 2] : vector<1x1x16xf32> to vector<1xf32>
    %548 = vector.shape_cast %547 : vector<1xf32> to vector<1x1x1xf32>
    %549 = vector.extract %548[0, 0, 0] : f32 from vector<1x1x1xf32>
    %550 = vector.broadcast %549 : f32 to vector<1x1xf32>
    %551 = vector.extract_strided_slice %478 {offsets = [0, 192], sizes = [1, 16], strides = [1, 1]} : vector<1x256xf32> to vector<1x16xf32>
    %552 = vector.shape_cast %551 : vector<1x16xf32> to vector<1x1x16xf32>
    %cst_144 = arith.constant dense<0xFF800000> : vector<1xf32>
    %553 = vector.multi_reduction <maximumf>, %552, %cst_144 [1, 2] : vector<1x1x16xf32> to vector<1xf32>
    %554 = vector.shape_cast %553 : vector<1xf32> to vector<1x1x1xf32>
    %555 = vector.extract %554[0, 0, 0] : f32 from vector<1x1x1xf32>
    %556 = vector.broadcast %555 : f32 to vector<1x1xf32>
    %557 = vector.extract_strided_slice %478 {offsets = [0, 208], sizes = [1, 16], strides = [1, 1]} : vector<1x256xf32> to vector<1x16xf32>
    %558 = vector.shape_cast %557 : vector<1x16xf32> to vector<1x1x16xf32>
    %cst_145 = arith.constant dense<0xFF800000> : vector<1xf32>
    %559 = vector.multi_reduction <maximumf>, %558, %cst_145 [1, 2] : vector<1x1x16xf32> to vector<1xf32>
    %560 = vector.shape_cast %559 : vector<1xf32> to vector<1x1x1xf32>
    %561 = vector.extract %560[0, 0, 0] : f32 from vector<1x1x1xf32>
    %562 = vector.broadcast %561 : f32 to vector<1x1xf32>
    %563 = vector.extract_strided_slice %478 {offsets = [0, 224], sizes = [1, 16], strides = [1, 1]} : vector<1x256xf32> to vector<1x16xf32>
    %564 = vector.shape_cast %563 : vector<1x16xf32> to vector<1x1x16xf32>
    %cst_146 = arith.constant dense<0xFF800000> : vector<1xf32>
    %565 = vector.multi_reduction <maximumf>, %564, %cst_146 [1, 2] : vector<1x1x16xf32> to vector<1xf32>
    %566 = vector.shape_cast %565 : vector<1xf32> to vector<1x1x1xf32>
    %567 = vector.extract %566[0, 0, 0] : f32 from vector<1x1x1xf32>
    %568 = vector.broadcast %567 : f32 to vector<1x1xf32>
    %569 = vector.extract_strided_slice %478 {offsets = [0, 240], sizes = [1, 16], strides = [1, 1]} : vector<1x256xf32> to vector<1x16xf32>
    %570 = vector.shape_cast %569 : vector<1x16xf32> to vector<1x1x16xf32>
    %cst_147 = arith.constant dense<0xFF800000> : vector<1xf32>
    %571 = vector.multi_reduction <maximumf>, %570, %cst_147 [1, 2] : vector<1x1x16xf32> to vector<1xf32>
    %572 = vector.shape_cast %571 : vector<1xf32> to vector<1x1x1xf32>
    %573 = vector.extract %572[0, 0, 0] : f32 from vector<1x1x1xf32>
    %574 = vector.broadcast %573 : f32 to vector<1x1xf32>
    %575 = tpu.concatenate %484, %490, %496, %502, %508, %514, %520, %526, %532, %538, %544, %550, %556, %562, %568, %574 in 1 : vector<1x1xf32>, vector<1x1xf32>, vector<1x1xf32>, vector<1x1xf32>, vector<1x1xf32>, vector<1x1xf32>, vector<1x1xf32>, vector<1x1xf32>, vector<1x1xf32>, vector<1x1xf32>, vector<1x1xf32>, vector<1x1xf32>, vector<1x1xf32>, vector<1x1xf32>, vector<1x1xf32>, vector<1x1xf32> -> vector<1x16xf32>
    %576 = arith.subf %377, %278 : vector<1x16xf32>
    %cst_148 = arith.constant 9.99999993E-9 : f32
    %577 = vector.broadcast %cst_148 : f32 to vector<1x16xf32>
    %578 = arith.addf %576, %577 : vector<1x16xf32>
    %cst_149 = arith.constant 1.000000e+00 : f32
    %579 = vector.broadcast %cst_149 : f32 to vector<1x16xf32>
    %580 = arith.divf %579, %578 : vector<1x16xf32>
    %581 = arith.subf %575, %476 : vector<1x16xf32>
    %cst_150 = arith.constant 9.99999993E-9 : f32
    %582 = vector.broadcast %cst_150 : f32 to vector<1x16xf32>
    %583 = arith.addf %581, %582 : vector<1x16xf32>
    %cst_151 = arith.constant 1.000000e+00 : f32
    %584 = vector.broadcast %cst_151 : f32 to vector<1x16xf32>
    %585 = arith.divf %584, %583 : vector<1x16xf32>
    %cst_152 = arith.constant dense<0.000000e+00> : vector<1x256xf32>
    %586 = tpu.matmul %278, %9, %cst_152 {dimension_numbers = #tpu.dot_dimension_numbers<[1], [0], [0], [1], [0, 0, 1, 1], [], []>} : vector<1x16xf32>, vector<16x256xf32>, vector<1x256xf32> -> vector<1x256xf32>
    %cst_153 = arith.constant dense<0.000000e+00> : vector<1x256xf32>
    %587 = tpu.matmul %580, %9, %cst_153 {dimension_numbers = #tpu.dot_dimension_numbers<[1], [0], [0], [1], [0, 0, 1, 1], [], []>} : vector<1x16xf32>, vector<16x256xf32>, vector<1x256xf32> -> vector<1x256xf32>
    %cst_154 = arith.constant dense<0.000000e+00> : vector<1x256xf32>
    %588 = tpu.matmul %476, %9, %cst_154 {dimension_numbers = #tpu.dot_dimension_numbers<[1], [0], [0], [1], [0, 0, 1, 1], [], []>} : vector<1x16xf32>, vector<16x256xf32>, vector<1x256xf32> -> vector<1x256xf32>
    %cst_155 = arith.constant dense<0.000000e+00> : vector<1x256xf32>
    %589 = tpu.matmul %585, %9, %cst_155 {dimension_numbers = #tpu.dot_dimension_numbers<[1], [0], [0], [1], [0, 0, 1, 1], [], []>} : vector<1x16xf32>, vector<16x256xf32>, vector<1x256xf32> -> vector<1x256xf32>
    %590 = vector.broadcast %586 : vector<1x256xf32> to vector<16x256xf32>
    %591 = arith.subf %104, %590 : vector<16x256xf32>
    %592 = vector.broadcast %587 : vector<1x256xf32> to vector<16x256xf32>
    %593 = arith.mulf %591, %592 : vector<16x256xf32>
    %594 = vector.broadcast %588 : vector<1x256xf32> to vector<16x256xf32>
    %595 = arith.subf %107, %594 : vector<16x256xf32>
    %596 = vector.broadcast %589 : vector<1x256xf32> to vector<16x256xf32>
    %597 = arith.mulf %595, %596 : vector<16x256xf32>
    %598 = arith.mulf %593, %593 : vector<16x256xf32>
    %599 = arith.mulf %597, %597 : vector<16x256xf32>
    %600 = arith.addf %598, %599 : vector<16x256xf32>
    %cst_156 = arith.constant 0.000000e+00 : f32
    %601 = vector.broadcast %cst_156 : f32 to vector<16x256xf32>
    %602 = arith.subf %601, %600 : vector<16x256xf32>
    %cst_157 = arith.constant 9.99999997E-7 : f32
    %603 = vector.broadcast %cst_157 : f32 to vector<16x256xf32>
    %604 = arith.divf %602, %603 : vector<16x256xf32>
    %605 = math.exp %604 : vector<16x256xf32>
    %cst_158 = arith.constant 1.000000e+00 : f32
    %606 = vector.broadcast %cst_158 : f32 to vector<16x256xf32>
    %607 = arith.subf %606, %605 : vector<16x256xf32>
    %608 = arith.mulf %179, %607 : vector<16x256xf32>
    %609 = arith.mulf %608, %8 : vector<16x256xf32>
    %610 = vector.extract_strided_slice %609 {offsets = [0, 0], sizes = [16, 128], strides = [1, 1]} : vector<16x256xf32> to vector<16x128xf32>
    %611 = vector.extract_strided_slice %609 {offsets = [0, 128], sizes = [16, 128], strides = [1, 1]} : vector<16x256xf32> to vector<16x128xf32>
    %cst_159 = arith.constant 6.000000e-02 : f32
    %612 = vector.broadcast %cst_159 : f32 to vector<16x256xf32>
    %613 = arith.mulf %612, %12 : vector<16x256xf32>
    %cst_160 = arith.constant 6.300000e-01 : f32
    %614 = vector.broadcast %cst_160 : f32 to vector<16x256xf32>
    %615 = arith.mulf %614, %14 : vector<16x256xf32>
    %616 = arith.addf %613, %615 : vector<16x256xf32>
    %cst_161 = arith.constant 2.700000e-01 : f32
    %617 = vector.broadcast %cst_161 : f32 to vector<16x256xf32>
    %618 = arith.mulf %617, %16 : vector<16x256xf32>
    %619 = arith.addf %616, %618 : vector<16x256xf32>
    %cst_162 = arith.constant 3.000000e-01 : f32
    %620 = vector.broadcast %cst_162 : f32 to vector<16x256xf32>
    %621 = arith.mulf %620, %12 : vector<16x256xf32>
    %cst_163 = arith.constant 4.000000e-02 : f32
    %622 = vector.broadcast %cst_163 : f32 to vector<16x256xf32>
    %623 = arith.mulf %622, %14 : vector<16x256xf32>
    %624 = arith.addf %621, %623 : vector<16x256xf32>
    %cst_164 = arith.constant -3.500000e-01 : f32
    %625 = vector.broadcast %cst_164 : f32 to vector<16x256xf32>
    %626 = arith.mulf %625, %16 : vector<16x256xf32>
    %627 = arith.addf %624, %626 : vector<16x256xf32>
    %cst_165 = arith.constant 3.400000e-01 : f32
    %628 = vector.broadcast %cst_165 : f32 to vector<16x256xf32>
    %629 = arith.mulf %628, %12 : vector<16x256xf32>
    %cst_166 = arith.constant -6.000000e-01 : f32
    %630 = vector.broadcast %cst_166 : f32 to vector<16x256xf32>
    %631 = arith.mulf %630, %14 : vector<16x256xf32>
    %632 = arith.addf %629, %631 : vector<16x256xf32>
    %cst_167 = arith.constant 1.700000e-01 : f32
    %633 = vector.broadcast %cst_167 : f32 to vector<16x256xf32>
    %634 = arith.mulf %633, %16 : vector<16x256xf32>
    %635 = arith.addf %632, %634 : vector<16x256xf32>
    %636 = vector.extract_strided_slice %627 {offsets = [0, 0], sizes = [16, 128], strides = [1, 1]} : vector<16x256xf32> to vector<16x128xf32>
    %637 = vector.extract_strided_slice %627 {offsets = [0, 128], sizes = [16, 128], strides = [1, 1]} : vector<16x256xf32> to vector<16x128xf32>
    %638 = vector.extract_strided_slice %635 {offsets = [0, 0], sizes = [16, 128], strides = [1, 1]} : vector<16x256xf32> to vector<16x128xf32>
    %639 = vector.extract_strided_slice %635 {offsets = [0, 128], sizes = [16, 128], strides = [1, 1]} : vector<16x256xf32> to vector<16x128xf32>
    %640 = tpu.iota {dimensions = array<i32: 1>} : vector<1x256xi32>
    %c15_i32 = arith.constant 15 : i32
    %641 = vector.broadcast %c15_i32 : i32 to vector<1x256xi32>
    %642 = arith.andi %640, %641 : vector<1x256xi32>
    %c0_i32 = arith.constant 0 : i32
    %643 = vector.broadcast %c0_i32 : i32 to vector<1x256xi32>
    %644 = arith.cmpi ne, %642, %643 : vector<1x256xi32>
    %645 = arith.extui %644 : vector<1x256xi1> to vector<1x256xi32>
    %646 = arith.sitofp %645 : vector<1x256xi32> to vector<1x256xf32>
    %c15_i32_168 = arith.constant 15 : i32
    %647 = vector.broadcast %c15_i32_168 : i32 to vector<1x256xi32>
    %648 = arith.cmpi ne, %642, %647 : vector<1x256xi32>
    %649 = arith.extui %648 : vector<1x256xi1> to vector<1x256xi32>
    %650 = arith.sitofp %649 : vector<1x256xi32> to vector<1x256xf32>
    %c255_i32 = arith.constant 255 : i32
    %651 = tpu.dynamic_rotate %619 by %c255_i32 dim 1 : vector<16x256xf32>, i32 -> vector<16x256xf32>
    %652 = vector.broadcast %650 : vector<1x256xf32> to vector<16x256xf32>
    %653 = arith.mulf %651, %652 : vector<16x256xf32>
    %c1_i32 = arith.constant 1 : i32
    %654 = tpu.dynamic_rotate %619 by %c1_i32 dim 1 : vector<16x256xf32>, i32 -> vector<16x256xf32>
    %655 = vector.broadcast %646 : vector<1x256xf32> to vector<16x256xf32>
    %656 = arith.mulf %654, %655 : vector<16x256xf32>
    %657 = arith.subf %653, %656 : vector<16x256xf32>
    %cst_169 = arith.constant 3.000000e+00 : f32
    %658 = vector.broadcast %cst_169 : f32 to vector<16x256xf32>
    %659 = arith.mulf %658, %656 : vector<16x256xf32>
    %cst_170 = arith.constant 1.000000e+01 : f32
    %660 = vector.broadcast %cst_170 : f32 to vector<16x256xf32>
    %661 = arith.mulf %660, %619 : vector<16x256xf32>
    %662 = arith.addf %659, %661 : vector<16x256xf32>
    %cst_171 = arith.constant 3.000000e+00 : f32
    %663 = vector.broadcast %cst_171 : f32 to vector<16x256xf32>
    %664 = arith.mulf %663, %653 : vector<16x256xf32>
    %665 = arith.addf %662, %664 : vector<16x256xf32>
    %cst_172 = arith.constant dense<0.000000e+00> : vector<16x256xf32>
    %666 = tpu.matmul %5, %657, %cst_172 {dimension_numbers = #tpu.dot_dimension_numbers<[1], [0], [0], [1], [0, 0, 1, 1], [], []>} : vector<16x16xf32>, vector<16x256xf32>, vector<16x256xf32> -> vector<16x256xf32>
    %cst_173 = arith.constant dense<0.000000e+00> : vector<16x256xf32>
    %667 = tpu.matmul %7, %665, %cst_173 {dimension_numbers = #tpu.dot_dimension_numbers<[1], [0], [0], [1], [0, 0, 1, 1], [], []>} : vector<16x16xf32>, vector<16x256xf32>, vector<16x256xf32> -> vector<16x256xf32>
    %668 = arith.mulf %666, %666 : vector<16x256xf32>
    %669 = arith.mulf %667, %667 : vector<16x256xf32>
    %670 = arith.addf %668, %669 : vector<16x256xf32>
    %671 = math.sqrt %670 : vector<16x256xf32>
    %672 = vector.extract_strided_slice %671 {offsets = [0, 0], sizes = [16, 128], strides = [1, 1]} : vector<16x256xf32> to vector<16x128xf32>
    %673 = vector.extract_strided_slice %671 {offsets = [0, 128], sizes = [16, 128], strides = [1, 1]} : vector<16x256xf32> to vector<16x128xf32>
    %674 = arith.maximumf %610, %611 : vector<16x128xf32>
    %cst_174 = arith.constant 2.000000e+00 : f32
    %675 = vector.broadcast %cst_174 : f32 to vector<16x128xf32>
    %676 = arith.mulf %675, %610 : vector<16x128xf32>
    %677 = arith.mulf %676, %611 : vector<16x128xf32>
    %cst_175 = arith.constant 1.270000e+00 : f32
    %678 = vector.broadcast %cst_175 : f32 to vector<16x128xf32>
    %679 = arith.addf %677, %678 : vector<16x128xf32>
    %680 = arith.mulf %610, %610 : vector<16x128xf32>
    %681 = arith.mulf %611, %611 : vector<16x128xf32>
    %682 = arith.addf %680, %681 : vector<16x128xf32>
    %cst_176 = arith.constant 1.270000e+00 : f32
    %683 = vector.broadcast %cst_176 : f32 to vector<16x128xf32>
    %684 = arith.addf %682, %683 : vector<16x128xf32>
    %685 = arith.divf %679, %684 : vector<16x128xf32>
    %cst_177 = arith.constant 2.000000e+00 : f32
    %686 = vector.broadcast %cst_177 : f32 to vector<16x128xf32>
    %687 = arith.mulf %686, %672 : vector<16x128xf32>
    %688 = arith.mulf %687, %673 : vector<16x128xf32>
    %cst_178 = arith.constant 0.00593617838 : f32
    %689 = vector.broadcast %cst_178 : f32 to vector<16x128xf32>
    %690 = arith.addf %688, %689 : vector<16x128xf32>
    %691 = arith.mulf %672, %672 : vector<16x128xf32>
    %692 = arith.mulf %673, %673 : vector<16x128xf32>
    %693 = arith.addf %691, %692 : vector<16x128xf32>
    %cst_179 = arith.constant 0.00593617838 : f32
    %694 = vector.broadcast %cst_179 : f32 to vector<16x128xf32>
    %695 = arith.addf %693, %694 : vector<16x128xf32>
    %696 = arith.divf %690, %695 : vector<16x128xf32>
    %cst_180 = arith.constant 2.000000e+00 : f32
    %697 = vector.broadcast %cst_180 : f32 to vector<16x128xf32>
    %698 = arith.mulf %697, %636 : vector<16x128xf32>
    %699 = arith.mulf %698, %637 : vector<16x128xf32>
    %cst_181 = arith.constant 0.00199923106 : f32
    %700 = vector.broadcast %cst_181 : f32 to vector<16x128xf32>
    %701 = arith.addf %699, %700 : vector<16x128xf32>
    %702 = arith.mulf %636, %636 : vector<16x128xf32>
    %703 = arith.mulf %637, %637 : vector<16x128xf32>
    %704 = arith.addf %702, %703 : vector<16x128xf32>
    %cst_182 = arith.constant 0.00199923106 : f32
    %705 = vector.broadcast %cst_182 : f32 to vector<16x128xf32>
    %706 = arith.addf %704, %705 : vector<16x128xf32>
    %707 = arith.divf %701, %706 : vector<16x128xf32>
    %cst_183 = arith.constant 2.000000e+00 : f32
    %708 = vector.broadcast %cst_183 : f32 to vector<16x128xf32>
    %709 = arith.mulf %708, %638 : vector<16x128xf32>
    %710 = arith.mulf %709, %639 : vector<16x128xf32>
    %cst_184 = arith.constant 0.00199923106 : f32
    %711 = vector.broadcast %cst_184 : f32 to vector<16x128xf32>
    %712 = arith.addf %710, %711 : vector<16x128xf32>
    %713 = arith.mulf %638, %638 : vector<16x128xf32>
    %714 = arith.mulf %639, %639 : vector<16x128xf32>
    %715 = arith.addf %713, %714 : vector<16x128xf32>
    %cst_185 = arith.constant 0.00199923106 : f32
    %716 = vector.broadcast %cst_185 : f32 to vector<16x128xf32>
    %717 = arith.addf %715, %716 : vector<16x128xf32>
    %718 = arith.divf %712, %717 : vector<16x128xf32>
    %719 = arith.mulf %707, %718 : vector<16x128xf32>
    %720 = math.absf %719 : vector<16x128xf32>
    %cst_186 = arith.constant 1.000000e-30 : f32
    %721 = vector.broadcast %cst_186 : f32 to vector<16x128xf32>
    %722 = arith.maximumf %720, %721 : vector<16x128xf32>
    %723 = math.log %722 : vector<16x128xf32>
    %cst_187 = arith.constant 2.000000e-02 : f32
    %724 = vector.broadcast %cst_187 : f32 to vector<16x128xf32>
    %725 = arith.mulf %724, %723 : vector<16x128xf32>
    %726 = math.log %696 : vector<16x128xf32>
    %cst_188 = arith.constant 4.000000e-01 : f32
    %727 = vector.broadcast %cst_188 : f32 to vector<16x128xf32>
    %728 = arith.mulf %727, %726 : vector<16x128xf32>
    %729 = arith.addf %725, %728 : vector<16x128xf32>
    %730 = math.exp %729 : vector<16x128xf32>
    %cst_189 = arith.constant 0.000000e+00 : f32
    %731 = vector.broadcast %cst_189 : f32 to vector<16x128xf32>
    %732 = arith.cmpf oge, %719, %731 : vector<16x128xf32>
    %cst_190 = arith.constant 1.000000e+00 : f32
    %cst_191 = arith.constant 0.998026728 : f32
    %733 = vector.broadcast %cst_190 : f32 to vector<16x128xf32>
    %734 = vector.broadcast %cst_191 : f32 to vector<16x128xf32>
    %735 = arith.select %732, %733, %734 : vector<16x128xi1>, vector<16x128xf32>
    %736 = arith.mulf %730, %735 : vector<16x128xf32>
    %cst_192 = arith.constant 0.000000e+00 : f32
    %737 = vector.broadcast %cst_192 : f32 to vector<16x128xf32>
    %738 = arith.cmpf ogt, %720, %737 : vector<16x128xf32>
    %cst_193 = arith.constant 0.000000e+00 : f32
    %739 = vector.broadcast %cst_193 : f32 to vector<16x128xf32>
    %740 = arith.select %738, %736, %739 : vector<16x128xi1>, vector<16x128xf32>
    %741 = arith.mulf %685, %740 : vector<16x128xf32>
    %742 = arith.mulf %741, %674 : vector<16x128xf32>
    %cst_194 = arith.constant dense<0.000000e+00> : vector<128xf32>
    %743 = vector.multi_reduction <add>, %742, %cst_194 [0] : vector<16x128xf32> to vector<128xf32>
    %744 = vector.shape_cast %743 : vector<128xf32> to vector<1x128xf32>
    %cst_195 = arith.constant dense<0.000000e+00> : vector<128xf32>
    %745 = vector.multi_reduction <add>, %674, %cst_195 [0] : vector<16x128xf32> to vector<128xf32>
    %746 = vector.shape_cast %745 : vector<128xf32> to vector<1x128xf32>
    %747 = tpu.concatenate %744, %746 in 0 : vector<1x128xf32>, vector<1x128xf32> -> vector<2x128xf32>
    %cst_196 = arith.constant dense<0.000000e+00> : vector<2x8xf32>
    %748 = tpu.matmul %747, %10, %cst_196 {dimension_numbers = #tpu.dot_dimension_numbers<[1], [0], [0], [1], [0, 0, 1, 1], [], []>} : vector<2x128xf32>, vector<128x8xf32>, vector<2x8xf32> -> vector<2x8xf32>
    %749 = vector.extract_strided_slice %748 {offsets = [0, 0], sizes = [1, 8], strides = [1, 1]} : vector<2x8xf32> to vector<1x8xf32>
    %750 = vector.extract_strided_slice %748 {offsets = [1, 0], sizes = [1, 8], strides = [1, 1]} : vector<2x8xf32> to vector<1x8xf32>
    %751 = arith.divf %749, %750 : vector<1x8xf32>
    %752 = vector.shape_cast %751 : vector<1x8xf32> to vector<1x1x8xf32>
    %c0_197 = arith.constant 0 : index
    %c0_198 = arith.constant 0 : index
    %c0_199 = arith.constant 0 : index
    %753 = vector.load %arg10[%c0_197, %c0_198, %c0_199] : memref<1x1x8xf32, #tpu.memory_space<vmem>>, vector<1x1x8xf32>
    tpu.vector_store %arg10[%c0_197, %c0_198, %c0_199], %752 {strides = array<i32>} : memref<1x1x8xf32, #tpu.memory_space<vmem>>, vector<1x1x8xf32>,
    return
  }
  func.func @transform_0(%arg0: i32) -> (i32, i32, i32) {
    %c0_i32 = arith.constant 0 : i32
    %c0_i32_0 = arith.constant 0 : i32
    %c0_i32_1 = arith.constant 0 : i32
    return %c0_i32, %c0_i32_0, %arg0 : i32, i32, i32
  }
  func.func @transform_1(%arg0: i32) -> (i32, i32) {
    %c0_i32 = arith.constant 0 : i32
    %c0_i32_0 = arith.constant 0 : i32
    %c0_i32_1 = arith.constant 0 : i32
    return %c0_i32, %c0_i32_0 : i32, i32
  }
  func.func @transform_2(%arg0: i32) -> (i32, i32) {
    %c0_i32 = arith.constant 0 : i32
    %c0_i32_0 = arith.constant 0 : i32
    %c0_i32_1 = arith.constant 0 : i32
    return %c0_i32, %c0_i32_0 : i32, i32
  }
  func.func @transform_3(%arg0: i32) -> (i32, i32) {
    %c0_i32 = arith.constant 0 : i32
    %c0_i32_0 = arith.constant 0 : i32
    %c0_i32_1 = arith.constant 0 : i32
    return %c0_i32, %c0_i32_0 : i32, i32
  }
  func.func @transform_4(%arg0: i32) -> (i32, i32) {
    %c0_i32 = arith.constant 0 : i32
    %c0_i32_0 = arith.constant 0 : i32
    %c0_i32_1 = arith.constant 0 : i32
    return %c0_i32, %c0_i32_0 : i32, i32
  }
  func.func @transform_5(%arg0: i32) -> (i32, i32, i32) {
    %c0_i32 = arith.constant 0 : i32
    %c0_i32_0 = arith.constant 0 : i32
    %c0_i32_1 = arith.constant 0 : i32
    %c0_i32_2 = arith.constant 0 : i32
    return %c0_i32, %c0_i32_0, %c0_i32_1 : i32, i32, i32
  }
  func.func @transform_6(%arg0: i32) -> (i32, i32) {
    %c0_i32 = arith.constant 0 : i32
    %c0_i32_0 = arith.constant 0 : i32
    %c0_i32_1 = arith.constant 0 : i32
    return %c0_i32, %c0_i32_0 : i32, i32
  }
  func.func @transform_7(%arg0: i32) -> (i32, i32) {
    %c0_i32 = arith.constant 0 : i32
    %c0_i32_0 = arith.constant 0 : i32
    %c0_i32_1 = arith.constant 0 : i32
    return %c0_i32, %c0_i32_0 : i32, i32
  }
  func.func @transform_8(%arg0: i32) -> (i32, i32) {
    %c0_i32 = arith.constant 0 : i32
    %c0_i32_0 = arith.constant 0 : i32
    %c0_i32_1 = arith.constant 0 : i32
    return %c0_i32, %c0_i32_0 : i32, i32
  }
  func.func @transform_9(%arg0: i32) -> (i32, i32, i32) {
    %c0_i32 = arith.constant 0 : i32
    %c0_i32_0 = arith.constant 0 : i32
    %c0_i32_1 = arith.constant 0 : i32
    return %arg0, %c0_i32, %c0_i32_0 : i32, i32, i32
  }
}

</mosaic_0001>

<bundles_post_ra>
// kernel: fn.1
= control target key start
LH: loop header
LB: loop body
LE: loop exit
PB: predicated region body
PF: predicated region fallthrough
CT: control target
= control target key end

     0   :  { %v8383_v3 = vmov 0.0   ;;  %vm567_vm4 = vcmask 130048   ;;  %vm2534_vm13 = vcmask 392448   ;;  %vm2528_vm14 = vcmask 261248   ;;  %s4672_s28 = smov 1   ;;  %s4673_s19 = smov 127   ;;  %s8373_s0 = inlined_call_operand.vmem [shape: f32[3,16,256], index: 0, kind: input, shape index: {}]   ;;  %s8374_s3 = inlined_call_operand.vmem [shape: f32[256,512], index: 3, kind: input, shape index: {}]   ;;  %s8375_s2 = inlined_call_operand.vmem [shape: f32[32,16], index: 2, kind: input, shape index: {}]   ;;  %s8376_s4 = inlined_call_operand.vmem [shape: f32[512,256], index: 4, kind: input, shape index: {}]   ;;  %s8377_s1 = inlined_call_operand.vmem [shape: f32[16,256], index: 1, kind: input, shape index: {}]   ;;  %s8378_s7 = inlined_call_operand.vmem [shape: f32[16,256], index: 7, kind: input, shape index: {}]   ;;  %s8379_s5 = inlined_call_operand.vmem [shape: f32[2,16,16], index: 5, kind: input, shape index: {}]   ;;  %s8380_s8 = inlined_call_operand.vmem [shape: f32[128,8], index: 8, kind: input, shape index: {}]   ;;  %s8381_s6 = inlined_call_operand.vmem [shape: f32[16,256], index: 6, kind: input, shape index: {}]   ;;  %s8382_s9 = inlined_call_operand.vmem [shape: f32[1,1,8], index: 9, kind: output, shape index: {}]  }
   0x1   :  { %8543 = sst [smem:[#allocation173_spill]] %s8373_s0  ;;  %v328_v0 = vld [vmem:[%s8373_s0 + $0x18] sm:$0xff]  ;;  %644 = vmatprep.mubr.f32.mxu1 %v8383_v3  ;;  %v327_v10 = vld [vmem:[%s8373_s0 + $0x10] sm:$0xff]  ;;  %v326_v20 = vld [vmem:[%s8373_s0 + $0x8] sm:$0xff]  ;;  %vm2540_vm15 = vcmask 523648  }
   0x2   :  { %8544 = sst [smem:[#allocation174_spill]] %s8378_s7  ;;  %v3915_v1 = vld [vmem:[%s8373_s0 + $0x38] sm:$0xff]  ;;  %v362_v4 = vmul.f32 0.212671, %v328_v0  ;;  %v3914_v11 = vld [vmem:[%s8373_s0 + $0x30] sm:$0xff]  ;;  %v3913_v22 = vld [vmem:[%s8373_s0 + $0x28] sm:$0xff] }
   0x3   :  { %8545 = sst [smem:[#allocation175_spill]] %s8379_s5  ;;  %v3919_v2 = vld [vmem:[%s8373_s0 + $0x58] sm:$0xff]  ;;  %v366_v5 = vmul.f32 0.71516, %v3915_v1  ;;  %v3918_v12 = vld [vmem:[%s8373_s0 + $0x50] sm:$0xff]  ;;  %v3917_v28 = vld [vmem:[%s8373_s0 + $0x48] sm:$0xff] }
   0x4   :  { %8546 = sst [smem:[#allocation176_spill]] %s8380_s8  ;;  %v374_v6 = vmul.f32 0.072169, %v3919_v2  ;;  %v361_v13 = vmul.f32 0.212671, %v327_v10  ;;  %v99_v18 = vld [vmem:[%s8374_s3 + $0x1f8] sm:$0xff] }
   0x5   :  { %8547 = sst [smem:[#allocation177_spill]] %s8381_s6  ;;  %v370_v7 = vadd.f32 %v366_v5, %v362_v4  ;;  %v365_v14 = vmul.f32 0.71516, %v3914_v11  ;;  %v373_v15 = vmul.f32 0.072169, %v3918_v12  ;;  %758 = vmatprep.subr.mxu0 %v99_v18  ;;  %v98_v21 = vld [vmem:[%s8374_s3 + $0x1f0] sm:$0xff] }
   0x6   :  { %8548 = sst [smem:[#allocation178_spill]] %s8382_s9  ;;  %759 = vmatpush1.msra.mxu0 %v98_v21  ;;  %v95_v23 = vld [vmem:[%s8374_s3 + $0x1d8] sm:$0xff]  ;;  %v94_v24 = vld [vmem:[%s8374_s3 + $0x1d0] sm:$0xff]  ;;  %v360_v26 = vmul.f32 0.212671, %v326_v20  ;;  %v325_v37 = vld [vmem:[%s8373_s0] sm:$0xff] }
   0x7   :  { %v4736_v8 = vadd.f32 %v374_v6, %v370_v7  ;;  %v369_v16 = vadd.f32 %v365_v14, %v361_v13  ;;  %760 = vmatprep.subr.mxu0 %v95_v23  ;;  %v364_v29 = vmul.f32 0.71516, %v3913_v22  ;;  %v91_v30 = vld [vmem:[%s8374_s3 + $0x1b8] sm:$0xff]  ;;  %v90_v33 = vld [vmem:[%s8374_s3 + $0x1b0] sm:$0xff]  ;;  %v372_v35 = vmul.f32 0.072169, %v3917_v28 }
   0x8   :  { %761 = vmatpush1.msra.mxu0 %v94_v24  ;;  %v87_v38 = vld [vmem:[%s8374_s3 + $0x198] sm:$0xff]  ;;  %v3912_v39 = vld [vmem:[%s8373_s0 + $0x20] sm:$0xff]  ;;  %v359_v43 = vmul.f32 0.212671, %v325_v37  ;;  %v86_v46 = vld [vmem:[%s8374_s3 + $0x190] sm:$0xff] }
   0x9   :  { %v458_v9 = vmax.f32 %v4736_v8, 1e-12  ;;  %v4748_v17 = vadd.f32 %v373_v15, %v369_v16  ;;  %762 = vmatprep.subr.mxu0 %v91_v30  ;;  %v368_v32 = vadd.f32 %v364_v29, %v360_v26  ;;  %v3916_v40 = vld [vmem:[%s8373_s0 + $0x40] sm:$0xff]  ;;  %v486_v41 = vmul.f32 903.2963, %v4736_v8  ;;  %v83_v53 = vld [vmem:[%s8374_s3 + $0x178] sm:$0xff] }
   0xa   :  { %763 = vmatpush1.msra.mxu0 %v90_v33  ;;  %v363_v44 = vmul.f32 0.71516, %v3912_v39  ;;  %v371_v45 = vmul.f32 0.072169, %v3916_v40  ;;  %v82_v54 = vld [vmem:[%s8374_s3 + $0x170] sm:$0xff]  ;;  %v79_v58 = vld [vmem:[%s8374_s3 + $0x158] sm:$0xff] }
   0xb   :  { %4157 = vlog2.f32 %v458_v9  ;;  %v457_v19 = vmax.f32 %v4748_v17, 1e-12  ;;  %v4778_v36 = vadd.f32 %v372_v35, %v368_v32  ;;  %764 = vmatprep.subr.mxu0 %v87_v38  ;;  %v490_v48 = vadd.f32 16.0, %v486_v41  ;;  %v78_v59 = vld [vmem:[%s8374_s3 + $0x150] sm:$0xff]  ;;  %v75_v61 = vld [vmem:[%s8374_s3 + $0x138] sm:$0xff] }
   0xc   :  { %765 = vmatpush1.msra.mxu0 %v86_v46  ;;  %v367_v50 = vadd.f32 %v363_v44, %v359_v43  ;;  %vm462_vm0 = vcmp.gt.f32.partialorder %v4736_v8, 0.008856452  ;;  %v74_v62 = vld [vmem:[%s8374_s3 + $0x130] sm:$0xff]  ;;  %v485_v0 = vmul.f32 903.2963, %v4748_v17  ;;  %v71_v1 = vld [vmem:[%s8374_s3 + $0x118] sm:$0xff] }
   0xd   :  { %4159 = vlog2.f32 %v457_v19  ;;  %v456_v42 = vmax.f32 %v4778_v36, 1e-12  ;;  %766 = vmatprep.subr.mxu0 %v83_v53  ;;  %v494_v55 = vmul.f32 0.00862069, %v490_v48  ;;  %v70_v4 = vld [vmem:[%s8374_s3 + $0x110] sm:$0xff]  ;;  %v67_v5 = vld [vmem:[%s8374_s3 + $0xf8] sm:$0xff] }
   0xe   :  { %v4797_v52 = vadd.f32 %v371_v45, %v367_v50  ;;  %767 = vmatpush1.msra.mxu0 %v82_v54  ;;  %v66_v6 = vld [vmem:[%s8374_s3 + $0xf0] sm:$0xff]  ;;  %v63_v9 = vld [vmem:[%s8374_s3 + $0xd8] sm:$0xff]  ;;  %v489_v10 = vadd.f32 16.0, %v485_v0  ;;  %vm461_vm1 = vcmp.gt.f32.partialorder %v4748_v17, 0.008856452 }
   0xf   :  { %768 = vmatprep.subr.mxu0 %v79_v58  ;;  %v62_v12 = vld [vmem:[%s8374_s3 + $0xd0] sm:$0xff]  ;;  %v59_v13 = vld [vmem:[%s8374_s3 + $0xb8] sm:$0xff]  ;;  %v484_v17 = vmul.f32 903.2963, %v4778_v36  ;;  %vm460_vm2 = vcmp.gt.f32.partialorder %v4778_v36, 0.008856452 }
  0x10   :  { %v455_v57 = vmax.f32 %v4797_v52, 1e-12  ;;  %769 = vmatpush1.msra.mxu0 %v78_v59  ;;  %v58_v15 = vld [vmem:[%s8374_s3 + $0xb0] sm:$0xff]  ;;  %v55_v16 = vld [vmem:[%s8374_s3 + $0x98] sm:$0xff]  ;;  %v493_v18 = vmul.f32 0.00862069, %v489_v10 }
  0x11   :  { %770 = vmatprep.subr.mxu0 %v75_v61  ;;  %v54_v20 = vld [vmem:[%s8374_s3 + $0x90] sm:$0xff]  ;;  %v51_v21 = vld [vmem:[%s8374_s3 + $0x78] sm:$0xff]  ;;  %v488_v35 = vadd.f32 16.0, %v484_v17  ;;  %v483_v44 = vmul.f32 903.2963, %v4797_v52  ;;  %v93_v10 = vld [vmem:[%s8374_s3 + $0x1c8] sm:$0xff] }
  0x12   :  { %771 = vmatpush1.msra.mxu0 %v74_v62  ;;  %v50_v22 = vld [vmem:[%s8374_s3 + $0x70] sm:$0xff]  ;;  %v47_v24 = vld [vmem:[%s8374_s3 + $0x58] sm:$0xff]  ;;  %vm459_vm3 = vcmp.gt.f32.partialorder %v4797_v52, 0.008856452 }
  0x13   :  { %772 = vmatprep.subr.mxu0 %v71_v1  ;;  %v43_v30 = vld [vmem:[%s8374_s3 + $0x38] sm:$0xff]  ;;  %v38_v37 = vld [vmem:[%s8374_s3 + $0x10] sm:$0xff] }
  0x14   :  { %773 = vmatpush1.msra.mxu0 %v70_v4  ;;  %v163_v39 = vld [vmem:[%s8374_s3 + $0x3f8] sm:$0xff]  ;;  %v162_v40 = vld [vmem:[%s8374_s3 + $0x3f0] sm:$0xff] }
  0x15   :  { %774 = vmatprep.subr.mxu0 %v67_v5  ;;  %v159_v41 = vld [vmem:[%s8374_s3 + $0x3d8] sm:$0xff]  ;;  %v158_v43 = vld [vmem:[%s8374_s3 + $0x3d0] sm:$0xff] }
  0x16   :  { %775 = vmatpush1.msra.mxu0 %v66_v6  ;;  %v155_v45 = vld [vmem:[%s8374_s3 + $0x3b8] sm:$0xff]  ;;  %v154_v46 = vld [vmem:[%s8374_s3 + $0x3b0] sm:$0xff] }
  0x17   :  { %776 = vmatprep.subr.mxu0 %v63_v9  ;;  %v151_v48 = vld [vmem:[%s8374_s3 + $0x398] sm:$0xff]  ;;  %v150_v36 = vld [vmem:[%s8374_s3 + $0x390] sm:$0xff]  ;;  %v96_v9 = vld [vmem:[%s8374_s3 + $0x1e0] sm:$0xff] }
  0x18   :  { %v4158_v25 = vpop.eup %4157  ;;  %777 = vmatpush1.msra.mxu0 %v62_v12  ;;  %v147_v53 = vld [vmem:[%s8374_s3 + $0x378] sm:$0xff]  ;;  %v146_v54 = vld [vmem:[%s8374_s3 + $0x370] sm:$0xff]  ;;  %v92_v12 = vld [vmem:[%s8374_s3 + $0x1c0] sm:$0xff] }
  0x19   :  { %v470_v27 = vmul.f32 0.6931472, %v4158_v25  ;;  %778 = vmatprep.subr.mxu0 %v59_v13  ;;  %v139_v59 = vld [vmem:[%s8374_s3 + $0x338] sm:$0xff]  ;;  %v134_v0 = vld [vmem:[%s8374_s3 + $0x310] sm:$0xff] }
  0x1a   :  { %v4160_v47 = vpop.eup %4159  ;;  %779 = vmatpush1.msra.mxu0 %v58_v15  ;;  %v135_v61 = vld [vmem:[%s8374_s3 + $0x318] sm:$0xff]  ;;  %v130_v4 = vld [vmem:[%s8374_s3 + $0x2f0] sm:$0xff]  ;;  %v89_v15 = vld [vmem:[%s8374_s3 + $0x1a8] sm:$0xff] }
  0x1b   :  { %v474_v31 = vmul.f32 0.33333334, %v470_v27  ;;  %v468_v49 = vmul.f32 0.6931472, %v4160_v47  ;;  %780 = vmatprep.subr.mxu0 %v55_v16  ;;  %v46_v27 = vld [vmem:[%s8374_s3 + $0x50] sm:$0xff]  ;;  %v131_v52 = vld [vmem:[%s8374_s3 + $0x2f8] sm:$0xff] }
  0x1c   :  { %781 = vmatpush1.msra.mxu0 %v54_v20  ;;  %v127_v5 = vld [vmem:[%s8374_s3 + $0x2d8] sm:$0xff]  ;;  %v88_v16 = vld [vmem:[%s8374_s3 + $0x1a0] sm:$0xff]  ;;  %v118_v17 = vld [vmem:[%s8374_s3 + $0x290] sm:$0xff] }
  0x1d   :  { %v481_v34 = vmul.f32 1.442695, %v474_v31  ;;  %v473_v51 = vmul.f32 0.33333334, %v468_v49  ;;  %782 = vmatprep.subr.mxu0 %v51_v21  ;;  %v42_v31 = vld [vmem:[%s8374_s3 + $0x30] sm:$0xff]  ;;  %v123_v13 = vld [vmem:[%s8374_s3 + $0x2b8] sm:$0xff] }
  0x1e   :  { %783 = vmatpush1.msra.mxu0 %v50_v22  ;;  %v84_v20 = vld [vmem:[%s8374_s3 + $0x180] sm:$0xff]  ;;  %v119_v21 = vld [vmem:[%s8374_s3 + $0x298] sm:$0xff]  ;;  %v5003_v22 = vld [vmem:[%s8375_s2 + $0x10] sm:$0xff] }
  0x1f   :  { %4161 = vpow2.f32 %v481_v34  ;;  %v479_v56 = vmul.f32 1.442695, %v473_v51  ;;  %784 = vmatprep.subr.mxu0 %v47_v24  ;;  %v39_v34 = vld [vmem:[%s8374_s3 + $0x18] sm:$0xff]  ;;  %v487_v51 = vadd.f32 16.0, %v483_v44  ;;  %v80_v24 = vld [vmem:[%s8374_s3 + $0x160] sm:$0xff]  ;;  %v53_v44 = vld [vmem:[%s8374_s3 + $0x88] sm:$0xff] }
  0x20   :  { %4163 = vlog2.f32 %v456_v42  ;;  %785 = vmatpush1.msra.mxu0 %v46_v27  ;;  %v492_v42 = vmul.f32 0.00862069, %v488_v35  ;;  %v76_v27 = vld [vmem:[%s8374_s3 + $0x140] sm:$0xff] }
  0x21   :  { %4165 = vpow2.f32 %v479_v56  ;;  %786 = vmatprep.subr.mxu0 %v43_v30  ;;  %v143_v56 = vld [vmem:[%s8374_s3 + $0x358] sm:$0xff]  ;;  %v491_v58 = vmul.f32 0.00862069, %v487_v51  ;;  %v73_v30 = vld [vmem:[%s8374_s3 + $0x128] sm:$0xff]  ;;  %v68_v35 = vld [vmem:[%s8374_s3 + $0x100] sm:$0xff] }
  0x22   :  { %4167 = vlog2.f32 %v455_v57  ;;  %787 = vmatpush1.msra.mxu0 %v42_v31  ;;  %v142_v57 = vld [vmem:[%s8374_s3 + $0x350] sm:$0xff]  ;;  %v72_v31 = vld [vmem:[%s8374_s3 + $0x120] sm:$0xff] }
  0x23   :  { %788 = vmatprep.subr.mxu0 %v39_v34  ;;  %v111_v34 = vld [vmem:[%s8374_s3 + $0x258] sm:$0xff]  ;;  %v40_v51 = vld [vmem:[%s8374_s3 + $0x20] sm:$0xff] }
  0x24   :  { %789 = vmatpush1.msra.mxu0 %v38_v37  ;;  %v110_v37 = vld [vmem:[%s8374_s3 + $0x250] sm:$0xff] }
  0x25   :  { %790 = vmatprep.subr.mxu0 %v163_v39  ;;  %v64_v39 = vld [vmem:[%s8374_s3 + $0xe0] sm:$0xff] }
  0x26   :  { %791 = vmatpush2.msra.mxu0 %v162_v40  ;;  %v61_v40 = vld [vmem:[%s8374_s3 + $0xc8] sm:$0xff] }
  0x27   :  { %792 = vmatprep.subr.mxu0 %v159_v41  ;;  %v60_v41 = vld [vmem:[%s8374_s3 + $0xc0] sm:$0xff] }
  0x28   :  { %793 = vmatpush2.msra.mxu0 %v158_v43  ;;  %v56_v43 = vld [vmem:[%s8374_s3 + $0xa0] sm:$0xff] }
  0x29   :  { %794 = vmatprep.subr.mxu0 %v155_v45  ;;  %v52_v45 = vld [vmem:[%s8374_s3 + $0x80] sm:$0xff] }
  0x2a   :  { %795 = vmatpush2.msra.mxu0 %v154_v46  ;;  %v49_v46 = vld [vmem:[%s8374_s3 + $0x68] sm:$0xff] }
  0x2b   :  { %796 = vmatprep.subr.mxu0 %v151_v48  ;;  %v45_v48 = vld [vmem:[%s8374_s3 + $0x48] sm:$0xff] }
  0x2c   :  { %v4162_v60 = vpop.eup %4161  ;;  %797 = vmatpush2.msra.mxu0 %v150_v36  ;;  %v44_v36 = vld [vmem:[%s8374_s3 + $0x40] sm:$0xff] }
  0x2d   :  { %v4819_v63 = vsel %vm462_vm0, %v4162_v60, %v494_v55  ;;  %v4164_v7 = vpop.eup %4163  ;;  %798 = vmatprep.subr.mxu0 %v147_v53  ;;  %v138_v60 = vld [vmem:[%s8374_s3 + $0x330] sm:$0xff]  ;;  %v37_v53 = vld [vmem:[%s8374_s3 + $0x8] sm:$0xff]  ;;  %vm2546_vm0 = vcmask 654848  }
  0x2e   :  { %v546_v2 = vmul.f32 116.0, %v4819_v63  ;;  %v466_v11 = vmul.f32 0.6931472, %v4164_v7  ;;  %v4166_v23 = vpop.eup %4165  ;;  %799 = vmatpush2.msra.mxu0 %v146_v54  ;;  %v4951_v7 = vld [vmem:[%s8375_s2] sm:$0xff] }
  0x2f   :  { %v4168_v25 = vpop.eup %4167  ;;  %v4863_v26 = vsel %vm461_vm1, %v4166_v23, %v493_v18  ;;  %800 = vmatprep.subr.mxu0 %v143_v56  ;;  %v85_v18 = vld [vmem:[%s8374_s3 + $0x188] sm:$0xff]  ;;  %v36_v54 = vld [vmem:[%s8374_s3] sm:$0xff]  ;;  %vm2552_vm1 = vcmask 786048  }
  0x30   :  { %v3923_v8 = vadd.f32 -16.0, %v546_v2  ;;  %v472_v14 = vmul.f32 0.33333334, %v466_v11  ;;  %8549 = vst [vmem:[#allocation2_spill] sm:$0xff] %v4863_v26  ;;  %v545_v28 = vmul.f32 116.0, %v4863_v26  ;;  %801 = vmatpush2.msra.mxu0 %v142_v57  ;;  %v126_v11 = vld [vmem:[%s8374_s3 + $0x2d0] sm:$0xff] }
  0x31   :  { %v464_v29 = vmul.f32 0.6931472, %v4168_v25  ;;  %802 = vmatprep.subr.mxu0 %v139_v59  ;;  %v81_v23 = vld [vmem:[%s8374_s3 + $0x168] sm:$0xff]  ;;  %v160_v56 = vld [vmem:[%s8374_s3 + $0x3e0] sm:$0xff] }
  0x32   :  { %608 = vmatprep.subr.mxu1 %v3923_v8  ;;  %v477_v19 = vmul.f32 1.442695, %v472_v14  ;;  %v3922_v32 = vadd.f32 -16.0, %v545_v28  ;;  %803 = vmatpush2.msra.mxu0 %v138_v60  ;;  %v97_v8 = vld [vmem:[%s8374_s3 + $0x1e8] sm:$0xff]  ;;  %v115_v28 = vld [vmem:[%s8374_s3 + $0x278] sm:$0xff]  ;;  %v152_v60 = vld [vmem:[%s8374_s3 + $0x3a0] sm:$0xff] }
  0x33   :  { %v471_v33 = vmul.f32 0.33333334, %v464_v29  ;;  %804 = vmatprep.subr.mxu0 %v135_v61  ;;  %v4977_v14 = vld [vmem:[%s8375_s2 + $0x8] sm:$0xff]  ;;  %v5029_v29 = vld [vmem:[%s8375_s2 + $0x18] sm:$0xff] }
  0x34   :  { %4169 = vpow2.f32 %v477_v19  ;;  %609 = vmatpush1.msra.mxu1 %v3922_v32  ;;  %805 = vmatpush2.msra.mxu0 %v134_v0  ;;  %v122_v19 = vld [vmem:[%s8374_s3 + $0x2b0] sm:$0xff]  ;;  %v77_v25 = vld [vmem:[%s8374_s3 + $0x148] sm:$0xff] }
  0x35   :  { %v475_v38 = vmul.f32 1.442695, %v471_v33  ;;  %806 = vmatprep.subr.mxu0 %v131_v52  ;;  %v114_v32 = vld [vmem:[%s8374_s3 + $0x270] sm:$0xff]  ;;  %v69_v33 = vld [vmem:[%s8374_s3 + $0x108] sm:$0xff]  ;;  %v144_v52 = vld [vmem:[%s8374_s3 + $0x360] sm:$0xff] }
  0x36   :  { %807 = vmatpush2.msra.mxu0 %v130_v4  ;;  %v157_v57 = vld [vmem:[%s8374_s3 + $0x3c8] sm:$0xff]  ;;  %v140_v4 = vld [vmem:[%s8374_s3 + $0x340] sm:$0xff] }
  0x37   :  { %4171 = vpow2.f32 %v475_v38  ;;  %808 = vmatprep.subr.mxu0 %v127_v5  ;;  %v65_v38 = vld [vmem:[%s8374_s3 + $0xe8] sm:$0xff] }
  0x38   :  { %809 = vmatpush2.msra.mxu0 %v126_v11  ;;  %v153_v59 = vld [vmem:[%s8374_s3 + $0x3a8] sm:$0xff]  ;;  %v128_v11 = vld [vmem:[%s8374_s3 + $0x2e0] sm:$0xff] }
  0x39   :  { %810 = vmatprep.subr.mxu0 %v123_v13  ;;  %v149_v61 = vld [vmem:[%s8374_s3 + $0x388] sm:$0xff]  ;;  %v124_v13 = vld [vmem:[%s8374_s3 + $0x2c0] sm:$0xff] }
  0x3a   :  { %811 = vmatpush2.msra.mxu0 %v122_v19  ;;  %v145_v0 = vld [vmem:[%s8374_s3 + $0x368] sm:$0xff]  ;;  %v116_v19 = vld [vmem:[%s8374_s3 + $0x280] sm:$0xff] }
  0x3b   :  { %812 = vmatprep.subr.mxu0 %v119_v21  ;;  %v137_v5 = vld [vmem:[%s8374_s3 + $0x328] sm:$0xff]  ;;  %v112_v21 = vld [vmem:[%s8374_s3 + $0x260] sm:$0xff] }
  0x3c   :  { %813 = vmatpush2.msra.mxu0 %v118_v17  ;;  %v107_v17 = vld [vmem:[%s8374_s3 + $0x238] sm:$0xff] }
  0x3d   :  { %814 = vmatprep.subr.mxu0 %v115_v28  ;;  %v106_v28 = vld [vmem:[%s8374_s3 + $0x230] sm:$0xff] }
  0x3e   :  { %815 = vmatpush2.msra.mxu0 %v114_v32  ;;  %v100_v32 = vld [vmem:[%s8374_s3 + $0x200] sm:$0xff] }
  0x3f   :  { %816 = vmatprep.subr.mxu0 %v111_v34 }
  0x40   :  { %817 = vmatpush2.msra.mxu0 %v110_v37 }
  0x41   :  { %v4170_v47 = vpop.eup %4169  ;;  %818 = vmatprep.subr.mxu0 %v107_v17 }
  0x42   :  { %v4905_v49 = vsel %vm460_vm2, %v4170_v47, %v492_v42  ;;  %v57_v42 = vld [vmem:[%s8374_s3 + $0xa8] sm:$0xff]  ;;  %v48_v47 = vld [vmem:[%s8374_s3 + $0x60] sm:$0xff]  ;;  %819 = vmatpush2.msra.mxu0 %v106_v28  ;;  %vm2558_vm2 = vcmask 917248  }
  0x43   :  { %8550 = vst [vmem:[#allocation3_spill] sm:$0xff] %v4905_v49  ;;  %v544_v50 = vmul.f32 116.0, %v4905_v49 }
  0x44   :  { %v4172_v62 = vpop.eup %4171 }
  0x45   :  { %v3921_v55 = vadd.f32 -16.0, %v544_v50  ;;  %v4936_v1 = vsel %vm459_vm3, %v4172_v62, %v491_v58  ;;  %v41_v50 = vld [vmem:[%s8374_s3 + $0x28] sm:$0xff]  ;;  %v156_v58 = vld [vmem:[%s8374_s3 + $0x3c0] sm:$0xff]  ;;  %vm2564_vm3 = vcmask 1048448  }
  0x46   :  { %8551 = vst [vmem:[#allocation4_spill] sm:$0xff] %v4936_v1  ;;  %v543_v2 = vmul.f32 116.0, %v4936_v1  ;;  %v148_v62 = vld [vmem:[%s8374_s3 + $0x380] sm:$0xff] }
  0x47   :  { %610 = vmatprep.subr.mxu1 %v3921_v55  ;;  %v161_v55 = vld [vmem:[%s8374_s3 + $0x3e8] sm:$0xff] }
  0x48   :  { %v3920_v6 = vadd.f32 -16.0, %v543_v2  ;;  %v141_v2 = vld [vmem:[%s8374_s3 + $0x348] sm:$0xff] }
  0x4a   :  { %611 = vmatpush1.msra.mxu1 %v3920_v6  ;;  %v136_v6 = vld [vmem:[%s8374_s3 + $0x320] sm:$0xff] }
  0x4b   :  { %3924 = vmatmul.mubr.msk.f32.vlgmr.msra.gmra.mxu1 %vm567_vm4, %v4951_v7  ;;  %669 = vmatprep.subr.mxu1 %v97_v8  ;;  %v133_v8 = vld [vmem:[%s8374_s3 + $0x308] sm:$0xff] }
  0x4c   :  { %650 = vmatprep.mubr.f32.mxu1 %v8383_v3  ;;  %670 = vmatpush1.msra.mxu1 %v96_v9  ;;  %v132_v9 = vld [vmem:[%s8374_s3 + $0x300] sm:$0xff] }
  0x4d   :  { %671 = vmatprep.subr.mxu1 %v93_v10  ;;  %v129_v10 = vld [vmem:[%s8374_s3 + $0x2e8] sm:$0xff] }
  0x4e   :  { %672 = vmatpush1.msra.mxu1 %v92_v12  ;;  %v125_v12 = vld [vmem:[%s8374_s3 + $0x2c8] sm:$0xff] }
  0x4f   :  { %3925 = vmatmul.mubr.msk.f32.gmra.mxu1 %vm567_vm4, %v4977_v14  ;;  %673 = vmatprep.subr.mxu1 %v89_v15  ;;  %v121_v15 = vld [vmem:[%s8374_s3 + $0x2a8] sm:$0xff] }
  0x50   :  { %656 = vmatprep.mubr.f32.mxu1 %v8383_v3  ;;  %674 = vmatpush1.msra.mxu1 %v88_v16  ;;  %v120_v16 = vld [vmem:[%s8374_s3 + $0x2a0] sm:$0xff] }
  0x51   :  { %675 = vmatprep.subr.mxu1 %v85_v18  ;;  %v117_v18 = vld [vmem:[%s8374_s3 + $0x288] sm:$0xff] }
  0x52   :  { %676 = vmatpush1.msra.mxu1 %v84_v20  ;;  %v113_v20 = vld [vmem:[%s8374_s3 + $0x268] sm:$0xff] }
  0x53   :  { %3926 = vmatmul.mubr.msk.f32.gmra.mxu1 %vm567_vm4, %v5003_v22  ;;  %677 = vmatprep.subr.mxu1 %v81_v23  ;;  %v109_v23 = vld [vmem:[%s8374_s3 + $0x248] sm:$0xff] }
  0x54   :  { %662 = vmatprep.mubr.f32.mxu1 %v8383_v3  ;;  %678 = vmatpush1.msra.mxu1 %v80_v24  ;;  %v108_v24 = vld [vmem:[%s8374_s3 + $0x240] sm:$0xff] }
  0x55   :  { %679 = vmatprep.subr.mxu1 %v77_v25  ;;  %v105_v25 = vld [vmem:[%s8374_s3 + $0x228] sm:$0xff] }
  0x56   :  { %680 = vmatpush1.msra.mxu1 %v76_v27  ;;  %v104_v27 = vld [vmem:[%s8374_s3 + $0x220] sm:$0xff] }
  0x57   :  { %3927 = vmatmul.mubr.msk.f32.gmra.mxu1 %vm567_vm4, %v5029_v29  ;;  %681 = vmatprep.subr.mxu1 %v73_v30  ;;  %v101_v30 = vld [vmem:[%s8374_s3 + $0x208] sm:$0xff] }
  0x58   :  { %682 = vmatpush1.msra.mxu1 %v72_v31  ;;  %v103_v31 = vld [vmem:[%s8374_s3 + $0x218] sm:$0xff] }
  0x59   :  { %683 = vmatprep.subr.mxu1 %v69_v33  ;;  %820 = vmatprep.subr.mxu0 %v103_v31  ;;  %v102_v33 = vld [vmem:[%s8374_s3 + $0x210] sm:$0xff] }
  0x5a   :  { %684 = vmatpush1.msra.mxu1 %v68_v35  ;;  %821 = vmatpush2.msra.mxu0 %v102_v33 }
  0x5b   :  { %685 = vmatprep.subr.mxu1 %v65_v38 }
  0x5c   :  { %686 = vmatpush1.msra.mxu1 %v64_v39 }
  0x5d   :  { %687 = vmatprep.subr.mxu1 %v61_v40 }
  0x5e   :  { %688 = vmatpush1.msra.mxu1 %v60_v41 }
  0x5f   :  { %689 = vmatprep.subr.mxu1 %v57_v42 }
  0x60   :  { %690 = vmatpush1.msra.mxu1 %v56_v43  ;;  %v195_v43 = vld [vmem:[%s8376_s4 + $0xf8] sm:$0xff] }
  0x61   :  { %691 = vmatprep.subr.mxu1 %v53_v44  ;;  %v194_v44 = vld [vmem:[%s8376_s4 + $0xf0] sm:$0xff] }
  0x62   :  { %692 = vmatpush1.msra.mxu1 %v52_v45  ;;  %v193_v45 = vld [vmem:[%s8376_s4 + $0xe8] sm:$0xff] }
  0x63   :  { %693 = vmatprep.subr.mxu1 %v49_v46  ;;  %v192_v46 = vld [vmem:[%s8376_s4 + $0xe0] sm:$0xff] }
  0x64   :  { %694 = vmatpush1.msra.mxu1 %v48_v47  ;;  %v191_v47 = vld [vmem:[%s8376_s4 + $0xd8] sm:$0xff] }
  0x65   :  { %695 = vmatprep.subr.mxu1 %v45_v48  ;;  %v190_v48 = vld [vmem:[%s8376_s4 + $0xd0] sm:$0xff] }
  0x66   :  { %696 = vmatpush1.msra.mxu1 %v44_v36  ;;  %v189_v36 = vld [vmem:[%s8376_s4 + $0xc8] sm:$0xff] }
  0x67   :  { %697 = vmatprep.subr.mxu1 %v41_v50  ;;  %v188_v50 = vld [vmem:[%s8376_s4 + $0xc0] sm:$0xff] }
  0x68   :  { %698 = vmatpush1.msra.mxu1 %v40_v51  ;;  %v187_v51 = vld [vmem:[%s8376_s4 + $0xb8] sm:$0xff] }
  0x69   :  { %699 = vmatprep.subr.mxu1 %v37_v53  ;;  %v186_v53 = vld [vmem:[%s8376_s4 + $0xb0] sm:$0xff] }
  0x6a   :  { %700 = vmatpush1.msra.mxu1 %v36_v54  ;;  %v185_v54 = vld [vmem:[%s8376_s4 + $0xa8] sm:$0xff] }
  0x6b   :  { %701 = vmatprep.subr.mxu1 %v161_v55  ;;  %v184_v55 = vld [vmem:[%s8376_s4 + $0xa0] sm:$0xff] }
  0x6c   :  { %702 = vmatpush2.msra.mxu1 %v160_v56  ;;  %v183_v56 = vld [vmem:[%s8376_s4 + $0x98] sm:$0xff] }
  0x6d   :  { %703 = vmatprep.subr.mxu1 %v157_v57  ;;  %v182_v57 = vld [vmem:[%s8376_s4 + $0x90] sm:$0xff] }
  0x6e   :  { %704 = vmatpush2.msra.mxu1 %v156_v58  ;;  %v181_v58 = vld [vmem:[%s8376_s4 + $0x88] sm:$0xff] }
  0x6f   :  { %705 = vmatprep.subr.mxu1 %v153_v59  ;;  %v180_v59 = vld [vmem:[%s8376_s4 + $0x80] sm:$0xff] }
  0x70   :  { %706 = vmatpush2.msra.mxu1 %v152_v60  ;;  %v179_v60 = vld [vmem:[%s8376_s4 + $0x78] sm:$0xff] }
  0x71   :  { %707 = vmatprep.subr.mxu1 %v149_v61  ;;  %v178_v61 = vld [vmem:[%s8376_s4 + $0x70] sm:$0xff] }
  0x72   :  { %708 = vmatpush2.msra.mxu1 %v148_v62  ;;  %v177_v62 = vld [vmem:[%s8376_s4 + $0x68] sm:$0xff] }
  0x73   :  { %709 = vmatprep.subr.mxu1 %v145_v0  ;;  %v176_v0 = vld [vmem:[%s8376_s4 + $0x60] sm:$0xff] }
  0x74   :  { %710 = vmatpush2.msra.mxu1 %v144_v52  ;;  %v175_v52 = vld [vmem:[%s8376_s4 + $0x58] sm:$0xff] }
  0x75   :  { %711 = vmatprep.subr.mxu1 %v141_v2  ;;  %v174_v2 = vld [vmem:[%s8376_s4 + $0x50] sm:$0xff] }
  0x76   :  { %712 = vmatpush2.msra.mxu1 %v140_v4  ;;  %v173_v4 = vld [vmem:[%s8376_s4 + $0x48] sm:$0xff] }
  0x77   :  { %713 = vmatprep.subr.mxu1 %v137_v5  ;;  %v172_v5 = vld [vmem:[%s8376_s4 + $0x40] sm:$0xff] }
  0x78   :  { %714 = vmatpush2.msra.mxu1 %v136_v6  ;;  %v171_v6 = vld [vmem:[%s8376_s4 + $0x38] sm:$0xff] }
  0x79   :  { %715 = vmatprep.subr.mxu1 %v133_v8  ;;  %v170_v8 = vld [vmem:[%s8376_s4 + $0x30] sm:$0xff] }
  0x7a   :  { %716 = vmatpush2.msra.mxu1 %v132_v9  ;;  %v169_v9 = vld [vmem:[%s8376_s4 + $0x28] sm:$0xff] }
  0x7b   :  { %717 = vmatprep.subr.mxu1 %v129_v10  ;;  %v168_v10 = vld [vmem:[%s8376_s4 + $0x20] sm:$0xff] }
  0x7c   :  { %718 = vmatpush2.msra.mxu1 %v128_v11  ;;  %v167_v11 = vld [vmem:[%s8376_s4 + $0x18] sm:$0xff] }
  0x7d   :  { %719 = vmatprep.subr.mxu1 %v125_v12  ;;  %v166_v12 = vld [vmem:[%s8376_s4 + $0x10] sm:$0xff] }
  0x7e   :  { %720 = vmatpush2.msra.mxu1 %v124_v13  ;;  %v165_v13 = vld [vmem:[%s8376_s4 + $0x8] sm:$0xff] }
  0x7f   :  { %721 = vmatprep.subr.mxu1 %v121_v15  ;;  %v164_v15 = vld [vmem:[%s8376_s4] sm:$0xff] }
  0x80   :  { %722 = vmatpush2.msra.mxu1 %v120_v16  ;;  %v227_v16 = vld [vmem:[%s8376_s4 + $0x1f8] sm:$0xff] }
  0x81   :  { %723 = vmatprep.subr.mxu1 %v117_v18  ;;  %v226_v18 = vld [vmem:[%s8376_s4 + $0x1f0] sm:$0xff] }
  0x82   :  { %724 = vmatpush2.msra.mxu1 %v116_v19 }
  0x83   :  { %725 = vmatprep.subr.mxu1 %v113_v20 }
  0x84   :  { %726 = vmatpush2.msra.mxu1 %v112_v21 }
  0x85   :  { %727 = vmatprep.subr.mxu1 %v109_v23 }
  0x86   :  { %728 = vmatpush2.msra.mxu1 %v108_v24 }
  0x87   :  { %729 = vmatprep.subr.mxu1 %v105_v25 }
  0x88   :  { %730 = vmatpush2.msra.mxu1 %v104_v27 }
  0x89   :  { %731 = vmatprep.subr.mxu1 %v101_v30 }
  0x8a   :  { %732 = vmatpush2.msra.mxu1 %v100_v32 }
  0x8b   :  { %1053 = vmatprep.subr.mxu1 %v195_v43  ;;  %v294_v43 = vld [vmem:[%s8377_s1 + $0x10] sm:$0xff] }
 0x10b   :  { %v646_v34 = vpop.f32.mrf.mxu1 }
 0x10d   :  { %v648_v35 = vpop.f32.mrf.mxu1 }
 0x10e   :  { %733 = vmatprep.mubr.f32.mxu1 %v648_v35  ;;  %822 = vmatprep.mubr.f32.mxu0 %v648_v35 }
 0x10f   :  { %v652_v37 = vpop.f32.mrf.mxu1  ;;  %734 = vmatmul.mubr.f32.vlgmr.msra.gmra.mxu1 %v646_v34  ;;  %823 = vmatmul.mubr.f32.vlgmr.msra.gmra.mxu0 %v646_v34 }
 0x110   :  { %1054 = vmatpush1.msra.mxu1 %v194_v44 }
 0x111   :  { %v654_v38 = vpop.f32.mrf.mxu1  ;;  %1055 = vmatprep.subr.mxu1 %v193_v45 }
 0x112   :  { %739 = vmatprep.mubr.f32.mxu1 %v654_v38  ;;  %828 = vmatprep.mubr.f32.mxu0 %v654_v38  ;;  %v295_v38 = vld [vmem:[%s8377_s1 + $0x18] sm:$0xff] }
 0x113   :  { %v658_v39 = vpop.f32.mrf.mxu1  ;;  %740 = vmatmul.mubr.f32.gmra.mxu1 %v652_v37  ;;  %829 = vmatmul.mubr.f32.gmra.mxu0 %v652_v37 }
 0x114   :  { %1056 = vmatpush1.msra.mxu1 %v192_v46 }
 0x115   :  { %v660_v40 = vpop.f32.mrf.mxu1  ;;  %1057 = vmatprep.subr.mxu1 %v191_v47 }
 0x116   :  { %745 = vmatprep.mubr.f32.mxu1 %v660_v40  ;;  %834 = vmatprep.mubr.f32.mxu0 %v660_v40 }
 0x117   :  { %v664_v41 = vpop.f32.mrf.mxu1  ;;  %746 = vmatmul.mubr.f32.gmra.mxu1 %v658_v39  ;;  %835 = vmatmul.mubr.f32.gmra.mxu0 %v658_v39 }
 0x118   :  { %1058 = vmatpush1.msra.mxu1 %v190_v48  ;;  %v293_v48 = vld [vmem:[%s8377_s1 + $0x8] sm:$0xff] }
 0x119   :  { %v666_v42 = vpop.f32.mrf.mxu1  ;;  %1059 = vmatprep.subr.mxu1 %v189_v36  ;;  %v292_v36 = vld [vmem:[%s8377_s1] sm:$0xff] }
 0x11a   :  { %751 = vmatprep.mubr.f32.mxu1 %v666_v42  ;;  %840 = vmatprep.mubr.f32.mxu0 %v666_v42 }
 0x11b   :  { %752 = vmatmul.mubr.f32.gmra.mxu1 %v664_v41  ;;  %841 = vmatmul.mubr.f32.gmra.mxu0 %v664_v41 }
 0x11c   :  { %931 = vmatprep.mubr.f32.mxu0 %v8383_v3  ;;  %1060 = vmatpush1.msra.mxu1 %v188_v50 }
 0x11d   :  { %1061 = vmatprep.subr.mxu1 %v187_v51 }
 0x11e   :  { %1062 = vmatpush1.msra.mxu1 %v186_v53 }
 0x11f   :  { %1063 = vmatprep.subr.mxu1 %v185_v54 }
 0x120   :  { %1064 = vmatpush1.msra.mxu1 %v184_v55 }
 0x121   :  { %1065 = vmatprep.subr.mxu1 %v183_v56 }
 0x122   :  { %1066 = vmatpush1.msra.mxu1 %v182_v57 }
 0x123   :  { %1067 = vmatprep.subr.mxu1 %v181_v58 }
 0x124   :  { %1068 = vmatpush1.msra.mxu1 %v180_v59 }
 0x125   :  { %1069 = vmatprep.subr.mxu1 %v179_v60 }
 0x126   :  { %1070 = vmatpush1.msra.mxu1 %v178_v61 }
 0x127   :  { %1071 = vmatprep.subr.mxu1 %v177_v62 }
 0x128   :  { %1072 = vmatpush1.msra.mxu1 %v176_v0  ;;  %v259_v0 = vld [vmem:[%s8376_s4 + $0x2f8] sm:$0xff] }
 0x129   :  { %1073 = vmatprep.subr.mxu1 %v175_v52  ;;  %v258_v52 = vld [vmem:[%s8376_s4 + $0x2f0] sm:$0xff] }
 0x12a   :  { %1074 = vmatpush1.msra.mxu1 %v174_v2  ;;  %v257_v2 = vld [vmem:[%s8376_s4 + $0x2e8] sm:$0xff] }
 0x12b   :  { %1075 = vmatprep.subr.mxu1 %v173_v4  ;;  %v256_v4 = vld [vmem:[%s8376_s4 + $0x2e0] sm:$0xff] }
 0x12c   :  { %1076 = vmatpush1.msra.mxu1 %v172_v5  ;;  %v255_v5 = vld [vmem:[%s8376_s4 + $0x2d8] sm:$0xff] }
 0x12d   :  { %1077 = vmatprep.subr.mxu1 %v171_v6  ;;  %v254_v6 = vld [vmem:[%s8376_s4 + $0x2d0] sm:$0xff] }
 0x12e   :  { %1078 = vmatpush1.msra.mxu1 %v170_v8  ;;  %v5364_v8 = vld [vmem:[%s8373_s0 + $0x18] sm:$0xff] }
 0x12f   :  { %1079 = vmatprep.subr.mxu1 %v169_v9  ;;  %v342_v9 = vmul.f32 0.412453, %v5364_v8 }
 0x130   :  { %1080 = vmatpush1.msra.mxu1 %v168_v10  ;;  %v5370_v10 = vld [vmem:[%s8373_s0 + $0x38] sm:$0xff] }
 0x131   :  { %1081 = vmatprep.subr.mxu1 %v167_v11  ;;  %v346_v11 = vmul.f32 0.35758, %v5370_v10 }
 0x132   :  { %1082 = vmatpush1.msra.mxu1 %v166_v12  ;;  %v252_v12 = vld [vmem:[%s8376_s4 + $0x2c0] sm:$0xff] }
 0x133   :  { %1083 = vmatprep.subr.mxu1 %v165_v13  ;;  %v251_v13 = vld [vmem:[%s8376_s4 + $0x2b8] sm:$0xff] }
 0x134   :  { %1084 = vmatpush1.msra.mxu1 %v164_v15  ;;  %v250_v15 = vld [vmem:[%s8376_s4 + $0x2b0] sm:$0xff] }
 0x135   :  { %1085 = vmatprep.subr.mxu1 %v227_v16  ;;  %v350_v16 = vadd.f32 %v346_v11, %v342_v9  ;;  %v220_v9 = vld [vmem:[%s8376_s4 + $0x1c0] sm:$0xff] }
 0x136   :  { %1086 = vmatpush2.msra.mxu1 %v226_v18  ;;  %v5391_v18 = vld [vmem:[%s8373_s0 + $0x58] sm:$0xff]  ;;  %v276_v11 = vld [vmem:[%s8376_s4 + $0x380] sm:$0xff] }
 0x1cf   :  { %v735_v19 = vpop.f32.mrf.mxu1  ;;  %v824_v20 = vpop.f32.mrf.mxu0 }
 0x1d1   :  { %v737_v21 = vpop.f32.mrf.mxu1  ;;  %v826_v23 = vpop.f32.mrf.mxu0 }
 0x1d3   :  { %v741_v24 = vpop.f32.mrf.mxu1  ;;  %v830_v25 = vpop.f32.mrf.mxu0 }
 0x1d5   :  { %v743_v17 = vpop.f32.mrf.mxu1  ;;  %v832_v27 = vpop.f32.mrf.mxu0 }
 0x1d7   :  { %v747_v28 = vpop.f32.mrf.mxu1  ;;  %v836_v30 = vpop.f32.mrf.mxu0 }
 0x1d8   :  { %v855_v46 = vadd.f32 %v824_v20, %v747_v28  ;;  %v847_v47 = vsub.f32 %v735_v19, %v836_v30  ;;  %v354_v19 = vmul.f32 0.180423, %v5391_v18  ;;  %v248_v20 = vld [vmem:[%s8376_s4 + $0x2a0] sm:$0xff] }
 0x1d9   :  { %v749_v31 = vpop.f32.mrf.mxu1  ;;  %v838_v32 = vpop.f32.mrf.mxu0  ;;  %v240_v30 = vld [vmem:[%s8376_s4 + $0x260] sm:$0xff] }
 0x1da   :  { %v856_v41 = vadd.f32 %v826_v23, %v749_v31  ;;  %v848_v42 = vsub.f32 %v737_v21, %v838_v32  ;;  %v859_v57 = vsub.f32 0.0, %v855_v46  ;;  %v851_v58 = vmul.f32 %v847_v47, %v292_v36  ;;  %v247_v21 = vld [vmem:[%s8376_s4 + $0x298] sm:$0xff]  ;;  %v246_v23 = vld [vmem:[%s8376_s4 + $0x290] sm:$0xff]  ;;  %v289_v47 = vld [vmem:[%s8376_s4 + $0x3e8] sm:$0xff] }
 0x1db   :  { %v753_v33 = vpop.f32.mrf.mxu1  ;;  %v842_v34 = vpop.f32.mrf.mxu0  ;;  %v239_v31 = vld [vmem:[%s8376_s4 + $0x258] sm:$0xff]  ;;  %v238_v32 = vld [vmem:[%s8376_s4 + $0x250] sm:$0xff] }
 0x1dc   :  { %v857_v35 = vadd.f32 %v830_v25, %v753_v33  ;;  %v849_v37 = vsub.f32 %v741_v24, %v842_v34  ;;  %v860_v55 = vsub.f32 0.0, %v856_v41  ;;  %v852_v56 = vmul.f32 %v848_v42, %v293_v48  ;;  %v244_v25 = vld [vmem:[%s8376_s4 + $0x280] sm:$0xff]  ;;  %v237_v33 = vld [vmem:[%s8376_s4 + $0x248] sm:$0xff]  ;;  %v231_v41 = vld [vmem:[%s8376_s4 + $0x218] sm:$0xff] }
 0x1dd   :  { %v755_v39 = vpop.f32.mrf.mxu1  ;;  %v844_v40 = vpop.f32.mrf.mxu0  ;;  %v863_v62 = vmul.f32 %v859_v57, %v292_v36  ;;  %v358_v24 = vadd.f32 %v354_v19, %v350_v16  ;;  %v230_v42 = vld [vmem:[%s8376_s4 + $0x210] sm:$0xff]  ;;  %v287_v36 = vld [vmem:[%s8376_s4 + $0x3d8] sm:$0xff]  ;;  %v5547_v19 = vld [vmem:[%s8376_s4 + $0x1a8] sm:$0xff] }
 0x1de   :  { %v858_v44 = vadd.f32 %v832_v27, %v755_v39  ;;  %v850_v45 = vsub.f32 %v743_v17, %v844_v40  ;;  %v861_v53 = vsub.f32 0.0, %v857_v35  ;;  %v853_v54 = vmul.f32 %v849_v37, %v294_v43  ;;  %v243_v17 = vld [vmem:[%s8376_s4 + $0x278] sm:$0xff]  ;;  %v242_v27 = vld [vmem:[%s8376_s4 + $0x270] sm:$0xff]  ;;  %v236_v35 = vld [vmem:[%s8376_s4 + $0x240] sm:$0xff] }
 0x1df   :  { %v864_v61 = vmul.f32 %v860_v55, %v293_v48  ;;  %v5423_v28 = vmul.f32 1.0521265, %v358_v24  ;;  %v235_v37 = vld [vmem:[%s8376_s4 + $0x238] sm:$0xff]  ;;  %v233_v39 = vld [vmem:[%s8376_s4 + $0x228] sm:$0xff]  ;;  %v232_v40 = vld [vmem:[%s8376_s4 + $0x220] sm:$0xff] }
 0x1e0   :  { %v862_v50 = vsub.f32 0.0, %v858_v44  ;;  %v854_v51 = vmul.f32 %v850_v45, %v295_v38  ;;  %v865_v60 = vmul.f32 %v861_v53, %v294_v43  ;;  %v229_v43 = vld [vmem:[%s8376_s4 + $0x208] sm:$0xff]  ;;  %v228_v44 = vld [vmem:[%s8376_s4 + $0x200] sm:$0xff]  ;;  %v291_v45 = vld [vmem:[%s8376_s4 + $0x3f8] sm:$0xff] }
 0x1e1   :  { %v412_v34 = vmax.f32 %v5423_v28, 1e-12  ;;  %v290_v46 = vld [vmem:[%s8376_s4 + $0x3f0] sm:$0xff]  ;;  %v288_v48 = vld [vmem:[%s8376_s4 + $0x3e0] sm:$0xff]  ;;  %v283_v55 = vld [vmem:[%s8376_s4 + $0x3b8] sm:$0xff] }
 0x1e2   :  { %895 = vmatprep.subr.mxu0 %v854_v51  ;;  %v866_v59 = vmul.f32 %v862_v50, %v295_v38  ;;  %v234_v38 = vld [vmem:[%s8376_s4 + $0x230] sm:$0xff]  ;;  %v285_v51 = vld [vmem:[%s8376_s4 + $0x3c8] sm:$0xff]  ;;  %v284_v53 = vld [vmem:[%s8376_s4 + $0x3c0] sm:$0xff]  ;;  %v441_v16 = vmul.f32 903.2963, %v5423_v28 }
 0x1e3   :  { %896 = vmatpush1.msra.mxu0 %v853_v54  ;;  %4173 = vlog2.f32 %v412_v34  ;;  %v286_v50 = vld [vmem:[%s8376_s4 + $0x3d0] sm:$0xff]  ;;  %v271_v24 = vld [vmem:[%s8376_s4 + $0x358] sm:$0xff]  ;;  %vm416_vm5 = vcmp.gt.f32.partialorder %v5423_v28, 0.008856452 }
 0x1e4   :  { %897 = vmatprep.subr.mxu0 %v852_v56  ;;  %v282_v56 = vld [vmem:[%s8376_s4 + $0x3b0] sm:$0xff]  ;;  %v267_v34 = vld [vmem:[%s8376_s4 + $0x338] sm:$0xff] }
 0x1e5   :  { %898 = vmatpush1.msra.mxu0 %v851_v58  ;;  %v5644_v28 = vld [vmem:[%s8376_s4 + $0x158] sm:$0xff] }
 0x1e6   :  { %3928 = vmatmul.mubr.msk.f32.vlgmr.msra.gmra.mxu0 %vm567_vm4, %v4951_v7  ;;  %984 = vmatprep.subr.mxu0 %v866_v59 }
 0x1e7   :  { %985 = vmatpush1.msra.mxu0 %v865_v60  ;;  %937 = vmatprep.mubr.f32.mxu0 %v8383_v3  ;;  %v225_v60 = vld [vmem:[%s8376_s4 + $0x1e8] sm:$0xff] }
 0x1e8   :  { %986 = vmatprep.subr.mxu0 %v864_v61  ;;  %v281_v61 = vld [vmem:[%s8376_s4 + $0x3a8] sm:$0xff]  ;;  %1087 = vmatprep.subr.mxu1 %v225_v60 }
 0x1e9   :  { %987 = vmatpush1.msra.mxu0 %v863_v62  ;;  %v224_v62 = vld [vmem:[%s8376_s4 + $0x1e0] sm:$0xff] }
 0x1ea   :  { %3929 = vmatmul.mubr.msk.f32.gmra.mxu0 %vm567_vm4, %v4977_v14  ;;  %1130 = vmatprep.subr.mxu0 %v259_v0  ;;  %v280_v0 = vld [vmem:[%s8376_s4 + $0x3a0] sm:$0xff] }
 0x1eb   :  { %943 = vmatprep.mubr.f32.mxu0 %v8383_v3  ;;  %1088 = vmatpush2.msra.mxu1 %v224_v62  ;;  %v5737_v62 = vld [vmem:[%s8376_s4 + $0x108] sm:$0xff] }
 0x1ec   :  { %8555 = vst [vmem:[#allocation8_spill] sm:$0xff] %v5737_v62 }
 0x1ee   :  { %3930 = vmatmul.mubr.msk.f32.gmra.mxu0 %vm567_vm4, %v5003_v22 }
 0x1ef   :  { %949 = vmatprep.mubr.f32.mxu0 %v8383_v3 }
 0x1f0   :  { %v4174_v54 = vpop.eup %4173 }
 0x1f1   :  { %v424_v57 = vmul.f32 0.6931472, %v4174_v54 }
 0x1f2   :  { %3931 = vmatmul.mubr.msk.f32.gmra.mxu0 %vm567_vm4, %v5029_v29 }
 0x1f3   :  { %1020 = vmatprep.mubr.f32.mxu0 %v8383_v3  ;;  %v429_v58 = vmul.f32 0.33333334, %v424_v57  ;;  %v5711_v57 = vld [vmem:[%s8376_s4 + $0x128] sm:$0xff] }
 0x1f5   :  { %v436_v59 = vmul.f32 1.442695, %v429_v58  ;;  %v5717_v58 = vld [vmem:[%s8376_s4 + $0x120] sm:$0xff] }
 0x1f6   :  { %3932 = vmatmul.mubr.msk.f32.vlgmr.msra.gmra.mxu0 %vm567_vm4, %v4951_v7  ;;  %v253_v7 = vld [vmem:[%s8376_s4 + $0x2c8] sm:$0xff] }
 0x1f7   :  { %1026 = vmatprep.mubr.f32.mxu0 %v8383_v3  ;;  %1131 = vmatpush1.msra.mxu0 %v258_v52  ;;  %v223_v52 = vld [vmem:[%s8376_s4 + $0x1d8] sm:$0xff]  ;;  %4175 = vpow2.f32 %v436_v59 }
 0x1f8   :  { %1132 = vmatprep.subr.mxu0 %v257_v2  ;;  %v279_v2 = vld [vmem:[%s8376_s4 + $0x398] sm:$0xff]  ;;  %1089 = vmatprep.subr.mxu1 %v223_v52  ;;  %v5750_v52 = vld [vmem:[%s8373_s0 + $0x10] sm:$0xff] }
 0x1f9   :  { %1133 = vmatpush1.msra.mxu0 %v256_v4  ;;  %v222_v4 = vld [vmem:[%s8376_s4 + $0x1d0] sm:$0xff]  ;;  %v5723_v59 = vld [vmem:[%s8376_s4 + $0x118] sm:$0xff]  ;;  %8557 = vst [vmem:[#allocation10_spill] sm:$0xff] %v5750_v52 }
 0x1fa   :  { %3933 = vmatmul.mubr.msk.f32.gmra.mxu0 %vm567_vm4, %v4977_v14  ;;  %1134 = vmatprep.subr.mxu0 %v255_v5  ;;  %v249_v14 = vld [vmem:[%s8376_s4 + $0x2a8] sm:$0xff]  ;;  %v278_v5 = vld [vmem:[%s8376_s4 + $0x390] sm:$0xff] }
 0x1fb   :  { %1032 = vmatprep.mubr.f32.mxu0 %v8383_v3  ;;  %1135 = vmatpush1.msra.mxu0 %v254_v6  ;;  %v221_v6 = vld [vmem:[%s8376_s4 + $0x1c8] sm:$0xff] }
 0x1fc   :  { %1136 = vmatprep.subr.mxu0 %v253_v7  ;;  %1090 = vmatpush2.msra.mxu1 %v222_v4  ;;  %v277_v7 = vld [vmem:[%s8376_s4 + $0x388] sm:$0xff]  ;;  %v5756_v4 = vld [vmem:[%s8373_s0 + $0x30] sm:$0xff] }
 0x1fd   :  { %1137 = vmatpush1.msra.mxu0 %v252_v12  ;;  %1091 = vmatprep.subr.mxu1 %v221_v6  ;;  %v219_v12 = vld [vmem:[%s8376_s4 + $0x1b8] sm:$0xff]  ;;  %8558 = vst [vmem:[#allocation11_spill] sm:$0xff] %v5756_v4  ;;  %v5762_v6 = vld [vmem:[%s8373_s0 + $0x8] sm:$0xff] }
 0x1fe   :  { %3934 = vmatmul.mubr.msk.f32.gmra.mxu0 %vm567_vm4, %v5003_v22  ;;  %1138 = vmatprep.subr.mxu0 %v251_v13  ;;  %v245_v22 = vld [vmem:[%s8376_s4 + $0x288] sm:$0xff]  ;;  %v275_v13 = vld [vmem:[%s8376_s4 + $0x378] sm:$0xff]  ;;  %8559 = vst [vmem:[#allocation12_spill] sm:$0xff] %v5762_v6 }
 0x1ff   :  { %1038 = vmatprep.mubr.f32.mxu0 %v8383_v3  ;;  %1139 = vmatpush1.msra.mxu0 %v250_v15  ;;  %v218_v15 = vld [vmem:[%s8376_s4 + $0x1b0] sm:$0xff] }
 0x200   :  { %1140 = vmatprep.subr.mxu0 %v249_v14  ;;  %1092 = vmatpush2.msra.mxu1 %v220_v9  ;;  %v274_v14 = vld [vmem:[%s8376_s4 + $0x370] sm:$0xff]  ;;  %v5768_v9 = vld [vmem:[%s8373_s0 + $0x28] sm:$0xff] }
 0x201   :  { %1141 = vmatpush1.msra.mxu0 %v248_v20  ;;  %1093 = vmatprep.subr.mxu1 %v219_v12  ;;  %v273_v20 = vld [vmem:[%s8376_s4 + $0x368] sm:$0xff]  ;;  %8560 = vst [vmem:[#allocation13_spill] sm:$0xff] %v5768_v9  ;;  %v5774_v12 = vld [vmem:[%s8373_s0] sm:$0xff] }
 0x202   :  { %3935 = vmatmul.mubr.msk.f32.gmra.mxu0 %vm567_vm4, %v5029_v29  ;;  %1142 = vmatprep.subr.mxu0 %v247_v21  ;;  %v241_v29 = vld [vmem:[%s8376_s4 + $0x268] sm:$0xff]  ;;  %v5555_v21 = vld [vmem:[%s8376_s4 + $0x1a0] sm:$0xff]  ;;  %8561 = vst [vmem:[#allocation14_spill] sm:$0xff] %v5774_v12 }
 0x203   :  { %1143 = vmatpush1.msra.mxu0 %v246_v23  ;;  %1094 = vmatpush2.msra.mxu1 %v218_v15  ;;  %v272_v23 = vld [vmem:[%s8376_s4 + $0x360] sm:$0xff] }
 0x204   :  { %1144 = vmatprep.subr.mxu0 %v245_v22  ;;  %1095 = vmatprep.subr.mxu1 %v5547_v19  ;;  %v5565_v22 = vld [vmem:[%s8376_s4 + $0x198] sm:$0xff]  ;;  %v5780_v15 = vld [vmem:[%s8373_s0 + $0x20] sm:$0xff] }
 0x205   :  { %1145 = vmatpush1.msra.mxu0 %v244_v25  ;;  %1096 = vmatpush2.msra.mxu1 %v5555_v21  ;;  %v5573_v25 = vld [vmem:[%s8376_s4 + $0x190] sm:$0xff]  ;;  %8562 = vst [vmem:[#allocation15_spill] sm:$0xff] %v5780_v15 }
 0x206   :  { %1146 = vmatprep.subr.mxu0 %v243_v17  ;;  %1097 = vmatprep.subr.mxu1 %v5565_v22  ;;  %v270_v17 = vld [vmem:[%s8376_s4 + $0x350] sm:$0xff] }
 0x207   :  { %1147 = vmatpush1.msra.mxu0 %v242_v27  ;;  %v445_v27 = vadd.f32 16.0, %v441_v16  ;;  %1098 = vmatpush2.msra.mxu1 %v5573_v25 }
 0x208   :  { %1148 = vmatprep.subr.mxu0 %v241_v29  ;;  %v5583_v29 = vld [vmem:[%s8376_s4 + $0x188] sm:$0xff] }
 0x209   :  { %1149 = vmatpush1.msra.mxu0 %v240_v30  ;;  %v269_v30 = vld [vmem:[%s8376_s4 + $0x348] sm:$0xff]  ;;  %1099 = vmatprep.subr.mxu1 %v5583_v29 }
 0x20a   :  { %1150 = vmatprep.subr.mxu0 %v239_v31  ;;  %v5591_v31 = vld [vmem:[%s8376_s4 + $0x180] sm:$0xff] }
 0x20b   :  { %1151 = vmatpush1.msra.mxu0 %v238_v32  ;;  %v268_v32 = vld [vmem:[%s8376_s4 + $0x340] sm:$0xff]  ;;  %1100 = vmatpush2.msra.mxu1 %v5591_v31 }
 0x20c   :  { %1152 = vmatprep.subr.mxu0 %v237_v33  ;;  %v5601_v33 = vld [vmem:[%s8376_s4 + $0x178] sm:$0xff] }
 0x20d   :  { %1153 = vmatpush1.msra.mxu0 %v236_v35  ;;  %v5609_v35 = vld [vmem:[%s8376_s4 + $0x170] sm:$0xff]  ;;  %1101 = vmatprep.subr.mxu1 %v5601_v33 }
 0x20e   :  { %1154 = vmatprep.subr.mxu0 %v235_v37  ;;  %v266_v37 = vld [vmem:[%s8376_s4 + $0x330] sm:$0xff]  ;;  %1102 = vmatpush2.msra.mxu1 %v5609_v35 }
 0x20f   :  { %1155 = vmatpush1.msra.mxu0 %v234_v38  ;;  %v450_v38 = vmul.f32 0.00862069, %v445_v27 }
 0x210   :  { %1156 = vmatprep.subr.mxu0 %v233_v39  ;;  %v5619_v39 = vld [vmem:[%s8376_s4 + $0x168] sm:$0xff] }
 0x211   :  { %1157 = vmatpush1.msra.mxu0 %v232_v40  ;;  %v5624_v40 = vld [vmem:[%s8376_s4 + $0x328] sm:$0xff]  ;;  %1103 = vmatprep.subr.mxu1 %v5619_v39 }
 0x212   :  { %1158 = vmatprep.subr.mxu0 %v231_v41  ;;  %v4176_v41 = vpop.eup %4175 }
 0x213   :  { %1159 = vmatpush1.msra.mxu0 %v230_v42  ;;  %v5632_v42 = vld [vmem:[%s8376_s4 + $0x160] sm:$0xff] }
 0x214   :  { %1160 = vmatprep.subr.mxu0 %v229_v43  ;;  %v5637_v43 = vld [vmem:[%s8376_s4 + $0x320] sm:$0xff]  ;;  %1104 = vmatpush2.msra.mxu1 %v5632_v42 }
 0x215   :  { %1161 = vmatpush1.msra.mxu0 %v228_v44  ;;  %v5649_v44 = vld [vmem:[%s8376_s4 + $0x318] sm:$0xff]  ;;  %1105 = vmatprep.subr.mxu1 %v5644_v28 }
 0x216   :  { %1162 = vmatprep.subr.mxu0 %v291_v45  ;;  %v5656_v45 = vld [vmem:[%s8376_s4 + $0x150] sm:$0xff] }
 0x217   :  { %1163 = vmatpush2.msra.mxu0 %v290_v46  ;;  %v5661_v46 = vld [vmem:[%s8376_s4 + $0x310] sm:$0xff]  ;;  %1106 = vmatpush2.msra.mxu1 %v5656_v45 }
 0x218   :  { %1164 = vmatprep.subr.mxu0 %v289_v47  ;;  %v454_v47 = vsel %vm416_vm5, %v4176_v41, %v450_v38  ;;  %vm2610_vm5 = vcmask 7168  }
 0x219   :  { %1165 = vmatpush2.msra.mxu0 %v288_v48  ;;  %v5668_v48 = vld [vmem:[%s8376_s4 + $0x148] sm:$0xff]  ;;  %v554_v54 = vsub.f32 %v454_v47, %v4819_v63 }
 0x21a   :  { %1166 = vmatprep.subr.mxu0 %v287_v36  ;;  %v5673_v36 = vld [vmem:[%s8376_s4 + $0x308] sm:$0xff]  ;;  %1107 = vmatprep.subr.mxu1 %v5668_v48 }
 0x21b   :  { %1167 = vmatpush2.msra.mxu0 %v286_v50  ;;  %v5680_v50 = vld [vmem:[%s8376_s4 + $0x140] sm:$0xff]  ;;  %v5725_v60 = vmul.f32 500.0, %v554_v54 }
 0x21c   :  { %1168 = vmatprep.subr.mxu0 %v285_v51  ;;  %v5685_v51 = vld [vmem:[%s8376_s4 + $0x300] sm:$0xff]  ;;  %1108 = vmatpush2.msra.mxu1 %v5680_v50 }
 0x21d   :  { %1169 = vmatpush2.msra.mxu0 %v284_v53  ;;  %8552 = vst [vmem:[#allocation5_spill] sm:$0xff] %v5685_v51  ;;  %v5692_v53 = vld [vmem:[%s8376_s4 + $0x138] sm:$0xff]  ;;  %8554 = vst [vmem:[#allocation7_spill] sm:$0xff] %v5725_v60 }
 0x21e   :  { %1170 = vmatprep.subr.mxu0 %v283_v55  ;;  %1109 = vmatprep.subr.mxu1 %v5692_v53  ;;  %v5699_v55 = vld [vmem:[%s8376_s4 + $0x130] sm:$0xff] }
 0x21f   :  { %1171 = vmatpush2.msra.mxu0 %v282_v56  ;;  %v5704_v56 = vld [vmem:[%s8374_s3 + $0x1e8] sm:$0xff]  ;;  %1110 = vmatpush2.msra.mxu1 %v5699_v55 }
 0x220   :  { %1172 = vmatprep.subr.mxu0 %v281_v61  ;;  %8553 = vst [vmem:[#allocation6_spill] sm:$0xff] %v5704_v56  ;;  %1111 = vmatprep.subr.mxu1 %v5711_v57  ;;  %v5731_v61 = vld [vmem:[%s8376_s4 + $0x110] sm:$0xff] }
 0x221   :  { %1173 = vmatpush2.msra.mxu0 %v280_v0  ;;  %1112 = vmatpush2.msra.mxu1 %v5717_v58  ;;  %v5743_v0 = vld [vmem:[%s8376_s4 + $0x100] sm:$0xff] }
 0x222   :  { %1174 = vmatprep.subr.mxu0 %v279_v2  ;;  %1113 = vmatprep.subr.mxu1 %v5723_v59  ;;  %8556 = vst [vmem:[#allocation9_spill] sm:$0xff] %v5743_v0  ;;  %v341_v2 = vmul.f32 0.412453, %v5750_v52 }
 0x223   :  { %1175 = vmatpush2.msra.mxu0 %v278_v5  ;;  %1114 = vmatpush2.msra.mxu1 %v5731_v61  ;;  %v345_v5 = vmul.f32 0.35758, %v5756_v4 }
 0x224   :  { %1176 = vmatprep.subr.mxu0 %v277_v7  ;;  %1115 = vmatprep.subr.mxu1 %v5737_v62  ;;  %v340_v7 = vmul.f32 0.412453, %v5762_v6 }
 0x225   :  { %1177 = vmatpush2.msra.mxu0 %v276_v11  ;;  %1116 = vmatpush2.msra.mxu1 %v5743_v0  ;;  %v344_v11 = vmul.f32 0.35758, %v5768_v9  ;;  %v349_v16 = vadd.f32 %v345_v5, %v341_v2 }
 0x226   :  { %1178 = vmatprep.subr.mxu0 %v275_v13  ;;  %1235 = vmatprep.subr.mxu1 %v5725_v60  ;;  %v339_v13 = vmul.f32 0.412453, %v5774_v12 }
 0x227   :  { %1179 = vmatpush2.msra.mxu0 %v274_v14  ;;  %v343_v14 = vmul.f32 0.35758, %v5780_v15 }
 0x228   :  { %1180 = vmatprep.subr.mxu0 %v273_v20  ;;  %v5786_v20 = vld [vmem:[%s8373_s0 + $0x50] sm:$0xff] }
 0x229   :  { %1181 = vmatpush2.msra.mxu0 %v272_v23  ;;  %8563 = vst [vmem:[#allocation16_spill] sm:$0xff] %v5786_v20  ;;  %v353_v23 = vmul.f32 0.180423, %v5786_v20 }
 0x22a   :  { %1182 = vmatprep.subr.mxu0 %v271_v24  ;;  %v348_v24 = vadd.f32 %v344_v11, %v340_v7 }
 0x22b   :  { %1183 = vmatpush2.msra.mxu0 %v270_v17  ;;  %v5792_v17 = vld [vmem:[%s8373_s0 + $0x48] sm:$0xff] }
 0x22c   :  { %1184 = vmatprep.subr.mxu0 %v269_v30  ;;  %8564 = vst [vmem:[#allocation17_spill] sm:$0xff] %v5792_v17  ;;  %v352_v27 = vmul.f32 0.180423, %v5792_v17  ;;  %v347_v30 = vadd.f32 %v343_v14, %v339_v13 }
 0x22d   :  { %1185 = vmatpush2.msra.mxu0 %v268_v32  ;;  %v5798_v32 = vld [vmem:[%s8373_s0 + $0x40] sm:$0xff] }
 0x22e   :  { %1186 = vmatprep.subr.mxu0 %v267_v34  ;;  %8565 = vst [vmem:[#allocation18_spill] sm:$0xff] %v5798_v32  ;;  %v351_v34 = vmul.f32 0.180423, %v5798_v32  ;;  %v356_v38 = vadd.f32 %v352_v27, %v348_v24 }
 0x22f   :  { %1187 = vmatpush2.msra.mxu0 %v266_v37  ;;  %v357_v37 = vadd.f32 %v353_v23, %v349_v16 }
 0x230   :  { %1188 = vmatprep.subr.mxu0 %v5624_v40  ;;  %v355_v41 = vadd.f32 %v351_v34, %v347_v30  ;;  %v401_v54 = vmul.f32 1.0521265, %v356_v38 }
 0x231   :  { %1189 = vmatpush2.msra.mxu0 %v5637_v43  ;;  %v402_v47 = vmul.f32 1.0521265, %v357_v37 }
 0x232   :  { %1190 = vmatprep.subr.mxu0 %v5649_v44  ;;  %v400_v2 = vmul.f32 1.0521265, %v355_v41  ;;  %v410_v7 = vmax.f32 %v401_v54, 1e-12  ;;  %vm414_vm7 = vcmp.gt.f32.partialorder %v401_v54, 0.008856452 }
 0x233   :  { %1191 = vmatpush2.msra.mxu0 %v5661_v46  ;;  %v411_v5 = vmax.f32 %v402_v47, 1e-12  ;;  %v440_v41 = vmul.f32 903.2963, %v402_v47  ;;  %vm415_vm6 = vcmp.gt.f32.partialorder %v402_v47, 0.008856452 }
 0x234   :  { %1192 = vmatprep.subr.mxu0 %v5673_v36  ;;  %v409_v11 = vmax.f32 %v400_v2, 1e-12  ;;  %vm413_vm8 = vcmp.gt.f32.partialorder %v400_v2, 0.008856452  ;;  %v5813_v47 = vld [vmem:[%s8374_s3 + $0x1e0] sm:$0xff] }
 0x235   :  { %1193 = vmatpush2.msra.mxu0 %v5685_v51  ;;  %4177 = vlog2.f32 %v411_v5  ;;  %8566 = vst [vmem:[#allocation19_spill] sm:$0xff] %v5813_v47 }
 0x236   :  { %1296 = vmatprep.subr.mxu0 %v5704_v56  ;;  %4179 = vlog2.f32 %v410_v7 }
 0x237   :  { %4181 = vlog2.f32 %v409_v11 }
 0x242   :  { %v4178_v13 = vpop.eup %4177 }
 0x243   :  { %v4180_v14 = vpop.eup %4179  ;;  %v422_v60 = vmul.f32 0.6931472, %v4178_v13 }
 0x244   :  { %v4182_v3 = vpop.eup %4181  ;;  %v420_v17 = vmul.f32 0.6931472, %v4180_v14 }
 0x245   :  { %v418_v20 = vmul.f32 0.6931472, %v4182_v3  ;;  %v428_v15 = vmul.f32 0.33333334, %v422_v60  ;;  %v439_v3 = vmul.f32 903.2963, %v401_v54 }
 0x246   :  { %v427_v32 = vmul.f32 0.33333334, %v420_v17  ;;  %v438_v17 = vmul.f32 903.2963, %v400_v2 }
 0x247   :  { %v426_v16 = vmul.f32 0.33333334, %v418_v20  ;;  %v434_v23 = vmul.f32 1.442695, %v428_v15  ;;  %v444_v20 = vadd.f32 16.0, %v440_v41  ;;  %v443_v7 = vadd.f32 16.0, %v439_v3 }
 0x248   :  { %v432_v27 = vmul.f32 1.442695, %v427_v32  ;;  %v442_v32 = vadd.f32 16.0, %v438_v17 }
 0x249   :  { %v430_v34 = vmul.f32 1.442695, %v426_v16  ;;  %4183 = vpow2.f32 %v434_v23  ;;  %v449_v13 = vmul.f32 0.00862069, %v444_v20  ;;  %v448_v23 = vmul.f32 0.00862069, %v443_v7 }
 0x24a   :  { %4185 = vpow2.f32 %v432_v27  ;;  %v447_v9 = vmul.f32 0.00862069, %v442_v32  ;;  %v5851_v32 = vld [vmem:[%s8374_s3 + $0x188] sm:$0xff] }
 0x24b   :  { %4187 = vpow2.f32 %v430_v34  ;;  %8573 = vst [vmem:[#allocation26_spill] sm:$0xff] %v5851_v32 }
 0x256   :  { %v4184_v16 = vpop.eup %4183 }
 0x257   :  { %v4186_v12 = vpop.eup %4185  ;;  %v453_v4 = vsel %vm415_vm6, %v4184_v16, %v449_v13  ;;  %v5859_v13 = vld [vmem:[%s8374_s3 + $0x180] sm:$0xff]  ;;  %vm2612_vm6 = vcmask 15360  }
 0x258   :  { %v4188_v34 = vpop.eup %4187  ;;  %v452_v41 = vsel %vm414_vm7, %v4186_v12, %v448_v23  ;;  %v553_v20 = vsub.f32 %v453_v4, %v4863_v26  ;;  %v5827_v4 = vld [vmem:[%s8374_s3 + $0x1c0] sm:$0xff]  ;;  %8575 = vst [vmem:[#allocation28_spill] sm:$0xff] %v5859_v13  ;;  %v4407_v26 = vld [vmem:[%s8377_s1 + $0x18] sm:$0xff]  ;;  %vm2614_vm7 = vcmask 23552  }
 0x259   :  { %v451_v17 = vsel %vm413_vm8, %v4188_v34, %v447_v9  ;;  %8568 = vst [vmem:[#allocation21_spill] sm:$0xff] %v5827_v4  ;;  %v5833_v9 = vld [vmem:[%s8374_s3 + $0x1a8] sm:$0xff]  ;;  %v5873_v23 = vld [vmem:[%s8374_s3 + $0x160] sm:$0xff]  ;;  %vm2616_vm8 = vcmask 31744  }
 0x25a   :  { %8569 = vst [vmem:[#allocation22_spill] sm:$0xff] %v5833_v9  ;;  %v5836_v12 = vmul.f32 500.0, %v553_v20  ;;  %8577 = vst [vmem:[#allocation30_spill] sm:$0xff] %v5873_v23  ;;  %v5881_v34 = vld [vmem:[%s8374_s3 + $0x148] sm:$0xff]  ;;  %v5913_v20 = vld [vmem:[%s8375_s2] sm:$0xff] }
 0x25b   :  { %8578 = vst [vmem:[#allocation31_spill] sm:$0xff] %v5881_v34 }
 0x25c   :  { %8570 = vst [vmem:[#allocation23_spill] sm:$0xff] %v5836_v12 }
 0x2a6   :  { %v5801_v24 = vpop.f32.mrf.mxu0 }
 0x2a8   :  { %v5803_v30 = vpop.f32.mrf.mxu0 }
 0x2aa   :  { %v5805_v37 = vpop.f32.mrf.mxu0 }
 0x2ac   :  { %v5807_v38 = vpop.f32.mrf.mxu0 }
 0x2ae   :  { %v945_v5 = vpop.f32.mrf.mxu0 }
 0x2b0   :  { %v947_v60 = vpop.f32.mrf.mxu0 }
 0x2b2   :  { %v951_v15 = vpop.f32.mrf.mxu0 }
 0x2b4   :  { %v953_v11 = vpop.f32.mrf.mxu0 }
 0x2b6   :  { %v1022_v14 = vpop.f32.mrf.mxu0 }
 0x2b7   :  { %v1049_v52 = vadd.f32 %v1022_v14, %v945_v5  ;;  %v552_v5 = vsub.f32 %v452_v41, %v4905_v49  ;;  %v5865_v14 = vld [vmem:[%s8374_s3 + $0x168] sm:$0xff]  ;;  %v5895_v41 = vld [vmem:[%s8374_s3 + $0x140] sm:$0xff] }
 0x2b8   :  { %v1024_v27 = vpop.f32.mrf.mxu0  ;;  %8576 = vst [vmem:[#allocation29_spill] sm:$0xff] %v5865_v14  ;;  %8581 = vst [vmem:[#allocation33_spill] sm:$0xff] %v5895_v41 }
 0x2b9   :  { %v1050_v6 = vadd.f32 %v1024_v27, %v947_v60  ;;  %v5842_v60 = vld [vmem:[%s8374_s3 + $0x1a0] sm:$0xff] }
 0x2ba   :  { %v1028_v56 = vpop.f32.mrf.mxu0  ;;  %8571 = vst [vmem:[#allocation24_spill] sm:$0xff] %v5842_v60 }
 0x2bb   :  { %1194 = vmatprep.mubr.f32.mxu0 %v1050_v6  ;;  %v1051_v54 = vadd.f32 %v1028_v56, %v951_v15  ;;  %v5820_v6 = vld [vmem:[%s8374_s3 + $0x1c8] sm:$0xff] }
 0x2bc   :  { %v1030_v3 = vpop.f32.mrf.mxu0  ;;  %1195 = vmatmul.mubr.f32.vlgmr.msra.gmra.mxu0 %v1049_v52  ;;  %8567 = vst [vmem:[#allocation20_spill] sm:$0xff] %v5820_v6  ;;  %v551_v52 = vsub.f32 %v451_v17, %v4936_v1  ;;  %v5907_v17 = vld [vmem:[%s8374_s3 + $0x120] sm:$0xff] }
 0x2bd   :  { %v1052_v0 = vadd.f32 %v1030_v3, %v953_v11  ;;  %1297 = vmatpush1.msra.mxu0 %v5813_v47  ;;  %v5846_v11 = vmul.f32 500.0, %v552_v5  ;;  %v5901_v3 = vld [vmem:[%s8374_s3 + $0x128] sm:$0xff]  ;;  %8583 = vst [vmem:[#allocation35_spill] sm:$0xff] %v5907_v17  ;;  %v5933_v5 = vld [vmem:[%s8374_s3 + $0x1d8] sm:$0xff] }
 0x2be   :  { %v1034_v2 = vpop.f32.mrf.mxu0  ;;  %1298 = vmatprep.subr.mxu0 %v5820_v6  ;;  %8582 = vst [vmem:[#allocation34_spill] sm:$0xff] %v5901_v3  ;;  %8586 = vst [vmem:[#allocation38_spill] sm:$0xff] %v5933_v5 }
 0x2bf   :  { %1200 = vmatprep.mubr.f32.mxu0 %v1052_v0  ;;  %1299 = vmatpush1.msra.mxu0 %v5827_v4  ;;  %v1045_v15 = vsub.f32 %v5801_v24, %v1034_v2  ;;  %8572 = vst [vmem:[#allocation25_spill] sm:$0xff] %v5846_v11  ;;  %v5927_v2 = vld [vmem:[%s8374_s3 + $0x1f0] sm:$0xff] }
 0x2c0   :  { %v1036_v56 = vpop.f32.mrf.mxu0  ;;  %1201 = vmatmul.mubr.f32.gmra.mxu0 %v1051_v54  ;;  %1300 = vmatprep.subr.mxu0 %v5833_v9  ;;  %v5920_v54 = vld [vmem:[%s8374_s3 + $0x108] sm:$0xff]  ;;  %8585 = vst [vmem:[#allocation37_spill] sm:$0xff] %v5927_v2 }
 0x2c1   :  { %v1046_v0 = vsub.f32 %v5803_v30, %v1036_v56  ;;  %1301 = vmatpush1.msra.mxu0 %v5842_v60  ;;  %v5854_v30 = vmul.f32 500.0, %v551_v52  ;;  %8584 = vst [vmem:[#allocation36_spill] sm:$0xff] %v5920_v54  ;;  %v5939_v52 = vld [vmem:[%s8374_s3 + $0x100] sm:$0xff]  ;;  %v5945_v56 = vld [vmem:[%s8374_s3 + $0x1d0] sm:$0xff] }
 0x2c2   :  { %v1040_v7 = vpop.f32.mrf.mxu0  ;;  %1302 = vmatprep.subr.mxu0 %v5851_v32  ;;  %8587 = vst [vmem:[#allocation39_spill] sm:$0xff] %v5939_v52  ;;  %8588 = vst [vmem:[#allocation40_spill] sm:$0xff] %v5945_v56 }
 0x2c3   :  { %1117 = vmatprep.mubr.f32.mxu1 %v1046_v0  ;;  %8574 = vst [vmem:[#allocation27_spill] sm:$0xff] %v5854_v30  ;;  %1303 = vmatpush1.msra.mxu0 %v5859_v13  ;;  %v1047_v27 = vsub.f32 %v5805_v37, %v1040_v7  ;;  %v8580_v37 = vmov 0.0   ;;  %v5951_v0 = vld [vmem:[%s8374_s3 + $0xe8] sm:$0xff]  ;;  %v5964_v7 = vld [vmem:[%s8374_s3 + $0x1b8] sm:$0xff] }
 0x2c4   :  { %v1042_v24 = vpop.f32.mrf.mxu0  ;;  %1118 = vmatmul.mubr.f32.vlgmr.msra.gmra.mxu1 %v1045_v15  ;;  %1304 = vmatprep.subr.mxu0 %v5865_v14  ;;  %8589 = vst [vmem:[#allocation41_spill] sm:$0xff] %v5951_v0  ;;  %v5957_v15 = vld [vmem:[%s8375_s2 + $0x8] sm:$0xff]  ;;  %8590 = vst [vmem:[#allocation42_spill] sm:$0xff] %v5964_v7 }
 0x2c5   :  { %v1048_v16 = vsub.f32 %v5807_v38, %v1042_v24  ;;  %1236 = vmatpush1.msra.mxu1 %v5836_v12  ;;  %1305 = vmatpush1.msra.mxu0 %v5873_v23  ;;  %v5888_v38 = vld [vmem:[%s8374_s3 + $0x1f8] sm:$0xff]  ;;  %v5971_v24 = vld [vmem:[%s8374_s3 + $0x1b0] sm:$0xff] }
 0x2c6   :  { %1237 = vmatprep.subr.mxu1 %v5846_v11  ;;  %1306 = vmatprep.subr.mxu0 %v5881_v34  ;;  %8579 = vst [vmem:[#allocation32_spill] sm:$0xff] %v5888_v38  ;;  %8591 = vst [vmem:[#allocation43_spill] sm:$0xff] %v5971_v24  ;;  %v5989_v11 = vld [vmem:[%s8374_s3 + $0x190] sm:$0xff] }
 0x2c7   :  { %1123 = vmatprep.mubr.f32.mxu1 %v1048_v16  ;;  %1238 = vmatpush1.msra.mxu1 %v5854_v30  ;;  %v5977_v16 = vld [vmem:[%s8374_s3 + $0x198] sm:$0xff]  ;;  %8594 = vst [vmem:[#allocation46_spill] sm:$0xff] %v5989_v11  ;;  %v5995_v30 = vld [vmem:[%s8374_s3 + $0xc8] sm:$0xff]  ;;  %v6001_v12 = vld [vmem:[%s8375_s2 + $0x10] sm:$0xff] }
 0x2c8   :  { %1124 = vmatmul.mubr.f32.gmra.mxu1 %v1047_v27  ;;  %1385 = vmatprep.subr.mxu1 %v5888_v38  ;;  %8592 = vst [vmem:[#allocation44_spill] sm:$0xff] %v5977_v16  ;;  %v5983_v27 = vld [vmem:[%s8374_s3 + $0xe0] sm:$0xff]  ;;  %8595 = vst [vmem:[#allocation47_spill] sm:$0xff] %v5995_v30 }
 0x2c9   :  { %1271 = vmatprep.mubr.f32.mxu1 %v8580_v37  ;;  %1307 = vmatpush1.msra.mxu0 %v5895_v41  ;;  %8593 = vst [vmem:[#allocation45_spill] sm:$0xff] %v5983_v27  ;;  %v6070_v41 = vld [vmem:[%s8374_s3 + $0x118] sm:$0xff] }
 0x2ca   :  { %1308 = vmatprep.subr.mxu0 %v5901_v3  ;;  %v6045_v3 = vld [vmem:[%s8375_s2 + $0x18] sm:$0xff]  ;;  %8605 = vst [vmem:[#allocation57_spill] sm:$0xff] %v6070_v41 }
 0x2cb   :  { %1309 = vmatpush1.msra.mxu0 %v5907_v17  ;;  %v6039_v17 = vld [vmem:[%s8374_s3 + $0xa8] sm:$0xff] }
 0x2cc   :  { %3936 = vmatmul.mubr.msk.f32.vlgmr.msra.gmra.mxu1 %vm567_vm4, %v5913_v20  ;;  %1310 = vmatprep.subr.mxu0 %v5920_v54  ;;  %v6033_v54 = vld [vmem:[%s8374_s3 + $0x150] sm:$0xff]  ;;  %8601 = vst [vmem:[#allocation53_spill] sm:$0xff] %v6039_v17 }
 0x2cd   :  { %1277 = vmatprep.mubr.f32.mxu1 %v8580_v37  ;;  %1386 = vmatpush1.msra.mxu1 %v5927_v2  ;;  %8600 = vst [vmem:[#allocation52_spill] sm:$0xff] %v6033_v54 }
 0x2ce   :  { %1387 = vmatprep.subr.mxu1 %v5933_v5  ;;  %1311 = vmatpush1.msra.mxu0 %v5939_v52  ;;  %v6027_v52 = vld [vmem:[%s8374_s3 + $0xc0] sm:$0xff] }
 0x2cf   :  { %1388 = vmatpush1.msra.mxu1 %v5945_v56  ;;  %1312 = vmatprep.subr.mxu0 %v5951_v0  ;;  %v6021_v0 = vld [vmem:[%s8374_s3 + $0x158] sm:$0xff]  ;;  %8599 = vst [vmem:[#allocation51_spill] sm:$0xff] %v6027_v52 }
 0x2d0   :  { %3937 = vmatmul.mubr.msk.f32.gmra.mxu1 %vm567_vm4, %v5957_v15  ;;  %1389 = vmatprep.subr.mxu1 %v5964_v7  ;;  %8598 = vst [vmem:[#allocation50_spill] sm:$0xff] %v6021_v0 }
 0x2d1   :  { %1283 = vmatprep.mubr.f32.mxu1 %v8580_v37  ;;  %1390 = vmatpush1.msra.mxu1 %v5971_v24 }
 0x2d2   :  { %1391 = vmatprep.subr.mxu1 %v5977_v16  ;;  %1313 = vmatpush1.msra.mxu0 %v5983_v27  ;;  %v6008_v27 = vld [vmem:[%s8374_s3 + $0x178] sm:$0xff] }
 0x2d3   :  { %1392 = vmatpush1.msra.mxu1 %v5989_v11  ;;  %1314 = vmatprep.subr.mxu0 %v5995_v30  ;;  %8596 = vst [vmem:[#allocation48_spill] sm:$0xff] %v6008_v27  ;;  %v6015_v30 = vld [vmem:[%s8374_s3 + $0x170] sm:$0xff] }
 0x2d4   :  { %3938 = vmatmul.mubr.msk.f32.gmra.mxu1 %vm567_vm4, %v6001_v12  ;;  %1393 = vmatprep.subr.mxu1 %v6008_v27  ;;  %8597 = vst [vmem:[#allocation49_spill] sm:$0xff] %v6015_v30 }
 0x2d5   :  { %1289 = vmatprep.mubr.f32.mxu1 %v8580_v37  ;;  %1394 = vmatpush1.msra.mxu1 %v6015_v30 }
 0x2d6   :  { %1395 = vmatprep.subr.mxu1 %v6021_v0  ;;  %1315 = vmatpush1.msra.mxu0 %v6027_v52  ;;  %v6052_v52 = vld [vmem:[%s8374_s3 + $0x138] sm:$0xff] }
 0x2d7   :  { %1396 = vmatpush1.msra.mxu1 %v6033_v54  ;;  %1316 = vmatprep.subr.mxu0 %v6039_v17  ;;  %8602 = vst [vmem:[#allocation54_spill] sm:$0xff] %v6052_v52  ;;  %v6058_v54 = vld [vmem:[%s8374_s3 + $0x130] sm:$0xff]  ;;  %v6064_v17 = vld [vmem:[%s8374_s3 + $0xa0] sm:$0xff] }
 0x2d8   :  { %3939 = vmatmul.mubr.msk.f32.gmra.mxu1 %vm567_vm4, %v6045_v3  ;;  %1397 = vmatprep.subr.mxu1 %v6052_v52  ;;  %8603 = vst [vmem:[#allocation55_spill] sm:$0xff] %v6058_v54  ;;  %8604 = vst [vmem:[#allocation56_spill] sm:$0xff] %v6064_v17  ;;  %v6076_v52 = vld [vmem:[%s8374_s3 + $0x88] sm:$0xff] }
 0x2d9   :  { %1398 = vmatpush1.msra.mxu1 %v6058_v54  ;;  %1317 = vmatpush1.msra.mxu0 %v6064_v17  ;;  %8606 = vst [vmem:[#allocation58_spill] sm:$0xff] %v6076_v52  ;;  %v6082_v54 = vld [vmem:[%s8374_s3 + $0x110] sm:$0xff]  ;;  %v6088_v17 = vld [vmem:[%s8374_s3 + $0x80] sm:$0xff] }
 0x2da   :  { %1399 = vmatprep.subr.mxu1 %v6070_v41  ;;  %1318 = vmatprep.subr.mxu0 %v6076_v52  ;;  %8607 = vst [vmem:[#allocation59_spill] sm:$0xff] %v6082_v54  ;;  %8608 = vst [vmem:[#allocation60_spill] sm:$0xff] %v6088_v17  ;;  %v6094_v41 = vld [vmem:[%s8374_s3 + $0xf8] sm:$0xff]  ;;  %v6100_v52 = vld [vmem:[%s8374_s3 + $0x68] sm:$0xff] }
 0x2db   :  { %1400 = vmatpush1.msra.mxu1 %v6082_v54  ;;  %1319 = vmatpush1.msra.mxu0 %v6088_v17  ;;  %8609 = vst [vmem:[#allocation61_spill] sm:$0xff] %v6094_v41  ;;  %8610 = vst [vmem:[#allocation62_spill] sm:$0xff] %v6100_v52  ;;  %v6106_v54 = vld [vmem:[%s8374_s3 + $0xf0] sm:$0xff]  ;;  %v6112_v17 = vld [vmem:[%s8374_s3 + $0x60] sm:$0xff] }
 0x2dc   :  { %1401 = vmatprep.subr.mxu1 %v6094_v41  ;;  %1320 = vmatprep.subr.mxu0 %v6100_v52  ;;  %8611 = vst [vmem:[#allocation63_spill] sm:$0xff] %v6106_v54  ;;  %8612 = vst [vmem:[#allocation64_spill] sm:$0xff] %v6112_v17  ;;  %v6118_v41 = vld [vmem:[%s8374_s3 + $0xd8] sm:$0xff]  ;;  %v6124_v52 = vld [vmem:[%s8374_s3 + $0x48] sm:$0xff] }
 0x2dd   :  { %1402 = vmatpush1.msra.mxu1 %v6106_v54  ;;  %1321 = vmatpush1.msra.mxu0 %v6112_v17  ;;  %8613 = vst [vmem:[#allocation65_spill] sm:$0xff] %v6118_v41  ;;  %8614 = vst [vmem:[#allocation66_spill] sm:$0xff] %v6124_v52  ;;  %v6130_v54 = vld [vmem:[%s8374_s3 + $0xd0] sm:$0xff]  ;;  %v6136_v17 = vld [vmem:[%s8374_s3 + $0x40] sm:$0xff] }
 0x2de   :  { %1403 = vmatprep.subr.mxu1 %v6118_v41  ;;  %1322 = vmatprep.subr.mxu0 %v6124_v52  ;;  %8615 = vst [vmem:[#allocation67_spill] sm:$0xff] %v6130_v54  ;;  %8616 = vst [vmem:[#allocation68_spill] sm:$0xff] %v6136_v17  ;;  %v6142_v41 = vld [vmem:[%s8374_s3 + $0xb8] sm:$0xff]  ;;  %v6148_v52 = vld [vmem:[%s8374_s3 + $0x28] sm:$0xff] }
 0x2df   :  { %1404 = vmatpush1.msra.mxu1 %v6130_v54  ;;  %1323 = vmatpush1.msra.mxu0 %v6136_v17  ;;  %8617 = vst [vmem:[#allocation69_spill] sm:$0xff] %v6142_v41  ;;  %8618 = vst [vmem:[#allocation70_spill] sm:$0xff] %v6148_v52  ;;  %v6154_v54 = vld [vmem:[%s8374_s3 + $0xb0] sm:$0xff]  ;;  %v6160_v17 = vld [vmem:[%s8374_s3 + $0x20] sm:$0xff] }
 0x2e0   :  { %1405 = vmatprep.subr.mxu1 %v6142_v41  ;;  %1324 = vmatprep.subr.mxu0 %v6148_v52  ;;  %8619 = vst [vmem:[#allocation71_spill] sm:$0xff] %v6154_v54  ;;  %8620 = vst [vmem:[#allocation72_spill] sm:$0xff] %v6160_v17  ;;  %v6166_v41 = vld [vmem:[%s8374_s3 + $0x98] sm:$0xff]  ;;  %v6172_v52 = vld [vmem:[%s8374_s3 + $0x8] sm:$0xff] }
 0x2e1   :  { %1406 = vmatpush1.msra.mxu1 %v6154_v54  ;;  %1325 = vmatpush1.msra.mxu0 %v6160_v17  ;;  %8621 = vst [vmem:[#allocation73_spill] sm:$0xff] %v6166_v41  ;;  %8622 = vst [vmem:[#allocation74_spill] sm:$0xff] %v6172_v52  ;;  %v6178_v54 = vld [vmem:[%s8374_s3 + $0x90] sm:$0xff]  ;;  %v6184_v17 = vld [vmem:[%s8374_s3] sm:$0xff] }
 0x2e2   :  { %1407 = vmatprep.subr.mxu1 %v6166_v41  ;;  %1326 = vmatprep.subr.mxu0 %v6172_v52  ;;  %8623 = vst [vmem:[#allocation75_spill] sm:$0xff] %v6178_v54  ;;  %8624 = vst [vmem:[#allocation76_spill] sm:$0xff] %v6184_v17  ;;  %v6190_v41 = vld [vmem:[%s8374_s3 + $0x78] sm:$0xff]  ;;  %v6196_v52 = vld [vmem:[%s8374_s3 + $0x3e8] sm:$0xff] }
 0x2e3   :  { %1408 = vmatpush1.msra.mxu1 %v6178_v54  ;;  %1327 = vmatpush1.msra.mxu0 %v6184_v17  ;;  %8625 = vst [vmem:[#allocation77_spill] sm:$0xff] %v6190_v41  ;;  %8626 = vst [vmem:[#allocation78_spill] sm:$0xff] %v6196_v52  ;;  %v6202_v54 = vld [vmem:[%s8374_s3 + $0x70] sm:$0xff]  ;;  %v6208_v17 = vld [vmem:[%s8374_s3 + $0x3e0] sm:$0xff] }
 0x2e4   :  { %1409 = vmatprep.subr.mxu1 %v6190_v41  ;;  %1328 = vmatprep.subr.mxu0 %v6196_v52  ;;  %8627 = vst [vmem:[#allocation79_spill] sm:$0xff] %v6202_v54  ;;  %8628 = vst [vmem:[#allocation80_spill] sm:$0xff] %v6208_v17  ;;  %v6214_v41 = vld [vmem:[%s8374_s3 + $0x58] sm:$0xff]  ;;  %v6220_v52 = vld [vmem:[%s8374_s3 + $0x3c8] sm:$0xff] }
 0x2e5   :  { %1410 = vmatpush1.msra.mxu1 %v6202_v54  ;;  %1329 = vmatpush2.msra.mxu0 %v6208_v17  ;;  %8629 = vst [vmem:[#allocation81_spill] sm:$0xff] %v6214_v41  ;;  %8630 = vst [vmem:[#allocation82_spill] sm:$0xff] %v6220_v52  ;;  %v6226_v54 = vld [vmem:[%s8374_s3 + $0x50] sm:$0xff]  ;;  %v6232_v17 = vld [vmem:[%s8374_s3 + $0x3c0] sm:$0xff] }
 0x2e6   :  { %1411 = vmatprep.subr.mxu1 %v6214_v41  ;;  %1330 = vmatprep.subr.mxu0 %v6220_v52  ;;  %8631 = vst [vmem:[#allocation83_spill] sm:$0xff] %v6226_v54  ;;  %8632 = vst [vmem:[#allocation84_spill] sm:$0xff] %v6232_v17  ;;  %v6238_v41 = vld [vmem:[%s8374_s3 + $0x38] sm:$0xff]  ;;  %v6244_v52 = vld [vmem:[%s8374_s3 + $0x3a8] sm:$0xff] }
 0x2e7   :  { %1412 = vmatpush1.msra.mxu1 %v6226_v54  ;;  %1331 = vmatpush2.msra.mxu0 %v6232_v17  ;;  %8633 = vst [vmem:[#allocation85_spill] sm:$0xff] %v6238_v41  ;;  %8634 = vst [vmem:[#allocation86_spill] sm:$0xff] %v6244_v52  ;;  %v6250_v54 = vld [vmem:[%s8374_s3 + $0x30] sm:$0xff]  ;;  %v6256_v17 = vld [vmem:[%s8374_s3 + $0x3a0] sm:$0xff] }
 0x2e8   :  { %1413 = vmatprep.subr.mxu1 %v6238_v41  ;;  %1332 = vmatprep.subr.mxu0 %v6244_v52  ;;  %8635 = vst [vmem:[#allocation87_spill] sm:$0xff] %v6250_v54  ;;  %8636 = vst [vmem:[#allocation88_spill] sm:$0xff] %v6256_v17  ;;  %v6262_v41 = vld [vmem:[%s8374_s3 + $0x18] sm:$0xff]  ;;  %v6268_v52 = vld [vmem:[%s8374_s3 + $0x388] sm:$0xff] }
 0x2e9   :  { %1414 = vmatpush1.msra.mxu1 %v6250_v54  ;;  %1333 = vmatpush2.msra.mxu0 %v6256_v17  ;;  %8637 = vst [vmem:[#allocation89_spill] sm:$0xff] %v6262_v41  ;;  %8638 = vst [vmem:[#allocation90_spill] sm:$0xff] %v6268_v52  ;;  %v6274_v54 = vld [vmem:[%s8374_s3 + $0x10] sm:$0xff]  ;;  %v6280_v17 = vld [vmem:[%s8374_s3 + $0x380] sm:$0xff] }
 0x2ea   :  { %1415 = vmatprep.subr.mxu1 %v6262_v41  ;;  %1334 = vmatprep.subr.mxu0 %v6268_v52  ;;  %8639 = vst [vmem:[#allocation91_spill] sm:$0xff] %v6274_v54  ;;  %8640 = vst [vmem:[#allocation92_spill] sm:$0xff] %v6280_v17  ;;  %v6286_v41 = vld [vmem:[%s8374_s3 + $0x3f8] sm:$0xff]  ;;  %v6292_v52 = vld [vmem:[%s8374_s3 + $0x368] sm:$0xff] }
 0x2eb   :  { %1416 = vmatpush1.msra.mxu1 %v6274_v54  ;;  %1335 = vmatpush2.msra.mxu0 %v6280_v17  ;;  %8641 = vst [vmem:[#allocation93_spill] sm:$0xff] %v6286_v41  ;;  %8642 = vst [vmem:[#allocation94_spill] sm:$0xff] %v6292_v52  ;;  %v6298_v54 = vld [vmem:[%s8374_s3 + $0x3f0] sm:$0xff]  ;;  %v6304_v17 = vld [vmem:[%s8374_s3 + $0x360] sm:$0xff] }
 0x2ec   :  { %1417 = vmatprep.subr.mxu1 %v6286_v41  ;;  %1336 = vmatprep.subr.mxu0 %v6292_v52  ;;  %8643 = vst [vmem:[#allocation95_spill] sm:$0xff] %v6298_v54  ;;  %8644 = vst [vmem:[#allocation96_spill] sm:$0xff] %v6304_v17  ;;  %v6310_v41 = vld [vmem:[%s8374_s3 + $0x3d8] sm:$0xff]  ;;  %v6316_v52 = vld [vmem:[%s8374_s3 + $0x348] sm:$0xff] }
 0x2ed   :  { %1418 = vmatpush2.msra.mxu1 %v6298_v54  ;;  %1337 = vmatpush2.msra.mxu0 %v6304_v17  ;;  %8645 = vst [vmem:[#allocation97_spill] sm:$0xff] %v6310_v41  ;;  %8646 = vst [vmem:[#allocation98_spill] sm:$0xff] %v6316_v52  ;;  %v6322_v54 = vld [vmem:[%s8374_s3 + $0x3d0] sm:$0xff]  ;;  %v6328_v17 = vld [vmem:[%s8374_s3 + $0x340] sm:$0xff] }
 0x2ee   :  { %1419 = vmatprep.subr.mxu1 %v6310_v41  ;;  %1338 = vmatprep.subr.mxu0 %v6316_v52  ;;  %8647 = vst [vmem:[#allocation99_spill] sm:$0xff] %v6322_v54  ;;  %8648 = vst [vmem:[#allocation100_spill] sm:$0xff] %v6328_v17  ;;  %v6334_v41 = vld [vmem:[%s8374_s3 + $0x3b8] sm:$0xff]  ;;  %v6340_v52 = vld [vmem:[%s8374_s3 + $0x328] sm:$0xff] }
 0x2ef   :  { %1420 = vmatpush2.msra.mxu1 %v6322_v54  ;;  %1339 = vmatpush2.msra.mxu0 %v6328_v17  ;;  %8649 = vst [vmem:[#allocation101_spill] sm:$0xff] %v6334_v41  ;;  %8650 = vst [vmem:[#allocation102_spill] sm:$0xff] %v6340_v52  ;;  %v6346_v54 = vld [vmem:[%s8374_s3 + $0x3b0] sm:$0xff]  ;;  %v6352_v17 = vld [vmem:[%s8374_s3 + $0x320] sm:$0xff] }
 0x2f0   :  { %1421 = vmatprep.subr.mxu1 %v6334_v41  ;;  %1340 = vmatprep.subr.mxu0 %v6340_v52  ;;  %8651 = vst [vmem:[#allocation103_spill] sm:$0xff] %v6346_v54  ;;  %8652 = vst [vmem:[#allocation104_spill] sm:$0xff] %v6352_v17  ;;  %v6358_v41 = vld [vmem:[%s8374_s3 + $0x398] sm:$0xff]  ;;  %v6364_v52 = vld [vmem:[%s8374_s3 + $0x308] sm:$0xff] }
 0x2f1   :  { %1422 = vmatpush2.msra.mxu1 %v6346_v54  ;;  %1341 = vmatpush2.msra.mxu0 %v6352_v17  ;;  %8653 = vst [vmem:[#allocation105_spill] sm:$0xff] %v6358_v41  ;;  %8654 = vst [vmem:[#allocation106_spill] sm:$0xff] %v6364_v52  ;;  %v6370_v54 = vld [vmem:[%s8374_s3 + $0x390] sm:$0xff]  ;;  %v6376_v17 = vld [vmem:[%s8374_s3 + $0x300] sm:$0xff] }
 0x2f2   :  { %1423 = vmatprep.subr.mxu1 %v6358_v41  ;;  %1342 = vmatprep.subr.mxu0 %v6364_v52  ;;  %8655 = vst [vmem:[#allocation107_spill] sm:$0xff] %v6370_v54  ;;  %8656 = vst [vmem:[#allocation108_spill] sm:$0xff] %v6376_v17  ;;  %v6382_v41 = vld [vmem:[%s8374_s3 + $0x378] sm:$0xff]  ;;  %v6388_v52 = vld [vmem:[%s8374_s3 + $0x2e8] sm:$0xff] }
 0x2f3   :  { %1424 = vmatpush2.msra.mxu1 %v6370_v54  ;;  %1343 = vmatpush2.msra.mxu0 %v6376_v17  ;;  %8657 = vst [vmem:[#allocation109_spill] sm:$0xff] %v6382_v41  ;;  %8658 = vst [vmem:[#allocation110_spill] sm:$0xff] %v6388_v52  ;;  %v6394_v54 = vld [vmem:[%s8374_s3 + $0x370] sm:$0xff]  ;;  %v6400_v17 = vld [vmem:[%s8374_s3 + $0x2e0] sm:$0xff] }
 0x2f4   :  { %1425 = vmatprep.subr.mxu1 %v6382_v41  ;;  %1344 = vmatprep.subr.mxu0 %v6388_v52  ;;  %8659 = vst [vmem:[#allocation111_spill] sm:$0xff] %v6394_v54  ;;  %8660 = vst [vmem:[#allocation112_spill] sm:$0xff] %v6400_v17  ;;  %v6406_v41 = vld [vmem:[%s8374_s3 + $0x358] sm:$0xff]  ;;  %v6412_v52 = vld [vmem:[%s8374_s3 + $0x2c8] sm:$0xff] }
 0x2f5   :  { %1426 = vmatpush2.msra.mxu1 %v6394_v54  ;;  %1345 = vmatpush2.msra.mxu0 %v6400_v17  ;;  %8661 = vst [vmem:[#allocation113_spill] sm:$0xff] %v6406_v41  ;;  %8662 = vst [vmem:[#allocation114_spill] sm:$0xff] %v6412_v52  ;;  %v6418_v54 = vld [vmem:[%s8374_s3 + $0x350] sm:$0xff]  ;;  %v6424_v17 = vld [vmem:[%s8374_s3 + $0x2c0] sm:$0xff] }
 0x2f6   :  { %1427 = vmatprep.subr.mxu1 %v6406_v41  ;;  %1346 = vmatprep.subr.mxu0 %v6412_v52  ;;  %8663 = vst [vmem:[#allocation115_spill] sm:$0xff] %v6418_v54  ;;  %8664 = vst [vmem:[#allocation116_spill] sm:$0xff] %v6424_v17  ;;  %v6430_v41 = vld [vmem:[%s8374_s3 + $0x338] sm:$0xff]  ;;  %v6436_v52 = vld [vmem:[%s8374_s3 + $0x2a8] sm:$0xff] }
 0x2f7   :  { %1428 = vmatpush2.msra.mxu1 %v6418_v54  ;;  %1347 = vmatpush2.msra.mxu0 %v6424_v17  ;;  %8665 = vst [vmem:[#allocation117_spill] sm:$0xff] %v6430_v41  ;;  %8666 = vst [vmem:[#allocation118_spill] sm:$0xff] %v6436_v52  ;;  %v6442_v54 = vld [vmem:[%s8374_s3 + $0x330] sm:$0xff]  ;;  %v6448_v17 = vld [vmem:[%s8374_s3 + $0x2a0] sm:$0xff] }
 0x2f8   :  { %1429 = vmatprep.subr.mxu1 %v6430_v41  ;;  %1348 = vmatprep.subr.mxu0 %v6436_v52  ;;  %8667 = vst [vmem:[#allocation119_spill] sm:$0xff] %v6442_v54  ;;  %8668 = vst [vmem:[#allocation120_spill] sm:$0xff] %v6448_v17  ;;  %v6454_v41 = vld [vmem:[%s8374_s3 + $0x318] sm:$0xff]  ;;  %v6460_v52 = vld [vmem:[%s8374_s3 + $0x288] sm:$0xff] }
 0x2f9   :  { %1430 = vmatpush2.msra.mxu1 %v6442_v54  ;;  %1349 = vmatpush2.msra.mxu0 %v6448_v17  ;;  %8669 = vst [vmem:[#allocation121_spill] sm:$0xff] %v6454_v41  ;;  %8670 = vst [vmem:[#allocation122_spill] sm:$0xff] %v6460_v52  ;;  %v6466_v54 = vld [vmem:[%s8374_s3 + $0x310] sm:$0xff]  ;;  %v6472_v17 = vld [vmem:[%s8374_s3 + $0x280] sm:$0xff] }
 0x2fa   :  { %1431 = vmatprep.subr.mxu1 %v6454_v41  ;;  %1350 = vmatprep.subr.mxu0 %v6460_v52  ;;  %8671 = vst [vmem:[#allocation123_spill] sm:$0xff] %v6466_v54  ;;  %8672 = vst [vmem:[#allocation124_spill] sm:$0xff] %v6472_v17  ;;  %v6478_v41 = vld [vmem:[%s8374_s3 + $0x2f8] sm:$0xff]  ;;  %v6484_v52 = vld [vmem:[%s8374_s3 + $0x268] sm:$0xff] }
 0x2fb   :  { %1432 = vmatpush2.msra.mxu1 %v6466_v54  ;;  %1351 = vmatpush2.msra.mxu0 %v6472_v17  ;;  %8673 = vst [vmem:[#allocation125_spill] sm:$0xff] %v6478_v41  ;;  %8674 = vst [vmem:[#allocation126_spill] sm:$0xff] %v6484_v52  ;;  %v6490_v54 = vld [vmem:[%s8374_s3 + $0x2f0] sm:$0xff]  ;;  %v6496_v17 = vld [vmem:[%s8374_s3 + $0x260] sm:$0xff] }
 0x2fc   :  { %1433 = vmatprep.subr.mxu1 %v6478_v41  ;;  %1352 = vmatprep.subr.mxu0 %v6484_v52  ;;  %8675 = vst [vmem:[#allocation127_spill] sm:$0xff] %v6490_v54  ;;  %8676 = vst [vmem:[#allocation128_spill] sm:$0xff] %v6496_v17  ;;  %v6502_v41 = vld [vmem:[%s8374_s3 + $0x2d8] sm:$0xff]  ;;  %v6508_v52 = vld [vmem:[%s8374_s3 + $0x248] sm:$0xff] }
 0x2fd   :  { %1434 = vmatpush2.msra.mxu1 %v6490_v54  ;;  %1353 = vmatpush2.msra.mxu0 %v6496_v17  ;;  %8677 = vst [vmem:[#allocation129_spill] sm:$0xff] %v6502_v41  ;;  %8678 = vst [vmem:[#allocation130_spill] sm:$0xff] %v6508_v52  ;;  %v6514_v54 = vld [vmem:[%s8374_s3 + $0x2d0] sm:$0xff]  ;;  %v6520_v17 = vld [vmem:[%s8374_s3 + $0x240] sm:$0xff] }
 0x2fe   :  { %1435 = vmatprep.subr.mxu1 %v6502_v41  ;;  %1354 = vmatprep.subr.mxu0 %v6508_v52  ;;  %8679 = vst [vmem:[#allocation131_spill] sm:$0xff] %v6514_v54  ;;  %8680 = vst [vmem:[#allocation132_spill] sm:$0xff] %v6520_v17  ;;  %v6526_v41 = vld [vmem:[%s8374_s3 + $0x2b8] sm:$0xff]  ;;  %v6532_v52 = vld [vmem:[%s8374_s3 + $0x228] sm:$0xff] }
 0x2ff   :  { %1436 = vmatpush2.msra.mxu1 %v6514_v54  ;;  %1355 = vmatpush2.msra.mxu0 %v6520_v17  ;;  %8681 = vst [vmem:[#allocation133_spill] sm:$0xff] %v6526_v41  ;;  %8682 = vst [vmem:[#allocation134_spill] sm:$0xff] %v6532_v52  ;;  %v6538_v54 = vld [vmem:[%s8374_s3 + $0x2b0] sm:$0xff]  ;;  %v6544_v17 = vld [vmem:[%s8374_s3 + $0x220] sm:$0xff] }
 0x300   :  { %1437 = vmatprep.subr.mxu1 %v6526_v41  ;;  %1356 = vmatprep.subr.mxu0 %v6532_v52  ;;  %8683 = vst [vmem:[#allocation135_spill] sm:$0xff] %v6538_v54  ;;  %8684 = vst [vmem:[#allocation136_spill] sm:$0xff] %v6544_v17  ;;  %v6550_v41 = vld [vmem:[%s8374_s3 + $0x298] sm:$0xff]  ;;  %v6556_v52 = vld [vmem:[%s8374_s3 + $0x208] sm:$0xff] }
 0x301   :  { %1438 = vmatpush2.msra.mxu1 %v6538_v54  ;;  %1357 = vmatpush2.msra.mxu0 %v6544_v17  ;;  %8685 = vst [vmem:[#allocation137_spill] sm:$0xff] %v6550_v41  ;;  %8686 = vst [vmem:[#allocation138_spill] sm:$0xff] %v6556_v52  ;;  %v6562_v54 = vld [vmem:[%s8374_s3 + $0x290] sm:$0xff]  ;;  %v6568_v17 = vld [vmem:[%s8374_s3 + $0x200] sm:$0xff] }
 0x302   :  { %1439 = vmatprep.subr.mxu1 %v6550_v41  ;;  %1358 = vmatprep.subr.mxu0 %v6556_v52  ;;  %8687 = vst [vmem:[#allocation139_spill] sm:$0xff] %v6562_v54  ;;  %8688 = vst [vmem:[#allocation140_spill] sm:$0xff] %v6568_v17  ;;  %v6574_v41 = vld [vmem:[%s8374_s3 + $0x278] sm:$0xff]  ;;  %v6580_v52 = vld [vmem:[%s8374_s3 + $0x270] sm:$0xff] }
 0x303   :  { %1440 = vmatpush2.msra.mxu1 %v6562_v54  ;;  %1359 = vmatpush2.msra.mxu0 %v6568_v17  ;;  %8689 = vst [vmem:[#allocation141_spill] sm:$0xff] %v6574_v41  ;;  %8690 = vst [vmem:[#allocation142_spill] sm:$0xff] %v6580_v52  ;;  %v6586_v54 = vld [vmem:[%s8374_s3 + $0x258] sm:$0xff]  ;;  %v6592_v17 = vld [vmem:[%s8374_s3 + $0x250] sm:$0xff] }
 0x304   :  { %1441 = vmatprep.subr.mxu1 %v6574_v41  ;;  %8691 = vst [vmem:[#allocation143_spill] sm:$0xff] %v6586_v54  ;;  %8692 = vst [vmem:[#allocation144_spill] sm:$0xff] %v6592_v17  ;;  %v6598_v41 = vld [vmem:[%s8374_s3 + $0x238] sm:$0xff] }
 0x305   :  { %1442 = vmatpush2.msra.mxu1 %v6580_v52  ;;  %8693 = vst [vmem:[#allocation145_spill] sm:$0xff] %v6598_v41  ;;  %v6604_v52 = vld [vmem:[%s8374_s3 + $0x230] sm:$0xff] }
 0x306   :  { %1443 = vmatprep.subr.mxu1 %v6586_v54  ;;  %8694 = vst [vmem:[#allocation146_spill] sm:$0xff] %v6604_v52  ;;  %v6610_v54 = vld [vmem:[%s8374_s3 + $0x218] sm:$0xff] }
 0x307   :  { %1444 = vmatpush2.msra.mxu1 %v6592_v17  ;;  %8695 = vst [vmem:[#allocation147_spill] sm:$0xff] %v6610_v54  ;;  %v6616_v17 = vld [vmem:[%s8374_s3 + $0x210] sm:$0xff] }
 0x308   :  { %1445 = vmatprep.subr.mxu1 %v6598_v41  ;;  %8696 = vst [vmem:[#allocation148_spill] sm:$0xff] %v6616_v17 }
 0x309   :  { %1446 = vmatpush2.msra.mxu1 %v6604_v52 }
 0x30a   :  { %1447 = vmatprep.subr.mxu1 %v6610_v54 }
 0x30b   :  { %1448 = vmatpush2.msra.mxu1 %v6616_v17 }
 0x37c   :  { %v1196_v41 = vpop.f32.mrf.mxu0 }
 0x37e   :  { %v1198_v0 = vpop.f32.mrf.mxu0 }
 0x380   :  { %v1202_v11 = vpop.f32.mrf.mxu0 }
 0x384   :  { %v1119_v30 = vpop.f32.mrf.mxu1 }
 0x385   :  { %v6619_v27 = vadd.f32 %v1196_v41, %v1119_v30 }
 0x386   :  { %v1121_v52 = vpop.f32.mrf.mxu1 }
 0x387   :  { %8697 = vst [vmem:[#allocation149_spill] sm:$0xff] %v6619_v27  ;;  %v6621_v34 = vadd.f32 %v1198_v0, %v1121_v52  ;;  %v6629_v52 = vpop.f32.mrf.mxu0 }
 0x388   :  { %v1125_v23 = vpop.f32.mrf.mxu1  ;;  %8701 = vst [vmem:[#allocation153_spill] sm:$0xff] %v6629_v52 }
 0x389   :  { %8698 = vst [vmem:[#allocation150_spill] sm:$0xff] %v6621_v34  ;;  %v6623_v16 = vadd.f32 %v1202_v11, %v1125_v23 }
 0x38a   :  { %v6625_v54 = vpop.f32.mrf.mxu1 }
 0x38b   :  { %8699 = vst [vmem:[#allocation151_spill] sm:$0xff] %v6623_v16  ;;  %8700 = vst [vmem:[#allocation152_spill] sm:$0xff] %v6625_v54 }
 0x38c   :  { %v1273_v24 = vpop.f32.mrf.mxu1 }
 0x38e   :  { %v1275_v7 = vpop.f32.mrf.mxu1 }
 0x38f   :  { %1360 = vmatprep.mubr.f32.mxu0 %v1275_v7  ;;  %1449 = vmatprep.mubr.f32.mxu1 %v1275_v7 }
 0x390   :  { %v1279_v14 = vpop.f32.mrf.mxu1  ;;  %1361 = vmatmul.mubr.f32.vlgmr.msra.gmra.mxu0 %v1273_v24  ;;  %1450 = vmatmul.mubr.f32.vlgmr.msra.gmra.mxu1 %v1273_v24 }
 0x392   :  { %v1281_v17 = vpop.f32.mrf.mxu1 }
 0x393   :  { %1366 = vmatprep.mubr.f32.mxu0 %v1281_v17  ;;  %1455 = vmatprep.mubr.f32.mxu1 %v1281_v17 }
 0x394   :  { %v1285_v30 = vpop.f32.mrf.mxu1  ;;  %1367 = vmatmul.mubr.f32.gmra.mxu0 %v1279_v14  ;;  %1456 = vmatmul.mubr.f32.gmra.mxu1 %v1279_v14 }
 0x396   :  { %v1287_v41 = vpop.f32.mrf.mxu1 }
 0x397   :  { %1372 = vmatprep.mubr.f32.mxu0 %v1287_v41  ;;  %1461 = vmatprep.mubr.f32.mxu1 %v1287_v41 }
 0x398   :  { %v1291_v11 = vpop.f32.mrf.mxu1  ;;  %1373 = vmatmul.mubr.f32.gmra.mxu0 %v1285_v30  ;;  %1462 = vmatmul.mubr.f32.gmra.mxu1 %v1285_v30 }
 0x39a   :  { %v1293_v23 = vpop.f32.mrf.mxu1 }
 0x39b   :  { %1378 = vmatprep.mubr.f32.mxu0 %v1293_v23  ;;  %1467 = vmatprep.mubr.f32.mxu1 %v1293_v23 }
 0x39c   :  { %1379 = vmatmul.mubr.f32.gmra.mxu0 %v1291_v11  ;;  %1468 = vmatmul.mubr.f32.gmra.mxu1 %v1291_v11 }
 0x39d   :  { %1558 = vmatprep.mubr.f32.mxu0 %v8580_v37  ;;  %1647 = vmatprep.mubr.f32.mxu1 %v8580_v37 }
 0x450   :  { %v1362_v17 = vpop.f32.mrf.mxu0  ;;  %v1451_v0 = vpop.f32.mrf.mxu1 }
 0x452   :  { %v1364_v14 = vpop.f32.mrf.mxu0  ;;  %v1453_v7 = vpop.f32.mrf.mxu1 }
 0x454   :  { %v1368_v24 = vpop.f32.mrf.mxu0  ;;  %v1457_v41 = vpop.f32.mrf.mxu1 }
 0x456   :  { %v1370_v16 = vpop.f32.mrf.mxu0  ;;  %v1459_v54 = vpop.f32.mrf.mxu1 }
 0x458   :  { %v1374_v30 = vpop.f32.mrf.mxu0  ;;  %v1463_v34 = vpop.f32.mrf.mxu1 }
 0x459   :  { %v1482_v2 = vadd.f32 %v1451_v0, %v1374_v30  ;;  %v1474_v6 = vsub.f32 %v1362_v17, %v1463_v34  ;;  %v4419_v17 = vld [vmem:[%s8376_s4 + $0xe0] sm:$0xff]  ;;  %v4420_v0 = vld [vmem:[%s8376_s4 + $0x2d0] sm:$0xff]  ;;  %v4424_v30 = vld [vmem:[%s8376_s4 + $0xc8] sm:$0xff] }
 0x45a   :  { %v1376_v27 = vpop.f32.mrf.mxu0  ;;  %v1465_v23 = vpop.f32.mrf.mxu1 }
 0x45b   :  { %v1483_v13 = vadd.f32 %v1453_v7, %v1376_v27  ;;  %v1475_v9 = vsub.f32 %v1364_v14, %v1465_v23  ;;  %v1486_v62 = vsub.f32 0.0, %v1482_v2  ;;  %v4421_v14 = vld [vmem:[%s8376_s4 + $0xd8] sm:$0xff]  ;;  %v4425_v23 = vld [vmem:[%s8376_s4 + $0x2c0] sm:$0xff] }
 0x45c   :  { %v1380_v56 = vpop.f32.mrf.mxu0  ;;  %v1469_v11 = vpop.f32.mrf.mxu1 }
 0x45d   :  { %v1484_v5 = vadd.f32 %v1457_v41, %v1380_v56  ;;  %v1476_v32 = vsub.f32 %v1368_v24, %v1469_v11  ;;  %v1487_v1 = vsub.f32 0.0, %v1483_v13  ;;  %v4408_v56 = vld [vmem:[%s8377_s1 + $0x10] sm:$0xff]  ;;  %v386_v13 = vmul.f32 0.119193, %v5370_v10  ;;  %v4413_v10 = vld [vmem:[%s8376_s4 + $0xf8] sm:$0xff]  ;;  %v4422_v24 = vld [vmem:[%s8376_s4 + $0x2c8] sm:$0xff] }
 0x45e   :  { %v1382_v60 = vpop.f32.mrf.mxu0  ;;  %v1471_v52 = vpop.f32.mrf.mxu1  ;;  %v4423_v41 = vld [vmem:[%s8376_s4 + $0xd0] sm:$0xff]  ;;  %v4426_v11 = vld [vmem:[%s8376_s4 + $0xc0] sm:$0xff] }
 0x45f   :  { %v1485_v4 = vadd.f32 %v1459_v54, %v1382_v60  ;;  %v1477_v38 = vsub.f32 %v1370_v16, %v1471_v52  ;;  %v1488_v47 = vsub.f32 0.0, %v1484_v5  ;;  %v1480_v27 = vmul.f32 %v4408_v56, %v1476_v32  ;;  %v4409_v60 = vld [vmem:[%s8377_s1 + $0x8] sm:$0xff]  ;;  %v4418_v52 = vld [vmem:[%s8376_s4 + $0x2d8] sm:$0xff] }
 0x460   :  { %v1479_v54 = vmul.f32 %v4409_v60, %v1475_v9  ;;  %v1491_v16 = vmul.f32 %v4409_v60, %v1487_v1  ;;  %v4411_v1 = vld [vmem:[%s8376_s4 + $0x2f8] sm:$0xff]  ;;  %v4429_v60 = vld [vmem:[%s8376_s4 + $0x2b0] sm:$0xff] }
 0x461   :  { %v1489_v49 = vsub.f32 0.0, %v1485_v4  ;;  %v1481_v51 = vmul.f32 %v4407_v26, %v1477_v38  ;;  %v382_v4 = vmul.f32 0.019334, %v5364_v8  ;;  %v4410_v38 = vld [vmem:[%s8377_s1] sm:$0xff]  ;;  %v1492_v5 = vmul.f32 %v4408_v56, %v1488_v47  ;;  %v4412_v8 = vld [vmem:[%s8376_s4 + $0x2f0] sm:$0xff]  ;;  %v4427_v56 = vld [vmem:[%s8376_s4 + $0x2b8] sm:$0xff] }
 0x462   :  { %v1478_v2 = vmul.f32 %v4410_v38, %v1474_v6  ;;  %v1490_v32 = vmul.f32 %v4410_v38, %v1486_v62  ;;  %v4415_v62 = vld [vmem:[%s8376_s4 + $0xf0] sm:$0xff]  ;;  %v4416_v47 = vld [vmem:[%s8376_s4 + $0x2e0] sm:$0xff]  ;;  %v4417_v6 = vld [vmem:[%s8376_s4 + $0xe8] sm:$0xff] }
 0x463   :  { %v1493_v34 = vmul.f32 %v4407_v26, %v1489_v49  ;;  %1522 = vmatprep.subr.mxu0 %v1481_v51  ;;  %v390_v26 = vadd.f32 %v386_v13, %v382_v4  ;;  %v394_v49 = vmul.f32 0.950227, %v5391_v18  ;;  %v4414_v51 = vld [vmem:[%s8376_s4 + $0x2e8] sm:$0xff]  ;;  %v4433_v13 = vld [vmem:[%s8376_s4 + $0x2a0] sm:$0xff] }
 0x464   :  { %1523 = vmatpush1.msra.mxu0 %v1480_v27  ;;  %v4428_v27 = vld [vmem:[%s8376_s4 + $0xb8] sm:$0xff]  ;;  %v4432_v4 = vld [vmem:[%s8376_s4 + $0xa8] sm:$0xff]  ;;  %v4434_v38 = vld [vmem:[%s8376_s4 + $0xa0] sm:$0xff] }
 0x465   :  { %1524 = vmatprep.subr.mxu0 %v1479_v54  ;;  %1611 = vmatprep.subr.mxu1 %v1493_v34  ;;  %v398_v18 = vadd.f32 %v394_v49, %v390_v26  ;;  %v4430_v54 = vld [vmem:[%s8376_s4 + $0xb0] sm:$0xff]  ;;  %v4431_v34 = vld [vmem:[%s8376_s4 + $0x2a8] sm:$0xff] }
 0x466   :  { %1525 = vmatpush1.msra.mxu0 %v1478_v2  ;;  %1612 = vmatpush1.msra.mxu1 %v1492_v5  ;;  %v4435_v2 = vld [vmem:[%s8376_s4 + $0x298] sm:$0xff]  ;;  %v4439_v26 = vld [vmem:[%s8376_s4 + $0x288] sm:$0xff] }
 0x467   :  { %3940 = vmatmul.mubr.msk.f32.vlgmr.msra.gmra.mxu0 %vm567_vm4, %v5913_v20  ;;  %1613 = vmatprep.subr.mxu1 %v1491_v16  ;;  %v6681_v9 = vmul.f32 0.91848105, %v398_v18  ;;  %v4436_v5 = vld [vmem:[%s8376_s4 + $0x98] sm:$0xff]  ;;  %v4437_v16 = vld [vmem:[%s8376_s4 + $0x290] sm:$0xff]  ;;  %v4440_v49 = vld [vmem:[%s8376_s4 + $0x88] sm:$0xff] }
 0x468   :  { %1614 = vmatpush1.msra.mxu1 %v1490_v32  ;;  %1564 = vmatprep.mubr.f32.mxu0 %v8580_v37  ;;  %v4438_v32 = vld [vmem:[%s8376_s4 + $0x90] sm:$0xff]  ;;  %v4444_v18 = vld [vmem:[%s8376_s4 + $0x78] sm:$0xff] }
 0x469   :  { %3944 = vmatmul.mubr.msk.f32.vlgmr.msra.gmra.mxu1 %vm567_vm4, %v5913_v20  ;;  %1757 = vmatprep.subr.mxu1 %v4411_v1  ;;  %v502_v7 = vmax.f32 %v6681_v9, 1e-12  ;;  %v4441_v1 = vld [vmem:[%s8376_s4 + $0x280] sm:$0xff]  ;;  %vm506_vm9 = vcmp.gt.f32.partialorder %v6681_v9, 0.008856452 }
 0x46a   :  { %1653 = vmatprep.mubr.f32.mxu1 %v8580_v37  ;;  %1758 = vmatpush1.msra.mxu1 %v4412_v8  ;;  %v4442_v8 = vld [vmem:[%s8376_s4 + $0x80] sm:$0xff] }
 0x46b   :  { %3941 = vmatmul.mubr.msk.f32.gmra.mxu0 %vm567_vm4, %v5957_v15  ;;  %1680 = vmatprep.subr.mxu0 %v4413_v10  ;;  %4189 = vlog2.f32 %v502_v7  ;;  %v4443_v10 = vld [vmem:[%s8376_s4 + $0x278] sm:$0xff]  ;;  %v4453_v7 = vld [vmem:[%s8376_s4 + $0x250] sm:$0xff] }
 0x46c   :  { %1570 = vmatprep.mubr.f32.mxu0 %v8580_v37  ;;  %1759 = vmatprep.subr.mxu1 %v4414_v51  ;;  %v4445_v51 = vld [vmem:[%s8376_s4 + $0x270] sm:$0xff] }
 0x46d   :  { %3945 = vmatmul.mubr.msk.f32.gmra.mxu1 %vm567_vm4, %v5957_v15  ;;  %1681 = vmatpush1.msra.mxu0 %v4415_v62  ;;  %v4446_v62 = vld [vmem:[%s8376_s4 + $0x70] sm:$0xff] }
 0x46e   :  { %1659 = vmatprep.mubr.f32.mxu1 %v8580_v37  ;;  %1760 = vmatpush1.msra.mxu1 %v4416_v47  ;;  %v4447_v47 = vld [vmem:[%s8376_s4 + $0x268] sm:$0xff] }
 0x46f   :  { %3942 = vmatmul.mubr.msk.f32.gmra.mxu0 %vm567_vm4, %v6001_v12  ;;  %1682 = vmatprep.subr.mxu0 %v4417_v6  ;;  %v4448_v6 = vld [vmem:[%s8376_s4 + $0x68] sm:$0xff] }
 0x470   :  { %1576 = vmatprep.mubr.f32.mxu0 %v8580_v37  ;;  %1761 = vmatprep.subr.mxu1 %v4418_v52  ;;  %v4449_v52 = vld [vmem:[%s8376_s4 + $0x260] sm:$0xff] }
 0x471   :  { %3946 = vmatmul.mubr.msk.f32.gmra.mxu1 %vm567_vm4, %v6001_v12  ;;  %1683 = vmatpush1.msra.mxu0 %v4419_v17  ;;  %v4450_v17 = vld [vmem:[%s8376_s4 + $0x60] sm:$0xff] }
 0x472   :  { %1665 = vmatprep.mubr.f32.mxu1 %v8580_v37  ;;  %1762 = vmatpush1.msra.mxu1 %v4420_v0  ;;  %v4451_v0 = vld [vmem:[%s8376_s4 + $0x258] sm:$0xff] }
 0x473   :  { %3943 = vmatmul.mubr.msk.f32.gmra.mxu0 %vm567_vm4, %v6045_v3  ;;  %1684 = vmatprep.subr.mxu0 %v4421_v14  ;;  %v4452_v14 = vld [vmem:[%s8376_s4 + $0x58] sm:$0xff] }
 0x474   :  { %1763 = vmatprep.subr.mxu1 %v4422_v24  ;;  %1685 = vmatpush1.msra.mxu0 %v4423_v41  ;;  %v4454_v24 = vld [vmem:[%s8376_s4 + $0x50] sm:$0xff] }
 0x475   :  { %3947 = vmatmul.mubr.msk.f32.gmra.mxu1 %vm567_vm4, %v6045_v3  ;;  %1686 = vmatprep.subr.mxu0 %v4424_v30  ;;  %v4455_v30 = vld [vmem:[%s8376_s4 + $0x248] sm:$0xff] }
 0x476   :  { %1764 = vmatpush1.msra.mxu1 %v4425_v23  ;;  %1687 = vmatpush1.msra.mxu0 %v4426_v11  ;;  %v4456_v23 = vld [vmem:[%s8376_s4 + $0x48] sm:$0xff]  ;;  %v4457_v11 = vld [vmem:[%s8376_s4 + $0x240] sm:$0xff] }
 0x477   :  { %1765 = vmatprep.subr.mxu1 %v4427_v56  ;;  %1688 = vmatprep.subr.mxu0 %v4428_v27  ;;  %v4458_v56 = vld [vmem:[%s8376_s4 + $0x40] sm:$0xff]  ;;  %v4459_v27 = vld [vmem:[%s8376_s4 + $0x238] sm:$0xff] }
 0x478   :  { %1766 = vmatpush1.msra.mxu1 %v4429_v60  ;;  %1689 = vmatpush1.msra.mxu0 %v4430_v54  ;;  %v4190_v41 = vpop.eup %4189  ;;  %v4460_v60 = vld [vmem:[%s8376_s4 + $0x38] sm:$0xff] }
 0x479   :  { %1767 = vmatprep.subr.mxu1 %v4431_v34  ;;  %1690 = vmatprep.subr.mxu0 %v4432_v4  ;;  %v514_v54 = vmul.f32 0.6931472, %v4190_v41  ;;  %v4461_v34 = vld [vmem:[%s8376_s4 + $0x230] sm:$0xff]  ;;  %v4483_v41 = vld [vmem:[%s8376_s4 + $0x3d8] sm:$0xff] }
 0x47a   :  { %1768 = vmatpush1.msra.mxu1 %v4433_v13  ;;  %1691 = vmatpush1.msra.mxu0 %v4434_v38  ;;  %v4462_v4 = vld [vmem:[%s8376_s4 + $0x30] sm:$0xff]  ;;  %v4463_v13 = vld [vmem:[%s8376_s4 + $0x228] sm:$0xff] }
 0x47b   :  { %1769 = vmatprep.subr.mxu1 %v4435_v2  ;;  %1692 = vmatprep.subr.mxu0 %v4436_v5  ;;  %v4464_v38 = vld [vmem:[%s8376_s4 + $0x28] sm:$0xff]  ;;  %v4465_v2 = vld [vmem:[%s8376_s4 + $0x220] sm:$0xff] }
 0x47c   :  { %1770 = vmatpush1.msra.mxu1 %v4437_v16  ;;  %1693 = vmatpush1.msra.mxu0 %v4438_v32  ;;  %v4466_v5 = vld [vmem:[%s8376_s4 + $0x20] sm:$0xff]  ;;  %v4467_v16 = vld [vmem:[%s8376_s4 + $0x218] sm:$0xff] }
 0x47d   :  { %1771 = vmatprep.subr.mxu1 %v4439_v26  ;;  %1694 = vmatprep.subr.mxu0 %v4440_v49  ;;  %v4468_v32 = vld [vmem:[%s8376_s4 + $0x18] sm:$0xff]  ;;  %v518_v26 = vmul.f32 0.33333334, %v514_v54  ;;  %v4469_v49 = vld [vmem:[%s8376_s4 + $0x210] sm:$0xff]  ;;  %v4490_v54 = vld [vmem:[%s8376_s4 + $0x1c0] sm:$0xff] }
 0x47e   :  { %1772 = vmatpush1.msra.mxu1 %v4441_v1  ;;  %1695 = vmatpush1.msra.mxu0 %v4442_v8  ;;  %v4470_v1 = vld [vmem:[%s8376_s4 + $0x10] sm:$0xff]  ;;  %v4471_v8 = vld [vmem:[%s8376_s4 + $0x208] sm:$0xff] }
 0x47f   :  { %1773 = vmatprep.subr.mxu1 %v4443_v10  ;;  %1696 = vmatprep.subr.mxu0 %v4444_v18  ;;  %v4472_v10 = vld [vmem:[%s8376_s4 + $0x8] sm:$0xff]  ;;  %v4473_v18 = vld [vmem:[%s8376_s4 + $0x200] sm:$0xff] }
 0x480   :  { %1774 = vmatpush1.msra.mxu1 %v4445_v51  ;;  %1697 = vmatpush1.msra.mxu0 %v4446_v62  ;;  %v4474_v51 = vld [vmem:[%s8376_s4] sm:$0xff]  ;;  %v4475_v62 = vld [vmem:[%s8376_s4 + $0x3f8] sm:$0xff] }
 0x481   :  { %1775 = vmatprep.subr.mxu1 %v4447_v47  ;;  %1698 = vmatprep.subr.mxu0 %v4448_v6  ;;  %v4476_v47 = vld [vmem:[%s8376_s4 + $0x1f8] sm:$0xff]  ;;  %v525_v6 = vmul.f32 1.442695, %v518_v26 }
 0x482   :  { %1776 = vmatpush1.msra.mxu1 %v4449_v52  ;;  %1699 = vmatpush1.msra.mxu0 %v4450_v17  ;;  %v4477_v52 = vld [vmem:[%s8376_s4 + $0x3f0] sm:$0xff] }
 0x483   :  { %1777 = vmatprep.subr.mxu1 %v4451_v0  ;;  %1700 = vmatprep.subr.mxu0 %v4452_v14  ;;  %v4478_v17 = vld [vmem:[%s8376_s4 + $0x1f0] sm:$0xff]  ;;  %v4479_v0 = vld [vmem:[%s8376_s4 + $0x3e8] sm:$0xff]  ;;  %4191 = vpow2.f32 %v525_v6 }
 0x484   :  { %1778 = vmatpush1.msra.mxu1 %v4453_v7  ;;  %1701 = vmatpush1.msra.mxu0 %v4454_v24  ;;  %v4480_v14 = vld [vmem:[%s8376_s4 + $0x1e8] sm:$0xff]  ;;  %v4481_v7 = vld [vmem:[%s8376_s4 + $0x3e0] sm:$0xff]  ;;  %v8712_v6 = vld [vmem:[#allocation16_spill] sm:$0xff] }
 0x485   :  { %1779 = vmatprep.subr.mxu1 %v4455_v30  ;;  %1702 = vmatprep.subr.mxu0 %v4456_v23  ;;  %v4482_v24 = vld [vmem:[%s8376_s4 + $0x1e0] sm:$0xff]  ;;  %v4484_v30 = vld [vmem:[%s8376_s4 + $0x1d8] sm:$0xff]  ;;  %v4485_v23 = vld [vmem:[%s8376_s4 + $0x3d0] sm:$0xff] }
 0x486   :  { %1780 = vmatpush1.msra.mxu1 %v4457_v11  ;;  %1703 = vmatpush1.msra.mxu0 %v4458_v56  ;;  %v4486_v11 = vld [vmem:[%s8376_s4 + $0x1d0] sm:$0xff]  ;;  %v4487_v56 = vld [vmem:[%s8376_s4 + $0x3c8] sm:$0xff] }
 0x487   :  { %1781 = vmatprep.subr.mxu1 %v4459_v27  ;;  %1704 = vmatprep.subr.mxu0 %v4460_v60  ;;  %v4488_v27 = vld [vmem:[%s8376_s4 + $0x1c8] sm:$0xff]  ;;  %v4489_v60 = vld [vmem:[%s8376_s4 + $0x3c0] sm:$0xff] }
 0x488   :  { %1782 = vmatpush1.msra.mxu1 %v4461_v34  ;;  %1705 = vmatpush1.msra.mxu0 %v4462_v4  ;;  %v4491_v34 = vld [vmem:[%s8376_s4 + $0x3b8] sm:$0xff] }
 0x489   :  { %1783 = vmatprep.subr.mxu1 %v4463_v13  ;;  %1706 = vmatprep.subr.mxu0 %v4464_v38  ;;  %v4492_v4 = vld [vmem:[%s8376_s4 + $0x1b8] sm:$0xff]  ;;  %v530_v13 = vmul.f32 903.2963, %v6681_v9  ;;  %v4493_v38 = vld [vmem:[%s8376_s4 + $0x3b0] sm:$0xff] }
 0x48a   :  { %1784 = vmatpush1.msra.mxu1 %v4465_v2  ;;  %1707 = vmatpush1.msra.mxu0 %v4466_v5  ;;  %v4494_v2 = vld [vmem:[%s8376_s4 + $0x1b0] sm:$0xff]  ;;  %v4495_v5 = vld [vmem:[%s8376_s4 + $0x3a8] sm:$0xff] }
 0x48b   :  { %1785 = vmatprep.subr.mxu1 %v4467_v16  ;;  %1708 = vmatprep.subr.mxu0 %v4468_v32  ;;  %v4496_v16 = vld [vmem:[%s8376_s4 + $0x3a0] sm:$0xff]  ;;  %v4497_v32 = vld [vmem:[%s8376_s4 + $0x398] sm:$0xff]  ;;  %v534_v26 = vadd.f32 16.0, %v530_v13 }
 0x48c   :  { %1786 = vmatpush1.msra.mxu1 %v4469_v49  ;;  %1709 = vmatpush1.msra.mxu0 %v4470_v1  ;;  %v4498_v49 = vld [vmem:[%s8376_s4 + $0x390] sm:$0xff] }
 0x48d   :  { %1787 = vmatprep.subr.mxu1 %v4471_v8  ;;  %1710 = vmatprep.subr.mxu0 %v4472_v10  ;;  %v4502_v1 = vld [vmem:[%s8376_s4 + $0x370] sm:$0xff]  ;;  %v8709_v10 = vld [vmem:[#allocation13_spill] sm:$0xff] }
 0x48e   :  { %1788 = vmatpush1.msra.mxu1 %v4473_v18  ;;  %1711 = vmatpush1.msra.mxu0 %v4474_v51  ;;  %v4506_v8 = vld [vmem:[%s8376_s4 + $0x350] sm:$0xff]  ;;  %v8710_v18 = vld [vmem:[#allocation14_spill] sm:$0xff]  ;;  %v8711_v51 = vld [vmem:[#allocation15_spill] sm:$0xff] }
 0x48f   :  { %1789 = vmatprep.subr.mxu1 %v4475_v62  ;;  %1712 = vmatprep.subr.mxu0 %v4476_v47  ;;  %v383_v62 = vmul.f32 0.119193, %v8711_v51 }
 0x490   :  { %1790 = vmatpush2.msra.mxu1 %v4477_v52  ;;  %1713 = vmatpush2.msra.mxu0 %v4478_v17  ;;  %v393_v52 = vmul.f32 0.950227, %v8712_v6 }
 0x491   :  { %1791 = vmatprep.subr.mxu1 %v4479_v0  ;;  %1714 = vmatprep.subr.mxu0 %v4480_v14  ;;  %v8713_v0 = vld [vmem:[#allocation17_spill] sm:$0xff] }
 0x492   :  { %1792 = vmatpush2.msra.mxu1 %v4481_v7  ;;  %1715 = vmatpush2.msra.mxu0 %v4482_v24  ;;  %v392_v14 = vmul.f32 0.950227, %v8713_v0  ;;  %v8714_v24 = vld [vmem:[#allocation18_spill] sm:$0xff] }
 0x493   :  { %1793 = vmatprep.subr.mxu1 %v4483_v41  ;;  %1716 = vmatprep.subr.mxu0 %v4484_v30  ;;  %v391_v41 = vmul.f32 0.950227, %v8714_v24 }
 0x494   :  { %1794 = vmatpush2.msra.mxu1 %v4485_v23  ;;  %1717 = vmatpush2.msra.mxu0 %v4486_v11 }
 0x495   :  { %1795 = vmatprep.subr.mxu1 %v4487_v56  ;;  %1718 = vmatprep.subr.mxu0 %v4488_v27 }
 0x496   :  { %1796 = vmatpush2.msra.mxu1 %v4489_v60  ;;  %1719 = vmatpush2.msra.mxu0 %v4490_v54 }
 0x497   :  { %1797 = vmatprep.subr.mxu1 %v4491_v34  ;;  %1720 = vmatprep.subr.mxu0 %v4492_v4 }
 0x498   :  { %1798 = vmatpush2.msra.mxu1 %v4493_v38  ;;  %1721 = vmatpush2.msra.mxu0 %v4494_v2 }
 0x499   :  { %1799 = vmatprep.subr.mxu1 %v4495_v5  ;;  %1722 = vmatprep.subr.mxu0 %v5547_v19  ;;  %v4499_v19 = vld [vmem:[%s8376_s4 + $0x388] sm:$0xff] }
 0x49a   :  { %1800 = vmatpush2.msra.mxu1 %v4496_v16  ;;  %1723 = vmatpush2.msra.mxu0 %v5555_v21  ;;  %v4500_v21 = vld [vmem:[%s8376_s4 + $0x380] sm:$0xff] }
 0x49b   :  { %1801 = vmatprep.subr.mxu1 %v4497_v32  ;;  %1724 = vmatprep.subr.mxu0 %v5565_v22  ;;  %v4501_v22 = vld [vmem:[%s8376_s4 + $0x378] sm:$0xff] }
 0x49c   :  { %1802 = vmatpush2.msra.mxu1 %v4498_v49  ;;  %1725 = vmatpush2.msra.mxu0 %v5573_v25  ;;  %v538_v25 = vmul.f32 0.00862069, %v534_v26 }
 0x49d   :  { %1803 = vmatprep.subr.mxu1 %v4499_v19  ;;  %1726 = vmatprep.subr.mxu0 %v5583_v29  ;;  %v4192_v29 = vpop.eup %4191 }
 0x49e   :  { %1804 = vmatpush2.msra.mxu1 %v4500_v21  ;;  %1727 = vmatpush2.msra.mxu0 %v5591_v31  ;;  %v4503_v31 = vld [vmem:[%s8376_s4 + $0x368] sm:$0xff]  ;;  %v542_v9 = vsel %vm506_vm9, %v4192_v29, %v538_v25  ;;  %vm2618_vm9 = vcmask 39936  }
 0x49f   :  { %1805 = vmatprep.subr.mxu1 %v4501_v22  ;;  %1728 = vmatprep.subr.mxu0 %v5601_v33  ;;  %v4504_v33 = vld [vmem:[%s8376_s4 + $0x360] sm:$0xff] }
 0x4a0   :  { %1806 = vmatpush2.msra.mxu1 %v4502_v1  ;;  %1729 = vmatpush2.msra.mxu0 %v5609_v35  ;;  %v4505_v35 = vld [vmem:[%s8376_s4 + $0x358] sm:$0xff] }
 0x4a1   :  { %1807 = vmatprep.subr.mxu1 %v4503_v31  ;;  %1730 = vmatprep.subr.mxu0 %v5619_v39  ;;  %v4507_v39 = vld [vmem:[%s8376_s4 + $0x348] sm:$0xff] }
 0x4a2   :  { %1808 = vmatpush2.msra.mxu1 %v4504_v33  ;;  %1731 = vmatpush2.msra.mxu0 %v5632_v42  ;;  %v4508_v42 = vld [vmem:[%s8376_s4 + $0x340] sm:$0xff] }
 0x4a3   :  { %1809 = vmatprep.subr.mxu1 %v4505_v35  ;;  %1732 = vmatprep.subr.mxu0 %v5644_v28  ;;  %v562_v28 = vsub.f32 %v4819_v63, %v542_v9 }
 0x4a4   :  { %1810 = vmatpush2.msra.mxu1 %v4506_v8  ;;  %1733 = vmatpush2.msra.mxu0 %v5656_v45  ;;  %v4509_v45 = vld [vmem:[%s8376_s4 + $0x338] sm:$0xff] }
 0x4a5   :  { %1811 = vmatprep.subr.mxu1 %v4507_v39  ;;  %1734 = vmatprep.subr.mxu0 %v5668_v48  ;;  %v4510_v48 = vld [vmem:[%s8376_s4 + $0x330] sm:$0xff]  ;;  %v6994_v63 = vmul.f32 200.0, %v562_v28 }
 0x4a6   :  { %1812 = vmatpush2.msra.mxu1 %v4508_v42  ;;  %1735 = vmatpush2.msra.mxu0 %v5680_v50  ;;  %v8702_v50 = vld [vmem:[#allocation8_spill] sm:$0xff] }
 0x4a7   :  { %1813 = vmatprep.subr.mxu1 %v4509_v45  ;;  %1736 = vmatprep.subr.mxu0 %v5692_v53  ;;  %v8704_v53 = vld [vmem:[#allocation9_spill] sm:$0xff] }
 0x4a8   :  { %1814 = vmatpush2.msra.mxu1 %v4510_v48  ;;  %1737 = vmatpush2.msra.mxu0 %v5699_v55  ;;  %v8706_v55 = vld [vmem:[#allocation10_spill] sm:$0xff] }
 0x4a9   :  { %1815 = vmatprep.subr.mxu1 %v5624_v40  ;;  %1738 = vmatprep.subr.mxu0 %v5711_v57  ;;  %v8703_v40 = vld [vmem:[#allocation5_spill] sm:$0xff]  ;;  %v8707_v57 = vld [vmem:[#allocation11_spill] sm:$0xff] }
 0x4aa   :  { %1816 = vmatpush2.msra.mxu1 %v5637_v43  ;;  %1739 = vmatpush2.msra.mxu0 %v5717_v58  ;;  %v8705_v43 = vld [vmem:[#allocation6_spill] sm:$0xff]  ;;  %v385_v58 = vmul.f32 0.119193, %v8707_v57 }
 0x4ab   :  { %1817 = vmatprep.subr.mxu1 %v5649_v44  ;;  %1740 = vmatprep.subr.mxu0 %v5723_v59  ;;  %v381_v44 = vmul.f32 0.019334, %v8706_v55  ;;  %v8708_v59 = vld [vmem:[#allocation12_spill] sm:$0xff] }
 0x4ac   :  { %1818 = vmatpush2.msra.mxu1 %v5661_v46  ;;  %1741 = vmatpush2.msra.mxu0 %v5731_v61  ;;  %v380_v46 = vmul.f32 0.019334, %v8708_v59  ;;  %v384_v61 = vmul.f32 0.119193, %v8709_v10 }
 0x4ad   :  { %1819 = vmatprep.subr.mxu1 %v5673_v36  ;;  %1742 = vmatprep.subr.mxu0 %v8702_v50  ;;  %v379_v36 = vmul.f32 0.019334, %v8710_v18  ;;  %v389_v47 = vadd.f32 %v385_v58, %v381_v44  ;;  %v8715_v18 = vld [vmem:[#allocation2_spill] sm:$0xff] }
 0x4ae   :  { %1820 = vmatpush2.msra.mxu1 %v8703_v40  ;;  %1743 = vmatpush2.msra.mxu0 %v8704_v53  ;;  %v388_v17 = vadd.f32 %v384_v61, %v380_v46 }
 0x4af   :  { %1862 = vmatprep.subr.mxu0 %v6994_v63  ;;  %1923 = vmatprep.subr.mxu1 %v8705_v43  ;;  %v387_v7 = vadd.f32 %v383_v62, %v379_v36  ;;  %v397_v30 = vadd.f32 %v393_v52, %v389_v47  ;;  %v8716_v47 = vld [vmem:[#allocation3_spill] sm:$0xff] }
 0x4b0   :  { %v396_v23 = vadd.f32 %v392_v14, %v388_v17  ;;  %v8717_v17 = vld [vmem:[#allocation4_spill] sm:$0xff] }
 0x4b1   :  { %v395_v11 = vadd.f32 %v391_v41, %v387_v7  ;;  %v407_v56 = vmul.f32 0.91848105, %v397_v30 }
 0x4b2   :  { %v406_v27 = vmul.f32 0.91848105, %v396_v23 }
 0x4b3   :  { %v405_v60 = vmul.f32 0.91848105, %v395_v11  ;;  %v501_v54 = vmax.f32 %v407_v56, 1e-12  ;;  %v529_v1 = vmul.f32 903.2963, %v407_v56 }
 0x4b4   :  { %v500_v34 = vmax.f32 %v406_v27, 1e-12  ;;  %v528_v29 = vmul.f32 903.2963, %v406_v27  ;;  %vm505_vm10 = vcmp.gt.f32.partialorder %v407_v56, 0.008856452 }
 0x4b5   :  { %v499_v4 = vmax.f32 %v405_v60, 1e-12  ;;  %4193 = vlog2.f32 %v501_v54  ;;  %v527_v31 = vmul.f32 903.2963, %v405_v60  ;;  %v533_v33 = vadd.f32 16.0, %v529_v1  ;;  %v8728_v1 = vld [vmem:[#allocation40_spill] sm:$0xff] }
 0x4b6   :  { %4195 = vlog2.f32 %v500_v34  ;;  %v532_v35 = vadd.f32 16.0, %v528_v29  ;;  %vm504_vm11 = vcmp.gt.f32.partialorder %v406_v27, 0.008856452  ;;  %vm503_vm12 = vcmp.gt.f32.partialorder %v405_v60, 0.008856452  ;;  %v8718_v34 = vld [vmem:[#allocation19_spill] sm:$0xff] }
 0x4b7   :  { %4197 = vlog2.f32 %v499_v4  ;;  %v531_v8 = vadd.f32 16.0, %v527_v31  ;;  %v537_v39 = vmul.f32 0.00862069, %v533_v33  ;;  %v8729_v29 = vld [vmem:[#allocation29_spill] sm:$0xff]  ;;  %v8730_v31 = vld [vmem:[#allocation42_spill] sm:$0xff]  ;;  %v8732_v33 = vld [vmem:[#allocation44_spill] sm:$0xff] }
 0x4b8   :  { %v536_v48 = vmul.f32 0.00862069, %v532_v35  ;;  %v8733_v35 = vld [vmem:[#allocation30_spill] sm:$0xff] }
 0x4b9   :  { %v535_v43 = vmul.f32 0.00862069, %v531_v8  ;;  %v8735_v8 = vld [vmem:[#allocation31_spill] sm:$0xff] }
 0x4c2   :  { %v4194_v13 = vpop.eup %4193 }
 0x4c3   :  { %v4196_v38 = vpop.eup %4195  ;;  %v512_v5 = vmul.f32 0.6931472, %v4194_v13 }
 0x4c4   :  { %v4198_v2 = vpop.eup %4197  ;;  %v510_v16 = vmul.f32 0.6931472, %v4196_v38  ;;  %v8719_v38 = vld [vmem:[#allocation20_spill] sm:$0xff] }
 0x4c5   :  { %v508_v32 = vmul.f32 0.6931472, %v4198_v2  ;;  %v517_v26 = vmul.f32 0.33333334, %v512_v5 }
 0x4c6   :  { %v516_v49 = vmul.f32 0.33333334, %v510_v16  ;;  %v8720_v16 = vld [vmem:[#allocation32_spill] sm:$0xff] }
 0x4c7   :  { %v515_v19 = vmul.f32 0.33333334, %v508_v32  ;;  %v523_v21 = vmul.f32 1.442695, %v517_v26  ;;  %v8721_v32 = vld [vmem:[#allocation21_spill] sm:$0xff]  ;;  %v8722_v26 = vld [vmem:[#allocation22_spill] sm:$0xff] }
 0x4c8   :  { %v521_v22 = vmul.f32 1.442695, %v516_v49  ;;  %v8723_v49 = vld [vmem:[#allocation24_spill] sm:$0xff] }
 0x4c9   :  { %v519_v25 = vmul.f32 1.442695, %v515_v19  ;;  %4199 = vpow2.f32 %v523_v21  ;;  %v8724_v19 = vld [vmem:[#allocation26_spill] sm:$0xff]  ;;  %v8725_v21 = vld [vmem:[#allocation37_spill] sm:$0xff] }
 0x4ca   :  { %4201 = vpow2.f32 %v521_v22  ;;  %v8726_v22 = vld [vmem:[#allocation38_spill] sm:$0xff] }
 0x4cb   :  { %4203 = vpow2.f32 %v519_v25  ;;  %v8727_v25 = vld [vmem:[#allocation28_spill] sm:$0xff] }
 0x4d6   :  { %v4200_v45 = vpop.eup %4199 }
 0x4d7   :  { %v4202_v50 = vpop.eup %4201  ;;  %v541_v44 = vsel %vm505_vm10, %v4200_v45, %v537_v39  ;;  %v8736_v39 = vld [vmem:[#allocation48_spill] sm:$0xff]  ;;  %vm2620_vm10 = vcmask 48128  }
 0x4d8   :  { %v4204_v55 = vpop.eup %4203  ;;  %v540_v59 = vsel %vm504_vm11, %v4202_v50, %v536_v48  ;;  %v561_v36 = vsub.f32 %v8715_v18, %v541_v44  ;;  %v8740_v45 = vld [vmem:[#allocation52_spill] sm:$0xff]  ;;  %v8741_v48 = vld [vmem:[#allocation34_spill] sm:$0xff]  ;;  %v8748_v44 = vld [vmem:[#allocation59_spill] sm:$0xff]  ;;  %vm2622_vm11 = vcmask 56320  }
 0x4d9   :  { %v539_v61 = vsel %vm503_vm12, %v4204_v55, %v535_v43  ;;  %v560_v6 = vsub.f32 %v8716_v47, %v540_v59  ;;  %v8742_v50 = vld [vmem:[#allocation54_spill] sm:$0xff]  ;;  %v8746_v43 = vld [vmem:[#allocation57_spill] sm:$0xff]  ;;  %v8747_v55 = vld [vmem:[#allocation39_spill] sm:$0xff]  ;;  %vm2624_vm12 = vcmask 64512  }
 0x4da   :  { %v559_v0 = vsub.f32 %v8717_v17, %v539_v61  ;;  %v7018_v41 = vmul.f32 200.0, %v561_v36  ;;  %v8751_v59 = vld [vmem:[#allocation45_spill] sm:$0xff]  ;;  %v8755_v61 = vld [vmem:[#allocation51_spill] sm:$0xff]  ;;  %v8763_v17 = vld [vmem:[#allocation60_spill] sm:$0xff] }
 0x4db   :  { %v7020_v27 = vmul.f32 200.0, %v560_v6  ;;  %v8756_v18 = vld [vmem:[#allocation67_spill] sm:$0xff]  ;;  %v8757_v36 = vld [vmem:[#allocation53_spill] sm:$0xff]  ;;  %v8761_v6 = vld [vmem:[#allocation58_spill] sm:$0xff] }
 0x4dc   :  { %v7022_v54 = vmul.f32 200.0, %v559_v0  ;;  %v8760_v47 = vld [vmem:[#allocation71_spill] sm:$0xff] }
 0x4dd   :  { %v8764_v0 = vld [vmem:[#allocation75_spill] sm:$0xff] }
 0x527   :  { %v1560_v9 = vpop.f32.mrf.mxu0 }
 0x529   :  { %v1562_v42 = vpop.f32.mrf.mxu0  ;;  %v1649_v28 = vpop.f32.mrf.mxu1 }
 0x52b   :  { %v1566_v40 = vpop.f32.mrf.mxu0  ;;  %v1651_v53 = vpop.f32.mrf.mxu1 }
 0x52d   :  { %v1568_v57 = vpop.f32.mrf.mxu0  ;;  %v1655_v58 = vpop.f32.mrf.mxu1 }
 0x52f   :  { %v1572_v46 = vpop.f32.mrf.mxu0  ;;  %v1657_v10 = vpop.f32.mrf.mxu1 }
 0x530   :  { %v1676_v14 = vadd.f32 %v1649_v28, %v1572_v46  ;;  %v8739_v28 = vld [vmem:[#allocation33_spill] sm:$0xff]  ;;  %v8753_v46 = vld [vmem:[#allocation47_spill] sm:$0xff] }
 0x531   :  { %v1574_v51 = vpop.f32.mrf.mxu0  ;;  %v1661_v62 = vpop.f32.mrf.mxu1 }
 0x532   :  { %v1677_v52 = vadd.f32 %v1651_v53, %v1574_v51  ;;  %v1672_v23 = vsub.f32 %v1560_v9, %v1661_v62  ;;  %v8734_v9 = vld [vmem:[#allocation46_spill] sm:$0xff]  ;;  %v8745_v53 = vld [vmem:[#allocation36_spill] sm:$0xff]  ;;  %v8758_v51 = vld [vmem:[#allocation69_spill] sm:$0xff] }
 0x533   :  { %v1578_v7 = vpop.f32.mrf.mxu0  ;;  %v1663_v24 = vpop.f32.mrf.mxu1  ;;  %v8759_v62 = vld [vmem:[#allocation56_spill] sm:$0xff] }
 0x534   :  { %v1673_v30 = vsub.f32 %v1562_v42, %v1663_v24  ;;  %1821 = vmatprep.mubr.f32.mxu1 %v1677_v52  ;;  %v1678_v4 = vadd.f32 %v1655_v58, %v1578_v7  ;;  %v8738_v42 = vld [vmem:[#allocation50_spill] sm:$0xff]  ;;  %v8750_v58 = vld [vmem:[#allocation61_spill] sm:$0xff]  ;;  %v8767_v24 = vld [vmem:[#allocation64_spill] sm:$0xff] }
 0x535   :  { %v1580_v11 = vpop.f32.mrf.mxu0  ;;  %v1667_v56 = vpop.f32.mrf.mxu1  ;;  %1822 = vmatmul.mubr.f32.vlgmr.msra.gmra.mxu1 %v1676_v14  ;;  %v8762_v52 = vld [vmem:[#allocation73_spill] sm:$0xff]  ;;  %v8765_v14 = vld [vmem:[#allocation62_spill] sm:$0xff] }
 0x536   :  { %v1679_v60 = vadd.f32 %v1657_v10, %v1580_v11  ;;  %1744 = vmatprep.mubr.f32.mxu0 %v1673_v30  ;;  %1924 = vmatpush1.msra.mxu1 %v8718_v34  ;;  %v1674_v5 = vsub.f32 %v1566_v40, %v1667_v56  ;;  %v8744_v40 = vld [vmem:[#allocation55_spill] sm:$0xff]  ;;  %v8754_v10 = vld [vmem:[#allocation65_spill] sm:$0xff]  ;;  %v8771_v56 = vld [vmem:[#allocation68_spill] sm:$0xff] }
 0x537   :  { %v1669_v13 = vpop.f32.mrf.mxu1  ;;  %1745 = vmatmul.mubr.f32.vlgmr.msra.gmra.mxu0 %v1672_v23  ;;  %1925 = vmatprep.subr.mxu1 %v8719_v38  ;;  %v8766_v7 = vld [vmem:[#allocation77_spill] sm:$0xff]  ;;  %v8768_v30 = vld [vmem:[#allocation79_spill] sm:$0xff]  ;;  %v8769_v23 = vld [vmem:[#allocation66_spill] sm:$0xff] }
 0x538   :  { %v1675_v2 = vsub.f32 %v1568_v57, %v1669_v13  ;;  %1827 = vmatprep.mubr.f32.mxu1 %v1679_v60  ;;  %1863 = vmatpush1.msra.mxu0 %v7018_v41  ;;  %v8749_v57 = vld [vmem:[#allocation41_spill] sm:$0xff]  ;;  %v8772_v60 = vld [vmem:[#allocation83_spill] sm:$0xff]  ;;  %v8773_v34 = vld [vmem:[#allocation70_spill] sm:$0xff] }
 0x539   :  { %1828 = vmatmul.mubr.f32.gmra.mxu1 %v1678_v4  ;;  %1864 = vmatprep.subr.mxu0 %v7020_v27  ;;  %v8770_v11 = vld [vmem:[#allocation81_spill] sm:$0xff]  ;;  %v8775_v13 = vld [vmem:[#allocation72_spill] sm:$0xff]  ;;  %v8776_v38 = vld [vmem:[#allocation87_spill] sm:$0xff] }
 0x53a   :  { %1750 = vmatprep.mubr.f32.mxu0 %v1675_v2  ;;  %1865 = vmatpush1.msra.mxu0 %v7022_v54  ;;  %v8774_v4 = vld [vmem:[#allocation85_spill] sm:$0xff]  ;;  %v8777_v2 = vld [vmem:[#allocation74_spill] sm:$0xff] }
 0x53b   :  { %1751 = vmatmul.mubr.f32.gmra.mxu0 %v1674_v5  ;;  %2012 = vmatprep.subr.mxu0 %v8720_v16  ;;  %v8778_v5 = vld [vmem:[#allocation89_spill] sm:$0xff]  ;;  %v8779_v16 = vld [vmem:[#allocation76_spill] sm:$0xff] }
 0x53c   :  { %1898 = vmatprep.mubr.f32.mxu0 %v8580_v37  ;;  %1926 = vmatpush1.msra.mxu1 %v8721_v32  ;;  %v8780_v32 = vld [vmem:[#allocation91_spill] sm:$0xff] }
 0x53d   :  { %1927 = vmatprep.subr.mxu1 %v8722_v26  ;;  %v8781_v26 = vld [vmem:[#allocation78_spill] sm:$0xff] }
 0x53e   :  { %1928 = vmatpush1.msra.mxu1 %v8723_v49  ;;  %v8782_v49 = vld [vmem:[#allocation93_spill] sm:$0xff] }
 0x53f   :  { %3948 = vmatmul.mubr.msk.f32.vlgmr.msra.gmra.mxu0 %vm567_vm4, %v5913_v20  ;;  %1929 = vmatprep.subr.mxu1 %v8724_v19  ;;  %v8731_v20 = vld [vmem:[#allocation43_spill] sm:$0xff]  ;;  %v8783_v19 = vld [vmem:[#allocation80_spill] sm:$0xff] }
 0x540   :  { %1904 = vmatprep.mubr.f32.mxu0 %v8580_v37  ;;  %2013 = vmatpush1.msra.mxu0 %v8725_v21  ;;  %v8784_v21 = vld [vmem:[#allocation95_spill] sm:$0xff] }
 0x541   :  { %2014 = vmatprep.subr.mxu0 %v8726_v22  ;;  %1930 = vmatpush1.msra.mxu1 %v8727_v25  ;;  %v8785_v22 = vld [vmem:[#allocation82_spill] sm:$0xff]  ;;  %v8786_v25 = vld [vmem:[#allocation97_spill] sm:$0xff] }
 0x542   :  { %2015 = vmatpush1.msra.mxu0 %v8728_v1  ;;  %1931 = vmatprep.subr.mxu1 %v8729_v29  ;;  %v8787_v1 = vld [vmem:[#allocation84_spill] sm:$0xff]  ;;  %v8788_v29 = vld [vmem:[#allocation99_spill] sm:$0xff] }
 0x543   :  { %3949 = vmatmul.mubr.msk.f32.gmra.mxu0 %vm567_vm4, %v5957_v15  ;;  %2016 = vmatprep.subr.mxu0 %v8730_v31  ;;  %v8737_v15 = vld [vmem:[#allocation49_spill] sm:$0xff]  ;;  %v8789_v31 = vld [vmem:[#allocation86_spill] sm:$0xff] }
 0x544   :  { %1910 = vmatprep.mubr.f32.mxu0 %v8580_v37  ;;  %2017 = vmatpush1.msra.mxu0 %v8731_v20  ;;  %v8790_v20 = vld [vmem:[#allocation101_spill] sm:$0xff] }
 0x545   :  { %2018 = vmatprep.subr.mxu0 %v8732_v33  ;;  %1932 = vmatpush1.msra.mxu1 %v8733_v35  ;;  %v8791_v33 = vld [vmem:[#allocation88_spill] sm:$0xff]  ;;  %v8792_v35 = vld [vmem:[#allocation103_spill] sm:$0xff] }
 0x546   :  { %2019 = vmatpush1.msra.mxu0 %v8734_v9  ;;  %1933 = vmatprep.subr.mxu1 %v8735_v8  ;;  %v8793_v9 = vld [vmem:[#allocation90_spill] sm:$0xff]  ;;  %v8794_v8 = vld [vmem:[#allocation105_spill] sm:$0xff] }
 0x547   :  { %3950 = vmatmul.mubr.msk.f32.gmra.mxu0 %vm567_vm4, %v6001_v12  ;;  %2020 = vmatprep.subr.mxu0 %v8736_v39  ;;  %v8743_v12 = vld [vmem:[#allocation35_spill] sm:$0xff]  ;;  %v8795_v39 = vld [vmem:[#allocation92_spill] sm:$0xff] }
 0x548   :  { %1916 = vmatprep.mubr.f32.mxu0 %v8580_v37  ;;  %2021 = vmatpush1.msra.mxu0 %v8737_v15  ;;  %v8796_v15 = vld [vmem:[#allocation107_spill] sm:$0xff] }
 0x549   :  { %2022 = vmatprep.subr.mxu0 %v8738_v42  ;;  %1934 = vmatpush1.msra.mxu1 %v8739_v28  ;;  %v8797_v42 = vld [vmem:[#allocation94_spill] sm:$0xff]  ;;  %v8798_v28 = vld [vmem:[#allocation109_spill] sm:$0xff] }
 0x54a   :  { %2023 = vmatpush1.msra.mxu0 %v8740_v45  ;;  %1935 = vmatprep.subr.mxu1 %v8741_v48  ;;  %v8799_v45 = vld [vmem:[#allocation96_spill] sm:$0xff]  ;;  %v8800_v48 = vld [vmem:[#allocation111_spill] sm:$0xff] }
 0x54b   :  { %3951 = vmatmul.mubr.msk.f32.gmra.mxu0 %vm567_vm4, %v6045_v3  ;;  %2024 = vmatprep.subr.mxu0 %v8742_v50  ;;  %v8752_v3 = vld [vmem:[#allocation63_spill] sm:$0xff]  ;;  %v8801_v50 = vld [vmem:[#allocation98_spill] sm:$0xff] }
 0x54c   :  { %1936 = vmatpush1.msra.mxu1 %v8743_v12  ;;  %2025 = vmatpush1.msra.mxu0 %v8744_v40  ;;  %v8802_v12 = vld [vmem:[#allocation113_spill] sm:$0xff]  ;;  %v8803_v40 = vld [vmem:[#allocation100_spill] sm:$0xff] }
 0x54d   :  { %1937 = vmatprep.subr.mxu1 %v8745_v53  ;;  %2026 = vmatprep.subr.mxu0 %v8746_v43  ;;  %v8804_v53 = vld [vmem:[#allocation115_spill] sm:$0xff]  ;;  %v8805_v43 = vld [vmem:[#allocation102_spill] sm:$0xff] }
 0x54e   :  { %1938 = vmatpush1.msra.mxu1 %v8747_v55  ;;  %2027 = vmatpush1.msra.mxu0 %v8748_v44  ;;  %v8806_v55 = vld [vmem:[#allocation117_spill] sm:$0xff]  ;;  %v8807_v44 = vld [vmem:[#allocation104_spill] sm:$0xff] }
 0x54f   :  { %1939 = vmatprep.subr.mxu1 %v8749_v57  ;;  %2028 = vmatprep.subr.mxu0 %v8750_v58  ;;  %v8808_v57 = vld [vmem:[#allocation119_spill] sm:$0xff]  ;;  %v8809_v58 = vld [vmem:[#allocation106_spill] sm:$0xff] }
 0x550   :  { %1940 = vmatpush1.msra.mxu1 %v8751_v59  ;;  %2029 = vmatpush1.msra.mxu0 %v8752_v3  ;;  %v8810_v59 = vld [vmem:[#allocation121_spill] sm:$0xff]  ;;  %v8811_v3 = vld [vmem:[#allocation108_spill] sm:$0xff] }
 0x551   :  { %1941 = vmatprep.subr.mxu1 %v8753_v46  ;;  %2030 = vmatprep.subr.mxu0 %v8754_v10  ;;  %v8812_v46 = vld [vmem:[#allocation123_spill] sm:$0xff]  ;;  %v8813_v10 = vld [vmem:[#allocation110_spill] sm:$0xff] }
 0x552   :  { %1942 = vmatpush1.msra.mxu1 %v8755_v61  ;;  %2031 = vmatpush1.msra.mxu0 %v8756_v18  ;;  %v8814_v61 = vld [vmem:[#allocation125_spill] sm:$0xff]  ;;  %v8815_v18 = vld [vmem:[#allocation112_spill] sm:$0xff] }
 0x553   :  { %1943 = vmatprep.subr.mxu1 %v8757_v36  ;;  %2032 = vmatprep.subr.mxu0 %v8758_v51  ;;  %v8816_v36 = vld [vmem:[#allocation127_spill] sm:$0xff]  ;;  %v8817_v51 = vld [vmem:[#allocation114_spill] sm:$0xff] }
 0x554   :  { %1944 = vmatpush1.msra.mxu1 %v8759_v62  ;;  %2033 = vmatpush1.msra.mxu0 %v8760_v47  ;;  %v8818_v62 = vld [vmem:[#allocation129_spill] sm:$0xff]  ;;  %v8819_v47 = vld [vmem:[#allocation116_spill] sm:$0xff] }
 0x555   :  { %1945 = vmatprep.subr.mxu1 %v8761_v6  ;;  %2034 = vmatprep.subr.mxu0 %v8762_v52  ;;  %v8820_v6 = vld [vmem:[#allocation131_spill] sm:$0xff] }
 0x556   :  { %1946 = vmatpush1.msra.mxu1 %v8763_v17  ;;  %2035 = vmatpush1.msra.mxu0 %v8764_v0  ;;  %v8821_v52 = vld [vmem:[#allocation23_spill] sm:$0xff] }
 0x557   :  { %1947 = vmatprep.subr.mxu1 %v8765_v14  ;;  %2036 = vmatprep.subr.mxu0 %v8766_v7  ;;  %v8822_v17 = vld [vmem:[#allocation27_spill] sm:$0xff]  ;;  %v8823_v14 = vld [vmem:[#allocation118_spill] sm:$0xff]  ;;  %v8824_v7 = vld [vmem:[#allocation133_spill] sm:$0xff] }
 0x558   :  { %1948 = vmatpush1.msra.mxu1 %v8767_v24  ;;  %2037 = vmatpush1.msra.mxu0 %v8768_v30  ;;  %v2509_v0 = vmin.f32 %v8822_v17, %v8821_v52  ;;  %v8825_v24 = vld [vmem:[#allocation120_spill] sm:$0xff]  ;;  %v8826_v30 = vld [vmem:[#allocation135_spill] sm:$0xff] }
 0x559   :  { %1949 = vmatprep.subr.mxu1 %v8769_v23  ;;  %2038 = vmatprep.subr.mxu0 %v8770_v11  ;;  %v8827_v23 = vld [vmem:[#allocation122_spill] sm:$0xff]  ;;  %v8828_v11 = vld [vmem:[#allocation137_spill] sm:$0xff] }
 0x55a   :  { %1950 = vmatpush1.msra.mxu1 %v8771_v56  ;;  %2039 = vmatpush1.msra.mxu0 %v8772_v60  ;;  %v8829_v56 = vld [vmem:[#allocation124_spill] sm:$0xff]  ;;  %v8830_v60 = vld [vmem:[#allocation139_spill] sm:$0xff] }
 0x55b   :  { %1951 = vmatprep.subr.mxu1 %v8773_v34  ;;  %2040 = vmatprep.subr.mxu0 %v8774_v4  ;;  %v2510_v34 = vrot.slane %v2509_v0, 4  ;;  %v8831_v4 = vld [vmem:[#allocation126_spill] sm:$0xff] }
 0x55c   :  { %1952 = vmatpush1.msra.mxu1 %v8775_v13  ;;  %2041 = vmatpush1.msra.mxu0 %v8776_v38  ;;  %v8832_v13 = vld [vmem:[#allocation141_spill] sm:$0xff]  ;;  %v8833_v38 = vld [vmem:[#allocation128_spill] sm:$0xff] }
 0x55d   :  { %1953 = vmatprep.subr.mxu1 %v8777_v2  ;;  %2042 = vmatprep.subr.mxu0 %v8778_v5  ;;  %v8834_v2 = vld [vmem:[#allocation142_spill] sm:$0xff] }
 0x55e   :  { %1954 = vmatpush1.msra.mxu1 %v8779_v16  ;;  %2043 = vmatpush1.msra.mxu0 %v8780_v32  ;;  %v8835_v5 = vld [vmem:[#allocation130_spill] sm:$0xff]  ;;  %v8836_v16 = vld [vmem:[#allocation143_spill] sm:$0xff]  ;;  %v8837_v32 = vld [vmem:[#allocation132_spill] sm:$0xff] }
 0x55f   :  { %1955 = vmatprep.subr.mxu1 %v8781_v26  ;;  %2044 = vmatprep.subr.mxu0 %v8782_v49  ;;  %v8838_v26 = vld [vmem:[#allocation144_spill] sm:$0xff]  ;;  %v2511_v49 = vmin.f32 %v2509_v0, %v2510_v34 }
 0x560   :  { %1956 = vmatpush2.msra.mxu1 %v8783_v19  ;;  %2045 = vmatpush2.msra.mxu0 %v8784_v21  ;;  %v8839_v19 = vld [vmem:[#allocation134_spill] sm:$0xff]  ;;  %v8840_v21 = vld [vmem:[#allocation145_spill] sm:$0xff] }
 0x561   :  { %1957 = vmatprep.subr.mxu1 %v8785_v22  ;;  %2046 = vmatprep.subr.mxu0 %v8786_v25  ;;  %v8841_v22 = vld [vmem:[#allocation136_spill] sm:$0xff]  ;;  %v8842_v25 = vld [vmem:[#allocation146_spill] sm:$0xff] }
 0x562   :  { %1958 = vmatpush2.msra.mxu1 %v8787_v1  ;;  %2047 = vmatpush2.msra.mxu0 %v8788_v29  ;;  %v8843_v1 = vld [vmem:[#allocation138_spill] sm:$0xff]  ;;  %v8844_v29 = vld [vmem:[#allocation147_spill] sm:$0xff] }
 0x563   :  { %1959 = vmatprep.subr.mxu1 %v8789_v31  ;;  %2048 = vmatprep.subr.mxu0 %v8790_v20  ;;  %v8845_v31 = vld [vmem:[#allocation140_spill] sm:$0xff] }
 0x564   :  { %1960 = vmatpush2.msra.mxu1 %v8791_v33  ;;  %2049 = vmatpush2.msra.mxu0 %v8792_v35  ;;  %v8846_v20 = vld [vmem:[#allocation148_spill] sm:$0xff]  ;;  %v2512_v33 = vrot.slane %v2511_v49, 2  ;;  %v8847_v35 = vld [vmem:[#allocation7_spill] sm:$0xff] }
 0x565   :  { %1961 = vmatprep.subr.mxu1 %v8793_v9  ;;  %2050 = vmatprep.subr.mxu0 %v8794_v8  ;;  %v8848_v9 = vld [vmem:[#allocation25_spill] sm:$0xff] }
 0x566   :  { %1962 = vmatpush2.msra.mxu1 %v8795_v39  ;;  %2051 = vmatpush2.msra.mxu0 %v8796_v15  ;;  %v2516_v8 = vmin.f32 %v8848_v9, %v8847_v35  ;;  %v2513_v39 = vmin.f32 %v2511_v49, %v2512_v33  ;;  %v2756_v33 = vmin.f32 %v7020_v27, %v6994_v63 }
 0x567   :  { %1963 = vmatprep.subr.mxu1 %v8797_v42  ;;  %2052 = vmatprep.subr.mxu0 %v8798_v28 }
 0x568   :  { %1964 = vmatpush2.msra.mxu1 %v8799_v45  ;;  %2053 = vmatpush2.msra.mxu0 %v8800_v48  ;;  %v2517_v15 = vrot.slane %v2516_v8, 4  ;;  %v2514_v42 = vrot.slane %v2513_v39, 1 }
 0x569   :  { %1965 = vmatprep.subr.mxu1 %v8801_v50  ;;  %2054 = vmatprep.subr.mxu0 %v8802_v12 }
 0x56a   :  { %1966 = vmatpush2.msra.mxu1 %v8803_v40  ;;  %2055 = vmatpush2.msra.mxu0 %v8804_v53  ;;  %v2518_v28 = vmin.f32 %v2516_v8, %v2517_v15  ;;  %v2515_v45 = vmin.f32 %v2513_v39, %v2514_v42  ;;  %v2640_v53 = vmax.f32 %v8822_v17, %v8821_v52  ;;  %v2757_v42 = vrot.slane %v2756_v33, 4 }
 0x56b   :  { %1967 = vmatprep.subr.mxu1 %v8805_v43  ;;  %2056 = vmatprep.subr.mxu0 %v8806_v55 }
 0x56c   :  { %1968 = vmatpush2.msra.mxu1 %v8807_v44  ;;  %2057 = vmatpush2.msra.mxu0 %v8808_v57  ;;  %v2519_v48 = vrot.slane %v2518_v28, 2  ;;  %v2523_v50 = vsel %vm567_vm4, %v2515_v45, inf  ;;  %v2535_v12 = vsel %vm2534_vm13, %v2515_v45, inf  ;;  %v2529_v43 = vsel %vm2528_vm14, %v2515_v45, inf }
 0x56d   :  { %1969 = vmatprep.subr.mxu1 %v8809_v58  ;;  %2058 = vmatprep.subr.mxu0 %v8810_v59  ;;  %v2541_v55 = vsel %vm2540_vm15, %v2515_v45, inf  ;;  %v2641_v57 = vrot.slane %v2640_v53, 4  ;;  %v2547_v58 = vsel %vm2546_vm0, %v2515_v45, inf  ;;  %v2553_v59 = vsel %vm2552_vm1, %v2515_v45, inf }
 0x56e   :  { %1970 = vmatpush2.msra.mxu1 %v8811_v3  ;;  %2059 = vmatpush2.msra.mxu0 %v8812_v46  ;;  %v2520_v40 = vmin.f32 %v2518_v28, %v2519_v48 }
 0x56f   :  { %1971 = vmatprep.subr.mxu1 %v8813_v10  ;;  %2060 = vmatprep.subr.mxu0 %v8814_v61  ;;  %v2642_v46 = vmax.f32 %v2640_v53, %v2641_v57  ;;  %v2559_v10 = vsel %vm2558_vm2, %v2515_v45, inf  ;;  %v2565_v61 = vsel %vm2564_vm3, %v2515_v45, inf }
 0x570   :  { %1972 = vmatpush2.msra.mxu1 %v8815_v18  ;;  %2061 = vmatpush2.msra.mxu0 %v8816_v36  ;;  %v2521_v44 = vrot.slane %v2520_v40, 1 }
 0x571   :  { %1973 = vmatprep.subr.mxu1 %v8817_v51  ;;  %2062 = vmatprep.subr.mxu0 %v8818_v62  ;;  %v2643_v18 = vrot.slane %v2642_v46, 2  ;;  %v2647_v62 = vmax.f32 %v8848_v9, %v8847_v35 }
 0x572   :  { %1974 = vmatpush2.msra.mxu1 %v8819_v47  ;;  %2063 = vmatpush2.msra.mxu0 %v8820_v6  ;;  %v2522_v3 = vmin.f32 %v2520_v40, %v2521_v44 }
 0x573   :  { %1975 = vmatprep.subr.mxu1 %v8823_v14  ;;  %2064 = vmatprep.subr.mxu0 %v8824_v7  ;;  %v2644_v47 = vmax.f32 %v2642_v46, %v2643_v18  ;;  %v2648_v14 = vrot.slane %v2647_v62, 4 }
 0x574   :  { %1976 = vmatpush2.msra.mxu1 %v8825_v24  ;;  %2065 = vmatpush2.msra.mxu0 %v8826_v30  ;;  %v2570_v36 = vsel %vm567_vm4, %v2522_v3, inf  ;;  %v2575_v51 = vsel %vm2528_vm14, %v2522_v3, inf  ;;  %v2580_v6 = vsel %vm2534_vm13, %v2522_v3, inf  ;;  %v2585_v0 = vsel %vm2540_vm15, %v2522_v3, inf }
 0x575   :  { %1977 = vmatprep.subr.mxu1 %v8827_v23  ;;  %2066 = vmatprep.subr.mxu0 %v8828_v11  ;;  %v2645_v7 = vrot.slane %v2644_v47, 1  ;;  %v2590_v24 = vsel %vm2546_vm0, %v2522_v3, inf  ;;  %v2595_v30 = vsel %vm2552_vm1, %v2522_v3, inf  ;;  %v2649_v23 = vmax.f32 %v2647_v62, %v2648_v14 }
 0x576   :  { %1978 = vmatpush2.msra.mxu1 %v8829_v56  ;;  %2067 = vmatpush2.msra.mxu0 %v8830_v60  ;;  %v2600_v56 = vsel %vm2558_vm2, %v2522_v3, inf  ;;  %v2605_v60 = vsel %vm2564_vm3, %v2522_v3, inf }
 0x577   :  { %1979 = vmatprep.subr.mxu1 %v8831_v4  ;;  %2068 = vmatprep.subr.mxu0 %v8832_v13  ;;  %v2646_v11 = vmax.f32 %v2644_v47, %v2645_v7  ;;  %v2650_v34 = vrot.slane %v2649_v23, 2  ;;  %v2865_v7 = vmax.f32 %v7020_v27, %v6994_v63 }
 0x578   :  { %1980 = vmatpush2.msra.mxu1 %v8833_v38  ;;  %2069 = vmatpush2.msra.mxu0 %v8834_v2  ;;  %v2749_v2 = vmin.f32 %v7022_v54, %v7018_v41 }
 0x579   :  { %1981 = vmatprep.subr.mxu1 %v8835_v5  ;;  %2070 = vmatprep.subr.mxu0 %v8836_v16  ;;  %v2654_v4 = vsel %vm567_vm4, %v2646_v11, -inf  ;;  %v2659_v13 = vsel %vm2528_vm14, %v2646_v11, -inf  ;;  %v2651_v38 = vmax.f32 %v2649_v23, %v2650_v34  ;;  %v2664_v5 = vsel %vm2534_vm13, %v2646_v11, -inf }
 0x57a   :  { %1982 = vmatpush2.msra.mxu1 %v8837_v32  ;;  %2071 = vmatpush2.msra.mxu0 %v8838_v26  ;;  %v2669_v16 = vsel %vm2540_vm15, %v2646_v11, -inf  ;;  %v2750_v26 = vrot.slane %v2749_v2, 4  ;;  %v2674_v49 = vsel %vm2546_vm0, %v2646_v11, -inf }
 0x57b   :  { %1983 = vmatprep.subr.mxu1 %v8839_v19  ;;  %2072 = vmatprep.subr.mxu0 %v8840_v21  ;;  %v2652_v32 = vrot.slane %v2651_v38, 1  ;;  %v2679_v19 = vsel %vm2552_vm1, %v2646_v11, -inf }
 0x57c   :  { %1984 = vmatpush2.msra.mxu1 %v8841_v22  ;;  %2073 = vmatpush2.msra.mxu0 %v8842_v25  ;;  %v2751_v22 = vmin.f32 %v2749_v2, %v2750_v26  ;;  %v2684_v25 = vsel %vm2558_vm2, %v2646_v11, -inf }
 0x57d   :  { %1985 = vmatprep.subr.mxu1 %v8843_v1  ;;  %2074 = vmatprep.subr.mxu0 %v8844_v29  ;;  %v2653_v21 = vmax.f32 %v2651_v38, %v2652_v32  ;;  %v2689_v1 = vsel %vm2564_vm3, %v2646_v11, -inf  ;;  %v2866_v11 = vrot.slane %v2865_v7, 4 }
 0x57e   :  { %1986 = vmatpush2.msra.mxu1 %v8845_v31  ;;  %2075 = vmatpush2.msra.mxu0 %v8846_v20  ;;  %v2752_v29 = vrot.slane %v2751_v22, 2 }
 0x57f   :  { %2524 = vmin.xlane.f32.xlu0 %v2523_v50  ;;  %2536 = vmin.xlane.f32.xlu1 %v2535_v12  ;;  %v2694_v31 = vsel %vm567_vm4, %v2653_v21, -inf  ;;  %v2699_v20 = vsel %vm2528_vm14, %v2653_v21, -inf  ;;  %v2704_v39 = vsel %vm2534_vm13, %v2653_v21, -inf  ;;  %v2709_v15 = vsel %vm2540_vm15, %v2653_v21, -inf }
 0x580   :  { %v2753_v8 = vmin.f32 %v2751_v22, %v2752_v29  ;;  %v2714_v45 = vsel %vm2546_vm0, %v2653_v21, -inf  ;;  %v2719_v48 = vsel %vm2552_vm1, %v2653_v21, -inf  ;;  %v2758_v50 = vmin.f32 %v2756_v33, %v2757_v42  ;;  %v8849_v42 = vld [vmem:[#allocation149_spill] sm:$0xff] }
 0x581   :  { %v2724_v40 = vsel %vm2558_vm2, %v2653_v21, -inf  ;;  %v2729_v53 = vsel %vm2564_vm3, %v2653_v21, -inf }
 0x582   :  { %v2754_v28 = vrot.slane %v2753_v8, 1 }
 0x583   :  { %2530 = vmin.xlane.f32.xlu0 %v2529_v43  ;;  %2542 = vmin.xlane.f32.xlu1 %v2541_v55  ;;  %v2759_v43 = vrot.slane %v2758_v50, 2 }
 0x584   :  { %v2755_v12 = vmin.f32 %v2753_v8, %v2754_v28  ;;  %v2461_v28 = vmul.f32 %v8849_v42, %v8849_v42 }
 0x585   :  { %v2760_v57 = vmin.f32 %v2758_v50, %v2759_v43  ;;  %v8851_v43 = vld [vmem:[#allocation152_spill] sm:$0xff] }
 0x586   :  { %v2763_v55 = vsel %vm567_vm4, %v2755_v12, inf  ;;  %v2768_v44 = vsel %vm2528_vm14, %v2755_v12, inf  ;;  %v2778_v3 = vsel %vm2540_vm15, %v2755_v12, inf  ;;  %v2788_v18 = vsel %vm2552_vm1, %v2755_v12, inf }
 0x587   :  { %2548 = vmin.xlane.f32.xlu0 %v2547_v58  ;;  %2554 = vmin.xlane.f32.xlu1 %v2553_v59  ;;  %v2858_v58 = vmax.f32 %v7022_v54, %v7018_v41  ;;  %v2773_v59 = vsel %vm2534_vm13, %v2755_v12, inf  ;;  %v2761_v46 = vrot.slane %v2760_v57, 1  ;;  %v2793_v62 = vsel %vm2558_vm2, %v2755_v12, inf }
 0x588   :  { %v2798_v47 = vsel %vm2564_vm3, %v2755_v12, inf }
 0x58b   :  { %2560 = vmin.xlane.f32.xlu0 %v2559_v10  ;;  %2566 = vmin.xlane.f32.xlu1 %v2565_v61  ;;  %v2859_v10 = vrot.slane %v2858_v58, 4  ;;  %v2783_v61 = vsel %vm2546_vm0, %v2755_v12, inf  ;;  %v8850_v12 = vld [vmem:[#allocation150_spill] sm:$0xff] }
 0x58f   :  { %2571 = vmin.xlane.f32.xlu0 %v2570_v36  ;;  %2576 = vmin.xlane.f32.xlu1 %v2575_v51  ;;  %v2762_v36 = vmin.f32 %v2760_v57, %v2761_v46  ;;  %v2860_v51 = vmax.f32 %v2858_v58, %v2859_v10 }
 0x591   :  { %v2808_v14 = vsel %vm2528_vm14, %v2762_v36, inf  ;;  %v2818_v23 = vsel %vm2540_vm15, %v2762_v36, inf  ;;  %v2828_v34 = vsel %vm2552_vm1, %v2762_v36, inf  ;;  %v2833_v38 = vsel %vm2558_vm2, %v2762_v36, inf }
 0x592   :  { %v2838_v2 = vsel %vm2564_vm3, %v2762_v36, inf }
 0x593   :  { %2581 = vmin.xlane.f32.xlu0 %v2580_v6  ;;  %2586 = vmin.xlane.f32.xlu1 %v2585_v0  ;;  %v2861_v6 = vrot.slane %v2860_v51, 2  ;;  %v2803_v0 = vsel %vm567_vm4, %v2762_v36, inf }
 0x597   :  { %2591 = vmin.xlane.f32.xlu0 %v2590_v24  ;;  %2596 = vmin.xlane.f32.xlu1 %v2595_v30  ;;  %v2862_v24 = vmax.f32 %v2860_v51, %v2861_v6  ;;  %v2813_v30 = vsel %vm2534_vm13, %v2762_v36, inf }
 0x59b   :  { %2601 = vmin.xlane.f32.xlu0 %v2600_v56  ;;  %2606 = vmin.xlane.f32.xlu1 %v2605_v60  ;;  %v2863_v56 = vrot.slane %v2862_v24, 1  ;;  %v2823_v60 = vsel %vm2546_vm0, %v2762_v36, inf }
 0x59f   :  { %2655 = vmax.xlane.f32.xlu0 %v2654_v4  ;;  %2660 = vmax.xlane.f32.xlu1 %v2659_v13  ;;  %v2867_v4 = vmax.f32 %v2865_v7, %v2866_v11  ;;  %v2864_v13 = vmax.f32 %v2862_v24, %v2863_v56 }
 0x5a1   :  { %v2877_v32 = vsel %vm2528_vm14, %v2864_v13, -inf  ;;  %v2907_v50 = vsel %vm2564_vm3, %v2864_v13, -inf }
 0x5a3   :  { %2665 = vmax.xlane.f32.xlu0 %v2664_v5  ;;  %2670 = vmax.xlane.f32.xlu1 %v2669_v16  ;;  %v2868_v5 = vrot.slane %v2867_v4, 2  ;;  %v2872_v16 = vsel %vm567_vm4, %v2864_v13, -inf }
 0x5a5   :  { %v2869_v26 = vmax.f32 %v2867_v4, %v2868_v5 }
 0x5a7   :  { %2675 = vmax.xlane.f32.xlu0 %v2674_v49  ;;  %2680 = vmax.xlane.f32.xlu1 %v2679_v19  ;;  %v2882_v49 = vsel %vm2534_vm13, %v2864_v13, -inf  ;;  %v2887_v19 = vsel %vm2540_vm15, %v2864_v13, -inf  ;;  %v2870_v21 = vrot.slane %v2869_v26, 1 }
 0x5a9   :  { %v7236_v33 = vmax.f32 %v2869_v26, %v2870_v21 }
 0x5ab   :  { %2685 = vmax.xlane.f32.xlu0 %v2684_v25  ;;  %2690 = vmax.xlane.f32.xlu1 %v2689_v1  ;;  %v2892_v25 = vsel %vm2546_vm0, %v2864_v13, -inf  ;;  %v2897_v1 = vsel %vm2552_vm1, %v2864_v13, -inf  ;;  %v2927_v11 = vsel %vm2540_vm15, %v7236_v33, -inf  ;;  %v2937_v4 = vsel %vm2552_vm1, %v7236_v33, -inf }
 0x5ac   :  { %vm2630_vm15 = vcmask 89088   ;;  %vm2634_vm1 = vcmask 105472  }
 0x5af   :  { %2695 = vmax.xlane.f32.xlu0 %v2694_v31  ;;  %2700 = vmax.xlane.f32.xlu1 %v2699_v20 }
 0x5b3   :  { %2705 = vmax.xlane.f32.xlu0 %v2704_v39  ;;  %2710 = vmax.xlane.f32.xlu1 %v2709_v15  ;;  %v2902_v15 = vsel %vm2558_vm2, %v2864_v13, -inf }
 0x5b7   :  { %2715 = vmax.xlane.f32.xlu0 %v2714_v45  ;;  %2720 = vmax.xlane.f32.xlu1 %v2719_v48 }
 0x5bb   :  { %2725 = vmax.xlane.f32.xlu0 %v2724_v40  ;;  %2730 = vmax.xlane.f32.xlu1 %v2729_v53  ;;  %v2462_v40 = vmul.f32 %v8850_v12, %v8850_v12  ;;  %v4511_v12 = vld [vmem:[%s8373_s0 + $0x18] sm:$0xff] }
 0x5bf   :  { %2764 = vmin.xlane.f32.xlu0 %v2763_v55  ;;  %2769 = vmin.xlane.f32.xlu1 %v2768_v44  ;;  %v8852_v55 = vld [vmem:[#allocation153_spill] sm:$0xff] }
 0x5c0   :  { %v1205_v44 = vadd.f32 %v8852_v55, %v8851_v43  ;;  %v4513_v55 = vld [vmem:[%s8373_s0 + $0x58] sm:$0xff] }
 0x5c3   :  { %2774 = vmin.xlane.f32.xlu0 %v2773_v59  ;;  %2779 = vmin.xlane.f32.xlu1 %v2778_v3  ;;  %v8853_v3 = vld [vmem:[#allocation151_spill] sm:$0xff] }
 0x5c4   :  { %v2463_v46 = vmul.f32 %v8853_v3, %v8853_v3 }
 0x5c7   :  { %2784 = vmin.xlane.f32.xlu0 %v2783_v61  ;;  %2789 = vmin.xlane.f32.xlu1 %v2788_v18  ;;  %v2912_v18 = vsel %vm567_vm4, %v7236_v33, -inf }
 0x5cb   :  { %2794 = vmin.xlane.f32.xlu0 %v2793_v62  ;;  %2799 = vmin.xlane.f32.xlu1 %v2798_v47  ;;  %v2917_v47 = vsel %vm2528_vm14, %v7236_v33, -inf  ;;  %vm2628_vm14 = vcmask 80896  }
 0x5cf   :  { %2804 = vmin.xlane.f32.xlu0 %v2803_v0  ;;  %2809 = vmin.xlane.f32.xlu1 %v2808_v14  ;;  %v2464_v0 = vmul.f32 %v1205_v44, %v1205_v44  ;;  %v3375_v44 = vmul.f32 0.27, %v4513_v55 }
 0x5d3   :  { %2814 = vmin.xlane.f32.xlu0 %v2813_v30  ;;  %2819 = vmin.xlane.f32.xlu1 %v2818_v23  ;;  %v2922_v30 = vsel %vm2534_vm13, %v7236_v33, -inf  ;;  %vm2626_vm13 = vcmask 72704  }
 0x5d7   :  { %2824 = vmin.xlane.f32.xlu0 %v2823_v60  ;;  %2829 = vmin.xlane.f32.xlu1 %v2828_v34  ;;  %v2932_v34 = vsel %vm2546_vm0, %v7236_v33, -inf  ;;  %vm2632_vm0 = vcmask 97280  }
 0x5db   :  { %2834 = vmin.xlane.f32.xlu0 %v2833_v38  ;;  %2839 = vmin.xlane.f32.xlu1 %v2838_v2  ;;  %v2942_v2 = vsel %vm2558_vm2, %v7236_v33, -inf  ;;  %vm2636_vm2 = vcmask 113664  }
 0x5df   :  { %2873 = vmax.xlane.f32.xlu0 %v2872_v16  ;;  %2878 = vmax.xlane.f32.xlu1 %v2877_v32  ;;  %v2947_v32 = vsel %vm2564_vm3, %v7236_v33, -inf  ;;  %vm2638_vm3 = vcmask 121856  }
 0x5e3   :  { %2883 = vmax.xlane.f32.xlu0 %v2882_v49  ;;  %2888 = vmax.xlane.f32.xlu1 %v2887_v19 }
 0x5e7   :  { %2893 = vmax.xlane.f32.xlu0 %v2892_v25  ;;  %2898 = vmax.xlane.f32.xlu1 %v2897_v1 }
 0x5eb   :  { %2903 = vmax.xlane.f32.xlu0 %v2902_v15  ;;  %2908 = vmax.xlane.f32.xlu1 %v2907_v50 }
 0x5ef   :  { %2913 = vmax.xlane.f32.xlu0 %v2912_v18  ;;  %2918 = vmax.xlane.f32.xlu1 %v2917_v47  ;;  %v4516_v47 = vld [vmem:[%s8373_s0 + $0x50] sm:$0xff] }
 0x5f3   :  { %2923 = vmax.xlane.f32.xlu0 %v2922_v30  ;;  %2928 = vmax.xlane.f32.xlu1 %v2927_v11  ;;  %v4518_v30 = vld [vmem:[%s8373_s0 + $0x28] sm:$0xff] }
 0x5f4   :  { %v3365_v11 = vmul.f32 0.63, %v4518_v30 }
 0x5f5   :  { %v1823_v22 = vpop.f32.mrf.mxu1 }
 0x5f7   :  { %v1746_v29 = vpop.f32.mrf.mxu0  ;;  %v1825_v31 = vpop.f32.mrf.mxu1  ;;  %2933 = vmax.xlane.f32.xlu0 %v2932_v34  ;;  %2938 = vmax.xlane.f32.xlu1 %v2937_v4  ;;  %v4520_v34 = vld [vmem:[%s8373_s0 + $0x20] sm:$0xff] }
 0x5f8   :  { %v1824_v20 = vadd.f32 %v1823_v22, %v1746_v29  ;;  %v3364_v4 = vmul.f32 0.63, %v4520_v34 }
 0x5f9   :  { %v1748_v8 = vpop.f32.mrf.mxu0  ;;  %v1829_v39 = vpop.f32.mrf.mxu1 }
 0x5fa   :  { %v2465_v45 = vmul.f32 %v1824_v20, %v1824_v20  ;;  %v1826_v48 = vadd.f32 %v1825_v31, %v1748_v8 }
 0x5fb   :  { %v1752_v53 = vpop.f32.mrf.mxu0  ;;  %v1831_v10 = vpop.f32.mrf.mxu1  ;;  %2943 = vmax.xlane.f32.xlu0 %v2942_v2  ;;  %2948 = vmax.xlane.f32.xlu1 %v2947_v32 }
 0x5fc   :  { %v7246_v57 = vadd.f32 %v2465_v45, %v2461_v28  ;;  %v2466_v58 = vmul.f32 %v1826_v48, %v1826_v48  ;;  %v1830_v59 = vadd.f32 %v1829_v39, %v1752_v53  ;;  %v4512_v53 = vld [vmem:[%s8373_s0 + $0x38] sm:$0xff] }
 0x5fd   :  { %v1754_v61 = vpop.f32.mrf.mxu0  ;;  %v3367_v43 = vmul.f32 0.63, %v4512_v53 }
 0x5fe   :  { %v7252_v36 = vadd.f32 %v2466_v58, %v2462_v40  ;;  %v2467_v51 = vmul.f32 %v1830_v59, %v1830_v59  ;;  %v1832_v62 = vadd.f32 %v1831_v10, %v1754_v61  ;;  %v3363_v40 = vmul.f32 0.06, %v4511_v12  ;;  %v4514_v61 = vld [vmem:[%s8373_s0 + $0x10] sm:$0xff] }
 0x5ff   :  { %v1900_v6 = vpop.f32.mrf.mxu0  ;;  %v3362_v18 = vmul.f32 0.06, %v4514_v61 }
 0x600   :  { %v7256_v14 = vadd.f32 %v2467_v51, %v2463_v46  ;;  %v2468_v7 = vmul.f32 %v1832_v62, %v1832_v62  ;;  %v3371_v59 = vadd.f32 %v3367_v43, %v3363_v40  ;;  %v4515_v51 = vld [vmem:[%s8373_s0 + $0x30] sm:$0xff] }
 0x601   :  { %v1902_v24 = vpop.f32.mrf.mxu0  ;;  %v3366_v62 = vmul.f32 0.63, %v4515_v51 }
 0x602   :  { %v7260_v23 = vadd.f32 %v2468_v7, %v2464_v0  ;;  %1987 = vmatprep.mubr.f32.mxu1 %v1902_v24  ;;  %2076 = vmatprep.mubr.f32.mxu0 %v1902_v24  ;;  %v7283_v46 = vadd.f32 %v3375_v44, %v3371_v59  ;;  %v4517_v0 = vld [vmem:[%s8373_s0 + $0x8] sm:$0xff] }
 0x603   :  { %v1906_v56 = vpop.f32.mrf.mxu0  ;;  %1988 = vmatmul.mubr.f32.vlgmr.msra.gmra.mxu1 %v1900_v6  ;;  %2077 = vmatmul.mubr.f32.vlgmr.msra.gmra.mxu0 %v1900_v6  ;;  %v3374_v6 = vmul.f32 0.27, %v4516_v47  ;;  %v3361_v7 = vmul.f32 0.06, %v4517_v0  ;;  %v3370_v24 = vadd.f32 %v3366_v62, %v3362_v18 }
 0x605   :  { %v1908_v60 = vpop.f32.mrf.mxu0 }
 0x606   :  { %1993 = vmatprep.mubr.f32.mxu1 %v1908_v60  ;;  %2082 = vmatprep.mubr.f32.mxu0 %v1908_v60 }
 0x607   :  { %v1912_v13 = vpop.f32.mrf.mxu0  ;;  %1994 = vmatmul.mubr.f32.gmra.mxu1 %v1906_v56  ;;  %2083 = vmatmul.mubr.f32.gmra.mxu0 %v1906_v56  ;;  %v4519_v56 = vld [vmem:[%s8373_s0] sm:$0xff] }
 0x608   :  { %v2525_v26 = vpop.xlane.xlu0 %2524  ;;  %v2537_v49 = vpop.xlane.xlu1 %2536  ;;  %v3360_v60 = vmul.f32 0.06, %v4519_v56 }
 0x609   :  { %v1914_v38 = vpop.f32.mrf.mxu0  ;;  %4024 = vpush %v2525_v26  ;;  %v3369_v26 = vadd.f32 %v3365_v11, %v3361_v7 }
 0x60a   :  { %1999 = vmatprep.mubr.f32.mxu1 %v1914_v38  ;;  %2088 = vmatprep.mubr.f32.mxu0 %v1914_v38  ;;  %v4521_v38 = vld [vmem:[%s8373_s0 + $0x40] sm:$0xff]  ;;  %v3368_v32 = vadd.f32 %v3364_v4, %v3360_v60 }
 0x60b   :  { %v1918_v5 = vpop.f32.mrf.mxu0  ;;  %2000 = vmatmul.mubr.f32.gmra.mxu1 %v1912_v13  ;;  %2089 = vmatmul.mubr.f32.gmra.mxu0 %v1912_v13  ;;  %v3372_v2 = vmul.f32 0.27, %v4521_v38 }
 0x60c   :  { %v2531_v19 = vpop.xlane.xlu0 %2530  ;;  %v2543_v21 = vpop.xlane.xlu1 %2542  ;;  %3460 = vrot.lane.b32.xlu1 %v7283_v46, %s4672_s28 }
 0x60d   :  { %v1920_v16 = vpop.f32.mrf.mxu0  ;;  %4026 = vpush %v2531_v19 }
 0x60e   :  { %2005 = vmatprep.mubr.f32.mxu1 %v1920_v16  ;;  %2094 = vmatprep.mubr.f32.mxu0 %v1920_v16  ;;  %4028 = vpush %v2537_v49  ;;  %v7311_v16 = vadd.f32 %v3374_v6, %v3370_v24  ;;  %v4522_v49 = vld [vmem:[%s8373_s0 + $0x48] sm:$0xff] }
 0x60f   :  { %2006 = vmatmul.mubr.f32.gmra.mxu1 %v1918_v5  ;;  %2095 = vmatmul.mubr.f32.gmra.mxu0 %v1918_v5  ;;  %4030 = vpush %v2543_v21  ;;  %v3373_v19 = vmul.f32 0.27, %v4522_v49  ;;  %v7319_v21 = vadd.f32 %v3372_v2, %v3368_v32 }
 0x610   :  { %2185 = vmatprep.mubr.f32.mxu1 %v8580_v37  ;;  %2274 = vmatprep.mubr.f32.mxu0 %v8580_v37  ;;  %v2549_v22 = vpop.xlane.xlu0 %2548  ;;  %v2555_v25 = vpop.xlane.xlu1 %2554 }
 0x611   :  { %4032 = vpush %v2549_v22  ;;  %3439 = vrot.lane.b32.xlu1 %v7311_v16, %s4673_s19  ;;  %3456 = vrot.lane.b32.xlu0 %v7311_v16, %s4672_s28 }
 0x612   :  { %4034 = vpush %v2555_v25 }
 0x614   :  { %v2561_v1 = vpop.xlane.xlu0 %2560  ;;  %v2567_v29 = vpop.xlane.xlu1 %2566 }
 0x615   :  { %4036 = vpush %v2561_v1  ;;  %3443 = vrot.lane.b32.xlu1 %v7283_v46, %s4673_s19  ;;  %v7322_v1 = vadd.f32 %v3373_v19, %v3369_v26  ;;  %3454 = vrot.lane.b32.xlu0 %v7319_v21, %s4672_s28 }
 0x616   :  { %4038 = vpush %v2567_v29 }
 0x618   :  { %v2572_v31 = vpop.xlane.xlu0 %2571  ;;  %v2577_v20 = vpop.xlane.xlu1 %2576 }
 0x619   :  { %4040 = vpush %v2572_v31  ;;  %3458 = vrot.lane.b32.xlu1 %v7322_v1, %s4672_s28  ;;  %3437 = vrot.lane.b32.xlu0 %v7319_v21, %s4673_s19 }
 0x61a   :  { %4042 = vpush %v2577_v20 }
 0x61c   :  { %v2582_v33 = vpop.xlane.xlu0 %2581  ;;  %v2587_v8 = vpop.xlane.xlu1 %2586 }
 0x61d   :  { %4044 = vpush %v2582_v33  ;;  %3441 = vrot.lane.b32.xlu1 %v7322_v1, %s4673_s19 }
 0x61e   :  { %4046 = vpush %v2587_v8 }
 0x620   :  { %v2592_v39 = vpop.xlane.xlu0 %2591  ;;  %v2597_v15 = vpop.xlane.xlu1 %2596 }
 0x621   :  { %4048 = vpush %v2592_v39 }
 0x622   :  { %4050 = vpush %v2597_v15 }
 0x624   :  { %v2602_v42 = vpop.xlane.xlu0 %2601  ;;  %v2607_v28 = vpop.xlane.xlu1 %2606 }
 0x625   :  { %4052 = vpush %v2602_v42 }
 0x626   :  { %4054 = vpush %v2607_v28 }
 0x628   :  { %v2656_v45 = vpop.xlane.xlu0 %2655  ;;  %v2661_v48 = vpop.xlane.xlu1 %2660 }
 0x629   :  { %4056 = vpush %v2656_v45 }
 0x62a   :  { %4058 = vpush %v2661_v48 }
 0x62c   :  { %v2666_v50 = vpop.xlane.xlu0 %2665  ;;  %v2671_v58 = vpop.xlane.xlu1 %2670 }
 0x62d   :  { %4060 = vpush %v2666_v50 }
 0x62e   :  { %4062 = vpush %v2671_v58 }
 0x630   :  { %v2676_v3 = vpop.xlane.xlu0 %2675  ;;  %v2681_v10 = vpop.xlane.xlu1 %2680 }
 0x631   :  { %4064 = vpush %v2676_v3 }
 0x632   :  { %4066 = vpush %v2681_v10 }
 0x634   :  { %v2686_v13 = vpop.xlane.xlu0 %2685  ;;  %v2691_v5 = vpop.xlane.xlu1 %2690 }
 0x635   :  { %4068 = vpush %v2686_v13 }
 0x636   :  { %4070 = vpush %v2691_v5 }
 0x638   :  { %v2696_v22 = vpop.xlane.xlu0 %2695  ;;  %v2701_v25 = vpop.xlane.xlu1 %2700 }
 0x639   :  { %4072 = vpush %v2696_v22 }
 0x63a   :  { %4074 = vpush %v2701_v25  ;;  %s7614_s12 = spop %4024 }
 0x63c   :  { %v2706_v29 = vpop.xlane.xlu0 %2705  ;;  %v2711_v31 = vpop.xlane.xlu1 %2710 }
 0x63d   :  { %4076 = vpush %v2706_v29 }
 0x63e   :  { %4078 = vpush %v2711_v31  ;;  %s7628_s20 = spop %4026 }
 0x63f   :  { %s7642_s29 = spop %4028 }
 0x640   :  { %v2716_v20 = vpop.xlane.xlu0 %2715  ;;  %v2721_v33 = vpop.xlane.xlu1 %2720  ;;  %s7656_s16 = spop %4030 }
 0x641   :  { %4080 = vpush %v2716_v20 }
 0x642   :  { %4082 = vpush %v2721_v33  ;;  %s7670_s25 = spop %4032 }
 0x643   :  { %s7684_s13 = spop %4034 }
 0x644   :  { %v2726_v8 = vpop.xlane.xlu0 %2725  ;;  %v2731_v39 = vpop.xlane.xlu1 %2730 }
 0x645   :  { %4084 = vpush %v2726_v8 }
 0x646   :  { %4086 = vpush %v2731_v39  ;;  %s7698_s23 = spop %4036 }
 0x647   :  { %s7712_s11 = spop %4038 }
 0x648   :  { %v2765_v15 = vpop.xlane.xlu0 %2764  ;;  %v2770_v42 = vpop.xlane.xlu1 %2769 }
 0x649   :  { %4088 = vpush %v2765_v15 }
 0x64a   :  { %4090 = vpush %v2770_v42  ;;  %s7726_s24 = spop %4040 }
 0x64b   :  { %8854 = sst [smem:[#allocation154_spill]] %s7726_s24  ;;  %s7740_s15 = spop %4042 }
 0x64c   :  { %v2775_v28 = vpop.xlane.xlu0 %2774  ;;  %v2780_v45 = vpop.xlane.xlu1 %2779  ;;  %8855 = sst [smem:[#allocation155_spill]] %s7740_s15 }
 0x64d   :  { %4092 = vpush %v2775_v28 }
 0x64e   :  { %4094 = vpush %v2780_v45  ;;  %s7754_s28 = spop %4044 }
 0x64f   :  { %8856 = sst [smem:[#allocation156_spill]] %s7754_s28  ;;  %s7768_s19 = spop %4046 }
 0x650   :  { %v2785_v48 = vpop.xlane.xlu0 %2784  ;;  %v2790_v50 = vpop.xlane.xlu1 %2789  ;;  %8857 = sst [smem:[#allocation157_spill]] %s7768_s19 }
 0x651   :  { %4096 = vpush %v2785_v48 }
 0x652   :  { %4098 = vpush %v2790_v50  ;;  %s7776_s3 = spop %4048 }
 0x653   :  { %8858 = sst [smem:[#allocation158_spill]] %s7776_s3  ;;  %s7778_s30 = spop %4050 }
 0x654   :  { %v2795_v12 = vpop.xlane.xlu0 %2794  ;;  %v2800_v40 = vpop.xlane.xlu1 %2799  ;;  %8859 = sst [smem:[#allocation159_spill]] %s7778_s30 }
 0x655   :  { %4100 = vpush %v2795_v12 }
 0x656   :  { %4102 = vpush %v2800_v40 }
 0x658   :  { %v2805_v53 = vpop.xlane.xlu0 %2804  ;;  %v2810_v43 = vpop.xlane.xlu1 %2809 }
 0x659   :  { %4104 = vpush %v2805_v53 }
 0x65a   :  { %4106 = vpush %v2810_v43 }
 0x65c   :  { %v2815_v55 = vpop.xlane.xlu0 %2814  ;;  %v2820_v44 = vpop.xlane.xlu1 %2819 }
 0x65d   :  { %4108 = vpush %v2815_v55 }
 0x65e   :  { %4110 = vpush %v2820_v44 }
 0x660   :  { %v2825_v58 = vpop.xlane.xlu0 %2824  ;;  %v2830_v59 = vpop.xlane.xlu1 %2829 }
 0x661   :  { %4112 = vpush %v2825_v58  ;;  %v4523_v58 = vld [vmem:[%s8377_s1 + $0x18] sm:$0xff] }
 0x662   :  { %4114 = vpush %v2830_v59 }
 0x664   :  { %v2835_v3 = vpop.xlane.xlu0 %2834  ;;  %v2840_v10 = vpop.xlane.xlu1 %2839 }
 0x665   :  { %4116 = vpush %v2835_v3 }
 0x666   :  { %4118 = vpush %v2840_v10  ;;  %v4524_v10 = vld [vmem:[%s8377_s1 + $0x10] sm:$0xff] }
 0x668   :  { %v2874_v61 = vpop.xlane.xlu0 %2873  ;;  %v2879_v18 = vpop.xlane.xlu1 %2878 }
 0x669   :  { %4120 = vpush %v2874_v61 }
 0x66a   :  { %4122 = vpush %v2879_v18  ;;  %v4525_v18 = vld [vmem:[%s8377_s1 + $0x8] sm:$0xff] }
 0x66c   :  { %v2884_v51 = vpop.xlane.xlu0 %2883  ;;  %v2889_v62 = vpop.xlane.xlu1 %2888 }
 0x66d   :  { %4124 = vpush %v2884_v51 }
 0x66e   :  { %4126 = vpush %v2889_v62 }
 0x670   :  { %v2894_v47 = vpop.xlane.xlu0 %2893  ;;  %v2899_v6 = vpop.xlane.xlu1 %2898 }
 0x671   :  { %4128 = vpush %v2894_v47  ;;  %v4526_v47 = vld [vmem:[%s8377_s1] sm:$0xff]  ;;  %s7780_s1 = spop %4052 }
 0x672   :  { %4130 = vpush %v2899_v6  ;;  %8860 = sst [smem:[#allocation160_spill]] %s7780_s1  ;;  %s7782_s10 = spop %4054 }
 0x673   :  { %8861 = sst [smem:[#allocation161_spill]] %s7782_s10  ;;  %s7784_s14 = spop %4056 }
 0x674   :  { %v2904_v0 = vpop.xlane.xlu0 %2903  ;;  %v2909_v7 = vpop.xlane.xlu1 %2908 }
 0x675   :  { %4132 = vpush %v2904_v0 }
 0x676   :  { %4134 = vpush %v2909_v7 }
 0x678   :  { %v2914_v24 = vpop.xlane.xlu0 %2913  ;;  %v2919_v30 = vpop.xlane.xlu1 %2918 }
 0x679   :  { %4136 = vpush %v2914_v24 }
 0x67a   :  { %4138 = vpush %v2919_v30  ;;  %v4527_v30 = vld [vmem:[%s8375_s2] sm:$0xff] }
 0x67c   :  { %v2924_v11 = vpop.xlane.xlu0 %2923  ;;  %v2929_v56 = vpop.xlane.xlu1 %2928 }
 0x67d   :  { %4140 = vpush %v2924_v11  ;;  %v4528_v11 = vld [vmem:[%s8376_s4 + $0x2f8] sm:$0xff] }
 0x67e   :  { %4142 = vpush %v2929_v56  ;;  %v4529_v56 = vld [vmem:[%s8376_s4 + $0x2f0] sm:$0xff] }
 0x680   :  { %v2934_v60 = vpop.xlane.xlu0 %2933  ;;  %v2939_v34 = vpop.xlane.xlu1 %2938 }
 0x681   :  { %4144 = vpush %v2934_v60  ;;  %v4530_v60 = vld [vmem:[%s8375_s2 + $0x8] sm:$0xff] }
 0x682   :  { %4146 = vpush %v2939_v34  ;;  %v4531_v34 = vld [vmem:[%s8376_s4 + $0xf8] sm:$0xff] }
 0x684   :  { %v2944_v4 = vpop.xlane.xlu0 %2943  ;;  %v2949_v13 = vpop.xlane.xlu1 %2948 }
 0x685   :  { %4148 = vpush %v2944_v4  ;;  %v4532_v4 = vld [vmem:[%s8376_s4 + $0x2e8] sm:$0xff] }
 0x686   :  { %4150 = vpush %v2949_v13  ;;  %v4533_v13 = vld [vmem:[%s8376_s4 + $0xf0] sm:$0xff] }
 0x6c3   :  { %v1989_v38 = vpop.f32.mrf.mxu1  ;;  %v2078_v2 = vpop.f32.mrf.mxu0 }
 0x6c5   :  { %v1991_v5 = vpop.f32.mrf.mxu1  ;;  %v2080_v32 = vpop.f32.mrf.mxu0 }
 0x6c7   :  { %v1995_v26 = vpop.f32.mrf.mxu1  ;;  %v2084_v49 = vpop.f32.mrf.mxu0 }
 0x6c9   :  { %v1997_v19 = vpop.f32.mrf.mxu1  ;;  %v2086_v22 = vpop.f32.mrf.mxu0 }
 0x6cb   :  { %v2001_v25 = vpop.f32.mrf.mxu1  ;;  %v2090_v29 = vpop.f32.mrf.mxu0 }
 0x6cc   :  { %v2109_v42 = vadd.f32 %v2078_v2, %v2001_v25  ;;  %v2101_v53 = vsub.f32 %v1989_v38, %v2090_v29  ;;  %v4534_v38 = vld [vmem:[%s8376_s4 + $0x2e0] sm:$0xff]  ;;  %v4535_v2 = vld [vmem:[%s8375_s2 + $0x10] sm:$0xff]  ;;  %v4542_v25 = vld [vmem:[%s8376_s4 + $0x2c8] sm:$0xff] }
 0x6cd   :  { %v2003_v31 = vpop.f32.mrf.mxu1  ;;  %v2092_v20 = vpop.f32.mrf.mxu0  ;;  %v4543_v29 = vld [vmem:[%s8376_s4 + $0xd0] sm:$0xff] }
 0x6ce   :  { %v2110_v39 = vadd.f32 %v2080_v32, %v2003_v31  ;;  %v2102_v50 = vsub.f32 %v1991_v5, %v2092_v20  ;;  %v2113_v3 = vsub.f32 0.0, %v2109_v42  ;;  %v2105_v6 = vmul.f32 %v4526_v47, %v2101_v53  ;;  %v4536_v5 = vld [vmem:[%s8376_s4 + $0xe8] sm:$0xff]  ;;  %v4537_v32 = vld [vmem:[%s8376_s4 + $0x2d8] sm:$0xff]  ;;  %v4545_v20 = vld [vmem:[%s8376_s4 + $0x2c0] sm:$0xff] }
 0x6cf   :  { %v2007_v33 = vpop.f32.mrf.mxu1  ;;  %v2096_v8 = vpop.f32.mrf.mxu0  ;;  %v4544_v31 = vld [vmem:[%s8376_s4 + $0xc8] sm:$0xff]  ;;  %v4550_v42 = vld [vmem:[%s8376_s4 + $0xb0] sm:$0xff] }
 0x6d0   :  { %v2111_v15 = vadd.f32 %v2084_v49, %v2007_v33  ;;  %v2103_v28 = vsub.f32 %v1995_v26, %v2096_v8  ;;  %v2114_v55 = vsub.f32 0.0, %v2110_v39  ;;  %v2106_v51 = vmul.f32 %v4525_v18, %v2102_v50  ;;  %v4538_v26 = vld [vmem:[%s8376_s4 + $0xe0] sm:$0xff]  ;;  %v4539_v49 = vld [vmem:[%s8376_s4 + $0x2d0] sm:$0xff]  ;;  %v4547_v8 = vld [vmem:[%s8376_s4 + $0x2b8] sm:$0xff] }
 0x6d1   :  { %v2009_v45 = vpop.f32.mrf.mxu1  ;;  %v2098_v48 = vpop.f32.mrf.mxu0  ;;  %v2117_v24 = vmul.f32 %v4526_v47, %v2113_v3  ;;  %v4546_v33 = vld [vmem:[%s8376_s4 + $0xc0] sm:$0xff]  ;;  %v4548_v39 = vld [vmem:[%s8376_s4 + $0xb8] sm:$0xff]  ;;  %v4557_v53 = vld [vmem:[%s8376_s4 + $0x290] sm:$0xff] }
 0x6d2   :  { %v2112_v12 = vadd.f32 %v2086_v22, %v2009_v45  ;;  %v2104_v40 = vsub.f32 %v1997_v19, %v2098_v48  ;;  %v2115_v43 = vsub.f32 0.0, %v2111_v15  ;;  %v2107_v61 = vmul.f32 %v4524_v10, %v2103_v28  ;;  %v4540_v19 = vld [vmem:[%s8375_s2 + $0x18] sm:$0xff]  ;;  %v4549_v15 = vld [vmem:[%s8376_s4 + $0x2b0] sm:$0xff]  ;;  %v4551_v28 = vld [vmem:[%s8376_s4 + $0x2a8] sm:$0xff] }
 0x6d3   :  { %v2118_v7 = vmul.f32 %v4525_v18, %v2114_v55  ;;  %v4541_v22 = vld [vmem:[%s8376_s4 + $0xd8] sm:$0xff]  ;;  %v4552_v45 = vld [vmem:[%s8376_s4 + $0xa8] sm:$0xff]  ;;  %v4553_v48 = vld [vmem:[%s8376_s4 + $0x2a0] sm:$0xff] }
 0x6d4   :  { %v2116_v44 = vsub.f32 0.0, %v2112_v12  ;;  %v2108_v59 = vmul.f32 %v4523_v58, %v2104_v40  ;;  %v2119_v0 = vmul.f32 %v4524_v10, %v2115_v43  ;;  %v4554_v50 = vld [vmem:[%s8376_s4 + $0xa0] sm:$0xff]  ;;  %v4555_v12 = vld [vmem:[%s8376_s4 + $0x298] sm:$0xff]  ;;  %v4558_v43 = vld [vmem:[%s8376_s4 + $0x90] sm:$0xff] }
 0x6d5   :  { %v4556_v40 = vld [vmem:[%s8376_s4 + $0x98] sm:$0xff]  ;;  %v4559_v55 = vld [vmem:[%s8376_s4 + $0x288] sm:$0xff]  ;;  %v4566_v18 = vld [vmem:[%s8376_s4 + $0x70] sm:$0xff] }
 0x6d6   :  { %v2120_v62 = vmul.f32 %v4523_v58, %v2116_v44  ;;  %2149 = vmatprep.subr.mxu1 %v2108_v59  ;;  %v4560_v44 = vld [vmem:[%s8376_s4 + $0x88] sm:$0xff]  ;;  %v4561_v58 = vld [vmem:[%s8376_s4 + $0x280] sm:$0xff]  ;;  %v4563_v3 = vld [vmem:[%s8376_s4 + $0x278] sm:$0xff] }
 0x6d7   :  { %2150 = vmatpush1.msra.mxu1 %v2107_v61  ;;  %v4562_v59 = vld [vmem:[%s8376_s4 + $0x80] sm:$0xff]  ;;  %v4564_v10 = vld [vmem:[%s8376_s4 + $0x78] sm:$0xff]  ;;  %v4565_v61 = vld [vmem:[%s8376_s4 + $0x270] sm:$0xff] }
 0x6d8   :  { %2151 = vmatprep.subr.mxu1 %v2106_v51  ;;  %2238 = vmatprep.subr.mxu0 %v2120_v62  ;;  %v4567_v51 = vld [vmem:[%s8376_s4 + $0x268] sm:$0xff]  ;;  %v4569_v47 = vld [vmem:[%s8376_s4 + $0x260] sm:$0xff] }
 0x6d9   :  { %2152 = vmatpush1.msra.mxu1 %v2105_v6  ;;  %2239 = vmatpush1.msra.mxu0 %v2119_v0  ;;  %v4568_v62 = vld [vmem:[%s8376_s4 + $0x68] sm:$0xff]  ;;  %v4570_v6 = vld [vmem:[%s8376_s4 + $0x60] sm:$0xff]  ;;  %v4571_v0 = vld [vmem:[%s8376_s4 + $0x258] sm:$0xff] }
 0x6da   :  { %3952 = vmatmul.mubr.msk.f32.vlgmr.msra.gmra.mxu1 %vm567_vm4, %v4527_v30  ;;  %2240 = vmatprep.subr.mxu0 %v2118_v7  ;;  %v4572_v7 = vld [vmem:[%s8376_s4 + $0x58] sm:$0xff] }
 0x6db   :  { %2241 = vmatpush1.msra.mxu0 %v2117_v24  ;;  %2191 = vmatprep.mubr.f32.mxu1 %v8580_v37  ;;  %v4573_v24 = vld [vmem:[%s8376_s4 + $0x250] sm:$0xff] }
 0x6dc   :  { %3956 = vmatmul.mubr.msk.f32.vlgmr.msra.gmra.mxu0 %vm567_vm4, %v4527_v30  ;;  %2384 = vmatprep.subr.mxu0 %v4528_v11  ;;  %v4574_v30 = vld [vmem:[%s8376_s4 + $0x50] sm:$0xff]  ;;  %v4575_v11 = vld [vmem:[%s8376_s4 + $0x248] sm:$0xff] }
 0x6dd   :  { %2280 = vmatprep.mubr.f32.mxu0 %v8580_v37  ;;  %2385 = vmatpush1.msra.mxu0 %v4529_v56  ;;  %v4576_v56 = vld [vmem:[%s8376_s4 + $0x48] sm:$0xff] }
 0x6de   :  { %3953 = vmatmul.mubr.msk.f32.gmra.mxu1 %vm567_vm4, %v4530_v60  ;;  %2307 = vmatprep.subr.mxu1 %v4531_v34  ;;  %v4578_v34 = vld [vmem:[%s8376_s4 + $0x40] sm:$0xff] }
 0x6df   :  { %2197 = vmatprep.mubr.f32.mxu1 %v8580_v37  ;;  %2386 = vmatprep.subr.mxu0 %v4532_v4  ;;  %v4579_v4 = vld [vmem:[%s8376_s4 + $0x238] sm:$0xff] }
 0x6e0   :  { %3957 = vmatmul.mubr.msk.f32.gmra.mxu0 %vm567_vm4, %v4530_v60  ;;  %2308 = vmatpush1.msra.mxu1 %v4533_v13  ;;  %v4577_v60 = vld [vmem:[%s8376_s4 + $0x240] sm:$0xff]  ;;  %v4580_v13 = vld [vmem:[%s8376_s4 + $0x38] sm:$0xff] }
 0x6e1   :  { %2286 = vmatprep.mubr.f32.mxu0 %v8580_v37  ;;  %2387 = vmatpush1.msra.mxu0 %v4534_v38  ;;  %v4581_v38 = vld [vmem:[%s8376_s4 + $0x230] sm:$0xff] }
 0x6e2   :  { %3954 = vmatmul.mubr.msk.f32.gmra.mxu1 %vm567_vm4, %v4535_v2  ;;  %2309 = vmatprep.subr.mxu1 %v4536_v5  ;;  %v4583_v5 = vld [vmem:[%s8376_s4 + $0x228] sm:$0xff] }
 0x6e3   :  { %2203 = vmatprep.mubr.f32.mxu1 %v8580_v37  ;;  %2388 = vmatprep.subr.mxu0 %v4537_v32  ;;  %v4584_v32 = vld [vmem:[%s8376_s4 + $0x28] sm:$0xff] }
 0x6e4   :  { %3958 = vmatmul.mubr.msk.f32.gmra.mxu0 %vm567_vm4, %v4535_v2  ;;  %2310 = vmatpush1.msra.mxu1 %v4538_v26  ;;  %v4582_v2 = vld [vmem:[%s8376_s4 + $0x30] sm:$0xff]  ;;  %v4585_v26 = vld [vmem:[%s8376_s4 + $0x220] sm:$0xff] }
 0x6e5   :  { %2292 = vmatprep.mubr.f32.mxu0 %v8580_v37  ;;  %2389 = vmatpush1.msra.mxu0 %v4539_v49  ;;  %v4586_v49 = vld [vmem:[%s8376_s4 + $0x20] sm:$0xff] }
 0x6e6   :  { %3955 = vmatmul.mubr.msk.f32.gmra.mxu1 %vm567_vm4, %v4540_v19  ;;  %2311 = vmatprep.subr.mxu1 %v4541_v22  ;;  %v4588_v22 = vld [vmem:[%s8376_s4 + $0x18] sm:$0xff] }
 0x6e7   :  { %2390 = vmatprep.subr.mxu0 %v4542_v25  ;;  %2312 = vmatpush1.msra.mxu1 %v4543_v29  ;;  %v4589_v25 = vld [vmem:[%s8376_s4 + $0x210] sm:$0xff] }
 0x6e8   :  { %3959 = vmatmul.mubr.msk.f32.gmra.mxu0 %vm567_vm4, %v4540_v19  ;;  %2313 = vmatprep.subr.mxu1 %v4544_v31  ;;  %v4587_v19 = vld [vmem:[%s8376_s4 + $0x218] sm:$0xff]  ;;  %v4590_v29 = vld [vmem:[%s8376_s4 + $0x10] sm:$0xff]  ;;  %v4591_v31 = vld [vmem:[%s8376_s4 + $0x208] sm:$0xff] }
 0x6e9   :  { %2391 = vmatpush1.msra.mxu0 %v4545_v20  ;;  %2314 = vmatpush1.msra.mxu1 %v4546_v33  ;;  %v4592_v20 = vld [vmem:[%s8376_s4 + $0x8] sm:$0xff]  ;;  %v4593_v33 = vld [vmem:[%s8376_s4 + $0x200] sm:$0xff] }
 0x6ea   :  { %2392 = vmatprep.subr.mxu0 %v4547_v8  ;;  %2315 = vmatprep.subr.mxu1 %v4548_v39  ;;  %v4594_v8 = vld [vmem:[%s8376_s4] sm:$0xff]  ;;  %v4595_v39 = vld [vmem:[%s8376_s4 + $0x3f8] sm:$0xff] }
 0x6eb   :  { %2393 = vmatpush1.msra.mxu0 %v4549_v15  ;;  %2316 = vmatpush1.msra.mxu1 %v4550_v42  ;;  %v4596_v15 = vld [vmem:[%s8376_s4 + $0x1f8] sm:$0xff]  ;;  %v4597_v42 = vld [vmem:[%s8376_s4 + $0x3f0] sm:$0xff] }
 0x6ec   :  { %2394 = vmatprep.subr.mxu0 %v4551_v28  ;;  %2317 = vmatprep.subr.mxu1 %v4552_v45  ;;  %v4598_v28 = vld [vmem:[%s8376_s4 + $0x1f0] sm:$0xff]  ;;  %v4599_v45 = vld [vmem:[%s8376_s4 + $0x3e8] sm:$0xff] }
 0x6ed   :  { %2395 = vmatpush1.msra.mxu0 %v4553_v48  ;;  %2318 = vmatpush1.msra.mxu1 %v4554_v50  ;;  %v4600_v48 = vld [vmem:[%s8376_s4 + $0x1e8] sm:$0xff]  ;;  %v4601_v50 = vld [vmem:[%s8376_s4 + $0x3e0] sm:$0xff] }
 0x6ee   :  { %2396 = vmatprep.subr.mxu0 %v4555_v12  ;;  %2319 = vmatprep.subr.mxu1 %v4556_v40  ;;  %v4602_v12 = vld [vmem:[%s8376_s4 + $0x1e0] sm:$0xff]  ;;  %v4603_v40 = vld [vmem:[%s8376_s4 + $0x3d8] sm:$0xff] }
 0x6ef   :  { %2397 = vmatpush1.msra.mxu0 %v4557_v53  ;;  %2320 = vmatpush1.msra.mxu1 %v4558_v43  ;;  %v4604_v53 = vld [vmem:[%s8376_s4 + $0x1d8] sm:$0xff]  ;;  %v4605_v43 = vld [vmem:[%s8376_s4 + $0x3d0] sm:$0xff] }
 0x6f0   :  { %2398 = vmatprep.subr.mxu0 %v4559_v55  ;;  %2321 = vmatprep.subr.mxu1 %v4560_v44  ;;  %v4606_v55 = vld [vmem:[%s8376_s4 + $0x1d0] sm:$0xff]  ;;  %v4607_v44 = vld [vmem:[%s8376_s4 + $0x3c8] sm:$0xff] }
 0x6f1   :  { %2399 = vmatpush1.msra.mxu0 %v4561_v58  ;;  %2322 = vmatpush1.msra.mxu1 %v4562_v59  ;;  %v4608_v58 = vld [vmem:[%s8376_s4 + $0x1c8] sm:$0xff]  ;;  %v4609_v59 = vld [vmem:[%s8376_s4 + $0x3c0] sm:$0xff] }
 0x6f2   :  { %2400 = vmatprep.subr.mxu0 %v4563_v3  ;;  %2323 = vmatprep.subr.mxu1 %v4564_v10  ;;  %v4610_v3 = vld [vmem:[%s8376_s4 + $0x1c0] sm:$0xff]  ;;  %v4611_v10 = vld [vmem:[%s8376_s4 + $0x3b8] sm:$0xff] }
 0x6f3   :  { %2401 = vmatpush1.msra.mxu0 %v4565_v61  ;;  %2324 = vmatpush1.msra.mxu1 %v4566_v18  ;;  %v4612_v61 = vld [vmem:[%s8376_s4 + $0x1b8] sm:$0xff]  ;;  %v4613_v18 = vld [vmem:[%s8376_s4 + $0x3b0] sm:$0xff] }
 0x6f4   :  { %2402 = vmatprep.subr.mxu0 %v4567_v51  ;;  %2325 = vmatprep.subr.mxu1 %v4568_v62  ;;  %v4614_v51 = vld [vmem:[%s8376_s4 + $0x1b0] sm:$0xff]  ;;  %v4615_v62 = vld [vmem:[%s8376_s4 + $0x3a8] sm:$0xff] }
 0x6f5   :  { %2403 = vmatpush1.msra.mxu0 %v4569_v47  ;;  %2326 = vmatpush1.msra.mxu1 %v4570_v6  ;;  %v4616_v47 = vld [vmem:[%s8376_s4 + $0x1a8] sm:$0xff]  ;;  %v4617_v6 = vld [vmem:[%s8376_s4 + $0x3a0] sm:$0xff] }
 0x6f6   :  { %2404 = vmatprep.subr.mxu0 %v4571_v0  ;;  %2327 = vmatprep.subr.mxu1 %v4572_v7  ;;  %v4618_v0 = vld [vmem:[%s8376_s4 + $0x1a0] sm:$0xff]  ;;  %v4619_v7 = vld [vmem:[%s8376_s4 + $0x398] sm:$0xff] }
 0x6f7   :  { %2405 = vmatpush1.msra.mxu0 %v4573_v24  ;;  %2328 = vmatpush1.msra.mxu1 %v4574_v30  ;;  %v4620_v24 = vld [vmem:[%s8376_s4 + $0x198] sm:$0xff]  ;;  %v4621_v30 = vld [vmem:[%s8376_s4 + $0x390] sm:$0xff] }
 0x6f8   :  { %2406 = vmatprep.subr.mxu0 %v4575_v11  ;;  %2329 = vmatprep.subr.mxu1 %v4576_v56  ;;  %v4622_v11 = vld [vmem:[%s8376_s4 + $0x190] sm:$0xff]  ;;  %v4623_v56 = vld [vmem:[%s8376_s4 + $0x388] sm:$0xff] }
 0x6f9   :  { %2407 = vmatpush1.msra.mxu0 %v4577_v60  ;;  %2330 = vmatpush1.msra.mxu1 %v4578_v34  ;;  %v4624_v60 = vld [vmem:[%s8376_s4 + $0x188] sm:$0xff]  ;;  %v4625_v34 = vld [vmem:[%s8376_s4 + $0x380] sm:$0xff] }
 0x6fa   :  { %2408 = vmatprep.subr.mxu0 %v4579_v4  ;;  %2331 = vmatprep.subr.mxu1 %v4580_v13  ;;  %v4626_v4 = vld [vmem:[%s8376_s4 + $0x180] sm:$0xff]  ;;  %v4627_v13 = vld [vmem:[%s8376_s4 + $0x378] sm:$0xff] }
 0x6fb   :  { %2409 = vmatpush1.msra.mxu0 %v4581_v38  ;;  %2332 = vmatpush1.msra.mxu1 %v4582_v2  ;;  %v4628_v38 = vld [vmem:[%s8376_s4 + $0x178] sm:$0xff]  ;;  %v4629_v2 = vld [vmem:[%s8376_s4 + $0x370] sm:$0xff] }
 0x6fc   :  { %2410 = vmatprep.subr.mxu0 %v4583_v5  ;;  %2333 = vmatprep.subr.mxu1 %v4584_v32  ;;  %v4630_v5 = vld [vmem:[%s8376_s4 + $0x170] sm:$0xff]  ;;  %v4631_v32 = vld [vmem:[%s8376_s4 + $0x368] sm:$0xff] }
 0x6fd   :  { %2411 = vmatpush1.msra.mxu0 %v4585_v26  ;;  %2334 = vmatpush1.msra.mxu1 %v4586_v49  ;;  %v4632_v26 = vld [vmem:[%s8376_s4 + $0x168] sm:$0xff]  ;;  %v4633_v49 = vld [vmem:[%s8376_s4 + $0x360] sm:$0xff] }
 0x6fe   :  { %2412 = vmatprep.subr.mxu0 %v4587_v19  ;;  %2335 = vmatprep.subr.mxu1 %v4588_v22  ;;  %v4634_v19 = vld [vmem:[%s8376_s4 + $0x160] sm:$0xff]  ;;  %v4635_v22 = vld [vmem:[%s8376_s4 + $0x358] sm:$0xff] }
 0x6ff   :  { %2413 = vmatpush1.msra.mxu0 %v4589_v25  ;;  %2336 = vmatpush1.msra.mxu1 %v4590_v29  ;;  %v4636_v25 = vld [vmem:[%s8376_s4 + $0x158] sm:$0xff]  ;;  %v4637_v29 = vld [vmem:[%s8376_s4 + $0x350] sm:$0xff] }
 0x700   :  { %2414 = vmatprep.subr.mxu0 %v4591_v31  ;;  %2337 = vmatprep.subr.mxu1 %v4592_v20  ;;  %v4638_v31 = vld [vmem:[%s8376_s4 + $0x150] sm:$0xff]  ;;  %v4639_v20 = vld [vmem:[%s8376_s4 + $0x348] sm:$0xff] }
 0x701   :  { %2415 = vmatpush1.msra.mxu0 %v4593_v33  ;;  %2338 = vmatpush1.msra.mxu1 %v4594_v8  ;;  %v4640_v33 = vld [vmem:[%s8376_s4 + $0x148] sm:$0xff]  ;;  %v4641_v8 = vld [vmem:[%s8376_s4 + $0x340] sm:$0xff] }
 0x702   :  { %2416 = vmatprep.subr.mxu0 %v4595_v39  ;;  %2339 = vmatprep.subr.mxu1 %v4596_v15  ;;  %v4642_v39 = vld [vmem:[%s8376_s4 + $0x140] sm:$0xff]  ;;  %v4643_v15 = vld [vmem:[%s8376_s4 + $0x338] sm:$0xff] }
 0x703   :  { %2417 = vmatpush2.msra.mxu0 %v4597_v42  ;;  %2340 = vmatpush2.msra.mxu1 %v4598_v28  ;;  %v4644_v42 = vld [vmem:[%s8376_s4 + $0x138] sm:$0xff]  ;;  %v4645_v28 = vld [vmem:[%s8376_s4 + $0x330] sm:$0xff] }
 0x704   :  { %2418 = vmatprep.subr.mxu0 %v4599_v45  ;;  %2341 = vmatprep.subr.mxu1 %v4600_v48  ;;  %v4646_v45 = vld [vmem:[%s8376_s4 + $0x130] sm:$0xff]  ;;  %v4647_v48 = vld [vmem:[%s8376_s4 + $0x328] sm:$0xff] }
 0x705   :  { %2419 = vmatpush2.msra.mxu0 %v4601_v50  ;;  %2342 = vmatpush2.msra.mxu1 %v4602_v12  ;;  %v4648_v50 = vld [vmem:[%s8376_s4 + $0x128] sm:$0xff]  ;;  %v4649_v12 = vld [vmem:[%s8376_s4 + $0x320] sm:$0xff] }
 0x706   :  { %2420 = vmatprep.subr.mxu0 %v4603_v40  ;;  %2343 = vmatprep.subr.mxu1 %v4604_v53  ;;  %v4650_v40 = vld [vmem:[%s8376_s4 + $0x120] sm:$0xff]  ;;  %v4651_v53 = vld [vmem:[%s8376_s4 + $0x318] sm:$0xff] }
 0x707   :  { %2421 = vmatpush2.msra.mxu0 %v4605_v43  ;;  %2344 = vmatpush2.msra.mxu1 %v4606_v55  ;;  %v4652_v43 = vld [vmem:[%s8376_s4 + $0x118] sm:$0xff]  ;;  %v4653_v55 = vld [vmem:[%s8376_s4 + $0x310] sm:$0xff] }
 0x708   :  { %2422 = vmatprep.subr.mxu0 %v4607_v44  ;;  %2345 = vmatprep.subr.mxu1 %v4608_v58  ;;  %v4654_v44 = vld [vmem:[%s8376_s4 + $0x110] sm:$0xff]  ;;  %v4655_v58 = vld [vmem:[%s8376_s4 + $0x308] sm:$0xff] }
 0x709   :  { %2423 = vmatpush2.msra.mxu0 %v4609_v59  ;;  %2346 = vmatpush2.msra.mxu1 %v4610_v3  ;;  %v4656_v59 = vld [vmem:[%s8376_s4 + $0x108] sm:$0xff]  ;;  %v4657_v3 = vld [vmem:[%s8376_s4 + $0x300] sm:$0xff] }
 0x70a   :  { %2424 = vmatprep.subr.mxu0 %v4611_v10  ;;  %2347 = vmatprep.subr.mxu1 %v4612_v61  ;;  %v4658_v10 = vld [vmem:[%s8376_s4 + $0x100] sm:$0xff]  ;;  %v7789_v61 = vld [vmem:[%s8378_s7 + $0x18] sm:$0xff]  ;;  %s7793_s4 = spop %4058 }
 0x70b   :  { %2425 = vmatpush2.msra.mxu0 %v4613_v18  ;;  %2348 = vmatpush2.msra.mxu1 %v4614_v51  ;;  %s7795_s18 = spop %4060  ;;  %v2527_v18 = vstv %s7614_s12  ;;  %v2533_v51 = vstv %s7628_s20 }
 0x70c   :  { %2426 = vmatprep.subr.mxu0 %v4615_v62  ;;  %2349 = vmatprep.subr.mxu1 %v4616_v47  ;;  %s7797_s21 = spop %4062  ;;  %v2658_v62 = vstv %s7784_s14  ;;  %v2663_v47 = vstv %s7793_s4  ;;  %s8883_s4 = sld [smem:[#allocation158_spill]] }
 0x70d   :  { %2427 = vmatpush2.msra.mxu0 %v4617_v6  ;;  %2350 = vmatpush2.msra.mxu1 %v4618_v0  ;;  %s7799_s22 = spop %4064  ;;  %v2611_v6 = vsel %vm2610_vm5, %v2527_v18, %v2533_v51  ;;  %v2539_v0 = vstv %s7642_s29 }
 0x70e   :  { %2428 = vmatprep.subr.mxu0 %v4619_v7  ;;  %2351 = vmatprep.subr.mxu1 %v4620_v24  ;;  %s7801_s26 = spop %4066  ;;  %v2734_v7 = vsel %vm2610_vm5, %v2658_v62, %v2663_v47  ;;  %v2668_v24 = vstv %s7795_s18 }
 0x70f   :  { %2429 = vmatpush2.msra.mxu0 %v4621_v30  ;;  %2352 = vmatpush2.msra.mxu1 %v4622_v11  ;;  %s7803_s27 = spop %4068 }
 0x710   :  { %2430 = vmatprep.subr.mxu0 %v4623_v56  ;;  %2353 = vmatprep.subr.mxu1 %v4624_v60  ;;  %s7805_s9 = spop %4070 }
 0x711   :  { %2431 = vmatpush2.msra.mxu0 %v4625_v34  ;;  %2354 = vmatpush2.msra.mxu1 %v4626_v4  ;;  %s7807_s17 = spop %4072  ;;  %v2613_v34 = vsel %vm2612_vm6, %v2611_v6, %v2539_v0  ;;  %v2545_v4 = vstv %s7656_s16  ;;  %v2693_v51 = vstv %s7805_s9  ;;  %s8878_s9 = sld [smem:[#allocation156_spill]] }
 0x712   :  { %2432 = vmatprep.subr.mxu0 %v4627_v13  ;;  %2355 = vmatprep.subr.mxu1 %v4628_v38  ;;  %8862 = sst [smem:[#allocation162_spill]] %s7807_s17  ;;  %s7809_s2 = spop %4074  ;;  %v2735_v13 = vsel %vm2612_vm6, %v2734_v7, %v2668_v24  ;;  %v2673_v38 = vstv %s7797_s21 }
 0x713   :  { %2433 = vmatpush2.msra.mxu0 %v4629_v2  ;;  %2356 = vmatpush2.msra.mxu1 %v4630_v5  ;;  %8863 = sst [smem:[#allocation163_spill]] %s7809_s2  ;;  %s7811_s6 = spop %4076 }
 0x714   :  { %2434 = vmatprep.subr.mxu0 %v4631_v32  ;;  %2357 = vmatprep.subr.mxu1 %v4632_v26  ;;  %8864 = sst [smem:[#allocation164_spill]] %s7811_s6  ;;  %s7813_s0 = spop %4078 }
 0x715   :  { %2435 = vmatpush2.msra.mxu0 %v4633_v49  ;;  %2358 = vmatpush2.msra.mxu1 %v4634_v19  ;;  %8865 = sst [smem:[#allocation165_spill]] %s7813_s0  ;;  %s7815_s8 = spop %4080  ;;  %v2615_v49 = vsel %vm2614_vm7, %v2613_v34, %v2545_v4  ;;  %v2551_v19 = vstv %s7670_s25 }
 0x716   :  { %2436 = vmatprep.subr.mxu0 %v4635_v22  ;;  %2359 = vmatprep.subr.mxu1 %v4636_v25  ;;  %8866 = sst [smem:[#allocation166_spill]] %s7815_s8  ;;  %s7817_s5 = spop %4082  ;;  %v2736_v22 = vsel %vm2614_vm7, %v2735_v13, %v2673_v38  ;;  %v2678_v25 = vstv %s7799_s22 }
 0x717   :  { %2437 = vmatpush2.msra.mxu0 %v4637_v29  ;;  %2360 = vmatpush2.msra.mxu1 %v4638_v31  ;;  %8867 = sst [smem:[#allocation167_spill]] %s7817_s5  ;;  %s7819_s7 = spop %4084 }
 0x718   :  { %2438 = vmatprep.subr.mxu0 %v4639_v20  ;;  %2361 = vmatprep.subr.mxu1 %v4640_v33  ;;  %8868 = sst [smem:[#allocation168_spill]] %s7819_s7  ;;  %s7821_s10 = spop %4086 }
 0x719   :  { %2439 = vmatpush2.msra.mxu0 %v4641_v8  ;;  %2362 = vmatpush2.msra.mxu1 %v4642_v39  ;;  %8869 = sst [smem:[#allocation169_spill]] %s7821_s10  ;;  %s7823_s1 = spop %4088  ;;  %v2617_v8 = vsel %vm2616_vm8, %v2615_v49, %v2551_v19  ;;  %v2557_v39 = vstv %s7684_s13 }
 0x71a   :  { %2440 = vmatprep.subr.mxu0 %v4643_v15  ;;  %2363 = vmatprep.subr.mxu1 %v4644_v42  ;;  %s7825_s30 = spop %4090  ;;  %v2767_v30 = vstv %s7823_s1  ;;  %v2737_v15 = vsel %vm2616_vm8, %v2736_v22, %v2678_v25  ;;  %v2683_v42 = vstv %s7801_s26  ;;  %s8874_s13 = sld [smem:[#allocation154_spill]]  ;;  %v2584_v25 = vstv %s8878_s9 }
 0x71b   :  { %2441 = vmatpush2.msra.mxu0 %v4645_v28  ;;  %2364 = vmatpush2.msra.mxu1 %v4646_v45  ;;  %s7827_s3 = spop %4092  ;;  %v2772_v11 = vstv %s7825_s30  ;;  %s8880_s30 = sld [smem:[#allocation157_spill]] }
 0x71c   :  { %2442 = vmatprep.subr.mxu0 %v4647_v48  ;;  %2365 = vmatprep.subr.mxu1 %v4648_v50  ;;  %s7829_s19 = spop %4094  ;;  %v2843_v2 = vsel %vm2610_vm5, %v2767_v30, %v2772_v11  ;;  %v2777_v5 = vstv %s7827_s3  ;;  %s8886_s22 = sld [smem:[#allocation159_spill]] }
 0x71d   :  { %2443 = vmatpush2.msra.mxu0 %v4649_v12  ;;  %2366 = vmatpush2.msra.mxu1 %v4650_v40  ;;  %s7831_s0 = spop %4096  ;;  %v2844_v29 = vsel %vm2612_vm6, %v2843_v2, %v2777_v5  ;;  %v2782_v31 = vstv %s7829_s19  ;;  %v2619_v12 = vsel %vm2618_vm9, %v2617_v8, %v2557_v39  ;;  %v2563_v40 = vstv %s7698_s23  ;;  %s8876_s23 = sld [smem:[#allocation155_spill]] }
 0x71e   :  { %2444 = vmatprep.subr.mxu0 %v4651_v53  ;;  %2367 = vmatprep.subr.mxu1 %v4652_v43  ;;  %s7833_s8 = spop %4098  ;;  %v2845_v28 = vsel %vm2614_vm7, %v2844_v29, %v2782_v31  ;;  %v2787_v45 = vstv %s7831_s0  ;;  %v2738_v53 = vsel %vm2618_vm9, %v2737_v15, %v2683_v42  ;;  %v2688_v43 = vstv %s7803_s27  ;;  %s8875_s0 = sld [smem:[#allocation162_spill]] }
 0x71f   :  { %2445 = vmatpush2.msra.mxu0 %v4653_v55  ;;  %2368 = vmatpush2.msra.mxu1 %v4654_v44  ;;  %s7835_s5 = spop %4100  ;;  %v2846_v55 = vsel %vm2616_vm8, %v2845_v28, %v2787_v45  ;;  %v2792_v44 = vstv %s7833_s8  ;;  %v2739_v18 = vsel %vm2620_vm10, %v2738_v53, %v2688_v43  ;;  %s8877_s8 = sld [smem:[#allocation163_spill]]  ;;  %v2594_v43 = vstv %s8883_s4 }
 0x720   :  { %2446 = vmatprep.subr.mxu0 %v4655_v58  ;;  %2369 = vmatprep.subr.mxu1 %v4656_v59  ;;  %8870 = sst [smem:[#allocation170_spill]] %s7835_s5  ;;  %s7837_s7 = spop %4102  ;;  %v2847_v62 = vsel %vm2618_vm9, %v2846_v55, %v2792_v44  ;;  %v2574_v24 = vstv %s8874_s13  ;;  %v2740_v30 = vsel %vm2622_vm11, %v2739_v18, %v2693_v51 }
 0x721   :  { %2447 = vmatpush2.msra.mxu0 %v4657_v3  ;;  %2370 = vmatpush2.msra.mxu1 %v4658_v10  ;;  %s7839_s10 = spop %4104  ;;  %s8873_s25 = sld [smem:[#allocation170_spill]]  ;;  %v2621_v3 = vsel %vm2620_vm10, %v2619_v12, %v2563_v40  ;;  %v2569_v10 = vstv %s7712_s11  ;;  %v2589_v42 = vstv %s8880_s30 }
 0x722   :  { %3080 = vmatprep.subr.mxu0 %v7789_v61  ;;  %3006 = vmatprep.subr.mxu1 %v7789_v61  ;;  %s7841_s6 = spop %4106  ;;  %v2623_v7 = vsel %vm2622_vm11, %v2621_v3, %v2569_v10  ;;  %s8879_s11 = sld [smem:[#allocation164_spill]]  ;;  %v2599_v51 = vstv %s8886_s22 }
 0x723   :  { %s7843_s28 = spop %4108  ;;  %v2625_v13 = vsel %vm2624_vm12, %v2623_v7, %v2574_v24  ;;  %v2579_v38 = vstv %s8876_s23  ;;  %s8888_s27 = sld [smem:[#allocation160_spill]] }
 0x724   :  { %8871 = sst [smem:[#allocation171_spill]] %s7843_s28  ;;  %s7845_s2 = spop %4110  ;;  %v2698_v11 = vstv %s8875_s0  ;;  %v2627_v22 = vsel %vm2626_vm13, %v2625_v13, %v2579_v38 }
 0x725   :  { %8872 = sst [smem:[#allocation172_spill]] %s7845_s2  ;;  %s7847_s15 = spop %4112  ;;  %v2741_v2 = vsel %vm2624_vm12, %v2740_v30, %v2698_v11  ;;  %v2703_v5 = vstv %s8877_s8  ;;  %v2629_v15 = vsel %vm2628_vm14, %v2627_v22, %v2584_v25 }
 0x726   :  { %s7849_s17 = spop %4114  ;;  %s8882_s14 = sld [smem:[#allocation171_spill]]  ;;  %v2742_v29 = vsel %vm2626_vm13, %v2741_v2, %v2703_v5  ;;  %v2631_v53 = vsel %vm2630_vm15, %v2629_v15, %v2589_v42  ;;  %v3271_v5 = vlaneseq }
 0x727   :  { %s7851_s24 = spop %4116  ;;  %v2797_v47 = vstv %s8873_s25  ;;  %s8885_s21 = sld [smem:[#allocation172_spill]]  ;;  %v2633_v18 = vsel %vm2632_vm0, %v2631_v53, %v2594_v43  ;;  %v2832_v13 = vstv %s7849_s17 }
 0x728   :  { %s7853_s5 = spop %4118  ;;  %v2708_v31 = vstv %s8879_s11  ;;  %v2635_v30 = vsel %vm2634_vm1, %v2633_v18, %v2599_v51  ;;  %v2837_v25 = vstv %s7851_s24  ;;  %s8892_s17 = sld [smem:[#allocation174_spill]] }
 0x729   :  { %s4121_s28 = spop %4120  ;;  %v2743_v28 = vsel %vm2628_vm14, %v2742_v29, %v2708_v31  ;;  %v2604_v11 = vstv %s8888_s27  ;;  %v2842_v42 = vstv %s7853_s5  ;;  %s8897_s9 = sld [smem:[#allocation175_spill]] }
 0x72a   :  { %s4123_s2 = spop %4122  ;;  %v2876_v56 = vstv %s4121_s28  ;;  %s8899_s23 = sld [smem:[#allocation173_spill]] }
 0x72b   :  { %v2881_v60 = vstv %s4123_s2  ;;  %s4125_s12 = spop %4124  ;;  %s8889_s2 = sld [smem:[#allocation168_spill]] }
 0x72c   :  { %v2952_v32 = vsel %vm2610_vm5, %v2876_v56, %v2881_v60  ;;  %v2886_v26 = vstv %s4125_s12  ;;  %s4127_s20 = spop %4126  ;;  %v2848_v56 = vsel %vm2620_vm10, %v2847_v62, %v2797_v47  ;;  %v2802_v60 = vstv %s7837_s7  ;;  %s8881_s7 = sld [smem:[#allocation165_spill]] }
 0x72d   :  { %v2953_v20 = vsel %vm2612_vm6, %v2952_v32, %v2886_v26  ;;  %v2891_v33 = vstv %s4127_s20  ;;  %s4129_s29 = spop %4128  ;;  %v2849_v32 = vsel %vm2622_vm11, %v2848_v56, %v2802_v60  ;;  %v2807_v26 = vstv %s7839_s10  ;;  %s8884_s10 = sld [smem:[#allocation166_spill]] }
 0x72e   :  { %v2954_v48 = vsel %vm2614_vm7, %v2953_v20, %v2891_v33  ;;  %v2896_v50 = vstv %s4129_s29  ;;  %s4131_s16 = spop %4130  ;;  %v2850_v20 = vsel %vm2624_vm12, %v2849_v32, %v2807_v26  ;;  %v2812_v33 = vstv %s7841_s6  ;;  %s8887_s6 = sld [smem:[#allocation167_spill]] }
 0x72f   :  { %v2955_v58 = vsel %vm2616_vm8, %v2954_v48, %v2896_v50  ;;  %v2901_v59 = vstv %s4131_s16  ;;  %s4133_s28 = spop %4132  ;;  %v2851_v48 = vsel %vm2626_vm13, %v2850_v20, %v2812_v33  ;;  %v2817_v50 = vstv %s8882_s14  ;;  %s8890_s20 = sld [smem:[#allocation161_spill]] }
 0x730   :  { %v2956_v6 = vsel %vm2618_vm9, %v2955_v58, %v2901_v59  ;;  %v2906_v0 = vstv %s4133_s28  ;;  %s4135_s19 = spop %4134  ;;  %v2852_v58 = vsel %vm2628_vm14, %v2851_v48, %v2817_v50  ;;  %v2822_v59 = vstv %s8885_s21  ;;  %s8891_s16 = sld [smem:[#allocation169_spill]] }
 0x731   :  { %v2957_v34 = vsel %vm2620_vm10, %v2956_v6, %v2906_v0  ;;  %v2911_v4 = vstv %s4135_s19  ;;  %s4137_s3 = spop %4136  ;;  %v2853_v6 = vsel %vm2630_vm15, %v2852_v58, %v2822_v59  ;;  %v2827_v0 = vstv %s7847_s15  ;;  %v3457_v58 = vpop.permute.xlu0 %3456 }
 0x732   :  { %v2958_v49 = vsel %vm2622_vm11, %v2957_v34, %v2911_v4  ;;  %v2916_v19 = vstv %s4137_s3  ;;  %s4139_s1 = spop %4138  ;;  %v2713_v45 = vstv %s8881_s7  ;;  %v2728_v60 = vstv %s8889_s2  ;;  %v7946_v34 = vpop.permute.xlu1 %3460  ;;  %s8901_s2 = sld [smem:[#allocation178_spill]] }
 0x733   :  { %v2959_v8 = vsel %vm2624_vm12, %v2958_v49, %v2916_v19  ;;  %v2921_v39 = vstv %s4139_s1  ;;  %s4141_s18 = spop %4140  ;;  %v2744_v55 = vsel %vm2630_vm15, %v2743_v28, %v2713_v45  ;;  %v2718_v44 = vstv %s8884_s10  ;;  %s8900_s1 = sld [smem:[#allocation177_spill]] }
 0x734   :  { %v2960_v12 = vsel %vm2626_vm13, %v2959_v8, %v2921_v39  ;;  %v2926_v40 = vstv %s4141_s18  ;;  %s4143_s26 = spop %4142  ;;  %v2745_v62 = vsel %vm2632_vm0, %v2744_v55, %v2718_v44  ;;  %v2723_v47 = vstv %s8887_s6  ;;  %s8898_s18 = sld [smem:[#allocation176_spill]] }
 0x735   :  { %v2961_v3 = vsel %vm2628_vm14, %v2960_v12, %v2926_v40  ;;  %v2931_v10 = vstv %s4143_s26  ;;  %s4145_s12 = spop %4144  ;;  %v2746_v56 = vsel %vm2634_vm1, %v2745_v62, %v2723_v47  ;;  %v2854_v4 = vsel %vm2632_vm0, %v2853_v6, %v2827_v0 }
 0x736   :  { %v2962_v7 = vsel %vm2630_vm15, %v2961_v3, %v2931_v10  ;;  %v2936_v24 = vstv %s4145_s12  ;;  %s4147_s29 = spop %4146  ;;  %v2637_v32 = vsel %vm2636_vm2, %v2635_v30, %v2604_v11  ;;  %v2609_v26 = vstv %s8890_s20  ;;  %v7962_v8 = vpop.permute.xlu1 %3439 }
 0x737   :  { %v2963_v38 = vsel %vm2632_vm0, %v2962_v7, %v2936_v24  ;;  %v2941_v2 = vstv %s4147_s29  ;;  %s4149_s15 = spop %4148  ;;  %v2747_v49 = vsel %vm2636_vm2, %v2746_v56, %v2728_v60  ;;  %v2733_v19 = vstv %s8891_s16  ;;  %v3455_v7 = vpop.permute.xlu0 %3454 }
 0x738   :  { %v2855_v22 = vsel %vm2634_vm1, %v2854_v4, %v2832_v13  ;;  %v2964_v29 = vsel %vm2634_vm1, %v2963_v38, %v2941_v2  ;;  %v2946_v31 = vstv %s4149_s15  ;;  %s4151_s25 = spop %4150  ;;  %v7959_v20 = vsel %vm2638_vm3, %v2637_v32, %v2609_v26 }
 0x739   :  { %v2748_v33 = vsel %vm2638_vm3, %v2747_v49, %v2733_v19  ;;  %v7965_v39 = vand.u32 127, %v3271_v5  ;;  %v2856_v15 = vsel %vm2636_vm2, %v2855_v22, %v2837_v25  ;;  %v2965_v28 = vsel %vm2636_vm2, %v2964_v29, %v2946_v31  ;;  %v7994_v19 = vld [vmem:[%s8892_s17 + $0x10] sm:$0xff]  ;;  %v8003_v31 = vld [vmem:[%s8892_s17 + $0x8] sm:$0xff] }
 0x73a   :  { %v2951_v45 = vstv %s4151_s25  ;;  %v2967_v48 = vsub.f32 %v2748_v33, %v7959_v20  ;;  %v7973_v40 = vsel %vm2638_vm3, %v2856_v15, %v2842_v42  ;;  %v7976_v44 = vpop.permute.xlu1 %3443  ;;  %vm4674_vm11 = vmmov 0  }
 0x73b   :  { %v3422_v12 = vadd.s32 128, %v7965_v39  ;;  %v2966_v53 = vsel %vm2638_vm3, %v2965_v28, %v2951_v45  ;;  %v3423_v6 = vand.u32 15, %v7965_v39  ;;  %vm3462_vm6 = vcmp.lt.s32.totalorder %v7965_v39, 1  ;;  %v3438_v15 = vpop.permute.xlu0 %3437 }
 0x73c   :  { %v2968_v59 = vadd.f32 1e-08, %v2967_v48  ;;  %v2971_v18 = vsub.f32 %v2966_v53, %v7973_v40  ;;  %v3464_v26 = vsel %vm3462_vm6, %v3457_v58, %v7946_v34  ;;  %v3466_v29 = vsel %vm3462_vm6, %v7946_v34, %v3457_v58 }
 0x73d   :  { %v3424_v51 = vand.u32 15, %v3422_v12  ;;  %vm3425_vm7 = vcmp.ne.s32.totalorder %v3423_v6, 0  ;;  %vm3445_vm9 = vcmp.lt.s32.totalorder %v7965_v39, 127  ;;  %vm8012_vm10 = vcmp.ne.s32.totalorder %v3423_v6, 15  ;;  %v3911_v12 = vld [vmem:[%s8897_s9 + $0x18] sm:$0xff] }
 0x73e   :  { %v3459_v0 = vpop.permute.xlu1 %3458  ;;  %4205 = vrcp.f32 %v2968_v59  ;;  %v2972_v11 = vadd.f32 1e-08, %v2971_v18  ;;  %v3964_v25 = vsel %vm3425_vm7, 1.0, %v8580_v37 }
 0x73f   :  { %vm3426_vm5 = vcmp.ne.s32.totalorder %v3424_v51, 0  ;;  %v3463_v49 = vsel %vm3462_vm6, %v3455_v7, %v3459_v0  ;;  %vm8005_vm8 = vcmp.ne.s32.totalorder %v3424_v51, 15  ;;  %v3465_v34 = vsel %vm3462_vm6, %v3459_v0, %v3455_v7 }
 0x740   :  { %v3965_v32 = vsel %vm3426_vm5, 1.0, %v8580_v37  ;;  %4207 = vrcp.f32 %v2972_v11  ;;  %v8021_v58 = vmul.f32 %v3964_v25, %v3466_v29  ;;  %v3967_v51 = vsel %vm8005_vm8, 1.0, %v8580_v37 }
 0x741   :  { %v8016_v53 = vmul.f32 %v3965_v32, %v3464_v26  ;;  %v8037_v0 = vmul.f32 %v3964_v25, %v3465_v34  ;;  %v3966_v7 = vsel %vm8012_vm10, 1.0, %v8580_v37  ;;  %v3910_v34 = vld [vmem:[%s8897_s9 + $0x10] sm:$0xff] }
 0x742   :  { %v3442_v33 = vpop.permute.xlu1 %3441 }
 0x743   :  { %v3448_v18 = vsel %vm3445_vm9, %v3442_v33, %v3438_v15  ;;  %v3478_v11 = vmul.f32 3.0, %v8016_v53 }
 0x79a   :  { %v2187_v50 = vpop.f32.mrf.mxu1 }
 0x79c   :  { %v2189_v43 = vpop.f32.mrf.mxu1  ;;  %v2276_v55 = vpop.f32.mrf.mxu0 }
 0x79e   :  { %v7978_v3 = vpop.f32.mrf.mxu1  ;;  %v2278_v10 = vpop.f32.mrf.mxu0 }
 0x7a0   :  { %v7981_v62 = vpop.f32.mrf.mxu1  ;;  %v2282_v47 = vpop.f32.mrf.mxu0 }
 0x7a2   :  { %v2199_v24 = vpop.f32.mrf.mxu1  ;;  %v2284_v30 = vpop.f32.mrf.mxu0 }
 0x7a3   :  { %v2303_v13 = vadd.f32 %v2276_v55, %v2199_v24  ;;  %v3447_v24 = vsel %vm3445_vm9, %v7962_v8, %v7976_v44 }
 0x7a4   :  { %v2201_v56 = vpop.f32.mrf.mxu1  ;;  %v2288_v60 = vpop.f32.mrf.mxu0 }
 0x7a5   :  { %v2304_v4 = vadd.f32 %v2278_v10, %v2201_v56  ;;  %v2299_v42 = vsub.f32 %v2187_v50, %v2288_v60  ;;  %v8018_v50 = vmul.f32 %v3965_v32, %v3463_v49  ;;  %v305_v10 = vld [vmem:[%s8892_s17] sm:$0xff]  ;;  %v3451_v60 = vmul.f32 %v3967_v51, %v3448_v18 }
 0x7a6   :  { %v2205_v38 = vpop.f32.mrf.mxu1  ;;  %v2290_v2 = vpop.f32.mrf.mxu0  ;;  %v317_v18 = vld [vmem:[%s8898_s18 + $0x40] sm:$0xff] }
 0x7a7   :  { %v2300_v22 = vsub.f32 %v2189_v43, %v2290_v2  ;;  %2448 = vmatprep.mubr.f32.mxu0 %v2304_v4  ;;  %v2305_v55 = vadd.f32 %v2282_v47, %v2205_v38  ;;  %v3449_v47 = vsel %vm3445_vm9, %v7976_v44, %v7962_v8  ;;  %v3476_v56 = vmul.f32 3.0, %v8018_v50  ;;  %v4206_v44 = vpop.eup %4205 }
 0x7a8   :  { %v2207_v45 = vpop.f32.mrf.mxu1  ;;  %v2294_v48 = vpop.f32.mrf.mxu0  ;;  %2449 = vmatmul.mubr.f32.vlgmr.msra.gmra.mxu0 %v2303_v13  ;;  %v3480_v4 = vmul.f32 10.0, %v7322_v1  ;;  %v3481_v13 = vmul.f32 10.0, %v7311_v16  ;;  %v3453_v38 = vmul.f32 %v3967_v51, %v3449_v47  ;;  %v3477_v8 = vmul.f32 3.0, %v8021_v58  ;;  %v316_v51 = vld [vmem:[%s8898_s18 + $0x38] sm:$0xff] }
 0x7a9   :  { %v2306_v43 = vadd.f32 %v2284_v30, %v2207_v45  ;;  %2371 = vmatprep.mubr.f32.mxu1 %v2300_v22  ;;  %3081 = vmatpush1.msra.mxu0 %v7994_v19  ;;  %v2301_v30 = vsub.f32 %v7978_v3, %v2294_v48  ;;  %v3479_v3 = vmul.f32 10.0, %v7319_v21  ;;  %v3475_v2 = vmul.f32 3.0, %v8037_v0  ;;  %v296_v48 = vld [vmem:[%s8897_s9] sm:$0xff]  ;;  %v4659_v47 = vld [vmem:[%s8899_s23 + $0x18] sm:$0xff] }
 0x7aa   :  { %v2296_v59 = vpop.f32.mrf.mxu0  ;;  %2372 = vmatmul.mubr.f32.vlgmr.msra.gmra.mxu1 %v2299_v42  ;;  %3082 = vmatprep.subr.mxu0 %v8003_v31  ;;  %v3452_v1 = vmul.f32 %v3966_v7, %v3447_v24  ;;  %v3490_v32 = vmul.f32 3.0, %v3453_v38  ;;  %v3488_v26 = vmul.f32 3.0, %v3451_v60  ;;  %v3484_v49 = vadd.f32 %v3480_v4, %v3476_v56  ;;  %v315_v24 = vld [vmem:[%s8898_s18 + $0x30] sm:$0xff] }
 0x7ab   :  { %v2302_v6 = vsub.f32 %v7981_v62, %v2296_v59  ;;  %2454 = vmatprep.mubr.f32.mxu0 %v2306_v43  ;;  %3007 = vmatpush1.msra.mxu1 %v7994_v19  ;;  %v3482_v62 = vmul.f32 10.0, %v7283_v46  ;;  %v3446_v46 = vsel %vm3445_vm9, %v3438_v15, %v3442_v33  ;;  %v3485_v22 = vadd.f32 %v3481_v13, %v3477_v8  ;;  %v4208_v33 = vpop.eup %4207  ;;  %v323_v43 = vld [vmem:[%s8898_s18 + $0x70] sm:$0xff]  ;;  %v4664_v13 = vld [vmem:[%s8899_s23 + $0x28] sm:$0xff] }
 0x7ac   :  { %2455 = vmatmul.mubr.f32.gmra.mxu0 %v2305_v55  ;;  %3008 = vmatprep.subr.mxu1 %v8003_v31  ;;  %v3450_v16 = vmul.f32 %v3966_v7, %v3446_v46  ;;  %v3489_v21 = vmul.f32 3.0, %v3452_v1  ;;  %v3483_v25 = vadd.f32 %v3479_v3, %v3475_v2  ;;  %v3492_v42 = vadd.f32 %v3488_v26, %v3484_v49  ;;  %v321_v55 = vld [vmem:[%s8898_s18 + $0x60] sm:$0xff]  ;;  %v319_v59 = vld [vmem:[%s8898_s18 + $0x50] sm:$0xff]  ;;  %v314_v46 = vld [vmem:[%s8898_s18 + $0x28] sm:$0xff] }
 0x7ad   :  { %2377 = vmatprep.mubr.f32.mxu1 %v2302_v6  ;;  %3083 = vmatpush1.msra.mxu0 %v305_v10  ;;  %v3486_v39 = vadd.f32 %v3482_v62, %v3478_v11  ;;  %v3383_v6 = vmul.f32 0.3, %v4659_v47  ;;  %v4662_v11 = vld [vmem:[%s8899_s23 + $0x30] sm:$0xff]  ;;  %v4665_v3 = vld [vmem:[%s8899_s23] sm:$0xff] }
 0x7ae   :  { %2378 = vmatmul.mubr.f32.gmra.mxu1 %v2301_v30  ;;  %3116 = vmatprep.mubr.f32.mxu0 %v8580_v37  ;;  %v3487_v29 = vmul.f32 3.0, %v3450_v16  ;;  %v3493_v28 = vadd.f32 %v3489_v21, %v3485_v22  ;;  %v3471_v45 = vsub.f32 %v3450_v16, %v8037_v0  ;;  %v4660_v0 = vld [vmem:[%s8899_s23 + $0x38] sm:$0xff]  ;;  %v4661_v30 = vld [vmem:[%s8899_s23 + $0x10] sm:$0xff]  ;;  %v3386_v56 = vmul.f32 0.04, %v4662_v11 }
 0x7af   :  { %3009 = vmatpush1.msra.mxu1 %v305_v10  ;;  %3228 = vmatprep.subr.mxu0 %v7789_v61  ;;  %v3494_v15 = vadd.f32 %v3490_v32, %v3486_v39  ;;  %v3387_v7 = vmul.f32 0.04, %v4660_v0  ;;  %v3382_v62 = vmul.f32 0.3, %v4661_v30  ;;  %v3380_v2 = vmul.f32 0.3, %v4665_v3 }
 0x7b0   :  { %3961 = vmatmul.mubr.msk.f32.vlgmr.msra.gmra.mxu0 %vm567_vm4, %v4206_v44  ;;  %3042 = vmatprep.mubr.f32.mxu1 %v8580_v37  ;;  %v3405_v44 = vmul.f32 -0.6, %v4664_v13  ;;  %v3400_v16 = vmul.f32 0.34, %v4665_v3  ;;  %v313_v39 = vld [vmem:[%s8898_s18 + $0x20] sm:$0xff]  ;;  %v4667_v21 = vld [vmem:[%s8899_s23 + $0x58] sm:$0xff] }
 0x7b1   :  { %3154 = vmatprep.subr.mxu1 %v7789_v61  ;;  %3229 = vmatpush1.msra.mxu0 %v7994_v19  ;;  %v3474_v61 = vsub.f32 %v3453_v38, %v8016_v53  ;;  %v324_v53 = vld [vmem:[%s8898_s18 + $0x78] sm:$0xff]  ;;  %v3385_v38 = vmul.f32 0.04, %v4664_v13  ;;  %v3391_v49 = vadd.f32 %v3387_v7, %v3383_v6  ;;  %v3395_v22 = vmul.f32 -0.35, %v4667_v21 }
 0x7b2   :  { %3960 = vmatmul.mubr.msk.f32.vlgmr.msra.gmra.mxu1 %vm567_vm4, %v7959_v20  ;;  %3230 = vmatprep.subr.mxu0 %v8003_v31  ;;  %v3473_v20 = vsub.f32 %v3452_v1, %v8021_v58  ;;  %v320_v58 = vld [vmem:[%s8898_s18 + $0x58] sm:$0xff]  ;;  %v4666_v1 = vld [vmem:[%s8899_s23 + $0x20] sm:$0xff]  ;;  %v3407_v6 = vmul.f32 -0.6, %v4660_v0 }
 0x7b3   :  { %3155 = vmatpush1.msra.mxu1 %v7994_v19  ;;  %3231 = vmatpush1.msra.mxu0 %v305_v10  ;;  %v3491_v19 = vadd.f32 %v3487_v29, %v3483_v25  ;;  %v3384_v32 = vmul.f32 0.04, %v4666_v1  ;;  %v3404_v26 = vmul.f32 -0.6, %v4666_v1  ;;  %v3390_v25 = vadd.f32 %v3386_v56, %v3382_v62  ;;  %v4668_v29 = vld [vmem:[%s8899_s23 + $0x50] sm:$0xff] }
 0x7b4   :  { %3156 = vmatprep.subr.mxu1 %v8003_v31  ;;  %3264 = vmatprep.mubr.f32.mxu0 %v8580_v37  ;;  %v3472_v31 = vsub.f32 %v3451_v60, %v8018_v50  ;;  %v322_v50 = vld [vmem:[%s8898_s18 + $0x68] sm:$0xff]  ;;  %v3402_v56 = vmul.f32 0.34, %v4661_v30  ;;  %v3414_v30 = vmul.f32 0.17, %v4668_v29 }
 0x7b5   :  { %3157 = vmatpush1.msra.mxu1 %v305_v10  ;;  %3963 = vmatmul.mubr.msk.f32.vlgmr.msra.gmra.mxu0 %vm567_vm4, %v4208_v33  ;;  %v318_v10 = vld [vmem:[%s8898_s18 + $0x48] sm:$0xff]  ;;  %v3394_v33 = vmul.f32 -0.35, %v4668_v29 }
 0x7b6   :  { %3190 = vmatprep.mubr.f32.mxu1 %v8580_v37  ;;  %3529 = vmatprep.subr.mxu1 %v3474_v61  ;;  %v4663_v60 = vld [vmem:[%s8899_s23 + $0x8] sm:$0xff]  ;;  %v312_v61 = vld [vmem:[%s8898_s18 + $0x18] sm:$0xff] }
 0x7b7   :  { %3612 = vmatprep.subr.mxu0 %v3494_v15  ;;  %3962 = vmatmul.mubr.msk.f32.vlgmr.msra.gmra.mxu1 %vm567_vm4, %v7973_v40  ;;  %v297_v40 = vld [vmem:[%s8897_s9 + $0x8] sm:$0xff]  ;;  %v3381_v4 = vmul.f32 0.3, %v4663_v60  ;;  %v3401_v8 = vmul.f32 0.34, %v4663_v60 }
 0x7b8   :  { %3530 = vmatpush1.msra.mxu1 %v3473_v20  ;;  %3613 = vmatpush1.msra.mxu0 %v3493_v28  ;;  %v4669_v15 = vld [vmem:[%s8899_s23 + $0x48] sm:$0xff]  ;;  %v4670_v20 = vld [vmem:[%s8899_s23 + $0x40] sm:$0xff]  ;;  %v3406_v60 = vmul.f32 -0.6, %v4662_v11 }
 0x7b9   :  { %3531 = vmatprep.subr.mxu1 %v3472_v31  ;;  %3614 = vmatprep.subr.mxu0 %v3492_v42  ;;  %v3393_v42 = vmul.f32 -0.35, %v4669_v15  ;;  %v3392_v28 = vmul.f32 -0.35, %v4670_v20  ;;  %v3389_v31 = vadd.f32 %v3385_v38, %v3381_v4 }
 0x7ba   :  { %3532 = vmatpush1.msra.mxu1 %v3471_v45  ;;  %3565 = vmatprep.mubr.f32.mxu1 %v8580_v37  ;;  %v3413_v45 = vmul.f32 0.17, %v4669_v15  ;;  %v3410_v1 = vadd.f32 %v3406_v60, %v3402_v56 }
 0x7bb   :  { %3615 = vmatpush1.msra.mxu0 %v3491_v19  ;;  %3648 = vmatprep.mubr.f32.mxu0 %v8580_v37  ;;  %v3388_v19 = vadd.f32 %v3384_v32, %v3380_v2  ;;  %v3272_v32 = vshrl.u32 %v3271_v5, 7 }
 0x7bc   :  { %3968 = vmatmul.mubr.msk.f32.vlgmr.msra.gmra.mxu1 %vm567_vm4, %v296_v48  ;;  %3970 = vmatmul.mubr.msk.f32.vlgmr.msra.gmra.mxu0 %vm567_vm4, %v3910_v34  ;;  %v3412_v48 = vmul.f32 0.17, %v4670_v20  ;;  %v311_v34 = vld [vmem:[%s8898_s18 + $0x10] sm:$0xff]  ;;  %v8227_v20 = vadd.f32 %v3414_v30, %v3410_v1 }
 0x7bd   :  { %3571 = vmatprep.mubr.f32.mxu1 %v8580_v37  ;;  %3654 = vmatprep.mubr.f32.mxu0 %v8580_v37 }
 0x7be   :  { %3989 = vmatprep.subr.mxu1 %v8580_v37 }
 0x7bf   :  { %3990 = vmatpush3.msra.mxu1 %v324_v53  ;;  %v8191_v53 = vadd.f32 %v3395_v22, %v3391_v49 }
 0x7c0   :  { %3969 = vmatmul.mubr.msk.f32.gmra.mxu1 %vm567_vm4, %v297_v40  ;;  %3971 = vmatmul.mubr.msk.f32.gmra.mxu0 %vm567_vm4, %v3911_v12  ;;  %v3408_v40 = vadd.f32 %v3404_v26, %v3400_v16  ;;  %v3409_v12 = vadd.f32 %v3405_v44, %v3401_v8 }
 0x7c1   :  { %4021 = vmatprep.mubr.msk.f32.mxu1 %vm4674_vm11, %v8580_v37  ;;  %3991 = vmatprep.subr.mxu1 %v8580_v37  ;;  %v3748_v7 = vmul.f32 %v8191_v53, %v8191_v53 }
 0x7c2   :  { %3992 = vmatpush3.msra.mxu1 %v323_v43  ;;  %v8193_v43 = vadd.f32 %v3394_v33, %v3390_v25 }
 0x7c3   :  { %3993 = vmatprep.subr.mxu1 %v8580_v37 }
 0x7c4   :  { %3994 = vmatpush3.msra.mxu1 %v322_v50  ;;  %v310_v50 = vld [vmem:[%s8898_s18 + $0x8] sm:$0xff] }
 0x7c5   :  { %3995 = vmatprep.subr.mxu1 %v8580_v37 }
 0x7c6   :  { %3996 = vmatpush3.msra.mxu1 %v321_v55  ;;  %v8199_v55 = vadd.f32 %v3392_v28, %v3388_v19 }
 0x7c7   :  { %3997 = vmatprep.subr.mxu1 %v8580_v37 }
 0x7c8   :  { %3998 = vmatpush3.msra.mxu1 %v320_v58  ;;  %v8201_v58 = vadd.f32 %v3393_v42, %v3389_v31  ;;  %v3745_v4 = vmul.f32 %v8199_v55, %v8199_v55 }
 0x7c9   :  { %3999 = vmatprep.subr.mxu1 %v8580_v37 }
 0x7ca   :  { %4000 = vmatpush3.msra.mxu1 %v319_v59  ;;  %v309_v59 = vld [vmem:[%s8898_s18] sm:$0xff]  ;;  %v3747_v13 = vmul.f32 %v8201_v58, %v8201_v58 }
 0x7cb   :  { %4001 = vmatprep.subr.mxu1 %v8580_v37 }
 0x7cc   :  { %4002 = vmatpush3.msra.mxu1 %v318_v10  ;;  %v8207_v10 = vadd.f32 %v3412_v48, %v3408_v40  ;;  %v3749_v26 = vadd.f32 %v3747_v13, %v3745_v4  ;;  %v3739_v4 = vmul.f32 2.0, %v8199_v55 }
 0x7cd   :  { %4003 = vmatprep.subr.mxu1 %v8580_v37 }
 0x7ce   :  { %4004 = vmatpush3.msra.mxu1 %v317_v18  ;;  %v8209_v18 = vadd.f32 %v3413_v45, %v3409_v12  ;;  %v3763_v38 = vmul.f32 %v8207_v10, %v8207_v10  ;;  %v3751_v28 = vadd.f32 0.001999231, %v3749_v26 }
 0x7cf   :  { %4005 = vmatprep.subr.mxu1 %v8580_v37 }
 0x7d0   :  { %4006 = vmatpush3.msra.mxu1 %v316_v51  ;;  %v3403_v51 = vmul.f32 0.34, %v4659_v47  ;;  %v3765_v8 = vmul.f32 %v8209_v18, %v8209_v18 }
 0x7d1   :  { %4007 = vmatprep.subr.mxu1 %v8580_v37 }
 0x7d2   :  { %4008 = vmatpush3.msra.mxu1 %v315_v24  ;;  %v3746_v24 = vmul.f32 %v8193_v43, %v8193_v43  ;;  %v3411_v44 = vadd.f32 %v3407_v6, %v3403_v51  ;;  %v3767_v22 = vadd.f32 %v3765_v8, %v3763_v38 }
 0x7d3   :  { %4009 = vmatprep.subr.mxu1 %v8580_v37 }
 0x7d4   :  { %4010 = vmatpush3.msra.mxu1 %v314_v46  ;;  %v3750_v11 = vadd.f32 %v3748_v7, %v3746_v24  ;;  %v3769_v45 = vadd.f32 0.001999231, %v3767_v22 }
 0x7d5   :  { %4011 = vmatprep.subr.mxu1 %v8580_v37 }
 0x7d6   :  { %4012 = vmatpush3.msra.mxu1 %v313_v39 }
 0x7d7   :  { %4013 = vmatprep.subr.mxu1 %v8580_v37 }
 0x7d8   :  { %4014 = vmatpush3.msra.mxu1 %v312_v61  ;;  %v3752_v61 = vadd.f32 0.001999231, %v3750_v11 }
 0x7d9   :  { %4015 = vmatprep.subr.mxu1 %v8580_v37 }
 0x7da   :  { %4016 = vmatpush3.msra.mxu1 %v311_v34  ;;  %4209 = vrcp.f32 %v3752_v61 }
 0x7db   :  { %4017 = vmatprep.subr.mxu1 %v8580_v37  ;;  %4211 = vrcp.f32 %v3751_v28 }
 0x7dc   :  { %4018 = vmatpush3.msra.mxu1 %v310_v50  ;;  %4213 = vrcp.f32 %v3769_v45 }
 0x7dd   :  { %4019 = vmatprep.subr.mxu1 %v8580_v37  ;;  %v3415_v37 = vmul.f32 0.17, %v4667_v21  ;;  %v3273_v21 = vsub.s32 0, %v3272_v32 }
 0x7de   :  { %4020 = vmatpush3.msra.mxu1 %v309_v59  ;;  %v8238_v59 = vmul.f32 %v8227_v20, %v8227_v20 }
 0x7df   :  { %v8225_v33 = vadd.f32 %v3415_v37, %v3411_v44 }
 0x7e1   :  { %v8234_v50 = vmul.f32 %v8225_v33, %v8225_v33 }
 0x868   :  { %v2450_v62 = vpop.f32.mrf.mxu0 }
 0x86a   :  { %v2373_v47 = vpop.f32.mrf.mxu1  ;;  %v2452_v0 = vpop.f32.mrf.mxu0 }
 0x86b   :  { %v2451_v46 = vadd.f32 %v2450_v62, %v2373_v47 }
 0x86c   :  { %v2375_v3 = vpop.f32.mrf.mxu1  ;;  %v2456_v2 = vpop.f32.mrf.mxu0 }
 0x86d   :  { %v2453_v16 = vadd.f32 %v2452_v0, %v2375_v3  ;;  %v2473_v25 = vmul.f32 %v2451_v46, %v2451_v46  ;;  %v3757_v46 = vmul.f32 2.0, %v8207_v10 }
 0x86e   :  { %v2379_v39 = vpop.f32.mrf.mxu1  ;;  %v2458_v49 = vpop.f32.mrf.mxu0 }
 0x86f   :  { %v2474_v29 = vmul.f32 %v2453_v16, %v2453_v16  ;;  %v8230_v5 = vadd.f32 %v2473_v25, %v7246_v57  ;;  %v2457_v48 = vadd.f32 %v2456_v2, %v2379_v39 }
 0x870   :  { %v2381_v15 = vpop.f32.mrf.mxu1  ;;  %v3118_v42 = vpop.f32.mrf.mxu0 }
 0x871   :  { %v2459_v34 = vadd.f32 %v2458_v49, %v2381_v15  ;;  %v8241_v51 = vadd.f32 %v2474_v29, %v7252_v36  ;;  %4215 = vrsqrt.f32 %v8230_v5  ;;  %v2475_v62 = vmul.f32 %v2457_v48, %v2457_v48 }
 0x872   :  { %v3044_v19 = vpop.f32.mrf.mxu1  ;;  %v3120_v31 = vpop.f32.mrf.mxu0  ;;  %v3286_v13 = vrot.slane %v3118_v42, %v3273_v21  ;;  %vm2483_vm4 = vcmp.eq.f32.partialorder %v8230_v5, inf  ;;  %vm2485_vm12 = vcmp.eq.f32.partialorder %v8230_v5, 0.0 }
 0x873   :  { %v3274_v40 = vrot.slane %v3044_v19, %v3273_v21  ;;  %v2476_v56 = vmul.f32 %v2459_v34, %v2459_v34  ;;  %4217 = vrsqrt.f32 %v8241_v51  ;;  %v8254_v11 = vadd.f32 %v2475_v62, %v7256_v14 }
 0x874   :  { %v3046_v12 = vpop.f32.mrf.mxu1  ;;  %v3759_v62 = vmul.f32 %v3757_v46, %v8209_v18  ;;  %v3758_v18 = vmul.f32 2.0, %v8227_v20  ;;  %vm2490_vm13 = vcmp.eq.f32.partialorder %v8241_v51, inf  ;;  %vm2492_vm15 = vcmp.eq.f32.partialorder %v8241_v51, 0.0 }
 0x875   :  { %v3266_v6 = vpop.f32.mrf.mxu0  ;;  %v3279_v57 = vsub.f32 %v8822_v17, %v3274_v40  ;;  %v3281_v7 = vsub.f32 %v8821_v52, %v3274_v40  ;;  %v3278_v24 = vrot.slane %v3046_v12, %v3273_v21  ;;  %v3290_v17 = vrot.slane %v3120_v31, %v3273_v21 }
 0x876   :  { %v3310_v52 = vrot.slane %v3266_v6, %v3273_v21  ;;  %4219 = vrsqrt.f32 %v8254_v11  ;;  %vm2497_vm14 = vcmp.eq.f32.partialorder %v8254_v11, inf  ;;  %vm2499_vm1 = vcmp.eq.f32.partialorder %v8254_v11, 0.0 }
 0x877   :  { %v3192_v60 = vpop.f32.mrf.mxu1  ;;  %v3280_v47 = vsub.f32 %v8848_v9, %v3278_v24  ;;  %v3282_v36 = vsub.f32 %v8847_v35, %v3278_v24  ;;  %v3268_v38 = vpop.f32.mrf.mxu0  ;;  %v3291_v44 = vmul.f32 %v3286_v13, %v3279_v57  ;;  %v3293_v37 = vmul.f32 %v3286_v13, %v3281_v7 }
 0x878   :  { %v3298_v0 = vrot.slane %v3192_v60, %v3273_v21  ;;  %v8257_v35 = vadd.f32 %v2476_v56, %v7260_v23  ;;  %v3314_v9 = vrot.slane %v3268_v38, %v3273_v21 }
 0x879   :  { %v3194_v8 = vpop.f32.mrf.mxu1  ;;  %v3292_v2 = vmul.f32 %v3290_v17, %v3280_v47  ;;  %v3294_v1 = vmul.f32 %v3290_v17, %v3282_v36  ;;  %v3319_v22 = vmul.f32 %v3291_v44, %v3291_v44  ;;  %v3321_v14 = vmul.f32 %v3293_v37, %v3293_v37 }
 0x87a   :  { %v3303_v30 = vsub.f32 %v7022_v54, %v3298_v0  ;;  %v3305_v55 = vsub.f32 %v7018_v41, %v3298_v0  ;;  %v3302_v3 = vrot.slane %v3194_v8, %v3273_v21  ;;  %4221 = vrsqrt.f32 %v8257_v35 }
 0x87b   :  { %v3320_v19 = vmul.f32 %v3292_v2, %v3292_v2  ;;  %v3322_v31 = vmul.f32 %v3294_v1, %v3294_v1  ;;  %v3740_v47 = vmul.f32 2.0, %v8193_v43  ;;  %v3768_v36 = vadd.f32 %v8234_v50, %v8238_v59 }
 0x87c   :  { %v3315_v32 = vmul.f32 %v3310_v52, %v3303_v30  ;;  %v3317_v16 = vmul.f32 %v3310_v52, %v3305_v55  ;;  %v3567_v26 = vpop.f32.mrf.mxu1  ;;  %v3650_v10 = vpop.f32.mrf.mxu0  ;;  %v3304_v39 = vsub.f32 %v7020_v27, %v3302_v3  ;;  %v3306_v54 = vsub.f32 %v6994_v63, %v3302_v3 }
 0x87d   :  { %v3661_v49 = vmul.f32 %v3567_v26, %v3567_v26  ;;  %v3665_v41 = vmul.f32 %v3650_v10, %v3650_v10  ;;  %v3741_v27 = vmul.f32 %v3739_v4, %v8201_v58  ;;  %v8266_v63 = vpop.eup %4209  ;;  %v3742_v50 = vmul.f32 %v3740_v47, %v8191_v53  ;;  %v303_v47 = vld [vmem:[%s8900_s1 + $0x10] sm:$0xff] }
 0x87e   :  { %v3323_v25 = vmul.f32 %v3315_v32, %v3315_v32  ;;  %v3325_v61 = vmul.f32 %v3317_v16, %v3317_v16  ;;  %v3316_v23 = vmul.f32 %v3314_v9, %v3304_v39  ;;  %v3318_v15 = vmul.f32 %v3314_v9, %v3306_v54  ;;  %v3569_v28 = vpop.f32.mrf.mxu1  ;;  %v3652_v34 = vpop.f32.mrf.mxu0 }
 0x87f   :  { %v8262_v42 = vadd.f32 %v3665_v41, %v3661_v49  ;;  %v4212_v40 = vpop.eup %4211  ;;  %v3662_v4 = vmul.f32 %v3569_v28, %v3569_v28  ;;  %v3743_v52 = vadd.f32 0.001999231, %v3741_v27  ;;  %v3666_v30 = vmul.f32 %v3652_v34, %v3652_v34 }
 0x880   :  { %v3327_v21 = vadd.f32 %v3323_v25, %v3319_v22  ;;  %v3329_v29 = vadd.f32 %v3325_v61, %v3321_v14  ;;  %v3324_v45 = vmul.f32 %v3316_v23, %v3316_v23  ;;  %v3326_v48 = vmul.f32 %v3318_v15, %v3318_v15  ;;  %v4214_v57 = vpop.eup %4213  ;;  %v3573_v13 = vpop.f32.mrf.mxu1 }
 0x881   :  { %4223 = vrsqrt.f32 %v8262_v42  ;;  %v4216_v56 = vpop.eup %4215  ;;  %v3656_v17 = vpop.f32.mrf.mxu0  ;;  %v3761_v9 = vadd.f32 0.001999231, %v3759_v62  ;;  %v8274_v3 = vadd.f32 %v3666_v30, %v3662_v4  ;;  %v3663_v43 = vmul.f32 %v3573_v13, %v3573_v13  ;;  %v302_v30 = vld [vmem:[%s8900_s1 + $0x8] sm:$0xff] }
 0x882   :  { %v3331_v12 = vsub.f32 0.0, %v3327_v21  ;;  %v3333_v6 = vsub.f32 0.0, %v3329_v29  ;;  %v3328_v7 = vadd.f32 %v3324_v45, %v3320_v19  ;;  %v3330_v24 = vadd.f32 %v3326_v48, %v3322_v31  ;;  %v4218_v8 = vpop.eup %4217  ;;  %v3575_v2 = vpop.f32.mrf.mxu1 }
 0x883   :  { %v3667_v32 = vmul.f32 %v3656_v17, %v3656_v17  ;;  %v3658_v16 = vpop.f32.mrf.mxu0  ;;  %v3770_v26 = vadd.f32 0.001999231, %v3768_v36  ;;  %v3754_v10 = vmul.f32 %v4212_v40, %v3743_v52  ;;  %v3664_v39 = vmul.f32 %v3575_v2, %v3575_v2  ;;  %v4220_v49 = vpop.eup %4219 }
 0x884   :  { %v3336_v60 = vmul.f32 1000000.0, %v3331_v12  ;;  %v3338_v58 = vmul.f32 1000000.0, %v3333_v6  ;;  %v3332_v0 = vsub.f32 0.0, %v3328_v7  ;;  %v3334_v38 = vsub.f32 0.0, %v3330_v24 }
 0x885   :  { %v8278_v20 = vadd.f32 %v3667_v32, %v3663_v43  ;;  %v3760_v54 = vmul.f32 %v3758_v18, %v8225_v33  ;;  %v3668_v41 = vmul.f32 %v3658_v16, %v3658_v16  ;;  %v3744_v22 = vadd.f32 0.001999231, %v3742_v50  ;;  %v304_v43 = vld [vmem:[%s8900_s1 + $0x18] sm:$0xff] }
 0x886   :  { %v3340_v44 = vmul.f32 1.442695, %v3336_v60  ;;  %v3344_v37 = vmul.f32 1.442695, %v3338_v58  ;;  %v3337_v46 = vmul.f32 1000000.0, %v3332_v0  ;;  %v3772_v53 = vmul.f32 %v4214_v57, %v3761_v9 }
 0x887   :  { %v3339_v55 = vmul.f32 1000000.0, %v3334_v38  ;;  %v4222_v14 = vpop.eup %4221  ;;  %v2482_v25 = vmul.f32 %v4216_v56, %v8230_v5  ;;  %v2489_v61 = vmul.f32 %v4218_v8, %v8241_v51  ;;  %v8284_v23 = vadd.f32 %v3668_v41, %v3664_v39  ;;  %v301_v58 = vld [vmem:[%s8900_s1] sm:$0xff] }
 0x888   :  { %4225 = vpow2.f32 %v3340_v44  ;;  %v3342_v59 = vmul.f32 1.442695, %v3337_v46  ;;  %v2496_v15 = vmul.f32 %v4220_v49, %v8254_v11  ;;  %v8287_v21 = vadd.f32 0.001999231, %v3760_v54 }
 0x889   :  { %4227 = vpow2.f32 %v3344_v37  ;;  %v3346_v1 = vmul.f32 1.442695, %v3339_v55  ;;  %v2503_v29 = vmul.f32 %v4222_v14, %v8257_v35  ;;  %v8292_v28 = vmul.f32 %v8266_v63, %v3744_v22 }
 0x88a   :  { %4229 = vrsqrt.f32 %v8274_v3  ;;  %v8294_v27 = vmul.f32 %v3772_v53, %v3754_v10  ;;  %v2486_v19 = vand.u32 2147483648, %v8230_v5  ;;  %v2484_v31 = vsel %vm2483_vm4, %v8230_v5, %v2482_v25 }
 0x88b   :  { %4231 = vpow2.f32 %v3342_v59  ;;  %v2491_v45 = vsel %vm2490_vm13, %v8241_v51, %v2489_v61  ;;  %v2498_v63 = vsel %vm2497_vm14, %v8254_v11, %v2496_v15  ;;  %v2493_v48 = vand.u32 2147483648, %v8241_v51 }
 0x88c   :  { %4233 = vpow2.f32 %v3346_v1  ;;  %vm2504_vm0 = vcmp.eq.f32.partialorder %v8257_v35, inf  ;;  %v2500_v40 = vand.u32 2147483648, %v8254_v11  ;;  %vm2506_vm2 = vcmp.eq.f32.partialorder %v8257_v35, 0.0 }
 0x88d   :  { %4235 = vrsqrt.f32 %v8278_v20  ;;  %v2505_v12 = vsel %vm2504_vm0, %v8257_v35, %v2503_v29  ;;  %v2487_v57 = vsel %vm2485_vm12, %v2486_v19, %v2484_v31  ;;  %v2494_v7 = vsel %vm2492_vm15, %v2493_v48, %v2491_v45 }
 0x88e   :  { %4237 = vrcp.f32 %v3770_v26  ;;  %v4224_v33 = vpop.eup %4223  ;;  %v2507_v24 = vand.u32 2147483648, %v8257_v35  ;;  %vm3675_vm3 = vcmp.eq.f32.partialorder %v8262_v42, inf  ;;  %v2501_v62 = vsel %vm2499_vm1, %v2500_v40, %v2498_v63 }
 0x88f   :  { %4239 = vrsqrt.f32 %v8284_v23  ;;  %v3674_v34 = vmul.f32 %v4224_v33, %v8262_v42  ;;  %vm3677_vm5 = vcmp.eq.f32.partialorder %v8262_v42, 0.0  ;;  %v3678_v11 = vand.u32 2147483648, %v8262_v42 }
 0x890   :  { %v2508_v5 = vsel %vm2506_vm2, %v2507_v24, %v2505_v12  ;;  %vm3682_vm6 = vcmp.eq.f32.partialorder %v8274_v3, inf  ;;  %vm3684_vm7 = vcmp.eq.f32.partialorder %v8274_v3, 0.0  ;;  %v3685_v38 = vand.u32 2147483648, %v8274_v3 }
 0x891   :  { %v3676_v13 = vsel %vm3675_vm3, %v8262_v42, %v3674_v34  ;;  %vm3689_vm8 = vcmp.eq.f32.partialorder %v8278_v20, inf  ;;  %vm3691_vm9 = vcmp.eq.f32.partialorder %v8278_v20, 0.0  ;;  %v3692_v42 = vand.u32 2147483648, %v8278_v20 }
 0x892   :  { %v3679_v46 = vsel %vm3677_vm5, %v3678_v11, %v3676_v13  ;;  %vm3696_vm10 = vcmp.eq.f32.partialorder %v8284_v23, inf  ;;  %v3699_v53 = vand.u32 2147483648, %v8284_v23  ;;  %vm3698_vm11 = vcmp.eq.f32.partialorder %v8284_v23, 0.0 }
 0x893   :  { %v3727_v54 = vmul.f32 %v3679_v46, %v3679_v46  ;;  %vm3799_vm4 = vcmp.ge.f32.partialorder %v8294_v27, 0.0  ;;  %vm3827_vm15 = vcmask 1040384   ;;  %vm3904_vm0 = vcmask 57344  }
 0x895   :  { %v4226_v6 = vpop.eup %4225 }
 0x896   :  { %v4228_v51 = vpop.eup %4227  ;;  %v3348_v56 = vsub.f32 1.0, %v4226_v6 }
 0x897   :  { %v4230_v60 = vpop.eup %4229  ;;  %v3350_v4 = vsub.f32 1.0, %v4228_v51 }
 0x898   :  { %v4232_v35 = vpop.eup %4231  ;;  %v3352_v36 = vmul.f32 %v3348_v56, %v2487_v57  ;;  %v3681_v0 = vmul.f32 %v4230_v60, %v8274_v3  ;;  %v3777_v56 = vand.u32 2147483647, %v8294_v27  ;;  %v3721_v60 = vmul.f32 2.0, %v3679_v46 }
 0x899   :  { %v4234_v17 = vpop.eup %4233  ;;  %v3354_v52 = vmul.f32 %v3350_v4, %v2501_v62  ;;  %v3349_v8 = vsub.f32 1.0, %v4232_v35 }
 0x89a   :  { %v4236_v44 = vpop.eup %4235  ;;  %v3356_v37 = vmul.f32 %v3352_v36, %v301_v58  ;;  %v3351_v18 = vsub.f32 1.0, %v4234_v17  ;;  %v3683_v55 = vsel %vm3682_vm6, %v8274_v3, %v3681_v0  ;;  %vm3805_vm12 = vcmp.gt.f32.partialorder %v3777_v56, 0.0 }
 0x89b   :  { %v3358_v9 = vmul.f32 %v3354_v52, %v303_v47  ;;  %v3353_v2 = vmul.f32 %v3349_v8, %v2494_v7  ;;  %v3686_v50 = vsel %vm3684_vm7, %v3685_v38, %v3683_v55  ;;  %v3688_v59 = vmul.f32 %v4236_v44, %v8278_v20  ;;  %v4238_v1 = vpop.eup %4237 }
 0x89c   :  { %v3703_v32 = vmul.f32 2.0, %v3356_v37  ;;  %v3355_v16 = vmul.f32 %v3351_v18, %v2508_v5  ;;  %v4240_v26 = vpop.eup %4239  ;;  %v3729_v49 = vmul.f32 %v3686_v50, %v3686_v50  ;;  %v3709_v14 = vmul.f32 %v3356_v37, %v3356_v37 }
 0x89d   :  { %v3704_v10 = vmul.f32 2.0, %v3358_v9  ;;  %v3357_v39 = vmul.f32 %v3353_v2, %v302_v30  ;;  %v3690_v3 = vsel %vm3689_vm8, %v8278_v20, %v3688_v59  ;;  %v3695_v22 = vmul.f32 %v4240_v26, %v8284_v23 }
 0x89e   :  { %v3359_v41 = vmul.f32 %v3355_v16, %v304_v43  ;;  %v3731_v15 = vadd.f32 %v3729_v49, %v3727_v54  ;;  %v3710_v33 = vmul.f32 %v3358_v9, %v3358_v9  ;;  %v3693_v31 = vsel %vm3691_vm9, %v3692_v42, %v3690_v3 }
 0x89f   :  { %v3705_v25 = vmul.f32 %v3703_v32, %v3357_v39  ;;  %v3711_v61 = vmul.f32 %v3357_v39, %v3357_v39  ;;  %v3697_v48 = vsel %vm3696_vm10, %v8284_v23, %v3695_v22  ;;  %v8358_v12 = vmax.f32 %v3356_v37, %v3357_v39 }
 0x8a0   :  { %v3706_v29 = vmul.f32 %v3704_v10, %v3359_v41  ;;  %v3712_v19 = vmul.f32 %v3359_v41, %v3359_v41  ;;  %v3733_v63 = vadd.f32 0.0059361784, %v3731_v15  ;;  %v3700_v40 = vsel %vm3698_vm11, %v3699_v53, %v3697_v48 }
 0x8a1   :  { %v3713_v45 = vadd.f32 %v3711_v61, %v3709_v14  ;;  %v3774_v6 = vmul.f32 %v4238_v1, %v8287_v21  ;;  %v3728_v7 = vmul.f32 %v3693_v31, %v3693_v31  ;;  %v3730_v24 = vmul.f32 %v3700_v40, %v3700_v40 }
 0x8a2   :  { %v3714_v34 = vadd.f32 %v3712_v19, %v3710_v33  ;;  %4241 = vrcp.f32 %v3733_v63  ;;  %v8361_v51 = vmax.f32 %v3358_v9, %v3359_v41  ;;  %v3779_v21 = vmax.f32 %v3777_v56, 1e-30 }
 0x8a3   :  { %v3715_v57 = vadd.f32 1.27, %v3713_v45  ;;  %v3732_v62 = vadd.f32 %v3730_v24, %v3728_v7  ;;  %v3776_v23 = vmul.f32 %v3774_v6, %v8292_v28  ;;  %v3723_v5 = vmul.f32 %v3721_v60, %v3686_v50 }
 0x8a4   :  { %v3716_v20 = vadd.f32 1.27, %v3714_v34  ;;  %v3820_v11 = vadd.f32 %v8361_v51, %v8358_v12  ;;  %v3722_v13 = vmul.f32 2.0, %v3693_v31  ;;  %v3707_v0 = vadd.f32 1.27, %v3705_v25 }
 0x8a5   :  { %4243 = vrcp.f32 %v3715_v57  ;;  %v3734_v58 = vadd.f32 0.0059361784, %v3732_v62  ;;  %v3778_v4 = vand.u32 2147483647, %v3776_v23  ;;  %v3725_v47 = vadd.f32 0.0059361784, %v3723_v5 }
 0x8a6   :  { %4245 = vrcp.f32 %v3716_v20  ;;  %v3724_v17 = vmul.f32 %v3722_v13, %v3700_v40  ;;  %v3708_v8 = vadd.f32 1.27, %v3706_v29  ;;  %v4675_v3 = vmov 0.9980267  }
 0x8a7   :  { %4247 = vrcp.f32 %v3734_v58  ;;  %v3780_v35 = vmax.f32 %v3778_v4, 1e-30  ;;  %v3801_v22 = vsel %vm3799_vm4, 1.0, %v4675_v3  ;;  %vm3800_vm13 = vcmp.ge.f32.partialorder %v3776_v23, 0.0 }
 0x8a8   :  { %4249 = vlog2.f32 %v3779_v21  ;;  %v3726_v30 = vadd.f32 0.0059361784, %v3724_v17  ;;  %v3802_v61 = vsel %vm3800_vm13, 1.0, %v4675_v3  ;;  %vm3806_vm14 = vcmp.gt.f32.partialorder %v3778_v4, 0.0 }
 0x8a9   :  { %4251 = vlog2.f32 %v3780_v35  ;;  %v3821_v19 = vrot.slane %v3820_v11, 4 }
 0x8ab   :  { %v3822_v48 = vadd.f32 %v3821_v19, %v3820_v11 }
 0x8ad   :  { %v3823_v40 = vrot.slane %v3822_v48, 2 }
 0x8af   :  { %v4242_v36 = vpop.eup %4241  ;;  %v3824_v7 = vadd.f32 %v3823_v40, %v3822_v48 }
 0x8b0   :  { %v3736_v38 = vmul.f32 %v4242_v36, %v3725_v47 }
 0x8b1   :  { %v3825_v62 = vrot.slane %v3824_v7, 1 }
 0x8b2   :  { %v4244_v52 = vpop.eup %4243  ;;  %4253 = vlog2.f32 %v3736_v38 }
 0x8b3   :  { %v4246_v28 = vpop.eup %4245  ;;  %v3718_v44 = vmul.f32 %v4244_v52, %v3707_v0  ;;  %v3826_v60 = vadd.f32 %v3825_v62, %v3824_v7 }
 0x8b4   :  { %v3720_v37 = vmul.f32 %v4246_v28, %v3708_v8  ;;  %v4248_v18 = vpop.eup %4247 }
 0x8b5   :  { %v3738_v46 = vmul.f32 %v4248_v18, %v3726_v30  ;;  %v4250_v55 = vpop.eup %4249 }
 0x8b6   :  { %v3782_v9 = vmul.f32 0.6931472, %v4250_v55  ;;  %v4252_v43 = vpop.eup %4251 }
 0x8b7   :  { %4255 = vlog2.f32 %v3738_v46  ;;  %v3784_v32 = vmul.f32 0.6931472, %v4252_v43 }
 0x8b8   :  { %v3785_v59 = vmul.f32 0.02, %v3782_v9 }
 0x8b9   :  { %v3786_v10 = vmul.f32 0.02, %v3784_v32 }
 0x8bf   :  { %v4254_v2 = vpop.eup %4253 }
 0x8c0   :  { %v3788_v50 = vmul.f32 0.6931472, %v4254_v2 }
 0x8c2   :  { %v3791_v1 = vmul.f32 0.4, %v3788_v50 }
 0x8c4   :  { %v3793_v16 = vadd.f32 %v3791_v1, %v3785_v59  ;;  %v4256_v42 = vpop.eup %4255 }
 0x8c5   :  { %v3790_v26 = vmul.f32 0.6931472, %v4256_v42 }
 0x8c6   :  { %v3795_v39 = vmul.f32 1.442695, %v3793_v16 }
 0x8c7   :  { %v3792_v54 = vmul.f32 0.4, %v3790_v26 }
 0x8c8   :  { %4257 = vpow2.f32 %v3795_v39 }
 0x8c9   :  { %v3794_v49 = vadd.f32 %v3792_v54, %v3786_v10 }
 0x8cb   :  { %v3797_v41 = vmul.f32 1.442695, %v3794_v49 }
 0x8cd   :  { %4259 = vpow2.f32 %v3797_v41 }
 0x8d5   :  { %v4258_v53 = vpop.eup %4257 }
 0x8d6   :  { %v3803_v14 = vmul.f32 %v4258_v53, %v3801_v22 }
 0x8d8   :  { %v3807_v25 = vsel %vm3805_vm12, %v3803_v14, 0.0 }
 0x8d9   :  { %v3809_v15 = vmul.f32 %v3807_v25, %v3718_v44 }
 0x8da   :  { %v4260_v33 = vpop.eup %4259 }
 0x8db   :  { %v3811_v29 = vmul.f32 %v3809_v15, %v8358_v12  ;;  %v3804_v31 = vmul.f32 %v4260_v33, %v3802_v61 }
 0x8dd   :  { %v3808_v45 = vsel %vm3806_vm14, %v3804_v31, 0.0 }
 0x8de   :  { %v3810_v63 = vmul.f32 %v3808_v45, %v3720_v37 }
 0x8e0   :  { %v3812_v27 = vmul.f32 %v3810_v63, %v8361_v51 }
 0x8e2   :  { %v3813_v34 = vadd.f32 %v3812_v27, %v3811_v29 }
 0x8e4   :  { %v3814_v6 = vrot.slane %v3813_v34, 4 }
 0x8e6   :  { %v3815_v57 = vadd.f32 %v3814_v6, %v3813_v34 }
 0x8e8   :  { %v3816_v24 = vrot.slane %v3815_v57, 2 }
 0x8ea   :  { %v3817_v20 = vadd.f32 %v3816_v24, %v3815_v57 }
 0x8ec   :  { %v3818_v56 = vrot.slane %v3817_v20, 1 }
 0x8ee   :  { %v3819_v23 = vadd.f32 %v3818_v56, %v3817_v20 }
 0x8f0   :  { %v3828_v12 = vsel %vm3827_vm15, %v3819_v23, %v3826_v60 }
 0x8f1   :  { %4022 = vmatmul.mubr.f32.vlgmr.msra.gmra.mxu1 %v3828_v12 }
 0x9b1   :  { %v3895_v58 = vpop.f32.mrf.mxu1 }
 0x9b2   :  { %v3900_v21 = vrot.slane %v3895_v58, 1 }
 0x9b3   :  { %v4023_v4 = vpop.f32.mrf.mxu1 }
 0x9b4   :  { %4261 = vrcp.f32 %v3900_v21 }
 0x9c1   :  { %v4262_v11 = vpop.eup %4261 }
 0x9c2   :  { %v3903_v51 = vmul.f32 %v4262_v11, %v3895_v58 }
 0x9c4   :  { %3905 = vst.msk [vmem:[%s8901_s2] sm:$0x1] %vm3904_vm0, %v3903_v51 }

</bundles_post_ra>
